<compile_context>
chip_gen: v5e
topology: v5e:2x2
jax: 0.10.0
libtpu: 0.0.40
codegen_flags: <defaults>
</compile_context>

<pallas_src>
import functools

import jax
import jax.numpy as jnp
from jax.experimental import pallas as pl
from jax.experimental.pallas import tpu as pltpu

_PADL = 8  # sublane-aligned left offset of the data inside the halo scratch


def _pick_tiles(H, W, C, block_h=None, block_c=None):
    """Choose (row tile TH, channel tile TN) satisfying TPU layout rules."""
    if block_c is None:
        tn = 128 if C % 128 == 0 else C
    else:
        tn = block_c
    assert C % tn == 0 and (tn == C or tn % 128 == 0), (C, tn)

    if block_h is None:
        # Target ~256 accumulator rows per grid step (acc = (TH*W, 4*TN) f32).
        th = 1
        for cand in range(1, H + 1):
            if H % cand == 0 and cand * W <= 256:
                th = cand
    else:
        th = block_h
    assert H % th == 0, (H, th)
    return th, tn


def _pack_gate_params(params, C, nj, tn):
    """Pack [i, f, g, o] gate convs so that channel-tile j occupies a
    contiguous 4*tn slab of the output dim (gate-major inside the slab),
    split into the x-half and h-half of the input channels."""
    w4 = jnp.stack([params["wi"], params["wf"], params["wg"], params["wo"]],
                   axis=3)                                    # (3,3,2C,4,C)
    w4 = w4.reshape(3, 3, 2 * C, 4, nj, tn)
    w4 = jnp.transpose(w4, (0, 1, 2, 4, 3, 5))                # (3,3,2C,nj,4,tn)
    w4 = w4.reshape(3, 3, 2 * C, 4 * C).astype(jnp.bfloat16)
    wx, wh = w4[:, :, :C, :], w4[:, :, C:, :]                 # each (3,3,C,4C)

    b4 = jnp.stack([params["bi"], params["bf"], params["bg"], params["bo"]],
                   axis=0)                                    # (4, C)
    b4 = jnp.transpose(b4.reshape(4, nj, tn), (1, 0, 2)).reshape(1, 4 * C)
    return wx, wh, b4.astype(jnp.float32)


def lstm64_forward(params, x, h, c, *, block_h=None, block_c=None):
    """x, h, c: (B, H, W, C) NHWC float32.  Returns (h', c') NHWC float32."""
    B, H, W, C = x.shape
    th, tn = _pick_tiles(H, W, C, block_h, block_c)
    nj, nm = C // tn, H // th

    wx, wh, bias = _pack_gate_params(params, C, nj, tn)
    x_b = x.astype(jnp.bfloat16)
    h_b = h.astype(jnp.bfloat16)
    c_f = c.astype(jnp.float32)

    wpad = W + _PADL + 1  # [.. 7 zeros | 1 zero halo | data (W) | 1 zero halo]

    def kernel(x_ref, h_ref, c_ref, wx_ref, wh_ref, b_ref,
               h_out_ref, c_out_ref, xpad_ref, hpad_ref, acc_ref):
        m = pl.program_id(2)

        # Build the zero-padded halo slabs once per (batch, channel-tile);
        # reused across the sequential spatial-row axis.  Data is written at a
        # sublane-aligned column offset so the stores are unmasked.
        @pl.when(m == 0)
        def _fill_halo():
            xpad_ref[...] = jnp.zeros_like(xpad_ref)
            hpad_ref[...] = jnp.zeros_like(hpad_ref)
            xpad_ref[pl.ds(1, H), pl.ds(_PADL, W), :] = (
                x_ref[0].astype(jnp.float32))
            hpad_ref[pl.ds(1, H), pl.ds(_PADL, W), :] = (
                h_ref[0].astype(jnp.float32))

        row0 = m * th

        # Fused gate pre-activations for this (row tile, channel tile):
        # acc = sum over the 9 taps of patch @ W_tap, in a f32 VMEM scratch.
        acc_ref[...] = jnp.zeros_like(acc_ref)
        for ky in range(3):
            for kx in range(3):
                xp = xpad_ref[pl.ds(row0 + ky, th),
                              pl.ds(_PADL - 1 + kx, W), :]
                hp = hpad_ref[pl.ds(row0 + ky, th),
                              pl.ds(_PADL - 1 + kx, W), :]
                xp = xp.reshape(th * W, C).astype(jnp.bfloat16)
                hp = hp.reshape(th * W, C).astype(jnp.bfloat16)
                acc_ref[...] += (
                    jnp.dot(xp, wx_ref[ky, kx],
                            preferred_element_type=jnp.float32)
                    + jnp.dot(hp, wh_ref[ky, kx],
                              preferred_element_type=jnp.float32))

        z = acc_ref[...] + b_ref[...]        # (th*W, 4*tn), gate order i,f,g,o
        i_g = jax.nn.sigmoid(z[:, 0 * tn:1 * tn])
        f_g = jax.nn.sigmoid(z[:, 1 * tn:2 * tn])
        g_g = jnp.tanh(z[:, 2 * tn:3 * tn])
        o_g = jax.nn.sigmoid(z[:, 3 * tn:4 * tn])

        c_old = c_ref[0].reshape(th * W, tn)
        c_new = f_g * c_old + i_g * g_g
        h_new = o_g * jnp.tanh(c_new)

        h_out_ref[0] = h_new.reshape(th, W, tn).astype(h_out_ref.dtype)
        c_out_ref[0] = c_new.reshape(th, W, tn).astype(c_out_ref.dtype)

    state_spec = pl.BlockSpec((1, th, W, tn), lambda b, j, m: (b, m, 0, j))
    full_spec = pl.BlockSpec((1, H, W, C), lambda b, j, m: (b, 0, 0, 0))
    w_spec = pl.BlockSpec((3, 3, C, 4 * tn), lambda b, j, m: (0, 0, 0, j))

    h_new, c_new = pl.pallas_call(
        kernel,
        out_shape=(jax.ShapeDtypeStruct((B, H, W, C), jnp.float32),
                   jax.ShapeDtypeStruct((B, H, W, C), jnp.float32)),
        grid=(B, nj, nm),
        in_specs=[
            full_spec,                                          # x (bf16)
            full_spec,                                          # h (bf16)
            state_spec,                                         # c (f32)
            w_spec,                                             # w_x (bf16)
            w_spec,                                             # w_h (bf16)
            pl.BlockSpec((1, 4 * tn), lambda b, j, m: (0, j)),  # bias (f32)
        ],
        out_specs=(state_spec, state_spec),                     # h', c'
        scratch_shapes=[
            pltpu.VMEM((H + 2, wpad, C), jnp.float32),          # padded x halo
            pltpu.VMEM((H + 2, wpad, C), jnp.float32),          # padded h halo
            pltpu.VMEM((th * W, 4 * tn), jnp.float32),          # gate accum
        ],
        input_output_aliases={2: 1},                            # c -> c' in place
        compiler_params=pltpu.CompilerParams(
            dimension_semantics=("parallel", "parallel", "arbitrary"),
            vmem_limit_bytes=64 * 1024 * 1024),
    )(x_b, h_b, c_f, wx, wh, bias)
    return h_new, c_new


# -----------------------------------------------------------------------------
# Deterministic parameter init (PyTorch-like uniform fan-in scaling) and a
# pure-JAX reference of the LSTM64 forward for a correctness check.
# -----------------------------------------------------------------------------
def init_params(key, n_feats):
    C = n_feats
    bound = float(2 * C * 9) ** -0.5
    keys = jax.random.split(key, 4)
    p = {}
    for name, k in zip("ifgo", keys):
        kw, kb = jax.random.split(k)
        p["w" + name] = jax.random.uniform(
            kw, (3, 3, 2 * C, C), jnp.float32, -bound, bound)   # HWIO
        p["b" + name] = jax.random.uniform(
            kb, (C,), jnp.float32, -bound, bound)
    return p


def lstm64_reference(params, x, h, c):
    """Pure-JAX f32 reference of the PyTorch LSTM64 forward (NHWC)."""
    xh = jnp.concatenate([x, h], axis=-1)

    def conv(w, b):
        y = jax.lax.conv_general_dilated(
            xh, w, window_strides=(1, 1), padding="SAME",
            dimension_numbers=("NHWC", "HWIO", "NHWC"),
            precision=jax.lax.Precision.HIGHEST)
        return y + b.reshape(1, 1, 1, -1)

    i = jax.nn.sigmoid(conv(params["wi"], params["bi"]))
    f = jax.nn.sigmoid(conv(params["wf"], params["bf"]))
    g = jnp.tanh(conv(params["wg"], params["bg"]))
    o = jax.nn.sigmoid(conv(params["wo"], params["bo"]))
    c_new = f * c + i * g
    h_new = o * jnp.tanh(c_new)
    return h_new, c_new


if __name__ == "__main__":
    n_feats = 64            # "LSTM64"
    B, H, W = 2, 16, 16
    C = n_feats

    key = jax.random.PRNGKey(0)
    kx, kh, kc, kp = jax.random.split(key, 4)

    # PyTorch-style NCHW inputs.
    x_nchw = jax.random.normal(kx, (B, C, H, W), jnp.float32)
    h_nchw = jax.random.normal(kh, (B, C, H, W), jnp.float32)
    c_nchw = jax.random.normal(kc, (B, C, H, W), jnp.float32)
    params = init_params(kp, n_feats)

    # NCHW -> NHWC for the TPU kernel.
    x = jnp.transpose(x_nchw, (0, 2, 3, 1))
    h = jnp.transpose(h_nchw, (0, 2, 3, 1))
    c = jnp.transpose(c_nchw, (0, 2, 3, 1))

    # block_h=8 exercises the spatial-row tiling / halo-scratch reuse path.
    fwd = jax.jit(functools.partial(lstm64_forward, params, block_h=8))
    h_new, c_new = fwd(x, h, c)
    jax.block_until_ready((h_new, c_new))

    h_exp, c_exp = lstm64_reference(params, x, h, c)
    err = max(float(jnp.max(jnp.abs(h_new - h_exp))),
              float(jnp.max(jnp.abs(c_new - c_exp))))
    assert h_new.shape == (B, H, W, C) and c_new.shape == (B, H, W, C)
    assert err < 5e-2, f"max abs error too large: {err}"
    print("KERNEL_OK")
</pallas_src>

<mosaic_0001>
module attributes {stable_mosaic.version = 11 : i64} {
  func.func @kernel(%arg0: i32, %arg1: i32, %arg2: i32, %arg3: memref<1x16x16x64xbf16, #tpu.memory_space<vmem>>, %arg4: memref<1x16x16x64xbf16, #tpu.memory_space<vmem>>, %arg5: memref<1x8x16x64xf32, #tpu.memory_space<vmem>>, %arg6: memref<3x3x64x256xbf16, #tpu.memory_space<vmem>>, %arg7: memref<3x3x64x256xbf16, #tpu.memory_space<vmem>>, %arg8: memref<1x256xf32, #tpu.memory_space<vmem>>, %arg9: memref<1x8x16x64xf32, #tpu.memory_space<vmem>>, %arg10: memref<1x8x16x64xf32, #tpu.memory_space<vmem>>, %arg11: memref<18x25x64xf32, #tpu.memory_space<vmem>>, %arg12: memref<18x25x64xf32, #tpu.memory_space<vmem>>, %arg13: memref<128x256xf32, #tpu.memory_space<vmem>>) attributes {dimension_semantics = [#tpu.dimension_semantics<parallel>, #tpu.dimension_semantics<parallel>, #tpu.dimension_semantics<arbitrary>], iteration_bounds = array<i64: 2, 1, 2>, scalar_prefetch = 0 : i64, scratch_operands = 3 : i64, tpu.core_type = #tpu.core_type<tc>, window_params = [{transform_indices = @transform_0, window_bounds = array<i64: 1, 16, 16, 64>}, {transform_indices = @transform_1, window_bounds = array<i64: 1, 16, 16, 64>}, {transform_indices = @transform_2, window_bounds = array<i64: 1, 8, 16, 64>}, {transform_indices = @transform_3, window_bounds = array<i64: 3, 3, 64, 256>}, {transform_indices = @transform_4, window_bounds = array<i64: 3, 3, 64, 256>}, {transform_indices = @transform_5, window_bounds = array<i64: 1, 256>}, {transform_indices = @transform_6, window_bounds = array<i64: 1, 8, 16, 64>}, {transform_indices = @transform_7, window_bounds = array<i64: 1, 8, 16, 64>}]} {
    %c0_i32 = arith.constant 0 : i32
    %0 = arith.cmpi eq, %arg2, %c0_i32 : i32
    %1 = arith.extui %0 : i1 to i32
    %c0_i32_0 = arith.constant 0 : i32
    %2 = arith.cmpi ne, %1, %c0_i32_0 : i32
    scf.if %2 {
      %cst_194 = arith.constant 0.000000e+00 : f32
      %226 = vector.broadcast %cst_194 : f32 to vector<18x25x64xf32>
      %c0_195 = arith.constant 0 : index
      %c0_196 = arith.constant 0 : index
      %c0_197 = arith.constant 0 : index
      %227 = vector.load %arg11[%c0_195, %c0_196, %c0_197] : memref<18x25x64xf32, #tpu.memory_space<vmem>>, vector<18x25x64xf32>
      tpu.vector_store %arg11[%c0_195, %c0_196, %c0_197], %226 {strides = array<i32>} : memref<18x25x64xf32, #tpu.memory_space<vmem>>, vector<18x25x64xf32>,
      %cst_198 = arith.constant 0.000000e+00 : f32
      %228 = vector.broadcast %cst_198 : f32 to vector<18x25x64xf32>
      %c0_199 = arith.constant 0 : index
      %c0_200 = arith.constant 0 : index
      %c0_201 = arith.constant 0 : index
      %229 = vector.load %arg12[%c0_199, %c0_200, %c0_201] : memref<18x25x64xf32, #tpu.memory_space<vmem>>, vector<18x25x64xf32>
      tpu.vector_store %arg12[%c0_199, %c0_200, %c0_201], %228 {strides = array<i32>} : memref<18x25x64xf32, #tpu.memory_space<vmem>>, vector<18x25x64xf32>,
      %c0_202 = arith.constant 0 : index
      %c0_203 = arith.constant 0 : index
      %c0_204 = arith.constant 0 : index
      %c0_205 = arith.constant 0 : index
      %230 = vector.load %arg3[%c0_202, %c0_203, %c0_204, %c0_205] : memref<1x16x16x64xbf16, #tpu.memory_space<vmem>>, vector<1x16x16x64xbf16>
      %231 = vector.shape_cast %230 : vector<1x16x16x64xbf16> to vector<16x16x64xbf16>
      %232 = arith.extf %231 : vector<16x16x64xbf16> to vector<16x16x64xf32>
      %c1_206 = arith.constant 1 : index
      %c8_207 = arith.constant 8 : index
      %c0_208 = arith.constant 0 : index
      %233 = vector.load %arg11[%c1_206, %c8_207, %c0_208] : memref<18x25x64xf32, #tpu.memory_space<vmem>>, vector<16x16x64xf32>
      tpu.vector_store %arg11[%c1_206, %c8_207, %c0_208], %232 {strides = array<i32>} : memref<18x25x64xf32, #tpu.memory_space<vmem>>, vector<16x16x64xf32>,
      %c0_209 = arith.constant 0 : index
      %c0_210 = arith.constant 0 : index
      %c0_211 = arith.constant 0 : index
      %c0_212 = arith.constant 0 : index
      %234 = vector.load %arg4[%c0_209, %c0_210, %c0_211, %c0_212] : memref<1x16x16x64xbf16, #tpu.memory_space<vmem>>, vector<1x16x16x64xbf16>
      %235 = vector.shape_cast %234 : vector<1x16x16x64xbf16> to vector<16x16x64xbf16>
      %236 = arith.extf %235 : vector<16x16x64xbf16> to vector<16x16x64xf32>
      %c1_213 = arith.constant 1 : index
      %c8_214 = arith.constant 8 : index
      %c0_215 = arith.constant 0 : index
      %237 = vector.load %arg12[%c1_213, %c8_214, %c0_215] : memref<18x25x64xf32, #tpu.memory_space<vmem>>, vector<16x16x64xf32>
      tpu.vector_store %arg12[%c1_213, %c8_214, %c0_215], %236 {strides = array<i32>} : memref<18x25x64xf32, #tpu.memory_space<vmem>>, vector<16x16x64xf32>,
    } else {
    }
    %c8_i32 = arith.constant 8 : i32
    %3 = arith.muli %arg2, %c8_i32 : i32
    %cst = arith.constant 0.000000e+00 : f32
    %4 = vector.broadcast %cst : f32 to vector<128x256xf32>
    %c0 = arith.constant 0 : index
    %c0_1 = arith.constant 0 : index
    %5 = vector.load %arg13[%c0, %c0_1] : memref<128x256xf32, #tpu.memory_space<vmem>>, vector<128x256xf32>
    tpu.vector_store %arg13[%c0, %c0_1], %4 {strides = array<i32>} : memref<128x256xf32, #tpu.memory_space<vmem>>, vector<128x256xf32>,
    %c0_i32_2 = arith.constant 0 : i32
    %6 = arith.addi %3, %c0_i32_2 : i32
    %7 = arith.index_cast %6 : i32 to index
    %c7 = arith.constant 7 : index
    %c0_3 = arith.constant 0 : index
    %8 = vector.load %arg11[%7, %c7, %c0_3] : memref<18x25x64xf32, #tpu.memory_space<vmem>>, vector<8x16x64xf32>
    %c0_i32_4 = arith.constant 0 : i32
    %9 = arith.addi %3, %c0_i32_4 : i32
    %10 = arith.index_cast %9 : i32 to index
    %c7_5 = arith.constant 7 : index
    %c0_6 = arith.constant 0 : index
    %11 = vector.load %arg12[%10, %c7_5, %c0_6] : memref<18x25x64xf32, #tpu.memory_space<vmem>>, vector<8x16x64xf32>
    %12 = vector.shape_cast %8 : vector<8x16x64xf32> to vector<128x64xf32>
    %13 = arith.truncf %12 : vector<128x64xf32> to vector<128x64xbf16>
    %14 = vector.shape_cast %11 : vector<8x16x64xf32> to vector<128x64xf32>
    %15 = arith.truncf %14 : vector<128x64xf32> to vector<128x64xbf16>
    %c0_7 = arith.constant 0 : index
    %c0_8 = arith.constant 0 : index
    %16 = vector.load %arg13[%c0_7, %c0_8] : memref<128x256xf32, #tpu.memory_space<vmem>>, vector<128x256xf32>
    %c0_9 = arith.constant 0 : index
    %c0_10 = arith.constant 0 : index
    %c0_11 = arith.constant 0 : index
    %c0_12 = arith.constant 0 : index
    %17 = vector.load %arg6[%c0_9, %c0_10, %c0_11, %c0_12] : memref<3x3x64x256xbf16, #tpu.memory_space<vmem>>, vector<1x1x64x256xbf16>
    %18 = vector.shape_cast %17 : vector<1x1x64x256xbf16> to vector<64x256xbf16>
    %cst_13 = arith.constant dense<0.000000e+00> : vector<128x256xf32>
    %19 = tpu.matmul %13, %18, %cst_13 {dimension_numbers = #tpu.dot_dimension_numbers<[1], [0], [0], [1], [0, 0, 1, 1], [], []>} : vector<128x64xbf16>, vector<64x256xbf16>, vector<128x256xf32> -> vector<128x256xf32>
    %c0_14 = arith.constant 0 : index
    %c0_15 = arith.constant 0 : index
    %c0_16 = arith.constant 0 : index
    %c0_17 = arith.constant 0 : index
    %20 = vector.load %arg7[%c0_14, %c0_15, %c0_16, %c0_17] : memref<3x3x64x256xbf16, #tpu.memory_space<vmem>>, vector<1x1x64x256xbf16>
    %21 = vector.shape_cast %20 : vector<1x1x64x256xbf16> to vector<64x256xbf16>
    %cst_18 = arith.constant dense<0.000000e+00> : vector<128x256xf32>
    %22 = tpu.matmul %15, %21, %cst_18 {dimension_numbers = #tpu.dot_dimension_numbers<[1], [0], [0], [1], [0, 0, 1, 1], [], []>} : vector<128x64xbf16>, vector<64x256xbf16>, vector<128x256xf32> -> vector<128x256xf32>
    %23 = arith.addf %19, %22 : vector<128x256xf32>
    %24 = arith.addf %16, %23 : vector<128x256xf32>
    %c0_19 = arith.constant 0 : index
    %c0_20 = arith.constant 0 : index
    %25 = vector.load %arg13[%c0_19, %c0_20] : memref<128x256xf32, #tpu.memory_space<vmem>>, vector<128x256xf32>
    tpu.vector_store %arg13[%c0_19, %c0_20], %24 {strides = array<i32>} : memref<128x256xf32, #tpu.memory_space<vmem>>, vector<128x256xf32>,
    %c0_i32_21 = arith.constant 0 : i32
    %26 = arith.addi %3, %c0_i32_21 : i32
    %27 = arith.index_cast %26 : i32 to index
    %c8 = arith.constant 8 : index
    %c0_22 = arith.constant 0 : index
    %28 = vector.load %arg11[%27, %c8, %c0_22] : memref<18x25x64xf32, #tpu.memory_space<vmem>>, vector<8x16x64xf32>
    %c0_i32_23 = arith.constant 0 : i32
    %29 = arith.addi %3, %c0_i32_23 : i32
    %30 = arith.index_cast %29 : i32 to index
    %c8_24 = arith.constant 8 : index
    %c0_25 = arith.constant 0 : index
    %31 = vector.load %arg12[%30, %c8_24, %c0_25] : memref<18x25x64xf32, #tpu.memory_space<vmem>>, vector<8x16x64xf32>
    %32 = vector.shape_cast %28 : vector<8x16x64xf32> to vector<128x64xf32>
    %33 = arith.truncf %32 : vector<128x64xf32> to vector<128x64xbf16>
    %34 = vector.shape_cast %31 : vector<8x16x64xf32> to vector<128x64xf32>
    %35 = arith.truncf %34 : vector<128x64xf32> to vector<128x64xbf16>
    %c0_26 = arith.constant 0 : index
    %c0_27 = arith.constant 0 : index
    %36 = vector.load %arg13[%c0_26, %c0_27] : memref<128x256xf32, #tpu.memory_space<vmem>>, vector<128x256xf32>
    %c0_28 = arith.constant 0 : index
    %c1 = arith.constant 1 : index
    %c0_29 = arith.constant 0 : index
    %c0_30 = arith.constant 0 : index
    %37 = vector.load %arg6[%c0_28, %c1, %c0_29, %c0_30] : memref<3x3x64x256xbf16, #tpu.memory_space<vmem>>, vector<1x1x64x256xbf16>
    %38 = vector.shape_cast %37 : vector<1x1x64x256xbf16> to vector<64x256xbf16>
    %cst_31 = arith.constant dense<0.000000e+00> : vector<128x256xf32>
    %39 = tpu.matmul %33, %38, %cst_31 {dimension_numbers = #tpu.dot_dimension_numbers<[1], [0], [0], [1], [0, 0, 1, 1], [], []>} : vector<128x64xbf16>, vector<64x256xbf16>, vector<128x256xf32> -> vector<128x256xf32>
    %c0_32 = arith.constant 0 : index
    %c1_33 = arith.constant 1 : index
    %c0_34 = arith.constant 0 : index
    %c0_35 = arith.constant 0 : index
    %40 = vector.load %arg7[%c0_32, %c1_33, %c0_34, %c0_35] : memref<3x3x64x256xbf16, #tpu.memory_space<vmem>>, vector<1x1x64x256xbf16>
    %41 = vector.shape_cast %40 : vector<1x1x64x256xbf16> to vector<64x256xbf16>
    %cst_36 = arith.constant dense<0.000000e+00> : vector<128x256xf32>
    %42 = tpu.matmul %35, %41, %cst_36 {dimension_numbers = #tpu.dot_dimension_numbers<[1], [0], [0], [1], [0, 0, 1, 1], [], []>} : vector<128x64xbf16>, vector<64x256xbf16>, vector<128x256xf32> -> vector<128x256xf32>
    %43 = arith.addf %39, %42 : vector<128x256xf32>
    %44 = arith.addf %36, %43 : vector<128x256xf32>
    %c0_37 = arith.constant 0 : index
    %c0_38 = arith.constant 0 : index
    %45 = vector.load %arg13[%c0_37, %c0_38] : memref<128x256xf32, #tpu.memory_space<vmem>>, vector<128x256xf32>
    tpu.vector_store %arg13[%c0_37, %c0_38], %44 {strides = array<i32>} : memref<128x256xf32, #tpu.memory_space<vmem>>, vector<128x256xf32>,
    %c0_i32_39 = arith.constant 0 : i32
    %46 = arith.addi %3, %c0_i32_39 : i32
    %47 = arith.index_cast %46 : i32 to index
    %c9 = arith.constant 9 : index
    %c0_40 = arith.constant 0 : index
    %48 = vector.load %arg11[%47, %c9, %c0_40] : memref<18x25x64xf32, #tpu.memory_space<vmem>>, vector<8x16x64xf32>
    %c0_i32_41 = arith.constant 0 : i32
    %49 = arith.addi %3, %c0_i32_41 : i32
    %50 = arith.index_cast %49 : i32 to index
    %c9_42 = arith.constant 9 : index
    %c0_43 = arith.constant 0 : index
    %51 = vector.load %arg12[%50, %c9_42, %c0_43] : memref<18x25x64xf32, #tpu.memory_space<vmem>>, vector<8x16x64xf32>
    %52 = vector.shape_cast %48 : vector<8x16x64xf32> to vector<128x64xf32>
    %53 = arith.truncf %52 : vector<128x64xf32> to vector<128x64xbf16>
    %54 = vector.shape_cast %51 : vector<8x16x64xf32> to vector<128x64xf32>
    %55 = arith.truncf %54 : vector<128x64xf32> to vector<128x64xbf16>
    %c0_44 = arith.constant 0 : index
    %c0_45 = arith.constant 0 : index
    %56 = vector.load %arg13[%c0_44, %c0_45] : memref<128x256xf32, #tpu.memory_space<vmem>>, vector<128x256xf32>
    %c0_46 = arith.constant 0 : index
    %c2 = arith.constant 2 : index
    %c0_47 = arith.constant 0 : index
    %c0_48 = arith.constant 0 : index
    %57 = vector.load %arg6[%c0_46, %c2, %c0_47, %c0_48] : memref<3x3x64x256xbf16, #tpu.memory_space<vmem>>, vector<1x1x64x256xbf16>
    %58 = vector.shape_cast %57 : vector<1x1x64x256xbf16> to vector<64x256xbf16>
    %cst_49 = arith.constant dense<0.000000e+00> : vector<128x256xf32>
    %59 = tpu.matmul %53, %58, %cst_49 {dimension_numbers = #tpu.dot_dimension_numbers<[1], [0], [0], [1], [0, 0, 1, 1], [], []>} : vector<128x64xbf16>, vector<64x256xbf16>, vector<128x256xf32> -> vector<128x256xf32>
    %c0_50 = arith.constant 0 : index
    %c2_51 = arith.constant 2 : index
    %c0_52 = arith.constant 0 : index
    %c0_53 = arith.constant 0 : index
    %60 = vector.load %arg7[%c0_50, %c2_51, %c0_52, %c0_53] : memref<3x3x64x256xbf16, #tpu.memory_space<vmem>>, vector<1x1x64x256xbf16>
    %61 = vector.shape_cast %60 : vector<1x1x64x256xbf16> to vector<64x256xbf16>
    %cst_54 = arith.constant dense<0.000000e+00> : vector<128x256xf32>
    %62 = tpu.matmul %55, %61, %cst_54 {dimension_numbers = #tpu.dot_dimension_numbers<[1], [0], [0], [1], [0, 0, 1, 1], [], []>} : vector<128x64xbf16>, vector<64x256xbf16>, vector<128x256xf32> -> vector<128x256xf32>
    %63 = arith.addf %59, %62 : vector<128x256xf32>
    %64 = arith.addf %56, %63 : vector<128x256xf32>
    %c0_55 = arith.constant 0 : index
    %c0_56 = arith.constant 0 : index
    %65 = vector.load %arg13[%c0_55, %c0_56] : memref<128x256xf32, #tpu.memory_space<vmem>>, vector<128x256xf32>
    tpu.vector_store %arg13[%c0_55, %c0_56], %64 {strides = array<i32>} : memref<128x256xf32, #tpu.memory_space<vmem>>, vector<128x256xf32>,
    %c1_i32 = arith.constant 1 : i32
    %66 = arith.addi %3, %c1_i32 : i32
    %67 = arith.index_cast %66 : i32 to index
    %c7_57 = arith.constant 7 : index
    %c0_58 = arith.constant 0 : index
    %68 = vector.load %arg11[%67, %c7_57, %c0_58] : memref<18x25x64xf32, #tpu.memory_space<vmem>>, vector<8x16x64xf32>
    %c1_i32_59 = arith.constant 1 : i32
    %69 = arith.addi %3, %c1_i32_59 : i32
    %70 = arith.index_cast %69 : i32 to index
    %c7_60 = arith.constant 7 : index
    %c0_61 = arith.constant 0 : index
    %71 = vector.load %arg12[%70, %c7_60, %c0_61] : memref<18x25x64xf32, #tpu.memory_space<vmem>>, vector<8x16x64xf32>
    %72 = vector.shape_cast %68 : vector<8x16x64xf32> to vector<128x64xf32>
    %73 = arith.truncf %72 : vector<128x64xf32> to vector<128x64xbf16>
    %74 = vector.shape_cast %71 : vector<8x16x64xf32> to vector<128x64xf32>
    %75 = arith.truncf %74 : vector<128x64xf32> to vector<128x64xbf16>
    %c0_62 = arith.constant 0 : index
    %c0_63 = arith.constant 0 : index
    %76 = vector.load %arg13[%c0_62, %c0_63] : memref<128x256xf32, #tpu.memory_space<vmem>>, vector<128x256xf32>
    %c1_64 = arith.constant 1 : index
    %c0_65 = arith.constant 0 : index
    %c0_66 = arith.constant 0 : index
    %c0_67 = arith.constant 0 : index
    %77 = vector.load %arg6[%c1_64, %c0_65, %c0_66, %c0_67] : memref<3x3x64x256xbf16, #tpu.memory_space<vmem>>, vector<1x1x64x256xbf16>
    %78 = vector.shape_cast %77 : vector<1x1x64x256xbf16> to vector<64x256xbf16>
    %cst_68 = arith.constant dense<0.000000e+00> : vector<128x256xf32>
    %79 = tpu.matmul %73, %78, %cst_68 {dimension_numbers = #tpu.dot_dimension_numbers<[1], [0], [0], [1], [0, 0, 1, 1], [], []>} : vector<128x64xbf16>, vector<64x256xbf16>, vector<128x256xf32> -> vector<128x256xf32>
    %c1_69 = arith.constant 1 : index
    %c0_70 = arith.constant 0 : index
    %c0_71 = arith.constant 0 : index
    %c0_72 = arith.constant 0 : index
    %80 = vector.load %arg7[%c1_69, %c0_70, %c0_71, %c0_72] : memref<3x3x64x256xbf16, #tpu.memory_space<vmem>>, vector<1x1x64x256xbf16>
    %81 = vector.shape_cast %80 : vector<1x1x64x256xbf16> to vector<64x256xbf16>
    %cst_73 = arith.constant dense<0.000000e+00> : vector<128x256xf32>
    %82 = tpu.matmul %75, %81, %cst_73 {dimension_numbers = #tpu.dot_dimension_numbers<[1], [0], [0], [1], [0, 0, 1, 1], [], []>} : vector<128x64xbf16>, vector<64x256xbf16>, vector<128x256xf32> -> vector<128x256xf32>
    %83 = arith.addf %79, %82 : vector<128x256xf32>
    %84 = arith.addf %76, %83 : vector<128x256xf32>
    %c0_74 = arith.constant 0 : index
    %c0_75 = arith.constant 0 : index
    %85 = vector.load %arg13[%c0_74, %c0_75] : memref<128x256xf32, #tpu.memory_space<vmem>>, vector<128x256xf32>
    tpu.vector_store %arg13[%c0_74, %c0_75], %84 {strides = array<i32>} : memref<128x256xf32, #tpu.memory_space<vmem>>, vector<128x256xf32>,
    %c1_i32_76 = arith.constant 1 : i32
    %86 = arith.addi %3, %c1_i32_76 : i32
    %87 = arith.index_cast %86 : i32 to index
    %c8_77 = arith.constant 8 : index
    %c0_78 = arith.constant 0 : index
    %88 = vector.load %arg11[%87, %c8_77, %c0_78] : memref<18x25x64xf32, #tpu.memory_space<vmem>>, vector<8x16x64xf32>
    %c1_i32_79 = arith.constant 1 : i32
    %89 = arith.addi %3, %c1_i32_79 : i32
    %90 = arith.index_cast %89 : i32 to index
    %c8_80 = arith.constant 8 : index
    %c0_81 = arith.constant 0 : index
    %91 = vector.load %arg12[%90, %c8_80, %c0_81] : memref<18x25x64xf32, #tpu.memory_space<vmem>>, vector<8x16x64xf32>
    %92 = vector.shape_cast %88 : vector<8x16x64xf32> to vector<128x64xf32>
    %93 = arith.truncf %92 : vector<128x64xf32> to vector<128x64xbf16>
    %94 = vector.shape_cast %91 : vector<8x16x64xf32> to vector<128x64xf32>
    %95 = arith.truncf %94 : vector<128x64xf32> to vector<128x64xbf16>
    %c0_82 = arith.constant 0 : index
    %c0_83 = arith.constant 0 : index
    %96 = vector.load %arg13[%c0_82, %c0_83] : memref<128x256xf32, #tpu.memory_space<vmem>>, vector<128x256xf32>
    %c1_84 = arith.constant 1 : index
    %c1_85 = arith.constant 1 : index
    %c0_86 = arith.constant 0 : index
    %c0_87 = arith.constant 0 : index
    %97 = vector.load %arg6[%c1_84, %c1_85, %c0_86, %c0_87] : memref<3x3x64x256xbf16, #tpu.memory_space<vmem>>, vector<1x1x64x256xbf16>
    %98 = vector.shape_cast %97 : vector<1x1x64x256xbf16> to vector<64x256xbf16>
    %cst_88 = arith.constant dense<0.000000e+00> : vector<128x256xf32>
    %99 = tpu.matmul %93, %98, %cst_88 {dimension_numbers = #tpu.dot_dimension_numbers<[1], [0], [0], [1], [0, 0, 1, 1], [], []>} : vector<128x64xbf16>, vector<64x256xbf16>, vector<128x256xf32> -> vector<128x256xf32>
    %c1_89 = arith.constant 1 : index
    %c1_90 = arith.constant 1 : index
    %c0_91 = arith.constant 0 : index
    %c0_92 = arith.constant 0 : index
    %100 = vector.load %arg7[%c1_89, %c1_90, %c0_91, %c0_92] : memref<3x3x64x256xbf16, #tpu.memory_space<vmem>>, vector<1x1x64x256xbf16>
    %101 = vector.shape_cast %100 : vector<1x1x64x256xbf16> to vector<64x256xbf16>
    %cst_93 = arith.constant dense<0.000000e+00> : vector<128x256xf32>
    %102 = tpu.matmul %95, %101, %cst_93 {dimension_numbers = #tpu.dot_dimension_numbers<[1], [0], [0], [1], [0, 0, 1, 1], [], []>} : vector<128x64xbf16>, vector<64x256xbf16>, vector<128x256xf32> -> vector<128x256xf32>
    %103 = arith.addf %99, %102 : vector<128x256xf32>
    %104 = arith.addf %96, %103 : vector<128x256xf32>
    %c0_94 = arith.constant 0 : index
    %c0_95 = arith.constant 0 : index
    %105 = vector.load %arg13[%c0_94, %c0_95] : memref<128x256xf32, #tpu.memory_space<vmem>>, vector<128x256xf32>
    tpu.vector_store %arg13[%c0_94, %c0_95], %104 {strides = array<i32>} : memref<128x256xf32, #tpu.memory_space<vmem>>, vector<128x256xf32>,
    %c1_i32_96 = arith.constant 1 : i32
    %106 = arith.addi %3, %c1_i32_96 : i32
    %107 = arith.index_cast %106 : i32 to index
    %c9_97 = arith.constant 9 : index
    %c0_98 = arith.constant 0 : index
    %108 = vector.load %arg11[%107, %c9_97, %c0_98] : memref<18x25x64xf32, #tpu.memory_space<vmem>>, vector<8x16x64xf32>
    %c1_i32_99 = arith.constant 1 : i32
    %109 = arith.addi %3, %c1_i32_99 : i32
    %110 = arith.index_cast %109 : i32 to index
    %c9_100 = arith.constant 9 : index
    %c0_101 = arith.constant 0 : index
    %111 = vector.load %arg12[%110, %c9_100, %c0_101] : memref<18x25x64xf32, #tpu.memory_space<vmem>>, vector<8x16x64xf32>
    %112 = vector.shape_cast %108 : vector<8x16x64xf32> to vector<128x64xf32>
    %113 = arith.truncf %112 : vector<128x64xf32> to vector<128x64xbf16>
    %114 = vector.shape_cast %111 : vector<8x16x64xf32> to vector<128x64xf32>
    %115 = arith.truncf %114 : vector<128x64xf32> to vector<128x64xbf16>
    %c0_102 = arith.constant 0 : index
    %c0_103 = arith.constant 0 : index
    %116 = vector.load %arg13[%c0_102, %c0_103] : memref<128x256xf32, #tpu.memory_space<vmem>>, vector<128x256xf32>
    %c1_104 = arith.constant 1 : index
    %c2_105 = arith.constant 2 : index
    %c0_106 = arith.constant 0 : index
    %c0_107 = arith.constant 0 : index
    %117 = vector.load %arg6[%c1_104, %c2_105, %c0_106, %c0_107] : memref<3x3x64x256xbf16, #tpu.memory_space<vmem>>, vector<1x1x64x256xbf16>
    %118 = vector.shape_cast %117 : vector<1x1x64x256xbf16> to vector<64x256xbf16>
    %cst_108 = arith.constant dense<0.000000e+00> : vector<128x256xf32>
    %119 = tpu.matmul %113, %118, %cst_108 {dimension_numbers = #tpu.dot_dimension_numbers<[1], [0], [0], [1], [0, 0, 1, 1], [], []>} : vector<128x64xbf16>, vector<64x256xbf16>, vector<128x256xf32> -> vector<128x256xf32>
    %c1_109 = arith.constant 1 : index
    %c2_110 = arith.constant 2 : index
    %c0_111 = arith.constant 0 : index
    %c0_112 = arith.constant 0 : index
    %120 = vector.load %arg7[%c1_109, %c2_110, %c0_111, %c0_112] : memref<3x3x64x256xbf16, #tpu.memory_space<vmem>>, vector<1x1x64x256xbf16>
    %121 = vector.shape_cast %120 : vector<1x1x64x256xbf16> to vector<64x256xbf16>
    %cst_113 = arith.constant dense<0.000000e+00> : vector<128x256xf32>
    %122 = tpu.matmul %115, %121, %cst_113 {dimension_numbers = #tpu.dot_dimension_numbers<[1], [0], [0], [1], [0, 0, 1, 1], [], []>} : vector<128x64xbf16>, vector<64x256xbf16>, vector<128x256xf32> -> vector<128x256xf32>
    %123 = arith.addf %119, %122 : vector<128x256xf32>
    %124 = arith.addf %116, %123 : vector<128x256xf32>
    %c0_114 = arith.constant 0 : index
    %c0_115 = arith.constant 0 : index
    %125 = vector.load %arg13[%c0_114, %c0_115] : memref<128x256xf32, #tpu.memory_space<vmem>>, vector<128x256xf32>
    tpu.vector_store %arg13[%c0_114, %c0_115], %124 {strides = array<i32>} : memref<128x256xf32, #tpu.memory_space<vmem>>, vector<128x256xf32>,
    %c2_i32 = arith.constant 2 : i32
    %126 = arith.addi %3, %c2_i32 : i32
    %127 = arith.index_cast %126 : i32 to index
    %c7_116 = arith.constant 7 : index
    %c0_117 = arith.constant 0 : index
    %128 = vector.load %arg11[%127, %c7_116, %c0_117] : memref<18x25x64xf32, #tpu.memory_space<vmem>>, vector<8x16x64xf32>
    %c2_i32_118 = arith.constant 2 : i32
    %129 = arith.addi %3, %c2_i32_118 : i32
    %130 = arith.index_cast %129 : i32 to index
    %c7_119 = arith.constant 7 : index
    %c0_120 = arith.constant 0 : index
    %131 = vector.load %arg12[%130, %c7_119, %c0_120] : memref<18x25x64xf32, #tpu.memory_space<vmem>>, vector<8x16x64xf32>
    %132 = vector.shape_cast %128 : vector<8x16x64xf32> to vector<128x64xf32>
    %133 = arith.truncf %132 : vector<128x64xf32> to vector<128x64xbf16>
    %134 = vector.shape_cast %131 : vector<8x16x64xf32> to vector<128x64xf32>
    %135 = arith.truncf %134 : vector<128x64xf32> to vector<128x64xbf16>
    %c0_121 = arith.constant 0 : index
    %c0_122 = arith.constant 0 : index
    %136 = vector.load %arg13[%c0_121, %c0_122] : memref<128x256xf32, #tpu.memory_space<vmem>>, vector<128x256xf32>
    %c2_123 = arith.constant 2 : index
    %c0_124 = arith.constant 0 : index
    %c0_125 = arith.constant 0 : index
    %c0_126 = arith.constant 0 : index
    %137 = vector.load %arg6[%c2_123, %c0_124, %c0_125, %c0_126] : memref<3x3x64x256xbf16, #tpu.memory_space<vmem>>, vector<1x1x64x256xbf16>
    %138 = vector.shape_cast %137 : vector<1x1x64x256xbf16> to vector<64x256xbf16>
    %cst_127 = arith.constant dense<0.000000e+00> : vector<128x256xf32>
    %139 = tpu.matmul %133, %138, %cst_127 {dimension_numbers = #tpu.dot_dimension_numbers<[1], [0], [0], [1], [0, 0, 1, 1], [], []>} : vector<128x64xbf16>, vector<64x256xbf16>, vector<128x256xf32> -> vector<128x256xf32>
    %c2_128 = arith.constant 2 : index
    %c0_129 = arith.constant 0 : index
    %c0_130 = arith.constant 0 : index
    %c0_131 = arith.constant 0 : index
    %140 = vector.load %arg7[%c2_128, %c0_129, %c0_130, %c0_131] : memref<3x3x64x256xbf16, #tpu.memory_space<vmem>>, vector<1x1x64x256xbf16>
    %141 = vector.shape_cast %140 : vector<1x1x64x256xbf16> to vector<64x256xbf16>
    %cst_132 = arith.constant dense<0.000000e+00> : vector<128x256xf32>
    %142 = tpu.matmul %135, %141, %cst_132 {dimension_numbers = #tpu.dot_dimension_numbers<[1], [0], [0], [1], [0, 0, 1, 1], [], []>} : vector<128x64xbf16>, vector<64x256xbf16>, vector<128x256xf32> -> vector<128x256xf32>
    %143 = arith.addf %139, %142 : vector<128x256xf32>
    %144 = arith.addf %136, %143 : vector<128x256xf32>
    %c0_133 = arith.constant 0 : index
    %c0_134 = arith.constant 0 : index
    %145 = vector.load %arg13[%c0_133, %c0_134] : memref<128x256xf32, #tpu.memory_space<vmem>>, vector<128x256xf32>
    tpu.vector_store %arg13[%c0_133, %c0_134], %144 {strides = array<i32>} : memref<128x256xf32, #tpu.memory_space<vmem>>, vector<128x256xf32>,
    %c2_i32_135 = arith.constant 2 : i32
    %146 = arith.addi %3, %c2_i32_135 : i32
    %147 = arith.index_cast %146 : i32 to index
    %c8_136 = arith.constant 8 : index
    %c0_137 = arith.constant 0 : index
    %148 = vector.load %arg11[%147, %c8_136, %c0_137] : memref<18x25x64xf32, #tpu.memory_space<vmem>>, vector<8x16x64xf32>
    %c2_i32_138 = arith.constant 2 : i32
    %149 = arith.addi %3, %c2_i32_138 : i32
    %150 = arith.index_cast %149 : i32 to index
    %c8_139 = arith.constant 8 : index
    %c0_140 = arith.constant 0 : index
    %151 = vector.load %arg12[%150, %c8_139, %c0_140] : memref<18x25x64xf32, #tpu.memory_space<vmem>>, vector<8x16x64xf32>
    %152 = vector.shape_cast %148 : vector<8x16x64xf32> to vector<128x64xf32>
    %153 = arith.truncf %152 : vector<128x64xf32> to vector<128x64xbf16>
    %154 = vector.shape_cast %151 : vector<8x16x64xf32> to vector<128x64xf32>
    %155 = arith.truncf %154 : vector<128x64xf32> to vector<128x64xbf16>
    %c0_141 = arith.constant 0 : index
    %c0_142 = arith.constant 0 : index
    %156 = vector.load %arg13[%c0_141, %c0_142] : memref<128x256xf32, #tpu.memory_space<vmem>>, vector<128x256xf32>
    %c2_143 = arith.constant 2 : index
    %c1_144 = arith.constant 1 : index
    %c0_145 = arith.constant 0 : index
    %c0_146 = arith.constant 0 : index
    %157 = vector.load %arg6[%c2_143, %c1_144, %c0_145, %c0_146] : memref<3x3x64x256xbf16, #tpu.memory_space<vmem>>, vector<1x1x64x256xbf16>
    %158 = vector.shape_cast %157 : vector<1x1x64x256xbf16> to vector<64x256xbf16>
    %cst_147 = arith.constant dense<0.000000e+00> : vector<128x256xf32>
    %159 = tpu.matmul %153, %158, %cst_147 {dimension_numbers = #tpu.dot_dimension_numbers<[1], [0], [0], [1], [0, 0, 1, 1], [], []>} : vector<128x64xbf16>, vector<64x256xbf16>, vector<128x256xf32> -> vector<128x256xf32>
    %c2_148 = arith.constant 2 : index
    %c1_149 = arith.constant 1 : index
    %c0_150 = arith.constant 0 : index
    %c0_151 = arith.constant 0 : index
    %160 = vector.load %arg7[%c2_148, %c1_149, %c0_150, %c0_151] : memref<3x3x64x256xbf16, #tpu.memory_space<vmem>>, vector<1x1x64x256xbf16>
    %161 = vector.shape_cast %160 : vector<1x1x64x256xbf16> to vector<64x256xbf16>
    %cst_152 = arith.constant dense<0.000000e+00> : vector<128x256xf32>
    %162 = tpu.matmul %155, %161, %cst_152 {dimension_numbers = #tpu.dot_dimension_numbers<[1], [0], [0], [1], [0, 0, 1, 1], [], []>} : vector<128x64xbf16>, vector<64x256xbf16>, vector<128x256xf32> -> vector<128x256xf32>
    %163 = arith.addf %159, %162 : vector<128x256xf32>
    %164 = arith.addf %156, %163 : vector<128x256xf32>
    %c0_153 = arith.constant 0 : index
    %c0_154 = arith.constant 0 : index
    %165 = vector.load %arg13[%c0_153, %c0_154] : memref<128x256xf32, #tpu.memory_space<vmem>>, vector<128x256xf32>
    tpu.vector_store %arg13[%c0_153, %c0_154], %164 {strides = array<i32>} : memref<128x256xf32, #tpu.memory_space<vmem>>, vector<128x256xf32>,
    %c2_i32_155 = arith.constant 2 : i32
    %166 = arith.addi %3, %c2_i32_155 : i32
    %167 = arith.index_cast %166 : i32 to index
    %c9_156 = arith.constant 9 : index
    %c0_157 = arith.constant 0 : index
    %168 = vector.load %arg11[%167, %c9_156, %c0_157] : memref<18x25x64xf32, #tpu.memory_space<vmem>>, vector<8x16x64xf32>
    %c2_i32_158 = arith.constant 2 : i32
    %169 = arith.addi %3, %c2_i32_158 : i32
    %170 = arith.index_cast %169 : i32 to index
    %c9_159 = arith.constant 9 : index
    %c0_160 = arith.constant 0 : index
    %171 = vector.load %arg12[%170, %c9_159, %c0_160] : memref<18x25x64xf32, #tpu.memory_space<vmem>>, vector<8x16x64xf32>
    %172 = vector.shape_cast %168 : vector<8x16x64xf32> to vector<128x64xf32>
    %173 = arith.truncf %172 : vector<128x64xf32> to vector<128x64xbf16>
    %174 = vector.shape_cast %171 : vector<8x16x64xf32> to vector<128x64xf32>
    %175 = arith.truncf %174 : vector<128x64xf32> to vector<128x64xbf16>
    %c0_161 = arith.constant 0 : index
    %c0_162 = arith.constant 0 : index
    %176 = vector.load %arg13[%c0_161, %c0_162] : memref<128x256xf32, #tpu.memory_space<vmem>>, vector<128x256xf32>
    %c2_163 = arith.constant 2 : index
    %c2_164 = arith.constant 2 : index
    %c0_165 = arith.constant 0 : index
    %c0_166 = arith.constant 0 : index
    %177 = vector.load %arg6[%c2_163, %c2_164, %c0_165, %c0_166] : memref<3x3x64x256xbf16, #tpu.memory_space<vmem>>, vector<1x1x64x256xbf16>
    %178 = vector.shape_cast %177 : vector<1x1x64x256xbf16> to vector<64x256xbf16>
    %cst_167 = arith.constant dense<0.000000e+00> : vector<128x256xf32>
    %179 = tpu.matmul %173, %178, %cst_167 {dimension_numbers = #tpu.dot_dimension_numbers<[1], [0], [0], [1], [0, 0, 1, 1], [], []>} : vector<128x64xbf16>, vector<64x256xbf16>, vector<128x256xf32> -> vector<128x256xf32>
    %c2_168 = arith.constant 2 : index
    %c2_169 = arith.constant 2 : index
    %c0_170 = arith.constant 0 : index
    %c0_171 = arith.constant 0 : index
    %180 = vector.load %arg7[%c2_168, %c2_169, %c0_170, %c0_171] : memref<3x3x64x256xbf16, #tpu.memory_space<vmem>>, vector<1x1x64x256xbf16>
    %181 = vector.shape_cast %180 : vector<1x1x64x256xbf16> to vector<64x256xbf16>
    %cst_172 = arith.constant dense<0.000000e+00> : vector<128x256xf32>
    %182 = tpu.matmul %175, %181, %cst_172 {dimension_numbers = #tpu.dot_dimension_numbers<[1], [0], [0], [1], [0, 0, 1, 1], [], []>} : vector<128x64xbf16>, vector<64x256xbf16>, vector<128x256xf32> -> vector<128x256xf32>
    %183 = arith.addf %179, %182 : vector<128x256xf32>
    %184 = arith.addf %176, %183 : vector<128x256xf32>
    %c0_173 = arith.constant 0 : index
    %c0_174 = arith.constant 0 : index
    %185 = vector.load %arg13[%c0_173, %c0_174] : memref<128x256xf32, #tpu.memory_space<vmem>>, vector<128x256xf32>
    tpu.vector_store %arg13[%c0_173, %c0_174], %184 {strides = array<i32>} : memref<128x256xf32, #tpu.memory_space<vmem>>, vector<128x256xf32>,
    %c0_175 = arith.constant 0 : index
    %c0_176 = arith.constant 0 : index
    %186 = vector.load %arg13[%c0_175, %c0_176] : memref<128x256xf32, #tpu.memory_space<vmem>>, vector<128x256xf32>
    %c0_177 = arith.constant 0 : index
    %c0_178 = arith.constant 0 : index
    %187 = vector.load %arg8[%c0_177, %c0_178] : memref<1x256xf32, #tpu.memory_space<vmem>>, vector<1x256xf32>
    %188 = vector.broadcast %187 : vector<1x256xf32> to vector<128x256xf32>
    %189 = arith.addf %186, %188 : vector<128x256xf32>
    %190 = vector.extract_strided_slice %189 {offsets = [0, 0], sizes = [128, 64], strides = [1, 1]} : vector<128x256xf32> to vector<128x64xf32>
    %191 = arith.negf %190 : vector<128x64xf32>
    %192 = math.exp %191 : vector<128x64xf32>
    %cst_179 = arith.constant 1.000000e+00 : f32
    %193 = vector.broadcast %cst_179 : f32 to vector<128x64xf32>
    %194 = arith.addf %193, %192 : vector<128x64xf32>
    %195 = arith.divf %193, %194 : vector<128x64xf32>
    %196 = vector.extract_strided_slice %189 {offsets = [0, 64], sizes = [128, 64], strides = [1, 1]} : vector<128x256xf32> to vector<128x64xf32>
    %197 = arith.negf %196 : vector<128x64xf32>
    %198 = math.exp %197 : vector<128x64xf32>
    %cst_180 = arith.constant 1.000000e+00 : f32
    %199 = vector.broadcast %cst_180 : f32 to vector<128x64xf32>
    %200 = arith.addf %199, %198 : vector<128x64xf32>
    %201 = arith.divf %199, %200 : vector<128x64xf32>
    %202 = vector.extract_strided_slice %189 {offsets = [0, 128], sizes = [128, 64], strides = [1, 1]} : vector<128x256xf32> to vector<128x64xf32>
    %203 = math.tanh %202 : vector<128x64xf32>
    %204 = vector.extract_strided_slice %189 {offsets = [0, 192], sizes = [128, 64], strides = [1, 1]} : vector<128x256xf32> to vector<128x64xf32>
    %205 = arith.negf %204 : vector<128x64xf32>
    %206 = math.exp %205 : vector<128x64xf32>
    %cst_181 = arith.constant 1.000000e+00 : f32
    %207 = vector.broadcast %cst_181 : f32 to vector<128x64xf32>
    %208 = arith.addf %207, %206 : vector<128x64xf32>
    %209 = arith.divf %207, %208 : vector<128x64xf32>
    %c0_182 = arith.constant 0 : index
    %c0_183 = arith.constant 0 : index
    %c0_184 = arith.constant 0 : index
    %c0_185 = arith.constant 0 : index
    %210 = vector.load %arg5[%c0_182, %c0_183, %c0_184, %c0_185] : memref<1x8x16x64xf32, #tpu.memory_space<vmem>>, vector<1x8x16x64xf32>
    %211 = vector.shape_cast %210 : vector<1x8x16x64xf32> to vector<8x16x64xf32>
    %212 = vector.shape_cast %211 : vector<8x16x64xf32> to vector<128x64xf32>
    %213 = arith.mulf %201, %212 : vector<128x64xf32>
    %214 = arith.mulf %195, %203 : vector<128x64xf32>
    %215 = arith.addf %213, %214 : vector<128x64xf32>
    %216 = math.tanh %215 : vector<128x64xf32>
    %217 = arith.mulf %209, %216 : vector<128x64xf32>
    %218 = vector.shape_cast %217 : vector<128x64xf32> to vector<8x16x64xf32>
    %c0_186 = arith.constant 0 : index
    %c0_187 = arith.constant 0 : index
    %c0_188 = arith.constant 0 : index
    %c0_189 = arith.constant 0 : index
    %219 = vector.load %arg9[%c0_186, %c0_187, %c0_188, %c0_189] : memref<1x8x16x64xf32, #tpu.memory_space<vmem>>, vector<1x8x16x64xf32>
    %220 = vector.shape_cast %219 : vector<1x8x16x64xf32> to vector<8x16x64xf32>
    %221 = vector.shape_cast %218 : vector<8x16x64xf32> to vector<1x8x16x64xf32>
    tpu.vector_store %arg9[%c0_186, %c0_187, %c0_188, %c0_189], %221 {strides = array<i32>} : memref<1x8x16x64xf32, #tpu.memory_space<vmem>>, vector<1x8x16x64xf32>,
    %222 = vector.shape_cast %215 : vector<128x64xf32> to vector<8x16x64xf32>
    %c0_190 = arith.constant 0 : index
    %c0_191 = arith.constant 0 : index
    %c0_192 = arith.constant 0 : index
    %c0_193 = arith.constant 0 : index
    %223 = vector.load %arg10[%c0_190, %c0_191, %c0_192, %c0_193] : memref<1x8x16x64xf32, #tpu.memory_space<vmem>>, vector<1x8x16x64xf32>
    %224 = vector.shape_cast %223 : vector<1x8x16x64xf32> to vector<8x16x64xf32>
    %225 = vector.shape_cast %222 : vector<8x16x64xf32> to vector<1x8x16x64xf32>
    tpu.vector_store %arg10[%c0_190, %c0_191, %c0_192, %c0_193], %225 {strides = array<i32>} : memref<1x8x16x64xf32, #tpu.memory_space<vmem>>, vector<1x8x16x64xf32>,
    return
  }
  func.func @transform_0(%arg0: i32, %arg1: i32, %arg2: i32) -> (i32, i32, i32, i32) {
    %c0_i32 = arith.constant 0 : i32
    %c0_i32_0 = arith.constant 0 : i32
    %c0_i32_1 = arith.constant 0 : i32
    %c0_i32_2 = arith.constant 0 : i32
    return %arg0, %c0_i32, %c0_i32_0, %c0_i32_1 : i32, i32, i32, i32
  }
  func.func @transform_1(%arg0: i32, %arg1: i32, %arg2: i32) -> (i32, i32, i32, i32) {
    %c0_i32 = arith.constant 0 : i32
    %c0_i32_0 = arith.constant 0 : i32
    %c0_i32_1 = arith.constant 0 : i32
    %c0_i32_2 = arith.constant 0 : i32
    return %arg0, %c0_i32, %c0_i32_0, %c0_i32_1 : i32, i32, i32, i32
  }
  func.func @transform_2(%arg0: i32, %arg1: i32, %arg2: i32) -> (i32, i32, i32, i32) {
    %c0_i32 = arith.constant 0 : i32
    %c0_i32_0 = arith.constant 0 : i32
    return %arg0, %arg2, %c0_i32, %arg1 : i32, i32, i32, i32
  }
  func.func @transform_3(%arg0: i32, %arg1: i32, %arg2: i32) -> (i32, i32, i32, i32) {
    %c0_i32 = arith.constant 0 : i32
    %c0_i32_0 = arith.constant 0 : i32
    %c0_i32_1 = arith.constant 0 : i32
    %c0_i32_2 = arith.constant 0 : i32
    return %c0_i32, %c0_i32_0, %c0_i32_1, %arg1 : i32, i32, i32, i32
  }
  func.func @transform_4(%arg0: i32, %arg1: i32, %arg2: i32) -> (i32, i32, i32, i32) {
    %c0_i32 = arith.constant 0 : i32
    %c0_i32_0 = arith.constant 0 : i32
    %c0_i32_1 = arith.constant 0 : i32
    %c0_i32_2 = arith.constant 0 : i32
    return %c0_i32, %c0_i32_0, %c0_i32_1, %arg1 : i32, i32, i32, i32
  }
  func.func @transform_5(%arg0: i32, %arg1: i32, %arg2: i32) -> (i32, i32) {
    %c0_i32 = arith.constant 0 : i32
    %c0_i32_0 = arith.constant 0 : i32
    return %c0_i32, %arg1 : i32, i32
  }
  func.func @transform_6(%arg0: i32, %arg1: i32, %arg2: i32) -> (i32, i32, i32, i32) {
    %c0_i32 = arith.constant 0 : i32
    %c0_i32_0 = arith.constant 0 : i32
    return %arg0, %arg2, %c0_i32, %arg1 : i32, i32, i32, i32
  }
  func.func @transform_7(%arg0: i32, %arg1: i32, %arg2: i32) -> (i32, i32, i32, i32) {
    %c0_i32 = arith.constant 0 : i32
    %c0_i32_0 = arith.constant 0 : i32
    return %arg0, %arg2, %c0_i32, %arg1 : i32, i32, i32, i32
  }
}

</mosaic_0001>

<bundles_post_ra>
// kernel: lstm64_forward.1
= control target key start
LH: loop header
LB: loop body
LE: loop exit
PB: predicated region body
PF: predicated region fallthrough
CT: control target
= control target key end

     0   :  { %s12098_s0 = inlined_call_operand.vmem [shape: bf16[2,16,16,64], index: 0, kind: input, shape index: {}]   ;;  %s12099_s1 = inlined_call_operand.vmem [shape: bf16[2,16,16,64], index: 1, kind: input, shape index: {}]   ;;  %s12100_s2 = inlined_call_operand.hbm [shape: f32[2,16,16,64], index: 2, kind: input, shape index: {}, may-alias: {2,7}]   ;;  %s12101_s3 = inlined_call_operand.vmem [shape: bf16[3,3,64,256], index: 3, kind: input, shape index: {}]   ;;  %s12102_s4 = inlined_call_operand.vmem [shape: bf16[3,3,64,256], index: 4, kind: input, shape index: {}]   ;;  %s12103_s5 = inlined_call_operand.vmem [shape: f32[1,256], index: 5, kind: input, shape index: {}]   ;;  %s12104_s6 = inlined_call_operand.hbm [shape: f32[2,16,16,64], index: 6, kind: output, shape index: {0}]   ;;  %s12105_s7 = inlined_call_operand.hbm [shape: f32[2,16,16,64], index: 7, kind: output, shape index: {1}, may-alias: {2,7}]  }
   0x1   :  { %12112 = sst [smem:[#allocation20_spill]] %s12105_s7 }
   0x2   :  { %13 = vsyncpa [#allocation6], 0 }
   0x3   :  { %15 = vsyncpa [#allocation6 + $0x1], 0 }
   0x4   :  { %16 = vsyncpa [#allocation7], 0 }
   0x5   :  { %18 = vsyncpa [#allocation7 + $0x1], 0 }
   0x6   :  { %19 = vsyncpa [#allocation10], 0 }
   0x7   :  { %21 = vsyncpa [#allocation10 + $0x1], 0  ;;  %s8615_s24 = smov 0   ;;  %s8617_s25 = smov 0  }
   0x8   :  { %s8619_s26 = smov 0   ;;  %s8621_s27 = smov 0  }
   0x9   :  { %s8623_s28 = smov 0   ;;  %s8625_s29 = smov 0  }
   0xa   :  { %s8627_s30 = smov 0   ;;  %s8629_s8 = smov 0  }
   0xb LB: > { %12113 = sst [smem:[#allocation14_spill]] %s8539_s24  ;;  %s6555_s9 = sadd.s32 4294967295, %s8567_s8   ;;  %s8567_s8 = sphi %s8629_s8, %s27_s8   ;;  %s8563_s30 = sphi %s8627_s30, %s12138_s30   ;;  %s8559_s29 = sphi %s8625_s29, %s12137_s29   ;;  %s8555_s28 = sphi %s8623_s28, %s12136_s28   ;;  %s8551_s27 = sphi %s8621_s27, %s12135_s27   ;;  %s8547_s26 = sphi %s8619_s26, %s12130_s26   ;;  %s8543_s25 = sphi %s8617_s25, %s12134_s25   ;;  %s8539_s24 = sphi %s8615_s24, %s12133_s24  }
   0xc   : > { %12114 = sst [smem:[#allocation15_spill]] %s8547_s26  ;;  %s6556_s10 = sadd.s32 4294967294, %s8567_s8  }
   0xd   : > { %s39_s11 = sadd.s32 1, %s8559_s29  ;;  %s46_s12 = sadd.s32 1, %s8563_s30 }
   0xe   : > { %p40_p0 = scmp.ge.s32.totalorder %s39_s11, 2  ;;  %s109_s13 = sadd.s32 1, %s8547_s26 }
   0xf   : > { %p116_p1 = scmp.ne.s32.totalorder %s8547_s26, %s8543_s25  ;;  %p117_p2 = scmp.eq.s32.totalorder %s8567_s8, 0 }
  0x10   : > { %s12140_s11 = smov (%p40_p0, %s39_s11), 0  ;;  %s12142_s12 = smov (!%p40_p0, %s46_s12), %s8563_s30 }
  0x11   : > { %12115 = sst [smem:[#allocation16_spill]] %s12140_s11  ;;  %s103_s14 = ssub.s32 %s8559_s29, %s12140_s11 }
  0x12   : > { %p8668_p3 = por %p117_p2, %p116_p1  ;;  %p48_p4 = scmp.ge.s32.totalorder %s12142_s12, 2 }
  0x13   : > { %p122_p5 = scmp.ne.s32.totalorder %s8543_s25, %s8539_s24  ;;  %p123_p6 = scmp.eq.s32.totalorder %s6555_s9, 0 }
  0x14   : > { %p228_p7 = scmp.eq.s32.totalorder %s6555_s9, 3  ;;  %s12144_s12 = smov (%p48_p4, %s12142_s12), 0 }
  0x15   : > { %12117 = sst [smem:[#allocation17_spill]] %s12144_s12  ;;  %p8676_p8 = por %p123_p6, %p122_p5 }
  0x16   : > { %p8680_p9 = por %p228_p7, %p116_p1  ;;  %s102_s18 = ssub.s32 %s8563_s30, %s12144_s12 }
  0x17   : > { %p234_p10 = scmp.eq.s32.totalorder %s6556_s10, 3  ;;  %s104_s19 = sor.u32 %s103_s14, %s102_s18 }
  0x18   : > { %p107_p11 = scmp.eq.s32.totalorder %s104_s19, 0  ;;  %p8143_p13 = scmp.lt.s32.totalorder %s8567_s8, 4 }
  0x19   : > { %p8686_p12 = por %p234_p10, %p122_p5  ;;  %s326_s21 = sand.u32 1, %s8547_s26  }
  0x1a   : > { %s8693_s22 = scalar_select %p107_p11, %s8547_s26, %s109_s13  }
  0x1b   : > { %s12120_s20 = scalar_select %p8686_p12, 1, 0 }
  0x1c   : > { %12122 = sst [smem:[#allocation19_spill]] %s8693_s22  ;;  %s6562_s23 = sshll.u32 %s326_s21, 7 }
  0x1d   : > { %12121 = sst [smem:[#allocation18_spill]] %s12120_s20  ;;  %s7814_s9 = sshll.u32 %s8559_s29, 4 }
  0x1e   : > { %s6565_s11 = sshll.u32 %s8563_s30, 5  ;;  %s330_s24 = scalar_lea.vmem [#allocation5], %s6562_s23 }
  0x1f   : > { %s342_s7 = sshll.u32 %s330_s24, 4  ;;  %s337_s12 = sadd.s32 %s7814_s9, %s6565_s11  ;;  %s343_s7 = int_to_ptr.vmem [resolvable:$true] %s342_s7 }
  0x20   : > { %s6566_s10 = sshll.u32 %s337_s12, 3  ;;  %p8133_p0 = pnand %p8143_p13, %p8668_p3 }
  0x21   : > { %s339_s19 = scalar_lea.hbm %s12100_s2, %s6566_s10  ;;  %s327_s13 = scalar_lea.sflag [#allocation6], %s326_s21 }
  0x22   : > { %s340_s20 = sshll.u32 %s339_s19, 4  ;;  %s8569_s22 = smov 128   ;;  %s341_s20 = int_to_ptr.hbm [resolvable:$true] %s340_s20 }
  0x23   : > { %s8570_s26 = smov 8   ;;  %p6567_p1 = scmp.ge.s32.totalorder %s8567_s8, 1 }
  0x24   : > { %8135 = dma.hbm_to_vmem [thread:$0]  (!%p8133_p0), %s341_s20, 2048, %s343_s7, %s327_s13, %s8569_s22, %s8569_s22, %s8570_s26  }
  0x25   : > { %p350_p2 = scmp.lt.s32.totalorder %s8567_s8, 5 }
  0x27   : > { %p351_p4 = pnand %p6567_p1, %p350_p2 }
  0x28   : > { %s8705_s24 = sand.u32 (!%p351_p4), 1, %s8543_s25  }
  0x29   : > { %354 = sbr.rel (%p351_p4) target bundleno = 1845 (0x735), region = 44  ;;  %s6568_s11 = sshll.u32 (!%p351_p4), %s8705_s24, 7 }
  0x2a   : > { %s357_s12 = scalar_lea.sflag (!%p351_p4), [#allocation6], %s8705_s24  ;;  %s8709_s15 = scalar_lea.vmem (!%p351_p4), [#allocation5], %s6568_s11 }
  0x2e   : > { %8526 = dma.done.wait (%p8676_p8), %s357_s12, 2048  }
  0x2f   : > { %8528 = vsyncadd (%p8676_p8), %s357_s12, 4294965248  ;;  %p421_p3 = scmp.lt.s32.totalorder %s8555_s28, 1  ;;  %s8727_s14 = scalar_lea.vmem [#allocation8], %s6568_s11 }
  0x30   : > { %s8729_s18 = scalar_lea.vmem [#allocation9], %s6568_s11  ;;  %p6575_p5 = scmp.ne.s32.totalorder %s8551_s27, 0 }
  0x31   : > { %s422_s7 = scalar_select %p421_p3, %s8555_s28, 1 }
  0x32   : > { %455 = sbr.rel (%p6575_p5) target bundleno = 264 (0x108), region = 52 }
  0x33   : > { %s7815_s26 = sshll.u32 %s422_s7, 7 }
  0x34   : > { %s8720_s22 = scalar_lea.vmem %s12098_s0, %s7815_s26  ;;  %s8725_s10 = scalar_lea.vmem %s12099_s1, %s7815_s26 }
  0x37   : > { %vm456_vm0 = vcmask 523264   ;;  %v8571_v0 = vmov 0.0   ;;  %vm460_vm1 = vcmask 516096   ;;  %v7969_v1 = vld [vmem:[%s8720_s22] sm:$0xff]   ;;  %v8096_v2 = vld [vmem:[%s8720_s22 + $0x8] sm:$0xff]   ;;  %v8097_v5 = vld [vmem:[%s8720_s22 + $0x10] sm:$0xff]  }
  0x38   : > { %463 = vst.msk [vmem:[#allocation2 + $0x28] sm:$0xff] %vm456_vm0, %v8571_v0  ;;  %v7970_v3 = vunpack.c.l.bf16 %v7969_v1  ;;  %v7971_v4 = vunpack.c.h.bf16 %v7969_v1  ;;  %v7974_v6 = vunpack.c.l.bf16 %v8096_v2  ;;  %v7975_v7 = vunpack.c.h.bf16 %v8096_v2  ;;  %v8098_v8 = vld [vmem:[%s8720_s22 + $0x18] sm:$0xff]   ;;  %v8099_v11 = vld [vmem:[%s8720_s22 + $0x20] sm:$0xff]   ;;  %v8100_v14 = vld [vmem:[%s8720_s22 + $0x28] sm:$0xff]  }
  0x39   : > { %457 = vst.msk [vmem:[#allocation2] sm:$0xff] %vm456_vm0, %v8571_v0  ;;  %v7978_v9 = vunpack.c.l.bf16 %v8097_v5  ;;  %v7979_v10 = vunpack.c.h.bf16 %v8097_v5  ;;  %v7982_v12 = vunpack.c.l.bf16 %v8098_v8  ;;  %v7983_v13 = vunpack.c.h.bf16 %v8098_v8  ;;  %v8101_v17 = vld [vmem:[%s8720_s22 + $0x30] sm:$0xff]   ;;  %v8102_v20 = vld [vmem:[%s8720_s22 + $0x38] sm:$0xff]   ;;  %v8103_v23 = vld [vmem:[%s8720_s22 + $0x40] sm:$0xff]  }
  0x3a   : > { %458 = vst.msk [vmem:[#allocation2 + $0x8] sm:$0xff] %vm456_vm0, %v8571_v0  ;;  %v7986_v15 = vunpack.c.l.bf16 %v8099_v11  ;;  %v7987_v16 = vunpack.c.h.bf16 %v8099_v11  ;;  %v7990_v18 = vunpack.c.l.bf16 %v8100_v14  ;;  %v7991_v19 = vunpack.c.h.bf16 %v8100_v14  ;;  %v8104_v26 = vld [vmem:[%s8720_s22 + $0x48] sm:$0xff]   ;;  %v8105_v29 = vld [vmem:[%s8720_s22 + $0x50] sm:$0xff]   ;;  %v8106_v32 = vld [vmem:[%s8720_s22 + $0x58] sm:$0xff]  }
  0x3b   : > { %459 = vst.msk [vmem:[#allocation2 + $0x10] sm:$0xff] %vm456_vm0, %v8571_v0  ;;  %v7994_v21 = vunpack.c.l.bf16 %v8101_v17  ;;  %v7995_v22 = vunpack.c.h.bf16 %v8101_v17  ;;  %v7998_v24 = vunpack.c.l.bf16 %v8102_v20  ;;  %v7999_v25 = vunpack.c.h.bf16 %v8102_v20  ;;  %v8107_v35 = vld [vmem:[%s8720_s22 + $0x60] sm:$0xff]   ;;  %v8108_v38 = vld [vmem:[%s8720_s22 + $0x68] sm:$0xff]   ;;  %v8109_v41 = vld [vmem:[%s8720_s22 + $0x70] sm:$0xff]  }
  0x3c   : > { %462 = vst.msk [vmem:[#allocation2 + $0x20] sm:$0xff] %vm456_vm0, %v8571_v0  ;;  %v8002_v27 = vunpack.c.l.bf16 %v8103_v23  ;;  %v8003_v28 = vunpack.c.h.bf16 %v8103_v23  ;;  %v8006_v30 = vunpack.c.l.bf16 %v8104_v26  ;;  %v8007_v31 = vunpack.c.h.bf16 %v8104_v26  ;;  %v8110_v44 = vld [vmem:[%s8720_s22 + $0x78] sm:$0xff]   ;;  %v8033_v47 = vld [vmem:[%s8725_s10] sm:$0xff]   ;;  %v8111_v50 = vld [vmem:[%s8725_s10 + $0x8] sm:$0xff]  }
  0x3d   : > { %464 = vst.msk [vmem:[#allocation2 + $0x30] sm:$0xff] %vm456_vm0, %v8571_v0  ;;  %v8010_v33 = vunpack.c.l.bf16 %v8105_v29  ;;  %v8011_v34 = vunpack.c.h.bf16 %v8105_v29  ;;  %v8014_v36 = vunpack.c.l.bf16 %v8106_v32  ;;  %v8015_v37 = vunpack.c.h.bf16 %v8106_v32  ;;  %v8112_v53 = vld [vmem:[%s8725_s10 + $0x10] sm:$0xff]   ;;  %v8113_v56 = vld [vmem:[%s8725_s10 + $0x18] sm:$0xff]   ;;  %v8114_v59 = vld [vmem:[%s8725_s10 + $0x20] sm:$0xff]  }
  0x3e   : > { %466 = vst.msk [vmem:[#allocation2 + $0x40] sm:$0xff] %vm456_vm0, %v8571_v0  ;;  %v8018_v39 = vunpack.c.l.bf16 %v8107_v35  ;;  %v8019_v40 = vunpack.c.h.bf16 %v8107_v35  ;;  %v8022_v42 = vunpack.c.l.bf16 %v8108_v38  ;;  %v8023_v43 = vunpack.c.h.bf16 %v8108_v38  ;;  %v8115_v62 = vld [vmem:[%s8725_s10 + $0x28] sm:$0xff]   ;;  %v8116_v1 = vld [vmem:[%s8725_s10 + $0x30] sm:$0xff]  }
  0x3f   : > { %467 = vst.msk [vmem:[#allocation2 + $0x48] sm:$0xff] %vm456_vm0, %v8571_v0  ;;  %v8026_v45 = vunpack.c.l.bf16 %v8109_v41  ;;  %v8027_v46 = vunpack.c.h.bf16 %v8109_v41  ;;  %v8030_v48 = vunpack.c.l.bf16 %v8110_v44  ;;  %v8031_v49 = vunpack.c.h.bf16 %v8110_v44 }
  0x40   : > { %468 = vst.msk [vmem:[#allocation2 + $0x50] sm:$0xff] %vm456_vm0, %v8571_v0  ;;  %v8034_v51 = vunpack.c.l.bf16 %v8033_v47  ;;  %v8035_v52 = vunpack.c.h.bf16 %v8033_v47  ;;  %v8038_v54 = vunpack.c.l.bf16 %v8111_v50  ;;  %v8039_v55 = vunpack.c.h.bf16 %v8111_v50 }
  0x41   : > { %470 = vst.msk [vmem:[#allocation2 + $0x60] sm:$0xff] %vm456_vm0, %v8571_v0  ;;  %v8042_v57 = vunpack.c.l.bf16 %v8112_v53  ;;  %v8043_v58 = vunpack.c.h.bf16 %v8112_v53  ;;  %v8046_v60 = vunpack.c.l.bf16 %v8113_v56  ;;  %v8047_v61 = vunpack.c.h.bf16 %v8113_v56 }
  0x42   : > { %471 = vst.msk [vmem:[#allocation2 + $0x68] sm:$0xff] %vm456_vm0, %v8571_v0  ;;  %v8050_v63 = vunpack.c.l.bf16 %v8114_v59  ;;  %v8054_v2 = vunpack.c.l.bf16 %v8115_v62  ;;  %v8058_v5 = vunpack.c.l.bf16 %v8116_v1 }
  0x43   : > { %472 = vst.msk [vmem:[#allocation2 + $0x70] sm:$0xff] %vm456_vm0, %v8571_v0 }
  0x44   : > { %474 = vst.msk [vmem:[#allocation2 + $0x80] sm:$0xff] %vm456_vm0, %v8571_v0 }
  0x45   : > { %475 = vst.msk [vmem:[#allocation2 + $0x88] sm:$0xff] %vm456_vm0, %v8571_v0 }
  0x46   : > { %476 = vst.msk [vmem:[#allocation2 + $0x90] sm:$0xff] %vm456_vm0, %v8571_v0 }
  0x47   : > { %478 = vst.msk [vmem:[#allocation2 + $0xa0] sm:$0xff] %vm456_vm0, %v8571_v0 }
  0x48   : > { %479 = vst.msk [vmem:[#allocation2 + $0xa8] sm:$0xff] %vm456_vm0, %v8571_v0 }
  0x49   : > { %480 = vst.msk [vmem:[#allocation2 + $0xb0] sm:$0xff] %vm456_vm0, %v8571_v0 }
  0x4a   : > { %482 = vst.msk [vmem:[#allocation2 + $0xc0] sm:$0xff] %vm456_vm0, %v8571_v0 }
  0x4b   : > { %483 = vst.msk [vmem:[#allocation2 + $0xc8] sm:$0xff] %vm456_vm0, %v8571_v0 }
  0x4c   : > { %484 = vst.msk [vmem:[#allocation2 + $0xd0] sm:$0xff] %vm456_vm0, %v8571_v0 }
  0x4d   : > { %486 = vst.msk [vmem:[#allocation2 + $0xe0] sm:$0xff] %vm456_vm0, %v8571_v0 }
  0x4e   : > { %487 = vst.msk [vmem:[#allocation2 + $0xe8] sm:$0xff] %vm456_vm0, %v8571_v0 }
  0x4f   : > { %488 = vst.msk [vmem:[#allocation2 + $0xf0] sm:$0xff] %vm456_vm0, %v8571_v0 }
  0x50   : > { %490 = vst.msk [vmem:[#allocation2 + $0x100] sm:$0xff] %vm456_vm0, %v8571_v0 }
  0x51   : > { %491 = vst.msk [vmem:[#allocation2 + $0x108] sm:$0xff] %vm456_vm0, %v8571_v0 }
  0x52   : > { %492 = vst.msk [vmem:[#allocation2 + $0x110] sm:$0xff] %vm456_vm0, %v8571_v0 }
  0x53   : > { %494 = vst.msk [vmem:[#allocation2 + $0x120] sm:$0xff] %vm456_vm0, %v8571_v0 }
  0x54   : > { %495 = vst.msk [vmem:[#allocation2 + $0x128] sm:$0xff] %vm456_vm0, %v8571_v0 }
  0x55   : > { %496 = vst.msk [vmem:[#allocation2 + $0x130] sm:$0xff] %vm456_vm0, %v8571_v0 }
  0x56   : > { %498 = vst.msk [vmem:[#allocation2 + $0x140] sm:$0xff] %vm456_vm0, %v8571_v0 }
  0x57   : > { %499 = vst.msk [vmem:[#allocation2 + $0x148] sm:$0xff] %vm456_vm0, %v8571_v0 }
  0x58   : > { %500 = vst.msk [vmem:[#allocation2 + $0x150] sm:$0xff] %vm456_vm0, %v8571_v0 }
  0x59   : > { %502 = vst.msk [vmem:[#allocation2 + $0x160] sm:$0xff] %vm456_vm0, %v8571_v0 }
  0x5a   : > { %503 = vst.msk [vmem:[#allocation2 + $0x168] sm:$0xff] %vm456_vm0, %v8571_v0 }
  0x5b   : > { %504 = vst.msk [vmem:[#allocation2 + $0x170] sm:$0xff] %vm456_vm0, %v8571_v0 }
  0x5c   : > { %506 = vst.msk [vmem:[#allocation2 + $0x180] sm:$0xff] %vm456_vm0, %v8571_v0 }
  0x5d   : > { %507 = vst.msk [vmem:[#allocation2 + $0x188] sm:$0xff] %vm456_vm0, %v8571_v0 }
  0x5e   : > { %508 = vst.msk [vmem:[#allocation2 + $0x190] sm:$0xff] %vm456_vm0, %v8571_v0 }
  0x5f   : > { %510 = vst.msk [vmem:[#allocation2 + $0x1a0] sm:$0xff] %vm456_vm0, %v8571_v0 }
  0x60   : > { %511 = vst.msk [vmem:[#allocation2 + $0x1a8] sm:$0xff] %vm456_vm0, %v8571_v0 }
  0x61   : > { %512 = vst.msk [vmem:[#allocation2 + $0x1b0] sm:$0xff] %vm456_vm0, %v8571_v0 }
  0x62   : > { %514 = vst.msk [vmem:[#allocation2 + $0x1c0] sm:$0xff] %vm456_vm0, %v8571_v0 }
  0x63   : > { %515 = vst.msk [vmem:[#allocation2 + $0x1c8] sm:$0xff] %vm456_vm0, %v8571_v0 }
  0x64   : > { %516 = vst.msk [vmem:[#allocation2 + $0x1d0] sm:$0xff] %vm456_vm0, %v8571_v0 }
  0x65   : > { %518 = vst.msk [vmem:[#allocation2 + $0x1e0] sm:$0xff] %vm456_vm0, %v8571_v0 }
  0x66   : > { %519 = vst.msk [vmem:[#allocation2 + $0x1e8] sm:$0xff] %vm456_vm0, %v8571_v0 }
  0x67   : > { %520 = vst.msk [vmem:[#allocation2 + $0x1f0] sm:$0xff] %vm456_vm0, %v8571_v0 }
  0x68   : > { %522 = vst.msk [vmem:[#allocation2 + $0x200] sm:$0xff] %vm456_vm0, %v8571_v0 }
  0x69   : > { %523 = vst.msk [vmem:[#allocation2 + $0x208] sm:$0xff] %vm456_vm0, %v8571_v0 }
  0x6a   : > { %524 = vst.msk [vmem:[#allocation2 + $0x210] sm:$0xff] %vm456_vm0, %v8571_v0 }
  0x6b   : > { %526 = vst.msk [vmem:[#allocation2 + $0x220] sm:$0xff] %vm456_vm0, %v8571_v0 }
  0x6c   : > { %527 = vst.msk [vmem:[#allocation2 + $0x228] sm:$0xff] %vm456_vm0, %v8571_v0 }
  0x6d   : > { %528 = vst.msk [vmem:[#allocation2 + $0x230] sm:$0xff] %vm456_vm0, %v8571_v0 }
  0x6e   : > { %530 = vst.msk [vmem:[#allocation3] sm:$0xff] %vm456_vm0, %v8571_v0 }
  0x6f   : > { %531 = vst.msk [vmem:[#allocation3 + $0x8] sm:$0xff] %vm456_vm0, %v8571_v0 }
  0x70   : > { %532 = vst.msk [vmem:[#allocation3 + $0x10] sm:$0xff] %vm456_vm0, %v8571_v0 }
  0x71   : > { %534 = vst.msk [vmem:[#allocation3 + $0x20] sm:$0xff] %vm456_vm0, %v8571_v0 }
  0x72   : > { %535 = vst.msk [vmem:[#allocation3 + $0x28] sm:$0xff] %vm456_vm0, %v8571_v0 }
  0x73   : > { %536 = vst.msk [vmem:[#allocation3 + $0x30] sm:$0xff] %vm456_vm0, %v8571_v0 }
  0x74   : > { %538 = vst.msk [vmem:[#allocation3 + $0x40] sm:$0xff] %vm456_vm0, %v8571_v0 }
  0x75   : > { %539 = vst.msk [vmem:[#allocation3 + $0x48] sm:$0xff] %vm456_vm0, %v8571_v0 }
  0x76   : > { %540 = vst.msk [vmem:[#allocation3 + $0x50] sm:$0xff] %vm456_vm0, %v8571_v0 }
  0x77   : > { %542 = vst.msk [vmem:[#allocation3 + $0x60] sm:$0xff] %vm456_vm0, %v8571_v0 }
  0x78   : > { %543 = vst.msk [vmem:[#allocation3 + $0x68] sm:$0xff] %vm456_vm0, %v8571_v0 }
  0x79   : > { %544 = vst.msk [vmem:[#allocation3 + $0x70] sm:$0xff] %vm456_vm0, %v8571_v0 }
  0x7a   : > { %546 = vst.msk [vmem:[#allocation3 + $0x80] sm:$0xff] %vm456_vm0, %v8571_v0 }
  0x7b   : > { %547 = vst.msk [vmem:[#allocation3 + $0x88] sm:$0xff] %vm456_vm0, %v8571_v0 }
  0x7c   : > { %548 = vst.msk [vmem:[#allocation3 + $0x90] sm:$0xff] %vm456_vm0, %v8571_v0 }
  0x7d   : > { %550 = vst.msk [vmem:[#allocation3 + $0xa0] sm:$0xff] %vm456_vm0, %v8571_v0 }
  0x7e   : > { %551 = vst.msk [vmem:[#allocation3 + $0xa8] sm:$0xff] %vm456_vm0, %v8571_v0 }
  0x7f   : > { %552 = vst.msk [vmem:[#allocation3 + $0xb0] sm:$0xff] %vm456_vm0, %v8571_v0 }
  0x80   : > { %554 = vst.msk [vmem:[#allocation3 + $0xc0] sm:$0xff] %vm456_vm0, %v8571_v0 }
  0x81   : > { %555 = vst.msk [vmem:[#allocation3 + $0xc8] sm:$0xff] %vm456_vm0, %v8571_v0 }
  0x82   : > { %556 = vst.msk [vmem:[#allocation3 + $0xd0] sm:$0xff] %vm456_vm0, %v8571_v0 }
  0x83   : > { %558 = vst.msk [vmem:[#allocation3 + $0xe0] sm:$0xff] %vm456_vm0, %v8571_v0 }
  0x84   : > { %559 = vst.msk [vmem:[#allocation3 + $0xe8] sm:$0xff] %vm456_vm0, %v8571_v0 }
  0x85   : > { %560 = vst.msk [vmem:[#allocation3 + $0xf0] sm:$0xff] %vm456_vm0, %v8571_v0 }
  0x86   : > { %562 = vst.msk [vmem:[#allocation3 + $0x100] sm:$0xff] %vm456_vm0, %v8571_v0 }
  0x87   : > { %563 = vst.msk [vmem:[#allocation3 + $0x108] sm:$0xff] %vm456_vm0, %v8571_v0 }
  0x88   : > { %564 = vst.msk [vmem:[#allocation3 + $0x110] sm:$0xff] %vm456_vm0, %v8571_v0 }
  0x89   : > { %566 = vst.msk [vmem:[#allocation3 + $0x120] sm:$0xff] %vm456_vm0, %v8571_v0 }
  0x8a   : > { %567 = vst.msk [vmem:[#allocation3 + $0x128] sm:$0xff] %vm456_vm0, %v8571_v0 }
  0x8b   : > { %568 = vst.msk [vmem:[#allocation3 + $0x130] sm:$0xff] %vm456_vm0, %v8571_v0 }
  0x8c   : > { %570 = vst.msk [vmem:[#allocation3 + $0x140] sm:$0xff] %vm456_vm0, %v8571_v0 }
  0x8d   : > { %571 = vst.msk [vmem:[#allocation3 + $0x148] sm:$0xff] %vm456_vm0, %v8571_v0 }
  0x8e   : > { %572 = vst.msk [vmem:[#allocation3 + $0x150] sm:$0xff] %vm456_vm0, %v8571_v0 }
  0x8f   : > { %574 = vst.msk [vmem:[#allocation3 + $0x160] sm:$0xff] %vm456_vm0, %v8571_v0 }
  0x90   : > { %575 = vst.msk [vmem:[#allocation3 + $0x168] sm:$0xff] %vm456_vm0, %v8571_v0 }
  0x91   : > { %576 = vst.msk [vmem:[#allocation3 + $0x170] sm:$0xff] %vm456_vm0, %v8571_v0 }
  0x92   : > { %578 = vst.msk [vmem:[#allocation3 + $0x180] sm:$0xff] %vm456_vm0, %v8571_v0 }
  0x93   : > { %579 = vst.msk [vmem:[#allocation3 + $0x188] sm:$0xff] %vm456_vm0, %v8571_v0 }
  0x94   : > { %580 = vst.msk [vmem:[#allocation3 + $0x190] sm:$0xff] %vm456_vm0, %v8571_v0 }
  0x95   : > { %582 = vst.msk [vmem:[#allocation3 + $0x1a0] sm:$0xff] %vm456_vm0, %v8571_v0 }
  0x96   : > { %583 = vst.msk [vmem:[#allocation3 + $0x1a8] sm:$0xff] %vm456_vm0, %v8571_v0 }
  0x97   : > { %584 = vst.msk [vmem:[#allocation3 + $0x1b0] sm:$0xff] %vm456_vm0, %v8571_v0 }
  0x98   : > { %586 = vst.msk [vmem:[#allocation3 + $0x1c0] sm:$0xff] %vm456_vm0, %v8571_v0 }
  0x99   : > { %587 = vst.msk [vmem:[#allocation3 + $0x1c8] sm:$0xff] %vm456_vm0, %v8571_v0 }
  0x9a   : > { %588 = vst.msk [vmem:[#allocation3 + $0x1d0] sm:$0xff] %vm456_vm0, %v8571_v0 }
  0x9b   : > { %590 = vst.msk [vmem:[#allocation3 + $0x1e0] sm:$0xff] %vm456_vm0, %v8571_v0 }
  0x9c   : > { %591 = vst.msk [vmem:[#allocation3 + $0x1e8] sm:$0xff] %vm456_vm0, %v8571_v0 }
  0x9d   : > { %592 = vst.msk [vmem:[#allocation3 + $0x1f0] sm:$0xff] %vm456_vm0, %v8571_v0 }
  0x9e   : > { %594 = vst.msk [vmem:[#allocation3 + $0x200] sm:$0xff] %vm456_vm0, %v8571_v0 }
  0x9f   : > { %595 = vst.msk [vmem:[#allocation3 + $0x208] sm:$0xff] %vm456_vm0, %v8571_v0 }
  0xa0   : > { %596 = vst.msk [vmem:[#allocation3 + $0x210] sm:$0xff] %vm456_vm0, %v8571_v0 }
  0xa1   : > { %598 = vst.msk [vmem:[#allocation3 + $0x220] sm:$0xff] %vm456_vm0, %v8571_v0 }
  0xa2   : > { %599 = vst.msk [vmem:[#allocation3 + $0x228] sm:$0xff] %vm456_vm0, %v8571_v0 }
  0xa3   : > { %600 = vst.msk [vmem:[#allocation3 + $0x230] sm:$0xff] %vm456_vm0, %v8571_v0 }
  0xa4   : > { %461 = vst.msk [vmem:[#allocation2 + $0x18] sm:$0x1] %vm460_vm1, %v8571_v0 }
  0xa5   : > { %465 = vst.msk [vmem:[#allocation2 + $0x38] sm:$0x1] %vm460_vm1, %v8571_v0 }
  0xa6   : > { %469 = vst.msk [vmem:[#allocation2 + $0x58] sm:$0x1] %vm460_vm1, %v8571_v0 }
  0xa7   : > { %473 = vst.msk [vmem:[#allocation2 + $0x78] sm:$0x1] %vm460_vm1, %v8571_v0 }
  0xa8   : > { %477 = vst.msk [vmem:[#allocation2 + $0x98] sm:$0x1] %vm460_vm1, %v8571_v0 }
  0xa9   : > { %481 = vst.msk [vmem:[#allocation2 + $0xb8] sm:$0x1] %vm460_vm1, %v8571_v0 }
  0xaa   : > { %485 = vst.msk [vmem:[#allocation2 + $0xd8] sm:$0x1] %vm460_vm1, %v8571_v0 }
  0xab   : > { %489 = vst.msk [vmem:[#allocation2 + $0xf8] sm:$0x1] %vm460_vm1, %v8571_v0 }
  0xac   : > { %493 = vst.msk [vmem:[#allocation2 + $0x118] sm:$0x1] %vm460_vm1, %v8571_v0 }
  0xad   : > { %497 = vst.msk [vmem:[#allocation2 + $0x138] sm:$0x1] %vm460_vm1, %v8571_v0 }
  0xae   : > { %501 = vst.msk [vmem:[#allocation2 + $0x158] sm:$0x1] %vm460_vm1, %v8571_v0 }
  0xaf   : > { %505 = vst.msk [vmem:[#allocation2 + $0x178] sm:$0x1] %vm460_vm1, %v8571_v0 }
  0xb0   : > { %509 = vst.msk [vmem:[#allocation2 + $0x198] sm:$0x1] %vm460_vm1, %v8571_v0 }
  0xb1   : > { %513 = vst.msk [vmem:[#allocation2 + $0x1b8] sm:$0x1] %vm460_vm1, %v8571_v0 }
  0xb2   : > { %517 = vst.msk [vmem:[#allocation2 + $0x1d8] sm:$0x1] %vm460_vm1, %v8571_v0 }
  0xb3   : > { %521 = vst.msk [vmem:[#allocation2 + $0x1f8] sm:$0x1] %vm460_vm1, %v8571_v0 }
  0xb4   : > { %525 = vst.msk [vmem:[#allocation2 + $0x218] sm:$0x1] %vm460_vm1, %v8571_v0 }
  0xb5   : > { %529 = vst.msk [vmem:[#allocation2 + $0x238] sm:$0x1] %vm460_vm1, %v8571_v0 }
  0xb6   : > { %533 = vst.msk [vmem:[#allocation3 + $0x18] sm:$0x1] %vm460_vm1, %v8571_v0 }
  0xb7   : > { %537 = vst.msk [vmem:[#allocation3 + $0x38] sm:$0x1] %vm460_vm1, %v8571_v0 }
  0xb8   : > { %541 = vst.msk [vmem:[#allocation3 + $0x58] sm:$0x1] %vm460_vm1, %v8571_v0 }
  0xb9   : > { %545 = vst.msk [vmem:[#allocation3 + $0x78] sm:$0x1] %vm460_vm1, %v8571_v0 }
  0xba   : > { %549 = vst.msk [vmem:[#allocation3 + $0x98] sm:$0x1] %vm460_vm1, %v8571_v0 }
  0xbb   : > { %553 = vst.msk [vmem:[#allocation3 + $0xb8] sm:$0x1] %vm460_vm1, %v8571_v0 }
  0xbc   : > { %557 = vst.msk [vmem:[#allocation3 + $0xd8] sm:$0x1] %vm460_vm1, %v8571_v0 }
  0xbd   : > { %561 = vst.msk [vmem:[#allocation3 + $0xf8] sm:$0x1] %vm460_vm1, %v8571_v0 }
  0xbe   : > { %565 = vst.msk [vmem:[#allocation3 + $0x118] sm:$0x1] %vm460_vm1, %v8571_v0 }
  0xbf   : > { %569 = vst.msk [vmem:[#allocation3 + $0x138] sm:$0x1] %vm460_vm1, %v8571_v0 }
  0xc0   : > { %573 = vst.msk [vmem:[#allocation3 + $0x158] sm:$0x1] %vm460_vm1, %v8571_v0 }
  0xc1   : > { %577 = vst.msk [vmem:[#allocation3 + $0x178] sm:$0x1] %vm460_vm1, %v8571_v0 }
  0xc2   : > { %581 = vst.msk [vmem:[#allocation3 + $0x198] sm:$0x1] %vm460_vm1, %v8571_v0 }
  0xc3   : > { %585 = vst.msk [vmem:[#allocation3 + $0x1b8] sm:$0x1] %vm460_vm1, %v8571_v0 }
  0xc4   : > { %589 = vst.msk [vmem:[#allocation3 + $0x1d8] sm:$0x1] %vm460_vm1, %v8571_v0 }
  0xc5   : > { %593 = vst.msk [vmem:[#allocation3 + $0x1f8] sm:$0x1] %vm460_vm1, %v8571_v0 }
  0xc6   : > { %597 = vst.msk [vmem:[#allocation3 + $0x218] sm:$0x1] %vm460_vm1, %v8571_v0 }
  0xc7   : > { %601 = vst.msk [vmem:[#allocation3 + $0x238] sm:$0x1] %vm460_vm1, %v8571_v0  ;;  %v8051_v0 = vunpack.c.h.bf16 %v8114_v59 }
  0xc8   : > { %667 = vst.msk [vmem:[#allocation2 + $0x28] sm:$0xff] %vm456_vm0, %v7970_v3  ;;  %v8055_v3 = vunpack.c.h.bf16 %v8115_v62 }
  0xc9   : > { %668 = vst.msk [vmem:[#allocation2 + $0x30] sm:$0xff] %vm456_vm0, %v7971_v4  ;;  %v8117_v4 = vld [vmem:[%s8725_s10 + $0x38] sm:$0xff]  }
  0xca   : > { %669 = vst.msk [vmem:[#allocation2 + $0x48] sm:$0xff] %vm456_vm0, %v7974_v6  ;;  %v8059_v6 = vunpack.c.h.bf16 %v8116_v1  ;;  %v8062_v8 = vunpack.c.l.bf16 %v8117_v4 }
  0xcb   : > { %670 = vst.msk [vmem:[#allocation2 + $0x50] sm:$0xff] %vm456_vm0, %v7975_v7  ;;  %v8118_v7 = vld [vmem:[%s8725_s10 + $0x40] sm:$0xff]  }
  0xcc   : > { %671 = vst.msk [vmem:[#allocation2 + $0x68] sm:$0xff] %vm456_vm0, %v7978_v9  ;;  %v8063_v9 = vunpack.c.h.bf16 %v8117_v4  ;;  %v8066_v11 = vunpack.c.l.bf16 %v8118_v7 }
  0xcd   : > { %672 = vst.msk [vmem:[#allocation2 + $0x70] sm:$0xff] %vm456_vm0, %v7979_v10  ;;  %v8119_v10 = vld [vmem:[%s8725_s10 + $0x48] sm:$0xff]  }
  0xce   : > { %673 = vst.msk [vmem:[#allocation2 + $0x88] sm:$0xff] %vm456_vm0, %v7982_v12  ;;  %v8067_v12 = vunpack.c.h.bf16 %v8118_v7  ;;  %v8070_v14 = vunpack.c.l.bf16 %v8119_v10 }
  0xcf   : > { %674 = vst.msk [vmem:[#allocation2 + $0x90] sm:$0xff] %vm456_vm0, %v7983_v13  ;;  %v8120_v13 = vld [vmem:[%s8725_s10 + $0x50] sm:$0xff]  }
  0xd0   : > { %675 = vst.msk [vmem:[#allocation2 + $0xa8] sm:$0xff] %vm456_vm0, %v7986_v15  ;;  %v8071_v15 = vunpack.c.h.bf16 %v8119_v10  ;;  %v8074_v17 = vunpack.c.l.bf16 %v8120_v13 }
  0xd1   : > { %676 = vst.msk [vmem:[#allocation2 + $0xb0] sm:$0xff] %vm456_vm0, %v7987_v16  ;;  %v8121_v16 = vld [vmem:[%s8725_s10 + $0x58] sm:$0xff]  }
  0xd2   : > { %677 = vst.msk [vmem:[#allocation2 + $0xc8] sm:$0xff] %vm456_vm0, %v7990_v18  ;;  %v8075_v18 = vunpack.c.h.bf16 %v8120_v13  ;;  %v8078_v20 = vunpack.c.l.bf16 %v8121_v16 }
  0xd3   : > { %678 = vst.msk [vmem:[#allocation2 + $0xd0] sm:$0xff] %vm456_vm0, %v7991_v19  ;;  %v8122_v19 = vld [vmem:[%s8725_s10 + $0x60] sm:$0xff]  }
  0xd4   : > { %679 = vst.msk [vmem:[#allocation2 + $0xe8] sm:$0xff] %vm456_vm0, %v7994_v21  ;;  %v8079_v21 = vunpack.c.h.bf16 %v8121_v16  ;;  %v8082_v23 = vunpack.c.l.bf16 %v8122_v19 }
  0xd5   : > { %680 = vst.msk [vmem:[#allocation2 + $0xf0] sm:$0xff] %vm456_vm0, %v7995_v22  ;;  %v8123_v22 = vld [vmem:[%s8725_s10 + $0x68] sm:$0xff]  }
  0xd6   : > { %681 = vst.msk [vmem:[#allocation2 + $0x108] sm:$0xff] %vm456_vm0, %v7998_v24  ;;  %v8083_v24 = vunpack.c.h.bf16 %v8122_v19  ;;  %v8086_v26 = vunpack.c.l.bf16 %v8123_v22 }
  0xd7   : > { %682 = vst.msk [vmem:[#allocation2 + $0x110] sm:$0xff] %vm456_vm0, %v7999_v25  ;;  %v8124_v25 = vld [vmem:[%s8725_s10 + $0x70] sm:$0xff]  }
  0xd8   : > { %683 = vst.msk [vmem:[#allocation2 + $0x128] sm:$0xff] %vm456_vm0, %v8002_v27  ;;  %v8087_v27 = vunpack.c.h.bf16 %v8123_v22  ;;  %v8090_v29 = vunpack.c.l.bf16 %v8124_v25 }
  0xd9   : > { %684 = vst.msk [vmem:[#allocation2 + $0x130] sm:$0xff] %vm456_vm0, %v8003_v28  ;;  %v8125_v28 = vld [vmem:[%s8725_s10 + $0x78] sm:$0xff]  }
  0xda   : > { %685 = vst.msk [vmem:[#allocation2 + $0x148] sm:$0xff] %vm456_vm0, %v8006_v30  ;;  %v8091_v30 = vunpack.c.h.bf16 %v8124_v25  ;;  %v8095_v32 = vunpack.c.h.bf16 %v8125_v28 }
  0xdb   : > { %686 = vst.msk [vmem:[#allocation2 + $0x150] sm:$0xff] %vm456_vm0, %v8007_v31  ;;  %v8094_v31 = vunpack.c.l.bf16 %v8125_v28 }
  0xdc   : > { %687 = vst.msk [vmem:[#allocation2 + $0x168] sm:$0xff] %vm456_vm0, %v8010_v33 }
  0xdd   : > { %688 = vst.msk [vmem:[#allocation2 + $0x170] sm:$0xff] %vm456_vm0, %v8011_v34 }
  0xde   : > { %689 = vst.msk [vmem:[#allocation2 + $0x188] sm:$0xff] %vm456_vm0, %v8014_v36 }
  0xdf   : > { %690 = vst.msk [vmem:[#allocation2 + $0x190] sm:$0xff] %vm456_vm0, %v8015_v37 }
  0xe0   : > { %691 = vst.msk [vmem:[#allocation2 + $0x1a8] sm:$0xff] %vm456_vm0, %v8018_v39 }
  0xe1   : > { %692 = vst.msk [vmem:[#allocation2 + $0x1b0] sm:$0xff] %vm456_vm0, %v8019_v40 }
  0xe2   : > { %693 = vst.msk [vmem:[#allocation2 + $0x1c8] sm:$0xff] %vm456_vm0, %v8022_v42 }
  0xe3   : > { %694 = vst.msk [vmem:[#allocation2 + $0x1d0] sm:$0xff] %vm456_vm0, %v8023_v43 }
  0xe4   : > { %695 = vst.msk [vmem:[#allocation2 + $0x1e8] sm:$0xff] %vm456_vm0, %v8026_v45 }
  0xe5   : > { %696 = vst.msk [vmem:[#allocation2 + $0x1f0] sm:$0xff] %vm456_vm0, %v8027_v46 }
  0xe6   : > { %697 = vst.msk [vmem:[#allocation2 + $0x208] sm:$0xff] %vm456_vm0, %v8030_v48 }
  0xe7   : > { %698 = vst.msk [vmem:[#allocation2 + $0x210] sm:$0xff] %vm456_vm0, %v8031_v49 }
  0xe8   : > { %764 = vst.msk [vmem:[#allocation3 + $0x28] sm:$0xff] %vm456_vm0, %v8034_v51 }
  0xe9   : > { %765 = vst.msk [vmem:[#allocation3 + $0x30] sm:$0xff] %vm456_vm0, %v8035_v52 }
  0xea   : > { %766 = vst.msk [vmem:[#allocation3 + $0x48] sm:$0xff] %vm456_vm0, %v8038_v54 }
  0xeb   : > { %767 = vst.msk [vmem:[#allocation3 + $0x50] sm:$0xff] %vm456_vm0, %v8039_v55 }
  0xec   : > { %768 = vst.msk [vmem:[#allocation3 + $0x68] sm:$0xff] %vm456_vm0, %v8042_v57 }
  0xed   : > { %769 = vst.msk [vmem:[#allocation3 + $0x70] sm:$0xff] %vm456_vm0, %v8043_v58 }
  0xee   : > { %770 = vst.msk [vmem:[#allocation3 + $0x88] sm:$0xff] %vm456_vm0, %v8046_v60 }
  0xef   : > { %771 = vst.msk [vmem:[#allocation3 + $0x90] sm:$0xff] %vm456_vm0, %v8047_v61 }
  0xf0   : > { %772 = vst.msk [vmem:[#allocation3 + $0xa8] sm:$0xff] %vm456_vm0, %v8050_v63 }
  0xf1   : > { %773 = vst.msk [vmem:[#allocation3 + $0xb0] sm:$0xff] %vm456_vm0, %v8051_v0 }
  0xf2   : > { %774 = vst.msk [vmem:[#allocation3 + $0xc8] sm:$0xff] %vm456_vm0, %v8054_v2 }
  0xf3   : > { %775 = vst.msk [vmem:[#allocation3 + $0xd0] sm:$0xff] %vm456_vm0, %v8055_v3 }
  0xf4   : > { %776 = vst.msk [vmem:[#allocation3 + $0xe8] sm:$0xff] %vm456_vm0, %v8058_v5 }
  0xf5   : > { %777 = vst.msk [vmem:[#allocation3 + $0xf0] sm:$0xff] %vm456_vm0, %v8059_v6 }
  0xf6   : > { %778 = vst.msk [vmem:[#allocation3 + $0x108] sm:$0xff] %vm456_vm0, %v8062_v8 }
  0xf7   : > { %779 = vst.msk [vmem:[#allocation3 + $0x110] sm:$0xff] %vm456_vm0, %v8063_v9 }
  0xf8   : > { %780 = vst.msk [vmem:[#allocation3 + $0x128] sm:$0xff] %vm456_vm0, %v8066_v11 }
  0xf9   : > { %781 = vst.msk [vmem:[#allocation3 + $0x130] sm:$0xff] %vm456_vm0, %v8067_v12 }
  0xfa   : > { %782 = vst.msk [vmem:[#allocation3 + $0x148] sm:$0xff] %vm456_vm0, %v8070_v14 }
  0xfb   : > { %783 = vst.msk [vmem:[#allocation3 + $0x150] sm:$0xff] %vm456_vm0, %v8071_v15 }
  0xfc   : > { %784 = vst.msk [vmem:[#allocation3 + $0x168] sm:$0xff] %vm456_vm0, %v8074_v17 }
  0xfd   : > { %785 = vst.msk [vmem:[#allocation3 + $0x170] sm:$0xff] %vm456_vm0, %v8075_v18 }
  0xfe   : > { %786 = vst.msk [vmem:[#allocation3 + $0x188] sm:$0xff] %vm456_vm0, %v8078_v20 }
  0xff   : > { %787 = vst.msk [vmem:[#allocation3 + $0x190] sm:$0xff] %vm456_vm0, %v8079_v21 }
 0x100   : > { %788 = vst.msk [vmem:[#allocation3 + $0x1a8] sm:$0xff] %vm456_vm0, %v8082_v23 }
 0x101   : > { %789 = vst.msk [vmem:[#allocation3 + $0x1b0] sm:$0xff] %vm456_vm0, %v8083_v24 }
 0x102   : > { %790 = vst.msk [vmem:[#allocation3 + $0x1c8] sm:$0xff] %vm456_vm0, %v8086_v26 }
 0x103   : > { %791 = vst.msk [vmem:[#allocation3 + $0x1d0] sm:$0xff] %vm456_vm0, %v8087_v27 }
 0x104   : > { %792 = vst.msk [vmem:[#allocation3 + $0x1e8] sm:$0xff] %vm456_vm0, %v8090_v29 }
 0x105   : > { %793 = vst.msk [vmem:[#allocation3 + $0x1f0] sm:$0xff] %vm456_vm0, %v8091_v30 }
 0x106   : > { %794 = vst.msk [vmem:[#allocation3 + $0x208] sm:$0xff] %vm456_vm0, %v8094_v31 }
 0x107   : > { %795 = vst.msk [vmem:[#allocation3 + $0x210] sm:$0xff] %vm456_vm0, %v8095_v32 }
 0x108 PF: > { %v6604_v33 = vld [vmem:[%s12102_s4 + $0x30] sm:$0xf]  ;;  %v7833_v34 = vld [vmem:[%s12102_s4 + $0x34] sm:$0xf0]  ;;  %v7824_v38 = vld [vmem:[%s12101_s3 + $0x34] sm:$0xf] }
 0x109   : > { %v6652_v35 = vld [vmem:[%s12101_s3 + $0x30] sm:$0xf]  ;;  %v6605_v36 = vor.u32 %v7833_v34, %v6604_v33  ;;  %v7825_v37 = vld [vmem:[%s12101_s3 + $0x34] sm:$0xf0]  ;;  %v6654_v39 = vld [vmem:[%s12101_s3 + $0x38] sm:$0xf0] }
 0x10a   : > { %v6653_v40 = vor.u32 %v7825_v37, %v6652_v35  ;;  %v6657_v41 = vor.u32 %v7824_v38, %v6654_v39  ;;  %v6596_v42 = vld [vmem:[%s12102_s4 + $0x20] sm:$0xf]  ;;  %v7831_v43 = vld [vmem:[%s12102_s4 + $0x24] sm:$0xf0]  ;;  %v7822_v47 = vld [vmem:[%s12101_s3 + $0x24] sm:$0xf] }
 0x10b   : > { %v6644_v44 = vld [vmem:[%s12101_s3 + $0x20] sm:$0xf]  ;;  %997 = vmatpush.bf16.msra.mxu0 %v6605_v36  ;;  %v6597_v45 = vor.u32 %v7831_v43, %v6596_v42  ;;  %v7823_v46 = vld [vmem:[%s12101_s3 + $0x24] sm:$0xf0]  ;;  %v6646_v48 = vld [vmem:[%s12101_s3 + $0x28] sm:$0xf0] }
 0x10c   : > { %1159 = vmatpush.bf16.msra.mxu2 %v6653_v40  ;;  %1208 = vmatpush.bf16.msra.mxu3 %v6657_v41  ;;  %v6645_v49 = vor.u32 %v7823_v46, %v6644_v44  ;;  %v6649_v50 = vor.u32 %v7822_v47, %v6646_v48  ;;  %v7832_v51 = vld [vmem:[%s12102_s4 + $0x34] sm:$0xf]  ;;  %v6606_v52 = vld [vmem:[%s12102_s4 + $0x38] sm:$0xf0]  ;;  %v6588_v53 = vld [vmem:[%s12102_s4 + $0x10] sm:$0xf] }
 0x10d   : > { %v6609_v54 = vor.u32 %v7832_v51, %v6606_v52  ;;  %v7829_v55 = vld [vmem:[%s12102_s4 + $0x14] sm:$0xf0]  ;;  %v6636_v56 = vld [vmem:[%s12101_s3 + $0x10] sm:$0xf]  ;;  %v7820_v58 = vld [vmem:[%s12101_s3 + $0x14] sm:$0xf] }
 0x10e   : > { %v7821_v57 = vld [vmem:[%s12101_s3 + $0x14] sm:$0xf0]  ;;  %v6638_v59 = vld [vmem:[%s12101_s3 + $0x18] sm:$0xf0]  ;;  %v7830_v60 = vld [vmem:[%s12102_s4 + $0x24] sm:$0xf]  ;;  %v6589_v61 = vor.u32 %v7829_v55, %v6588_v53 }
 0x10f   : > { %998 = vmatpush.bf16.msra.mxu0 %v6597_v45  ;;  %1046 = vmatpush.bf16.msra.mxu1 %v6609_v54  ;;  %v6598_v62 = vld [vmem:[%s12102_s4 + $0x28] sm:$0xf0]  ;;  %v6580_v63 = vld [vmem:[%s12102_s4] sm:$0xf]  ;;  %v7827_v0 = vld [vmem:[%s12102_s4 + $0x4] sm:$0xf0]  ;;  %v6637_v1 = vor.u32 %v7821_v57, %v6636_v56  ;;  %v6641_v2 = vor.u32 %v7820_v58, %v6638_v59 }
 0x110   : > { %1160 = vmatpush.bf16.msra.mxu2 %v6645_v49  ;;  %1209 = vmatpush.bf16.msra.mxu3 %v6649_v50  ;;  %v6601_v3 = vor.u32 %v7830_v60, %v6598_v62  ;;  %v6628_v4 = vld [vmem:[%s12101_s3] sm:$0xf]  ;;  %v7819_v5 = vld [vmem:[%s12101_s3 + $0x4] sm:$0xf0]  ;;  %v7818_v6 = vld [vmem:[%s12101_s3 + $0x4] sm:$0xf]  ;;  %v6581_v12 = vor.u32 %v7827_v0, %v6580_v63 }
 0x111   : > { %v6630_v7 = vld [vmem:[%s12101_s3 + $0x8] sm:$0xf0]  ;;  %v7828_v8 = vld [vmem:[%s12102_s4 + $0x14] sm:$0xf]  ;;  %v6590_v9 = vld [vmem:[%s12102_s4 + $0x18] sm:$0xf0]  ;;  %v6629_v16 = vor.u32 %v7819_v5, %v6628_v4 }
 0x112   : > { %s7817_s21 = sshll.u32 %s8551_s27, 8  ;;  %v6764_v10 = vld [vmem:[%s12101_s3 + $0x70] sm:$0xf]  ;;  %v7841_v11 = vld [vmem:[%s12101_s3 + $0x74] sm:$0xf0]  ;;  %v6593_v13 = vor.u32 %v7828_v8, %v6590_v9  ;;  %v6633_v17 = vor.u32 %v7818_v6, %v6630_v7  ;;  %vm968_vm2 = vcmask 523264  }
 0x113   : > { %999 = vmatpush.bf16.msra.mxu0 %v6589_v61  ;;  %1047 = vmatpush.bf16.msra.mxu1 %v6601_v3  ;;  %v7826_v14 = vld [vmem:[%s12102_s4 + $0x4] sm:$0xf]  ;;  %v6582_v15 = vld [vmem:[%s12102_s4 + $0x8] sm:$0xf0]  ;;  %s9219_s12 = scalar_lea.vmem [#allocation3], %s7817_s21  ;;  %s9223_s7 = scalar_lea.vmem [#allocation2], %s7817_s21  ;;  %v6765_v22 = vor.u32 %v7841_v11, %v6764_v10 }
 0x114   : > { %1161 = vmatpush.bf16.msra.mxu2 %v6637_v1  ;;  %1210 = vmatpush.bf16.msra.mxu3 %v6641_v2  ;;  %v848_v18 = vld [vmem:[%s9219_s12 + $0x7] sm:$0xff]  ;;  %v849_v19 = vld [vmem:[%s9219_s12 + $0xf] sm:$0xff]  ;;  %v7849_v24 = vld [vmem:[%s12102_s4 + $0x74] sm:$0xf0]  ;;  %v6585_v30 = vor.u32 %v7826_v14, %v6582_v15  ;;  %s8572_s22 = smov 64   ;;  %s7806_s23 = sshll.u32 %s8555_s28, 5 }
 0x115   : > { %v831_v20 = vld [vmem:[%s9223_s7 + $0x7] sm:$0xff]  ;;  %v832_v21 = vld [vmem:[%s9223_s7 + $0xf] sm:$0xff]  ;;  %v872_v25 = vpack.c.bf16 %v849_v19, %v848_v18  ;;  %v6766_v29 = vld [vmem:[%s12101_s3 + $0x78] sm:$0xf0]  ;;  %s6313_s13 = sshll.u32 %s8727_s14, 4  ;;  %s12125_s26 = sld [smem:[#allocation20_spill]]  ;;  %s6314_s13 = int_to_ptr.vmem [resolvable:$true] %s6313_s13 }
 0x116   : > { %v6716_v23 = vld [vmem:[%s12102_s4 + $0x70] sm:$0xf]  ;;  %v864_v27 = vpack.c.bf16 %v832_v21, %v831_v20  ;;  %v7840_v28 = vld [vmem:[%s12101_s3 + $0x74] sm:$0xf]  ;;  %v6718_v33 = vld [vmem:[%s12102_s4 + $0x78] sm:$0xf0] }
 0x117   : > { %v6717_v26 = vor.u32 %v7849_v24, %v6716_v23  ;;  %1000 = vmatpush.bf16.msra.mxu0 %v6581_v12  ;;  %1048 = vmatpush.bf16.msra.mxu1 %v6593_v13  ;;  %v6769_v31 = vor.u32 %v7840_v28, %v6766_v29  ;;  %v7848_v32 = vld [vmem:[%s12102_s4 + $0x74] sm:$0xf]  ;;  %v6756_v35 = vld [vmem:[%s12101_s3 + $0x60] sm:$0xf]  ;;  %v7839_v36 = vld [vmem:[%s12101_s3 + $0x64] sm:$0xf0] }
 0x118   : > { %1162 = vmatpush.bf16.msra.mxu2 %v6629_v16  ;;  %1211 = vmatpush.bf16.msra.mxu3 %v6633_v17  ;;  %v6721_v34 = vor.u32 %v7848_v32, %v6718_v33  ;;  %v6757_v37 = vor.u32 %v7839_v36, %v6756_v35  ;;  %v6708_v38 = vld [vmem:[%s12102_s4 + $0x60] sm:$0xf]  ;;  %v7847_v39 = vld [vmem:[%s12102_s4 + $0x64] sm:$0xf0]  ;;  %v851_v42 = vld [vmem:[%s9219_s12 + $0x2f] sm:$0xff]  ;;  %s8457_s10 = scalar_lea.hbm %s12104_s6, 512 }
 0x119   : > { %v6709_v40 = vor.u32 %v7847_v39, %v6708_v38  ;;  %v850_v41 = vld [vmem:[%s9219_s12 + $0x27] sm:$0xff]  ;;  %v834_v44 = vld [vmem:[%s9223_s7 + $0x2f] sm:$0xff]  ;;  %v7837_v60 = vld [vmem:[%s12101_s3 + $0x54] sm:$0xf0] }
 0x11a   : > { %6610 = vmatmul.msk.bf16.vlgmr.msra.gmra.mxu0 %vm968_vm2, %v872_v25  ;;  %v833_v43 = vld [vmem:[%s9223_s7 + $0x27] sm:$0xff]  ;;  %v873_v45 = vpack.c.bf16 %v851_v42, %v850_v41  ;;  %v853_v54 = vld [vmem:[%s9219_s12 + $0x4f] sm:$0xff]  ;;  %v7845_v63 = vld [vmem:[%s12102_s4 + $0x54] sm:$0xf0] }
 0x11b   : > { %1483 = vmatpush.bf16.msrb.mxu0 %v6717_v26  ;;  %6658 = vmatmul.msk.bf16.vlgmr.msra.gmra.mxu2 %vm968_vm2, %v864_v27  ;;  %v865_v46 = vpack.c.bf16 %v834_v44, %v833_v43  ;;  %v7838_v47 = vld [vmem:[%s12101_s3 + $0x64] sm:$0xf]  ;;  %v6758_v48 = vld [vmem:[%s12101_s3 + $0x68] sm:$0xf0]  ;;  %v6748_v59 = vld [vmem:[%s12101_s3 + $0x50] sm:$0xf]  ;;  %s12126_s20 = smov %s12125_s26 }
 0x11c   : > { %1645 = vmatpush.bf16.msrb.mxu2 %v6765_v22  ;;  %1694 = vmatpush.bf16.msrb.mxu3 %v6769_v31  ;;  %v6761_v49 = vor.u32 %v7838_v47, %v6758_v48  ;;  %v7846_v50 = vld [vmem:[%s12102_s4 + $0x64] sm:$0xf]  ;;  %v6710_v51 = vld [vmem:[%s12102_s4 + $0x68] sm:$0xf0]  ;;  %v6749_v61 = vor.u32 %v7837_v60, %v6748_v59  ;;  %v6700_v62 = vld [vmem:[%s12102_s4 + $0x50] sm:$0xf] }
 0x11d   : > { %6666 = vmatmul.msk.bf16.vlgmr.msra.gmra.mxu3 %vm968_vm2, %v864_v27  ;;  %1049 = vmatpush.bf16.msra.mxu1 %v6585_v30  ;;  %v6713_v52 = vor.u32 %v7846_v50, %v6710_v51  ;;  %v852_v53 = vld [vmem:[%s9219_s12 + $0x47] sm:$0xff]  ;;  %v836_v56 = vld [vmem:[%s9223_s7 + $0x4f] sm:$0xff]  ;;  %v6701_v0 = vor.u32 %v7845_v63, %v6700_v62  ;;  %v6750_v8 = vld [vmem:[%s12101_s3 + $0x58] sm:$0xf0] }
 0x11e   : > { %v835_v55 = vld [vmem:[%s9223_s7 + $0x47] sm:$0xff]  ;;  %v874_v57 = vpack.c.bf16 %v853_v54, %v852_v53  ;;  %v855_v2 = vld [vmem:[%s9219_s12 + $0x6f] sm:$0xff]  ;;  %v6702_v11 = vld [vmem:[%s12102_s4 + $0x58] sm:$0xf0] }
 0x11f   : > { %1484 = vmatpush.bf16.msrb.mxu0 %v6709_v40  ;;  %v866_v58 = vpack.c.bf16 %v836_v56, %v835_v55  ;;  %v854_v1 = vld [vmem:[%s9219_s12 + $0x67] sm:$0xff]  ;;  %v838_v4 = vld [vmem:[%s9223_s7 + $0x6f] sm:$0xff]  ;;  %v6740_v19 = vld [vmem:[%s12101_s3 + $0x40] sm:$0xf] }
 0x120   : > { %1646 = vmatpush.bf16.msrb.mxu2 %v6757_v37  ;;  %6618 = vmatmul.msk.bf16.vlgmr.msra.gmra.mxu1 %vm968_vm2, %v872_v25  ;;  %v837_v3 = vld [vmem:[%s9223_s7 + $0x67] sm:$0xff]  ;;  %v875_v5 = vpack.c.bf16 %v855_v2, %v854_v1  ;;  %v7836_v7 = vld [vmem:[%s12101_s3 + $0x54] sm:$0xf]  ;;  %v6692_v22 = vld [vmem:[%s12102_s4 + $0x40] sm:$0xf] }
 0x121   : > { %1532 = vmatpush.bf16.msrb.mxu1 %v6721_v34  ;;  %1695 = vmatpush.bf16.msrb.mxu3 %v6761_v49  ;;  %v867_v6 = vpack.c.bf16 %v838_v4, %v837_v3  ;;  %v6753_v9 = vor.u32 %v7836_v7, %v6750_v8  ;;  %v7844_v10 = vld [vmem:[%s12102_s4 + $0x54] sm:$0xf]  ;;  %v856_v13 = vld [vmem:[%s9219_s12 + $0x87] sm:$0xff]  ;;  %v6876_v43 = vld [vmem:[%s12101_s3 + $0xb0] sm:$0xf] }
 0x122   : > { %v6705_v12 = vor.u32 %v7844_v10, %v6702_v11  ;;  %v857_v14 = vld [vmem:[%s9219_s12 + $0x8f] sm:$0xff]  ;;  %v839_v15 = vld [vmem:[%s9223_s7 + $0x87] sm:$0xff]  ;;  %v7857_v44 = vld [vmem:[%s12101_s3 + $0xb4] sm:$0xf0] }
 0x123   : > { %1485 = vmatpush.bf16.msrb.mxu0 %v6701_v0  ;;  %v840_v16 = vld [vmem:[%s9223_s7 + $0x8f] sm:$0xff]  ;;  %v876_v17 = vpack.c.bf16 %v857_v14, %v856_v13  ;;  %v7835_v20 = vld [vmem:[%s12101_s3 + $0x44] sm:$0xf0]  ;;  %v7834_v31 = vld [vmem:[%s12101_s3 + $0x44] sm:$0xf] }
 0x124   : > { %1647 = vmatpush.bf16.msrb.mxu2 %v6749_v61  ;;  %v868_v18 = vpack.c.bf16 %v840_v16, %v839_v15  ;;  %v6741_v21 = vor.u32 %v7835_v20, %v6740_v19  ;;  %v7843_v23 = vld [vmem:[%s12102_s4 + $0x44] sm:$0xf0]  ;;  %v859_v26 = vld [vmem:[%s9219_s12 + $0xaf] sm:$0xff]  ;;  %v7842_v34 = vld [vmem:[%s12102_s4 + $0x44] sm:$0xf] }
 0x125   : > { %1533 = vmatpush.bf16.msrb.mxu1 %v6713_v52  ;;  %1696 = vmatpush.bf16.msrb.mxu3 %v6753_v9  ;;  %v6693_v24 = vor.u32 %v7843_v23, %v6692_v22  ;;  %v858_v25 = vld [vmem:[%s9219_s12 + $0xa7] sm:$0xff]  ;;  %v842_v28 = vld [vmem:[%s9223_s7 + $0xaf] sm:$0xff]  ;;  %v7865_v47 = vld [vmem:[%s12102_s4 + $0xb4] sm:$0xf0] }
 0x126   : > { %v841_v27 = vld [vmem:[%s9223_s7 + $0xa7] sm:$0xff]  ;;  %v877_v29 = vpack.c.bf16 %v859_v26, %v858_v25  ;;  %v861_v38 = vld [vmem:[%s9219_s12 + $0xcf] sm:$0xff]  ;;  %v6878_v56 = vld [vmem:[%s12101_s3 + $0xb8] sm:$0xf0] }
 0x127   : > { %1486 = vmatpush.bf16.msrb.mxu0 %v6693_v24  ;;  %v869_v30 = vpack.c.bf16 %v842_v28, %v841_v27  ;;  %v6742_v32 = vld [vmem:[%s12101_s3 + $0x48] sm:$0xf0]  ;;  %v7856_v55 = vld [vmem:[%s12101_s3 + $0xb4] sm:$0xf]  ;;  %v6830_v2 = vld [vmem:[%s12102_s4 + $0xb8] sm:$0xf0] }
 0x128   : > { %1648 = vmatpush.bf16.msrb.mxu2 %v6741_v21  ;;  %v6745_v33 = vor.u32 %v7834_v31, %v6742_v32  ;;  %v6694_v35 = vld [vmem:[%s12102_s4 + $0x48] sm:$0xf0]  ;;  %v1334_v59 = vld [vmem:[%s9219_s12 + $0x10] sm:$0xff]  ;;  %v6868_v4 = vld [vmem:[%s12101_s3 + $0xa0] sm:$0xf] }
 0x129   : > { %1534 = vmatpush.bf16.msrb.mxu1 %v6705_v12  ;;  %v6697_v36 = vor.u32 %v7842_v34, %v6694_v35  ;;  %v860_v37 = vld [vmem:[%s9219_s12 + $0xc7] sm:$0xff]  ;;  %v844_v40 = vld [vmem:[%s9223_s7 + $0xcf] sm:$0xff]  ;;  %v6820_v13 = vld [vmem:[%s12102_s4 + $0xa0] sm:$0xf] }
 0x12a   : > { %6611 = vmatmul.msk.bf16.gmra.mxu0 %vm968_vm2, %v873_v45  ;;  %1697 = vmatpush.bf16.msrb.mxu3 %v6745_v33  ;;  %v843_v39 = vld [vmem:[%s9223_s7 + $0xc7] sm:$0xff]  ;;  %v878_v41 = vpack.c.bf16 %v861_v38, %v860_v37  ;;  %v863_v50 = vld [vmem:[%s9219_s12 + $0xef] sm:$0xff] }
 0x12b   : > { %6659 = vmatmul.msk.bf16.gmra.mxu2 %vm968_vm2, %v865_v46  ;;  %v870_v42 = vpack.c.bf16 %v844_v40, %v843_v39  ;;  %v862_v49 = vld [vmem:[%s9219_s12 + $0xe7] sm:$0xff]  ;;  %v846_v52 = vld [vmem:[%s9223_s7 + $0xef] sm:$0xff] }
 0x12c   : > { %v845_v51 = vld [vmem:[%s9223_s7 + $0xe7] sm:$0xff]  ;;  %v879_v53 = vpack.c.bf16 %v863_v50, %v862_v49  ;;  %v1318_v61 = vld [vmem:[%s9223_s7 + $0x10] sm:$0xff] }
 0x12d   : > { %6667 = vmatmul.msk.bf16.gmra.mxu3 %vm968_vm2, %v865_v46  ;;  %1535 = vmatpush.bf16.msrb.mxu1 %v6697_v36  ;;  %v6828_v46 = vld [vmem:[%s12102_s4 + $0xb0] sm:$0xf]  ;;  %v871_v54 = vpack.c.bf16 %v846_v52, %v845_v51  ;;  %v1317_v60 = vld [vmem:[%s9223_s7 + $0x8] sm:$0xff]  ;;  %v7864_v1 = vld [vmem:[%s12102_s4 + $0xb4] sm:$0xf] }
 0x12e   : > { %v6829_v48 = vor.u32 %v7865_v47, %v6828_v46  ;;  %v1349_v0 = vpack.c.bf16 %v1318_v61, %v1317_v60  ;;  %v6833_v3 = vor.u32 %v7864_v1, %v6830_v2  ;;  %v7863_v14 = vld [vmem:[%s12102_s4 + $0xa4] sm:$0xf0]  ;;  %v1320_v20 = vld [vmem:[%s9223_s7 + $0x30] sm:$0xff]  ;;  %v7854_v34 = vld [vmem:[%s12101_s3 + $0xa4] sm:$0xf] }
 0x12f   : > { %v6821_v15 = vor.u32 %v7863_v14, %v6820_v13  ;;  %v1335_v16 = vld [vmem:[%s9219_s12 + $0x28] sm:$0xff]  ;;  %v1338_v38 = vld [vmem:[%s9219_s12 + $0x50] sm:$0xff]  ;;  %v7862_v49 = vld [vmem:[%s12102_s4 + $0xa4] sm:$0xf] }
 0x130   : > { %6619 = vmatmul.msk.bf16.gmra.mxu1 %vm968_vm2, %v873_v45  ;;  %v6877_v45 = vor.u32 %v7857_v44, %v6876_v43  ;;  %1969 = vmatpush.bf16.msra.mxu0 %v6829_v48  ;;  %v1319_v19 = vld [vmem:[%s9223_s7 + $0x28] sm:$0xff]  ;;  %v6860_v52 = vld [vmem:[%s12101_s3 + $0x90] sm:$0xf] }
 0x131   : > { %2018 = vmatpush.bf16.msra.mxu1 %v6833_v3  ;;  %v1350_v27 = vpack.c.bf16 %v1320_v20, %v1319_v19  ;;  %v6870_v35 = vld [vmem:[%s12101_s3 + $0xa8] sm:$0xf0]  ;;  %v6812_v61 = vld [vmem:[%s12102_s4 + $0x90] sm:$0xf]  ;;  %v7852_v20 = vld [vmem:[%s12101_s3 + $0x94] sm:$0xf] }
 0x132   : > { %2131 = vmatpush.bf16.msra.mxu2 %v6877_v45  ;;  %v6873_v36 = vor.u32 %v7854_v34, %v6870_v35  ;;  %v1337_v37 = vld [vmem:[%s9219_s12 + $0x48] sm:$0xff]  ;;  %v1340_v1 = vld [vmem:[%s9219_s12 + $0x70] sm:$0xff] }
 0x133   : > { %v1321_v40 = vld [vmem:[%s9223_s7 + $0x48] sm:$0xff]  ;;  %v1359_v44 = vpack.c.bf16 %v1338_v38, %v1337_v37 }
 0x134   : > { %1970 = vmatpush.bf16.msra.mxu0 %v6821_v15  ;;  %v6822_v50 = vld [vmem:[%s12102_s4 + $0xa8] sm:$0xf0] }
 0x135   : > { %v6825_v51 = vor.u32 %v7862_v49, %v6822_v50  ;;  %v1323_v3 = vld [vmem:[%s9223_s7 + $0x68] sm:$0xff] }
 0x137   : > { %2019 = vmatpush.bf16.msra.mxu1 %v6825_v51 }
 0x13a   : > { %6612 = vmatmul.msk.bf16.gmra.mxu0 %vm968_vm2, %v874_v57 }
 0x13b   : > { %6660 = vmatmul.msk.bf16.gmra.mxu2 %vm968_vm2, %v866_v58 }
 0x13d   : > { %6668 = vmatmul.msk.bf16.gmra.mxu3 %vm968_vm2, %v866_v58  ;;  %v1333_v58 = vld [vmem:[%s9219_s12 + $0x8] sm:$0xff] }
 0x13e   : > { %v1357_v62 = vpack.c.bf16 %v1334_v59, %v1333_v58 }
 0x140   : > { %6620 = vmatmul.msk.bf16.gmra.mxu1 %vm968_vm2, %v874_v57  ;;  %v6881_v57 = vor.u32 %v7856_v55, %v6878_v56 }
 0x142   : > { %2180 = vmatpush.bf16.msra.mxu3 %v6881_v57 }
 0x146   : > { %2181 = vmatpush.bf16.msra.mxu3 %v6873_v36 }
 0x14a   : > { %6613 = vmatmul.msk.bf16.gmra.mxu0 %vm968_vm2, %v875_v5 }
 0x14b   : > { %6661 = vmatmul.msk.bf16.gmra.mxu2 %vm968_vm2, %v867_v6 }
 0x14d   : > { %6669 = vmatmul.msk.bf16.gmra.mxu3 %vm968_vm2, %v867_v6 }
 0x150   : > { %6621 = vmatmul.msk.bf16.gmra.mxu1 %vm968_vm2, %v875_v5  ;;  %v7855_v5 = vld [vmem:[%s12101_s3 + $0xa4] sm:$0xf0] }
 0x151   : > { %v6869_v7 = vor.u32 %v7855_v5, %v6868_v4  ;;  %v1324_v4 = vld [vmem:[%s9223_s7 + $0x70] sm:$0xff] }
 0x152   : > { %v1352_v13 = vpack.c.bf16 %v1324_v4, %v1323_v3 }
 0x153   : > { %2132 = vmatpush.bf16.msra.mxu2 %v6869_v7 }
 0x15a   : > { %6614 = vmatmul.msk.bf16.gmra.mxu0 %vm968_vm2, %v876_v17 }
 0x15b   : > { %6662 = vmatmul.msk.bf16.gmra.mxu2 %vm968_vm2, %v868_v18 }
 0x15d   : > { %6670 = vmatmul.msk.bf16.gmra.mxu3 %vm968_vm2, %v868_v18 }
 0x160   : > { %6622 = vmatmul.msk.bf16.gmra.mxu1 %vm968_vm2, %v876_v17  ;;  %v1336_v17 = vld [vmem:[%s9219_s12 + $0x30] sm:$0xff] }
 0x161   : > { %v1358_v23 = vpack.c.bf16 %v1336_v17, %v1335_v16 }
 0x16a   : > { %6615 = vmatmul.msk.bf16.gmra.mxu0 %vm968_vm2, %v877_v29 }
 0x16b   : > { %6663 = vmatmul.msk.bf16.gmra.mxu2 %vm968_vm2, %v869_v30 }
 0x16d   : > { %6671 = vmatmul.msk.bf16.gmra.mxu3 %vm968_vm2, %v869_v30 }
 0x170   : > { %6623 = vmatmul.msk.bf16.gmra.mxu1 %vm968_vm2, %v877_v29 }
 0x17a   : > { %6616 = vmatmul.msk.bf16.gmra.mxu0 %vm968_vm2, %v878_v41 }
 0x17b   : > { %6664 = vmatmul.msk.bf16.gmra.mxu2 %vm968_vm2, %v870_v42 }
 0x17d   : > { %6672 = vmatmul.msk.bf16.gmra.mxu3 %vm968_vm2, %v870_v42 }
 0x180   : > { %6624 = vmatmul.msk.bf16.gmra.mxu1 %vm968_vm2, %v878_v41  ;;  %v1322_v41 = vld [vmem:[%s9223_s7 + $0x50] sm:$0xff] }
 0x181   : > { %v1351_v48 = vpack.c.bf16 %v1322_v41, %v1321_v40  ;;  %v6814_v40 = vld [vmem:[%s12102_s4 + $0x98] sm:$0xf0] }
 0x18a   : > { %6617 = vmatmul.msk.bf16.gmra.mxu0 %vm968_vm2, %v879_v53 }
 0x18b   : > { %6665 = vmatmul.msk.bf16.gmra.mxu2 %vm968_vm2, %v871_v54 }
 0x18d   : > { %6673 = vmatmul.msk.bf16.gmra.mxu3 %vm968_vm2, %v871_v54 }
 0x190   : > { %6625 = vmatmul.msk.bf16.gmra.mxu1 %vm968_vm2, %v879_v53  ;;  %v7853_v53 = vld [vmem:[%s12101_s3 + $0x94] sm:$0xf0] }
 0x191   : > { %v6861_v55 = vor.u32 %v7853_v53, %v6860_v52  ;;  %v6804_v53 = vld [vmem:[%s12102_s4 + $0x80] sm:$0xf] }
 0x193   : > { %2133 = vmatpush.bf16.msra.mxu2 %v6861_v55 }
 0x197   : > { %v1002_v63 = vpop.f32.mrf.mxu0 }
 0x19a   : > { %6722 = vmatmul.msk.bf16.vlgmr.msrb.gmra.mxu0 %vm968_vm2, %v1357_v62 }
 0x19b   : > { %6770 = vmatmul.msk.bf16.vlgmr.msrb.gmra.mxu2 %vm968_vm2, %v1349_v0 }
 0x19d   : > { %6778 = vmatmul.msk.bf16.vlgmr.msrb.gmra.mxu3 %vm968_vm2, %v1349_v0  ;;  %v1051_v6 = vpop.f32.mrf.mxu1  ;;  %v1339_v0 = vld [vmem:[%s9219_s12 + $0x68] sm:$0xff] }
 0x19e   : > { %v1164_v8 = vpop.f32.mrf.mxu2  ;;  %v1360_v7 = vpack.c.bf16 %v1340_v1, %v1339_v0 }
 0x19f   : > { %v9414_v10 = vadd.f32 %v1164_v8, %v1002_v63  ;;  %v1004_v12 = vpop.f32.mrf.mxu0 }
 0x1a0   : > { %v1213_v9 = vpop.f32.mrf.mxu3  ;;  %6730 = vmatmul.msk.bf16.vlgmr.msrb.gmra.mxu1 %vm968_vm2, %v1357_v62  ;;  %v7861_v62 = vld [vmem:[%s12102_s4 + $0x94] sm:$0xf0] }
 0x1a1   : > { %v9416_v11 = vadd.f32 %v1213_v9, %v1051_v6  ;;  %v6813_v63 = vor.u32 %v7861_v62, %v6812_v61  ;;  %v1327_v61 = vld [vmem:[%s9223_s7 + $0xa8] sm:$0xff]  ;;  %v1328_v62 = vld [vmem:[%s9223_s7 + $0xb0] sm:$0xff] }
 0x1a3   : > { %1971 = vmatpush.bf16.msra.mxu0 %v6813_v63 }
 0x1a5   : > { %v1053_v18 = vpop.f32.mrf.mxu1 }
 0x1a6   : > { %v1166_v21 = vpop.f32.mrf.mxu2 }
 0x1a7   : > { %v9429_v24 = vadd.f32 %v1166_v21, %v1004_v12  ;;  %v1007_v26 = vpop.f32.mrf.mxu0  ;;  %v6862_v21 = vld [vmem:[%s12101_s3 + $0x98] sm:$0xf0] }
 0x1a8   : > { %v1215_v22 = vpop.f32.mrf.mxu3 }
 0x1a9   : > { %v9431_v25 = vadd.f32 %v1215_v22, %v1053_v18  ;;  %v6865_v22 = vor.u32 %v7852_v20, %v6862_v21  ;;  %v1345_v21 = vld [vmem:[%s9219_s12 + $0xc8] sm:$0xff] }
 0x1aa   : > { %6723 = vmatmul.msk.bf16.gmra.mxu0 %vm968_vm2, %v1358_v23 }
 0x1ab   : > { %6771 = vmatmul.msk.bf16.gmra.mxu2 %vm968_vm2, %v1350_v27  ;;  %2182 = vmatpush.bf16.msra.mxu3 %v6865_v22  ;;  %v1346_v22 = vld [vmem:[%s9219_s12 + $0xd0] sm:$0xff] }
 0x1ad   : > { %6779 = vmatmul.msk.bf16.gmra.mxu3 %vm968_vm2, %v1350_v27  ;;  %v1056_v28 = vpop.f32.mrf.mxu1 }
 0x1ae   : > { %v1169_v29 = vpop.f32.mrf.mxu2 }
 0x1af   : > { %v9436_v31 = vadd.f32 %v1169_v29, %v1007_v26  ;;  %v1009_v33 = vpop.f32.mrf.mxu0  ;;  %v1342_v26 = vld [vmem:[%s9219_s12 + $0x90] sm:$0xff] }
 0x1b0   : > { %v1218_v30 = vpop.f32.mrf.mxu3  ;;  %6731 = vmatmul.msk.bf16.gmra.mxu1 %vm968_vm2, %v1358_v23  ;;  %v1341_v23 = vld [vmem:[%s9219_s12 + $0x88] sm:$0xff]  ;;  %v1326_v29 = vld [vmem:[%s9223_s7 + $0x90] sm:$0xff] }
 0x1b1   : > { %v9438_v32 = vadd.f32 %v1218_v30, %v1056_v28  ;;  %v1325_v28 = vld [vmem:[%s9223_s7 + $0x88] sm:$0xff]  ;;  %v1361_v34 = vpack.c.bf16 %v1342_v26, %v1341_v23 }
 0x1b2   : > { %v1353_v38 = vpack.c.bf16 %v1326_v29, %v1325_v28  ;;  %v1329_v26 = vld [vmem:[%s9223_s7 + $0xc8] sm:$0xff] }
 0x1b5   : > { %v1058_v39 = vpop.f32.mrf.mxu1 }
 0x1b6   : > { %v1171_v42 = vpop.f32.mrf.mxu2 }
 0x1b7   : > { %v9451_v45 = vadd.f32 %v1171_v42, %v1009_v33  ;;  %v1012_v47 = vpop.f32.mrf.mxu0  ;;  %v6852_v42 = vld [vmem:[%s12101_s3 + $0x80] sm:$0xf] }
 0x1b8   : > { %v1220_v43 = vpop.f32.mrf.mxu3 }
 0x1b9   : > { %v9453_v46 = vadd.f32 %v1220_v43, %v1058_v39  ;;  %v7860_v39 = vld [vmem:[%s12102_s4 + $0x94] sm:$0xf]  ;;  %v7851_v43 = vld [vmem:[%s12101_s3 + $0x84] sm:$0xf0] }
 0x1ba   : > { %6724 = vmatmul.msk.bf16.gmra.mxu0 %vm968_vm2, %v1359_v44  ;;  %v6817_v41 = vor.u32 %v7860_v39, %v6814_v40  ;;  %v7858_v39 = vld [vmem:[%s12102_s4 + $0x84] sm:$0xf]  ;;  %v6806_v40 = vld [vmem:[%s12102_s4 + $0x88] sm:$0xf0] }
 0x1bb   : > { %6772 = vmatmul.msk.bf16.gmra.mxu2 %vm968_vm2, %v1351_v48 }
 0x1bc   : > { %2020 = vmatpush.bf16.msra.mxu1 %v6817_v41  ;;  %v6809_v41 = vor.u32 %v7858_v39, %v6806_v40  ;;  %v1804_v39 = vld [vmem:[%s9223_s7 + $0x11] sm:$0xff] }
 0x1bd   : > { %6780 = vmatmul.msk.bf16.gmra.mxu3 %vm968_vm2, %v1351_v48  ;;  %v1061_v54 = vpop.f32.mrf.mxu1 }
 0x1be   : > { %v1174_v56 = vpop.f32.mrf.mxu2 }
 0x1bf   : > { %v9470_v58 = vadd.f32 %v1174_v56, %v1012_v47  ;;  %v1014_v60 = vpop.f32.mrf.mxu0  ;;  %v6853_v47 = vor.u32 %v7851_v43, %v6852_v42  ;;  %v1343_v56 = vld [vmem:[%s9219_s12 + $0xa8] sm:$0xff]  ;;  %v7024_v42 = vld [vmem:[%s12101_s3 + $0xf0] sm:$0xf]  ;;  %v7875_v43 = vld [vmem:[%s12101_s3 + $0xf4] sm:$0xf0] }
 0x1c0   : > { %v1223_v57 = vpop.f32.mrf.mxu3  ;;  %6732 = vmatmul.msk.bf16.gmra.mxu1 %vm968_vm2, %v1359_v44 }
 0x1c1   : > { %v9472_v59 = vadd.f32 %v1223_v57, %v1061_v54  ;;  %2134 = vmatpush.bf16.msra.mxu2 %v6853_v47  ;;  %v7859_v54 = vld [vmem:[%s12102_s4 + $0x84] sm:$0xf0]  ;;  %v1344_v57 = vld [vmem:[%s9219_s12 + $0xb0] sm:$0xff]  ;;  %2021 = vmatpush.bf16.msra.mxu1 %v6809_v41  ;;  %v7025_v47 = vor.u32 %v7875_v43, %v7024_v42 }
 0x1c2   : > { %v6805_v55 = vor.u32 %v7859_v54, %v6804_v53  ;;  %v1362_v1 = vpack.c.bf16 %v1344_v57, %v1343_v56  ;;  %v7883_v56 = vld [vmem:[%s12102_s4 + $0xf4] sm:$0xf0] }
 0x1c4   : > { %1972 = vmatpush.bf16.msra.mxu0 %v6805_v55  ;;  %v6976_v55 = vld [vmem:[%s12102_s4 + $0xf0] sm:$0xf] }
 0x1c5   : > { %v1063_v2 = vpop.f32.mrf.mxu1  ;;  %2621 = vmatpush.bf16.msrb.mxu2 %v7025_v47  ;;  %v6977_v57 = vor.u32 %v7883_v56, %v6976_v55  ;;  %v7016_v56 = vld [vmem:[%s12101_s3 + $0xe0] sm:$0xf] }
 0x1c6   : > { %v1176_v5 = vpop.f32.mrf.mxu2 }
 0x1c7   : > { %v9485_v8 = vadd.f32 %v1176_v5, %v1014_v60  ;;  %v1017_v12 = vpop.f32.mrf.mxu0  ;;  %v1354_v5 = vpack.c.bf16 %v1328_v62, %v1327_v61  ;;  %v1348_v61 = vld [vmem:[%s9219_s12 + $0xf0] sm:$0xff] }
 0x1c8   : > { %v1225_v6 = vpop.f32.mrf.mxu3  ;;  %2459 = vmatpush.bf16.msrb.mxu0 %v6977_v57  ;;  %v7873_v57 = vld [vmem:[%s12101_s3 + $0xe4] sm:$0xf0] }
 0x1c9   : > { %v9487_v9 = vadd.f32 %v1225_v6, %v1063_v2 }
 0x1ca   : > { %6725 = vmatmul.msk.bf16.gmra.mxu0 %vm968_vm2, %v1360_v7 }
 0x1cb   : > { %6773 = vmatmul.msk.bf16.gmra.mxu2 %vm968_vm2, %v1352_v13 }
 0x1cd   : > { %6781 = vmatmul.msk.bf16.gmra.mxu3 %vm968_vm2, %v1352_v13  ;;  %v1066_v14 = vpop.f32.mrf.mxu1 }
 0x1ce   : > { %v1179_v15 = vpop.f32.mrf.mxu2 }
 0x1cf   : > { %v9492_v17 = vadd.f32 %v1179_v15, %v1017_v12  ;;  %v1019_v19 = vpop.f32.mrf.mxu0 }
 0x1d0   : > { %v1228_v16 = vpop.f32.mrf.mxu3  ;;  %6733 = vmatmul.msk.bf16.gmra.mxu1 %vm968_vm2, %v1360_v7 }
 0x1d1   : > { %v9494_v18 = vadd.f32 %v1228_v16, %v1066_v14  ;;  %v7850_v16 = vld [vmem:[%s12101_s3 + $0x84] sm:$0xf] }
 0x1d5   : > { %v1068_v27 = vpop.f32.mrf.mxu1 }
 0x1d6   : > { %v1181_v30 = vpop.f32.mrf.mxu2 }
 0x1d7   : > { %v9507_v35 = vadd.f32 %v1181_v30, %v1019_v19  ;;  %v1022_v37 = vpop.f32.mrf.mxu0  ;;  %v6854_v19 = vld [vmem:[%s12101_s3 + $0x88] sm:$0xf0]  ;;  %v1363_v30 = vpack.c.bf16 %v1346_v22, %v1345_v21 }
 0x1d8   : > { %v1230_v33 = vpop.f32.mrf.mxu3  ;;  %v6857_v20 = vor.u32 %v7850_v16, %v6854_v19 }
 0x1d9   : > { %v9509_v36 = vadd.f32 %v1230_v33, %v1068_v27  ;;  %v1330_v27 = vld [vmem:[%s9223_s7 + $0xd0] sm:$0xff] }
 0x1da   : > { %6726 = vmatmul.msk.bf16.gmra.mxu0 %vm968_vm2, %v1361_v34  ;;  %2183 = vmatpush.bf16.msra.mxu3 %v6857_v20 }
 0x1db   : > { %6774 = vmatmul.msk.bf16.gmra.mxu2 %vm968_vm2, %v1353_v38 }
 0x1dd   : > { %6782 = vmatmul.msk.bf16.gmra.mxu3 %vm968_vm2, %v1353_v38  ;;  %v1071_v44 = vpop.f32.mrf.mxu1  ;;  %v1355_v38 = vpack.c.bf16 %v1330_v27, %v1329_v26  ;;  %v7874_v26 = vld [vmem:[%s12101_s3 + $0xf4] sm:$0xf]  ;;  %v7026_v27 = vld [vmem:[%s12101_s3 + $0xf8] sm:$0xf0] }
 0x1de   : > { %v1184_v48 = vpop.f32.mrf.mxu2 }
 0x1df   : > { %v9526_v50 = vadd.f32 %v1184_v48, %v1022_v37  ;;  %v1024_v52 = vpop.f32.mrf.mxu0 }
 0x1e0   : > { %v1233_v49 = vpop.f32.mrf.mxu3  ;;  %6734 = vmatmul.msk.bf16.gmra.mxu1 %vm968_vm2, %v1361_v34 }
 0x1e1   : > { %v9528_v51 = vadd.f32 %v1233_v49, %v1071_v44 }
 0x1e5   : > { %v1073_v60 = vpop.f32.mrf.mxu1 }
 0x1e6   : > { %v1186_v63 = vpop.f32.mrf.mxu2 }
 0x1e7   : > { %v9541_v2 = vadd.f32 %v1186_v63, %v1024_v52  ;;  %v1027_v4 = vpop.f32.mrf.mxu0  ;;  %v1331_v63 = vld [vmem:[%s9223_s7 + $0xe8] sm:$0xff] }
 0x1e8   : > { %v1235_v0 = vpop.f32.mrf.mxu3 }
 0x1e9   : > { %v9543_v3 = vadd.f32 %v1235_v0, %v1073_v60  ;;  %v1347_v60 = vld [vmem:[%s9219_s12 + $0xe8] sm:$0xff]  ;;  %v1332_v0 = vld [vmem:[%s9223_s7 + $0xf0] sm:$0xff] }
 0x1ea   : > { %6727 = vmatmul.msk.bf16.gmra.mxu0 %vm968_vm2, %v1362_v1 }
 0x1eb   : > { %6775 = vmatmul.msk.bf16.gmra.mxu2 %vm968_vm2, %v1354_v5 }
 0x1ed   : > { %6783 = vmatmul.msk.bf16.gmra.mxu3 %vm968_vm2, %v1354_v5  ;;  %v1076_v6 = vpop.f32.mrf.mxu1  ;;  %v1364_v5 = vpack.c.bf16 %v1348_v61, %v1347_v60  ;;  %v7017_v61 = vor.u32 %v7873_v57, %v7016_v56  ;;  %v7872_v56 = vld [vmem:[%s12101_s3 + $0xe4] sm:$0xf]  ;;  %v7018_v57 = vld [vmem:[%s12101_s3 + $0xe8] sm:$0xf0] }
 0x1ee   : > { %v1189_v7 = vpop.f32.mrf.mxu2 }
 0x1ef   : > { %v9548_v13 = vadd.f32 %v1189_v7, %v1027_v4  ;;  %v1029_v15 = vpop.f32.mrf.mxu0  ;;  %2622 = vmatpush.bf16.msrb.mxu2 %v7017_v61  ;;  %v1823_v61 = vld [vmem:[%s9219_s12 + $0x49] sm:$0xff] }
 0x1f0   : > { %v1238_v12 = vpop.f32.mrf.mxu3  ;;  %6735 = vmatmul.msk.bf16.gmra.mxu1 %vm968_vm2, %v1362_v1 }
 0x1f1   : > { %v9550_v14 = vadd.f32 %v1238_v12, %v1076_v6 }
 0x1f5   : > { %v1078_v23 = vpop.f32.mrf.mxu1 }
 0x1f6   : > { %v1191_v28 = vpop.f32.mrf.mxu2 }
 0x1f7   : > { %v9563_v33 = vadd.f32 %v1191_v28, %v1029_v15  ;;  %v1032_v37 = vpop.f32.mrf.mxu0  ;;  %v1356_v15 = vpack.c.bf16 %v1332_v0, %v1331_v63  ;;  %v7029_v28 = vor.u32 %v7874_v26, %v7026_v27  ;;  %v1805_v27 = vld [vmem:[%s9223_s7 + $0x29] sm:$0xff] }
 0x1f8   : > { %v1240_v29 = vpop.f32.mrf.mxu3 }
 0x1f9   : > { %v9565_v34 = vadd.f32 %v1240_v29, %v1078_v23  ;;  %v1819_v29 = vld [vmem:[%s9219_s12 + $0x9] sm:$0xff]  ;;  %2670 = vmatpush.bf16.msrb.mxu3 %v7029_v28  ;;  %v1806_v28 = vld [vmem:[%s9223_s7 + $0x31] sm:$0xff] }
 0x1fa   : > { %6728 = vmatmul.msk.bf16.gmra.mxu0 %vm968_vm2, %v1363_v30 }
 0x1fb   : > { %6776 = vmatmul.msk.bf16.gmra.mxu2 %vm968_vm2, %v1355_v38 }
 0x1fd   : > { %6784 = vmatmul.msk.bf16.gmra.mxu3 %vm968_vm2, %v1355_v38  ;;  %v1081_v44 = vpop.f32.mrf.mxu1  ;;  %v1803_v38 = vld [vmem:[%s9223_s7 + $0x9] sm:$0xff] }
 0x1fe   : > { %v1194_v48 = vpop.f32.mrf.mxu2 }
 0x1ff   : > { %v9582_v52 = vadd.f32 %v1194_v48, %v1032_v37  ;;  %v1034_v54 = vpop.f32.mrf.mxu0  ;;  %v1835_v48 = vpack.c.bf16 %v1804_v39, %v1803_v38  ;;  %v1836_v39 = vpack.c.bf16 %v1806_v28, %v1805_v27  ;;  %v7880_v27 = vld [vmem:[%s12102_s4 + $0xe4] sm:$0xf]  ;;  %v6970_v28 = vld [vmem:[%s12102_s4 + $0xe8] sm:$0xf0] }
 0x200   : > { %v1243_v49 = vpop.f32.mrf.mxu3  ;;  %6736 = vmatmul.msk.bf16.gmra.mxu1 %vm968_vm2, %v1363_v30  ;;  %v1820_v30 = vld [vmem:[%s9219_s12 + $0x11] sm:$0xff] }
 0x201   : > { %v9584_v53 = vadd.f32 %v1243_v49, %v1081_v44  ;;  %v1843_v42 = vpack.c.bf16 %v1820_v30, %v1819_v29  ;;  %v7882_v49 = vld [vmem:[%s12102_s4 + $0xf4] sm:$0xf] }
 0x205   : > { %v1083_v62 = vpop.f32.mrf.mxu1 }
 0x206   : > { %v1196_v1 = vpop.f32.mrf.mxu2 }
 0x207   : > { %v9597_v6 = vadd.f32 %v1196_v1, %v1034_v54  ;;  %v1037_v12 = vpop.f32.mrf.mxu0  ;;  %v6978_v54 = vld [vmem:[%s12102_s4 + $0xf8] sm:$0xf0] }
 0x208   : > { %v1245_v4 = vpop.f32.mrf.mxu3  ;;  %v6981_v55 = vor.u32 %v7882_v49, %v6978_v54 }
 0x209   : > { %v9599_v7 = vadd.f32 %v1245_v4, %v1083_v62 }
 0x20a   : > { %6729 = vmatmul.msk.bf16.gmra.mxu0 %vm968_vm2, %v1364_v5  ;;  %2508 = vmatpush.bf16.msrb.mxu1 %v6981_v55 }
 0x20b   : > { %6777 = vmatmul.msk.bf16.gmra.mxu2 %vm968_vm2, %v1356_v15 }
 0x20d   : > { %6785 = vmatmul.msk.bf16.gmra.mxu3 %vm968_vm2, %v1356_v15  ;;  %v1086_v16 = vpop.f32.mrf.mxu1  ;;  %v6968_v15 = vld [vmem:[%s12102_s4 + $0xe0] sm:$0xf] }
 0x20e   : > { %v1199_v19 = vpop.f32.mrf.mxu2 }
 0x20f   : > { %v9604_v21 = vadd.f32 %v1199_v19, %v1037_v12  ;;  %v1039_v23 = vpop.f32.mrf.mxu0 }
 0x210   : > { %v1248_v20 = vpop.f32.mrf.mxu3  ;;  %6737 = vmatmul.msk.bf16.gmra.mxu1 %vm968_vm2, %v1364_v5 }
 0x211   : > { %v9606_v22 = vadd.f32 %v1248_v20, %v1086_v16  ;;  %v7881_v16 = vld [vmem:[%s12102_s4 + $0xe4] sm:$0xf0] }
 0x212   : > { %v6969_v19 = vor.u32 %v7881_v16, %v6968_v15  ;;  %v1821_v20 = vld [vmem:[%s9219_s12 + $0x29] sm:$0xff] }
 0x214   : > { %2460 = vmatpush.bf16.msrb.mxu0 %v6969_v19 }
 0x215   : > { %v1088_v37 = vpop.f32.mrf.mxu1 }
 0x216   : > { %v1201_v40 = vpop.f32.mrf.mxu2 }
 0x217   : > { %v9619_v43 = vadd.f32 %v1201_v40, %v1039_v23  ;;  %v1488_v47 = vpop.f32.mrf.mxu0  ;;  %v1822_v23 = vld [vmem:[%s9219_s12 + $0x31] sm:$0xff] }
 0x218   : > { %v1250_v41 = vpop.f32.mrf.mxu3  ;;  %v1844_v30 = vpack.c.bf16 %v1822_v23, %v1821_v20 }
 0x219   : > { %v9621_v44 = vadd.f32 %v1250_v41, %v1088_v37 }
 0x21a   : > { %6834 = vmatmul.msk.bf16.vlgmr.msra.gmra.mxu0 %vm968_vm2, %v1843_v42 }
 0x21b   : > { %6882 = vmatmul.msk.bf16.vlgmr.msra.gmra.mxu2 %vm968_vm2, %v1835_v48 }
 0x21d   : > { %6890 = vmatmul.msk.bf16.vlgmr.msra.gmra.mxu3 %vm968_vm2, %v1835_v48  ;;  %v1537_v60 = vpop.f32.mrf.mxu1 }
 0x21e   : > { %v1650_v62 = vpop.f32.mrf.mxu2 }
 0x21f   : > { %v1651_v0 = vadd.f32 %v1650_v62, %v1488_v47  ;;  %v1490_v4 = vpop.f32.mrf.mxu0  ;;  %v1824_v62 = vld [vmem:[%s9219_s12 + $0x51] sm:$0xff] }
 0x220   : > { %v1699_v63 = vpop.f32.mrf.mxu3  ;;  %6842 = vmatmul.msk.bf16.vlgmr.msra.gmra.mxu1 %vm968_vm2, %v1843_v42  ;;  %v1845_v15 = vpack.c.bf16 %v1824_v62, %v1823_v61  ;;  %v1809_v61 = vld [vmem:[%s9223_s7 + $0x69] sm:$0xff]  ;;  %v1810_v62 = vld [vmem:[%s9223_s7 + $0x71] sm:$0xff] }
 0x221   : > { %v1700_v1 = vadd.f32 %v1699_v63, %v1537_v60  ;;  %v9640_v5 = vadd.f32 %v1651_v0, %v9414_v10  ;;  %v7021_v60 = vor.u32 %v7872_v56, %v7018_v57  ;;  %v1807_v0 = vld [vmem:[%s9223_s7 + $0x49] sm:$0xff]  ;;  %v1826_v57 = vld [vmem:[%s9219_s12 + $0x71] sm:$0xff] }
 0x222   : > { %v1825_v56 = vld [vmem:[%s9219_s12 + $0x69] sm:$0xff] }
 0x223   : > { %v9643_v12 = vadd.f32 %v1700_v1, %v9416_v11  ;;  %v1808_v1 = vld [vmem:[%s9223_s7 + $0x51] sm:$0xff]  ;;  %2671 = vmatpush.bf16.msrb.mxu3 %v7021_v60 }
 0x224   : > { %v1837_v20 = vpack.c.bf16 %v1808_v1, %v1807_v0  ;;  %v1846_v0 = vpack.c.bf16 %v1826_v57, %v1825_v56 }
 0x225   : > { %v1539_v26 = vpop.f32.mrf.mxu1 }
 0x226   : > { %v1652_v10 = vpop.f32.mrf.mxu2 }
 0x227   : > { %v1653_v11 = vadd.f32 %v1652_v10, %v1490_v4  ;;  %v1493_v38 = vpop.f32.mrf.mxu0  ;;  %v6973_v10 = vor.u32 %v7880_v27, %v6970_v28 }
 0x228   : > { %v1701_v29 = vpop.f32.mrf.mxu3 }
 0x229   : > { %v1702_v37 = vadd.f32 %v1701_v29, %v1539_v26  ;;  %v9656_v40 = vadd.f32 %v1653_v11, %v9429_v24  ;;  %2509 = vmatpush.bf16.msrb.mxu1 %v6973_v10 }
 0x22a   : > { %6835 = vmatmul.msk.bf16.gmra.mxu0 %vm968_vm2, %v1844_v30 }
 0x22b   : > { %v9659_v41 = vadd.f32 %v1702_v37, %v9431_v25  ;;  %6883 = vmatmul.msk.bf16.gmra.mxu2 %vm968_vm2, %v1836_v39 }
 0x22d   : > { %6891 = vmatmul.msk.bf16.gmra.mxu3 %vm968_vm2, %v1836_v39  ;;  %v1542_v42 = vpop.f32.mrf.mxu1 }
 0x22e   : > { %v1655_v47 = vpop.f32.mrf.mxu2 }
 0x22f   : > { %v1656_v49 = vadd.f32 %v1655_v47, %v1493_v38  ;;  %v1495_v24 = vpop.f32.mrf.mxu0 }
 0x230   : > { %v1704_v48 = vpop.f32.mrf.mxu3  ;;  %6843 = vmatmul.msk.bf16.gmra.mxu1 %vm968_vm2, %v1844_v30 }
 0x231   : > { %v1705_v54 = vadd.f32 %v1704_v48, %v1542_v42  ;;  %v9666_v25 = vadd.f32 %v1656_v49, %v9436_v31  ;;  %v6960_v49 = vld [vmem:[%s12102_s4 + $0xd0] sm:$0xf] }
 0x233   : > { %v9669_v55 = vadd.f32 %v1705_v54, %v9438_v32  ;;  %v7879_v54 = vld [vmem:[%s12102_s4 + $0xd4] sm:$0xf0] }
 0x235   : > { %v1544_v63 = vpop.f32.mrf.mxu1 }
 0x236   : > { %v1657_v31 = vpop.f32.mrf.mxu2 }
 0x237   : > { %v1658_v32 = vadd.f32 %v1657_v31, %v1495_v24  ;;  %v1498_v19 = vpop.f32.mrf.mxu0  ;;  %v6961_v24 = vor.u32 %v7879_v54, %v6960_v49 }
 0x238   : > { %v1706_v4 = vpop.f32.mrf.mxu3 }
 0x239   : > { %v1707_v16 = vadd.f32 %v1706_v4, %v1544_v63  ;;  %v9682_v23 = vadd.f32 %v1658_v32, %v9451_v45  ;;  %v7008_v45 = vld [vmem:[%s12101_s3 + $0xd0] sm:$0xf]  ;;  %2461 = vmatpush.bf16.msrb.mxu0 %v6961_v24  ;;  %v1838_v4 = vpack.c.bf16 %v1810_v62, %v1809_v61  ;;  %v7878_v61 = vld [vmem:[%s12102_s4 + $0xd4] sm:$0xf]  ;;  %v6962_v62 = vld [vmem:[%s12102_s4 + $0xd8] sm:$0xf0] }
 0x23a   : > { %6836 = vmatmul.msk.bf16.gmra.mxu0 %vm968_vm2, %v1845_v15 }
 0x23b   : > { %v9685_v26 = vadd.f32 %v1707_v16, %v9453_v46  ;;  %6884 = vmatmul.msk.bf16.gmra.mxu2 %vm968_vm2, %v1837_v20  ;;  %v7871_v46 = vld [vmem:[%s12101_s3 + $0xd4] sm:$0xf0] }
 0x23c   : > { %v7009_v30 = vor.u32 %v7871_v46, %v7008_v45  ;;  %v7870_v45 = vld [vmem:[%s12101_s3 + $0xd4] sm:$0xf]  ;;  %v7010_v46 = vld [vmem:[%s12101_s3 + $0xd8] sm:$0xf0] }
 0x23d   : > { %6892 = vmatmul.msk.bf16.gmra.mxu3 %vm968_vm2, %v1837_v20  ;;  %v1547_v29 = vpop.f32.mrf.mxu1 }
 0x23e   : > { %v1660_v11 = vpop.f32.mrf.mxu2  ;;  %2623 = vmatpush.bf16.msrb.mxu2 %v7009_v30  ;;  %v1827_v30 = vld [vmem:[%s9219_s12 + $0x89] sm:$0xff] }
 0x23f   : > { %v1661_v38 = vadd.f32 %v1660_v11, %v1498_v19  ;;  %v1500_v42 = vpop.f32.mrf.mxu0  ;;  %v1828_v11 = vld [vmem:[%s9219_s12 + $0x91] sm:$0xff] }
 0x240   : > { %v1709_v37 = vpop.f32.mrf.mxu3  ;;  %6844 = vmatmul.msk.bf16.gmra.mxu1 %vm968_vm2, %v1845_v15  ;;  %v1847_v49 = vpack.c.bf16 %v1828_v11, %v1827_v30  ;;  %v1813_v30 = vld [vmem:[%s9223_s7 + $0xa9] sm:$0xff]  ;;  %v1814_v11 = vld [vmem:[%s9223_s7 + $0xb1] sm:$0xff] }
 0x241   : > { %v1710_v39 = vadd.f32 %v1709_v37, %v1547_v29  ;;  %v9704_v47 = vadd.f32 %v1661_v38, %v9470_v58  ;;  %v7013_v29 = vor.u32 %v7870_v45, %v7010_v46  ;;  %v1811_v38 = vld [vmem:[%s9223_s7 + $0x89] sm:$0xff]  ;;  %v1830_v46 = vld [vmem:[%s9219_s12 + $0xb1] sm:$0xff] }
 0x242   : > { %v1829_v45 = vld [vmem:[%s9219_s12 + $0xa9] sm:$0xff] }
 0x243   : > { %v9707_v48 = vadd.f32 %v1710_v39, %v9472_v59  ;;  %v1812_v39 = vld [vmem:[%s9223_s7 + $0x91] sm:$0xff]  ;;  %2672 = vmatpush.bf16.msrb.mxu3 %v7013_v29 }
 0x244   : > { %v1839_v56 = vpack.c.bf16 %v1812_v39, %v1811_v38  ;;  %v1848_v38 = vpack.c.bf16 %v1830_v46, %v1829_v45 }
 0x245   : > { %v1549_v60 = vpop.f32.mrf.mxu1 }
 0x246   : > { %v1662_v58 = vpop.f32.mrf.mxu2 }
 0x247   : > { %v1663_v59 = vadd.f32 %v1662_v58, %v1500_v42  ;;  %v1503_v31 = vpop.f32.mrf.mxu0  ;;  %v6965_v58 = vor.u32 %v7878_v61, %v6962_v62 }
 0x248   : > { %v1711_v63 = vpop.f32.mrf.mxu3 }
 0x249   : > { %v1712_v1 = vadd.f32 %v1711_v63, %v1549_v60  ;;  %v9720_v15 = vadd.f32 %v1663_v59, %v9485_v8  ;;  %2510 = vmatpush.bf16.msrb.mxu1 %v6965_v58 }
 0x24a   : > { %6837 = vmatmul.msk.bf16.gmra.mxu0 %vm968_vm2, %v1846_v0 }
 0x24b   : > { %v9723_v32 = vadd.f32 %v1712_v1, %v9487_v9  ;;  %6885 = vmatmul.msk.bf16.gmra.mxu2 %vm968_vm2, %v1838_v4 }
 0x24d   : > { %6893 = vmatmul.msk.bf16.gmra.mxu3 %vm968_vm2, %v1838_v4  ;;  %v1552_v16 = vpop.f32.mrf.mxu1 }
 0x24e   : > { %v1665_v19 = vpop.f32.mrf.mxu2 }
 0x24f   : > { %v1666_v27 = vadd.f32 %v1665_v19, %v1503_v31  ;;  %v1505_v8 = vpop.f32.mrf.mxu0 }
 0x250   : > { %v1714_v20 = vpop.f32.mrf.mxu3  ;;  %6845 = vmatmul.msk.bf16.gmra.mxu1 %vm968_vm2, %v1846_v0 }
 0x251   : > { %v1715_v28 = vadd.f32 %v1714_v20, %v1552_v16  ;;  %v9730_v9 = vadd.f32 %v1666_v27, %v9492_v17  ;;  %v6952_v27 = vld [vmem:[%s12102_s4 + $0xc0] sm:$0xf] }
 0x253   : > { %v9733_v10 = vadd.f32 %v1715_v28, %v9494_v18  ;;  %v7877_v28 = vld [vmem:[%s12102_s4 + $0xc4] sm:$0xf0] }
 0x255   : > { %v1554_v37 = vpop.f32.mrf.mxu1 }
 0x256   : > { %v1667_v17 = vpop.f32.mrf.mxu2 }
 0x257   : > { %v1668_v18 = vadd.f32 %v1667_v17, %v1505_v8  ;;  %v1508_v24 = vpop.f32.mrf.mxu0  ;;  %v6953_v8 = vor.u32 %v7877_v28, %v6952_v27 }
 0x258   : > { %v1716_v42 = vpop.f32.mrf.mxu3 }
 0x259   : > { %v1717_v54 = vadd.f32 %v1716_v42, %v1554_v37  ;;  %v9746_v57 = vadd.f32 %v1668_v18, %v9507_v35  ;;  %v7000_v35 = vld [vmem:[%s12101_s3 + $0xc0] sm:$0xf]  ;;  %2462 = vmatpush.bf16.msrb.mxu0 %v6953_v8  ;;  %v1840_v42 = vpack.c.bf16 %v1814_v11, %v1813_v30  ;;  %v7876_v30 = vld [vmem:[%s12102_s4 + $0xc4] sm:$0xf]  ;;  %v6954_v11 = vld [vmem:[%s12102_s4 + $0xc8] sm:$0xf0] }
 0x25a   : > { %6838 = vmatmul.msk.bf16.gmra.mxu0 %vm968_vm2, %v1847_v49 }
 0x25b   : > { %v9749_v60 = vadd.f32 %v1717_v54, %v9509_v36  ;;  %6886 = vmatmul.msk.bf16.gmra.mxu2 %vm968_vm2, %v1839_v56  ;;  %v7869_v36 = vld [vmem:[%s12101_s3 + $0xc4] sm:$0xf0] }
 0x25c   : > { %v7001_v0 = vor.u32 %v7869_v36, %v7000_v35  ;;  %v7868_v35 = vld [vmem:[%s12101_s3 + $0xc4] sm:$0xf]  ;;  %v7002_v36 = vld [vmem:[%s12101_s3 + $0xc8] sm:$0xf0] }
 0x25d   : > { %6894 = vmatmul.msk.bf16.gmra.mxu3 %vm968_vm2, %v1839_v56  ;;  %v1557_v63 = vpop.f32.mrf.mxu1 }
 0x25e   : > { %v1670_v59 = vpop.f32.mrf.mxu2  ;;  %2624 = vmatpush.bf16.msrb.mxu2 %v7001_v0  ;;  %v1831_v0 = vld [vmem:[%s9219_s12 + $0xc9] sm:$0xff] }
 0x25f   : > { %v1671_v31 = vadd.f32 %v1670_v59, %v1508_v24  ;;  %v1510_v16 = vpop.f32.mrf.mxu0  ;;  %v1832_v59 = vld [vmem:[%s9219_s12 + $0xd1] sm:$0xff] }
 0x260   : > { %v1719_v1 = vpop.f32.mrf.mxu3  ;;  %6846 = vmatmul.msk.bf16.gmra.mxu1 %vm968_vm2, %v1847_v49  ;;  %v1849_v27 = vpack.c.bf16 %v1832_v59, %v1831_v0  ;;  %v1817_v0 = vld [vmem:[%s9223_s7 + $0xe9] sm:$0xff]  ;;  %v1818_v59 = vld [vmem:[%s9223_s7 + $0xf1] sm:$0xff] }
 0x261   : > { %v1720_v4 = vadd.f32 %v1719_v1, %v1557_v63  ;;  %v9768_v19 = vadd.f32 %v1671_v31, %v9526_v50  ;;  %v7005_v63 = vor.u32 %v7868_v35, %v7002_v36  ;;  %v1815_v31 = vld [vmem:[%s9223_s7 + $0xc9] sm:$0xff]  ;;  %v1834_v36 = vld [vmem:[%s9219_s12 + $0xf1] sm:$0xff] }
 0x262   : > { %v1833_v35 = vld [vmem:[%s9219_s12 + $0xe9] sm:$0xff] }
 0x263   : > { %v9771_v20 = vadd.f32 %v1720_v4, %v9528_v51  ;;  %v1816_v4 = vld [vmem:[%s9223_s7 + $0xd1] sm:$0xff]  ;;  %2673 = vmatpush.bf16.msrb.mxu3 %v7005_v63 }
 0x264   : > { %v1841_v45 = vpack.c.bf16 %v1816_v4, %v1815_v31  ;;  %v1850_v31 = vpack.c.bf16 %v1834_v36, %v1833_v35 }
 0x265   : > { %v1559_v29 = vpop.f32.mrf.mxu1 }
 0x266   : > { %v1672_v50 = vpop.f32.mrf.mxu2 }
 0x267   : > { %v1673_v51 = vadd.f32 %v1672_v50, %v1510_v16  ;;  %v1513_v17 = vpop.f32.mrf.mxu0  ;;  %v6957_v50 = vor.u32 %v7876_v30, %v6954_v11 }
 0x268   : > { %v1721_v37 = vpop.f32.mrf.mxu3 }
 0x269   : > { %v1722_v39 = vadd.f32 %v1721_v37, %v1559_v29  ;;  %v9784_v49 = vadd.f32 %v1673_v51, %v9541_v2  ;;  %2511 = vmatpush.bf16.msrb.mxu1 %v6957_v50 }
 0x26a   : > { %6839 = vmatmul.msk.bf16.gmra.mxu0 %vm968_vm2, %v1848_v38 }
 0x26b   : > { %v9787_v18 = vadd.f32 %v1722_v39, %v9543_v3  ;;  %6887 = vmatmul.msk.bf16.gmra.mxu2 %vm968_vm2, %v1840_v42 }
 0x26d   : > { %6895 = vmatmul.msk.bf16.gmra.mxu3 %vm968_vm2, %v1840_v42  ;;  %v1562_v54 = vpop.f32.mrf.mxu1 }
 0x26e   : > { %v1675_v24 = vpop.f32.mrf.mxu2 }
 0x26f   : > { %v1676_v61 = vadd.f32 %v1675_v24, %v1513_v17  ;;  %v1515_v2 = vpop.f32.mrf.mxu0 }
 0x270   : > { %v1724_v56 = vpop.f32.mrf.mxu3  ;;  %6847 = vmatmul.msk.bf16.gmra.mxu1 %vm968_vm2, %v1848_v38 }
 0x271   : > { %v1725_v62 = vadd.f32 %v1724_v56, %v1562_v54  ;;  %v9794_v3 = vadd.f32 %v1676_v61, %v9548_v13  ;;  %v7120_v61 = vld [vmem:[%s12102_s4 + $0x130] sm:$0xf] }
 0x273   : > { %v9797_v58 = vadd.f32 %v1725_v62, %v9550_v14  ;;  %v7899_v62 = vld [vmem:[%s12102_s4 + $0x134] sm:$0xf0] }
 0x275   : > { %v1564_v1 = vpop.f32.mrf.mxu1 }
 0x276   : > { %v1677_v13 = vpop.f32.mrf.mxu2 }
 0x277   : > { %v1678_v14 = vadd.f32 %v1677_v13, %v1515_v2  ;;  %v1518_v8 = vpop.f32.mrf.mxu0  ;;  %v7121_v2 = vor.u32 %v7899_v62, %v7120_v61 }
 0x278   : > { %v1726_v16 = vpop.f32.mrf.mxu3 }
 0x279   : > { %v1727_v28 = vadd.f32 %v1726_v16, %v1564_v1  ;;  %v9810_v46 = vadd.f32 %v1678_v14, %v9563_v33  ;;  %v7168_v33 = vld [vmem:[%s12101_s3 + $0x130] sm:$0xf]  ;;  %2945 = vmatpush.bf16.msra.mxu0 %v7121_v2  ;;  %v1842_v16 = vpack.c.bf16 %v1818_v59, %v1817_v0  ;;  %v7898_v0 = vld [vmem:[%s12102_s4 + $0x134] sm:$0xf]  ;;  %v7122_v59 = vld [vmem:[%s12102_s4 + $0x138] sm:$0xf0] }
 0x27a   : > { %6840 = vmatmul.msk.bf16.gmra.mxu0 %vm968_vm2, %v1849_v27 }
 0x27b   : > { %v9813_v29 = vadd.f32 %v1727_v28, %v9565_v34  ;;  %6888 = vmatmul.msk.bf16.gmra.mxu2 %vm968_vm2, %v1841_v45  ;;  %v7891_v34 = vld [vmem:[%s12101_s3 + $0x134] sm:$0xf0] }
 0x27c   : > { %v7169_v38 = vor.u32 %v7891_v34, %v7168_v33  ;;  %v7890_v33 = vld [vmem:[%s12101_s3 + $0x134] sm:$0xf]  ;;  %v7170_v34 = vld [vmem:[%s12101_s3 + $0x138] sm:$0xf0] }
 0x27d   : > { %6896 = vmatmul.msk.bf16.gmra.mxu3 %vm968_vm2, %v1841_v45  ;;  %v1567_v37 = vpop.f32.mrf.mxu1 }
 0x27e   : > { %v1680_v51 = vpop.f32.mrf.mxu2  ;;  %3107 = vmatpush.bf16.msra.mxu2 %v7169_v38  ;;  %v6918_v38 = vld [vmem:[%s9219_s12 + $0x27] sm:$0xff] }
 0x27f   : > { %v1681_v17 = vadd.f32 %v1680_v51, %v1518_v8  ;;  %v1520_v54 = vpop.f32.mrf.mxu0  ;;  %v6919_v51 = vld [vmem:[%s9219_s12 + $0x2f] sm:$0xff] }
 0x280   : > { %v1729_v39 = vpop.f32.mrf.mxu3  ;;  %6848 = vmatmul.msk.bf16.gmra.mxu1 %vm968_vm2, %v1849_v27  ;;  %v2333_v61 = vpack.c.bf16 %v6919_v51, %v6918_v38  ;;  %v6902_v38 = vld [vmem:[%s9223_s7 + $0x47] sm:$0xff]  ;;  %v6903_v51 = vld [vmem:[%s9223_s7 + $0x4f] sm:$0xff] }
 0x281   : > { %v1730_v42 = vadd.f32 %v1729_v39, %v1567_v37  ;;  %v9832_v24 = vadd.f32 %v1681_v17, %v9582_v52  ;;  %v7173_v37 = vor.u32 %v7890_v33, %v7170_v34  ;;  %v6900_v17 = vld [vmem:[%s9223_s7 + $0x27] sm:$0xff]  ;;  %v6921_v34 = vld [vmem:[%s9219_s12 + $0x4f] sm:$0xff] }
 0x282   : > { %v6920_v33 = vld [vmem:[%s9219_s12 + $0x47] sm:$0xff] }
 0x283   : > { %v9835_v56 = vadd.f32 %v1730_v42, %v9584_v53  ;;  %v6901_v42 = vld [vmem:[%s9223_s7 + $0x2f] sm:$0xff]  ;;  %3156 = vmatpush.bf16.msra.mxu3 %v7173_v37 }
 0x284   : > { %v2325_v35 = vpack.c.bf16 %v6901_v42, %v6900_v17  ;;  %v2334_v17 = vpack.c.bf16 %v6921_v34, %v6920_v33 }
 0x285   : > { %v1569_v63 = vpop.f32.mrf.mxu1 }
 0x286   : > { %v1682_v52 = vpop.f32.mrf.mxu2 }
 0x287   : > { %v1683_v53 = vadd.f32 %v1682_v52, %v1520_v54  ;;  %v1523_v13 = vpop.f32.mrf.mxu0  ;;  %v7125_v52 = vor.u32 %v7898_v0, %v7122_v59 }
 0x288   : > { %v1731_v1 = vpop.f32.mrf.mxu3 }
 0x289   : > { %v1732_v4 = vadd.f32 %v1731_v1, %v1569_v63  ;;  %v9848_v27 = vadd.f32 %v1683_v53, %v9597_v6  ;;  %2994 = vmatpush.bf16.msra.mxu1 %v7125_v52 }
 0x28a   : > { %6841 = vmatmul.msk.bf16.gmra.mxu0 %vm968_vm2, %v1850_v31 }
 0x28b   : > { %v9851_v14 = vadd.f32 %v1732_v4, %v9599_v7  ;;  %6889 = vmatmul.msk.bf16.gmra.mxu2 %vm968_vm2, %v1842_v16 }
 0x28d   : > { %6897 = vmatmul.msk.bf16.gmra.mxu3 %vm968_vm2, %v1842_v16  ;;  %v1572_v28 = vpop.f32.mrf.mxu1 }
 0x28e   : > { %v1685_v8 = vpop.f32.mrf.mxu2 }
 0x28f   : > { %v1686_v30 = vadd.f32 %v1685_v8, %v1523_v13  ;;  %v1525_v6 = vpop.f32.mrf.mxu0 }
 0x290   : > { %v1734_v45 = vpop.f32.mrf.mxu3  ;;  %6849 = vmatmul.msk.bf16.gmra.mxu1 %vm968_vm2, %v1850_v31 }
 0x291   : > { %v1735_v11 = vadd.f32 %v1734_v45, %v1572_v28  ;;  %v9858_v7 = vadd.f32 %v1686_v30, %v9604_v21  ;;  %v7112_v30 = vld [vmem:[%s12102_s4 + $0x120] sm:$0xf] }
 0x293   : > { %v9861_v50 = vadd.f32 %v1735_v11, %v9606_v22  ;;  %v7897_v11 = vld [vmem:[%s12102_s4 + $0x124] sm:$0xf0] }
 0x295   : > { %v1574_v39 = vpop.f32.mrf.mxu1 }
 0x296   : > { %v1687_v21 = vpop.f32.mrf.mxu2 }
 0x297   : > { %v1688_v22 = vadd.f32 %v1687_v21, %v1525_v6  ;;  %v1974_v2 = vpop.f32.mrf.mxu0  ;;  %v7113_v6 = vor.u32 %v7897_v11, %v7112_v30 }
 0x298   : > { %v1736_v54 = vpop.f32.mrf.mxu3 }
 0x299   : > { %v1737_v62 = vadd.f32 %v1736_v54, %v1574_v39  ;;  %v9874_v36 = vadd.f32 %v1688_v22, %v9619_v43  ;;  %v7160_v43 = vld [vmem:[%s12101_s3 + $0x120] sm:$0xf]  ;;  %2946 = vmatpush.bf16.msra.mxu0 %v7113_v6  ;;  %v2326_v54 = vpack.c.bf16 %v6903_v51, %v6902_v38  ;;  %v7896_v38 = vld [vmem:[%s12102_s4 + $0x124] sm:$0xf]  ;;  %v7114_v51 = vld [vmem:[%s12102_s4 + $0x128] sm:$0xf0] }
 0x29a   : > { %6982 = vmatmul.msk.bf16.vlgmr.msrb.gmra.mxu0 %vm968_vm2, %v2333_v61 }
 0x29b   : > { %v9877_v63 = vadd.f32 %v1737_v62, %v9621_v44  ;;  %7030 = vmatmul.msk.bf16.vlgmr.msrb.gmra.mxu2 %vm968_vm2, %v2325_v35  ;;  %v7889_v44 = vld [vmem:[%s12101_s3 + $0x124] sm:$0xf0] }
 0x29c   : > { %v7161_v31 = vor.u32 %v7889_v44, %v7160_v43  ;;  %v7888_v43 = vld [vmem:[%s12101_s3 + $0x124] sm:$0xf]  ;;  %v7162_v44 = vld [vmem:[%s12101_s3 + $0x128] sm:$0xf0] }
 0x29d   : > { %7038 = vmatmul.msk.bf16.vlgmr.msrb.gmra.mxu3 %vm968_vm2, %v2325_v35  ;;  %v2023_v1 = vpop.f32.mrf.mxu1 }
 0x29e   : > { %v2136_v53 = vpop.f32.mrf.mxu2  ;;  %3108 = vmatpush.bf16.msra.mxu2 %v7161_v31  ;;  %v6922_v31 = vld [vmem:[%s9219_s12 + $0x67] sm:$0xff] }
 0x29f   : > { %v2137_v13 = vadd.f32 %v2136_v53, %v1974_v2  ;;  %v1976_v28 = vpop.f32.mrf.mxu0  ;;  %v6923_v53 = vld [vmem:[%s9219_s12 + $0x6f] sm:$0xff] }
 0x2a0   : > { %v2185_v4 = vpop.f32.mrf.mxu3  ;;  %6990 = vmatmul.msk.bf16.vlgmr.msrb.gmra.mxu1 %vm968_vm2, %v2333_v61  ;;  %v2335_v30 = vpack.c.bf16 %v6923_v53, %v6922_v31  ;;  %v6906_v31 = vld [vmem:[%s9223_s7 + $0x87] sm:$0xff]  ;;  %v6907_v53 = vld [vmem:[%s9223_s7 + $0x8f] sm:$0xff] }
 0x2a1   : > { %v2186_v16 = vadd.f32 %v2185_v4, %v2023_v1  ;;  %v9896_v8 = vadd.f32 %v2137_v13, %v9640_v5  ;;  %v7165_v1 = vor.u32 %v7888_v43, %v7162_v44  ;;  %v6904_v13 = vld [vmem:[%s9223_s7 + $0x67] sm:$0xff]  ;;  %v6925_v44 = vld [vmem:[%s9219_s12 + $0x8f] sm:$0xff] }
 0x2a2   : > { %v6924_v43 = vld [vmem:[%s9219_s12 + $0x87] sm:$0xff] }
 0x2a3   : > { %v9899_v45 = vadd.f32 %v2186_v16, %v9643_v12  ;;  %v6905_v16 = vld [vmem:[%s9223_s7 + $0x6f] sm:$0xff]  ;;  %3157 = vmatpush.bf16.msra.mxu3 %v7165_v1 }
 0x2a4   : > { %v2327_v33 = vpack.c.bf16 %v6905_v16, %v6904_v13  ;;  %v2336_v13 = vpack.c.bf16 %v6925_v44, %v6924_v43 }
 0x2a5   : > { %v2025_v37 = vpop.f32.mrf.mxu1 }
 0x2a6   : > { %v2138_v5 = vpop.f32.mrf.mxu2 }
 0x2a7   : > { %v2139_v12 = vadd.f32 %v2138_v5, %v1976_v28  ;;  %v1979_v21 = vpop.f32.mrf.mxu0  ;;  %v7117_v5 = vor.u32 %v7896_v38, %v7114_v51 }
 0x2a8   : > { %v2187_v39 = vpop.f32.mrf.mxu3 }
 0x2a9   : > { %v2188_v42 = vadd.f32 %v2187_v39, %v2025_v37  ;;  %v9912_v61 = vadd.f32 %v2139_v12, %v9656_v40  ;;  %2995 = vmatpush.bf16.msra.mxu1 %v7117_v5 }
 0x2aa   : > { %6983 = vmatmul.msk.bf16.gmra.mxu0 %vm968_vm2, %v2334_v17 }
 0x2ab   : > { %v9915_v22 = vadd.f32 %v2188_v42, %v9659_v41  ;;  %7031 = vmatmul.msk.bf16.gmra.mxu2 %vm968_vm2, %v2326_v54 }
 0x2ad   : > { %7039 = vmatmul.msk.bf16.gmra.mxu3 %vm968_vm2, %v2326_v54  ;;  %v2028_v62 = vpop.f32.mrf.mxu1 }
 0x2ae   : > { %v2141_v2 = vpop.f32.mrf.mxu2 }
 0x2af   : > { %v2142_v0 = vadd.f32 %v2141_v2, %v1979_v21  ;;  %v1981_v40 = vpop.f32.mrf.mxu0 }
 0x2b0   : > { %v2190_v35 = vpop.f32.mrf.mxu3  ;;  %6991 = vmatmul.msk.bf16.gmra.mxu1 %vm968_vm2, %v2334_v17 }
 0x2b1   : > { %v2191_v59 = vadd.f32 %v2190_v35, %v2028_v62  ;;  %v9922_v41 = vadd.f32 %v2142_v0, %v9666_v25  ;;  %v7104_v0 = vld [vmem:[%s12102_s4 + $0x110] sm:$0xf] }
 0x2b3   : > { %v9925_v52 = vadd.f32 %v2191_v59, %v9669_v55  ;;  %v7895_v59 = vld [vmem:[%s12102_s4 + $0x114] sm:$0xf0] }
 0x2b5   : > { %v2030_v4 = vpop.f32.mrf.mxu1 }
 0x2b6   : > { %v2143_v25 = vpop.f32.mrf.mxu2 }
 0x2b7   : > { %v2144_v55 = vadd.f32 %v2143_v25, %v1981_v40  ;;  %v1984_v6 = vpop.f32.mrf.mxu0  ;;  %v7105_v40 = vor.u32 %v7895_v59, %v7104_v0 }
 0x2b8   : > { %v2192_v28 = vpop.f32.mrf.mxu3 }
 0x2b9   : > { %v2193_v11 = vadd.f32 %v2192_v28, %v2030_v4  ;;  %v9938_v34 = vadd.f32 %v2144_v55, %v9682_v23  ;;  %v7152_v23 = vld [vmem:[%s12101_s3 + $0x110] sm:$0xf]  ;;  %2947 = vmatpush.bf16.msra.mxu0 %v7105_v40  ;;  %v2328_v28 = vpack.c.bf16 %v6907_v53, %v6906_v31  ;;  %v7894_v31 = vld [vmem:[%s12102_s4 + $0x114] sm:$0xf]  ;;  %v7106_v53 = vld [vmem:[%s12102_s4 + $0x118] sm:$0xf0] }
 0x2ba   : > { %6984 = vmatmul.msk.bf16.gmra.mxu0 %vm968_vm2, %v2335_v30 }
 0x2bb   : > { %v9941_v37 = vadd.f32 %v2193_v11, %v9685_v26  ;;  %7032 = vmatmul.msk.bf16.gmra.mxu2 %vm968_vm2, %v2327_v33  ;;  %v7887_v26 = vld [vmem:[%s12101_s3 + $0x114] sm:$0xf0] }
 0x2bc   : > { %v7153_v17 = vor.u32 %v7887_v26, %v7152_v23  ;;  %v7886_v23 = vld [vmem:[%s12101_s3 + $0x114] sm:$0xf]  ;;  %v7154_v26 = vld [vmem:[%s12101_s3 + $0x118] sm:$0xf0] }
 0x2bd   : > { %7040 = vmatmul.msk.bf16.gmra.mxu3 %vm968_vm2, %v2327_v33  ;;  %v2033_v39 = vpop.f32.mrf.mxu1 }
 0x2be   : > { %v2146_v12 = vpop.f32.mrf.mxu2  ;;  %3109 = vmatpush.bf16.msra.mxu2 %v7153_v17  ;;  %v6926_v17 = vld [vmem:[%s9219_s12 + $0xa7] sm:$0xff] }
 0x2bf   : > { %v2147_v21 = vadd.f32 %v2146_v12, %v1984_v6  ;;  %v1986_v62 = vpop.f32.mrf.mxu0  ;;  %v6927_v12 = vld [vmem:[%s9219_s12 + $0xaf] sm:$0xff] }
 0x2c0   : > { %v2195_v42 = vpop.f32.mrf.mxu3  ;;  %6992 = vmatmul.msk.bf16.gmra.mxu1 %vm968_vm2, %v2335_v30  ;;  %v2337_v0 = vpack.c.bf16 %v6927_v12, %v6926_v17  ;;  %v6910_v17 = vld [vmem:[%s9223_s7 + $0xc7] sm:$0xff]  ;;  %v6911_v12 = vld [vmem:[%s9223_s7 + $0xcf] sm:$0xff] }
 0x2c1   : > { %v2196_v54 = vadd.f32 %v2195_v42, %v2033_v39  ;;  %v9960_v2 = vadd.f32 %v2147_v21, %v9704_v47  ;;  %v7157_v39 = vor.u32 %v7886_v23, %v7154_v26  ;;  %v6908_v21 = vld [vmem:[%s9223_s7 + $0xa7] sm:$0xff]  ;;  %v6929_v26 = vld [vmem:[%s9219_s12 + $0xcf] sm:$0xff] }
 0x2c2   : > { %v6928_v23 = vld [vmem:[%s9219_s12 + $0xc7] sm:$0xff] }
 0x2c3   : > { %v9963_v35 = vadd.f32 %v2196_v54, %v9707_v48  ;;  %v6909_v54 = vld [vmem:[%s9223_s7 + $0xaf] sm:$0xff]  ;;  %3158 = vmatpush.bf16.msra.mxu3 %v7157_v39 }
 0x2c4   : > { %v2329_v43 = vpack.c.bf16 %v6909_v54, %v6908_v21  ;;  %v2338_v21 = vpack.c.bf16 %v6929_v26, %v6928_v23 }
 0x2c5   : > { %v2035_v1 = vpop.f32.mrf.mxu1 }
 0x2c6   : > { %v2148_v47 = vpop.f32.mrf.mxu2 }
 0x2c7   : > { %v2149_v48 = vadd.f32 %v2148_v47, %v1986_v62  ;;  %v1989_v25 = vpop.f32.mrf.mxu0  ;;  %v7109_v47 = vor.u32 %v7894_v31, %v7106_v53 }
 0x2c8   : > { %v2197_v4 = vpop.f32.mrf.mxu3 }
 0x2c9   : > { %v2198_v16 = vadd.f32 %v2197_v4, %v2035_v1  ;;  %v9976_v30 = vadd.f32 %v2149_v48, %v9720_v15  ;;  %2996 = vmatpush.bf16.msra.mxu1 %v7109_v47 }
 0x2ca   : > { %6985 = vmatmul.msk.bf16.gmra.mxu0 %vm968_vm2, %v2336_v13 }
 0x2cb   : > { %v9979_v55 = vadd.f32 %v2198_v16, %v9723_v32  ;;  %7033 = vmatmul.msk.bf16.gmra.mxu2 %vm968_vm2, %v2328_v28 }
 0x2cd   : > { %7041 = vmatmul.msk.bf16.gmra.mxu3 %vm968_vm2, %v2328_v28  ;;  %v2038_v11 = vpop.f32.mrf.mxu1 }
 0x2ce   : > { %v2151_v6 = vpop.f32.mrf.mxu2 }
 0x2cf   : > { %v2152_v38 = vadd.f32 %v2151_v6, %v1989_v25  ;;  %v1991_v15 = vpop.f32.mrf.mxu0 }
 0x2d0   : > { %v2200_v33 = vpop.f32.mrf.mxu3  ;;  %6993 = vmatmul.msk.bf16.gmra.mxu1 %vm968_vm2, %v2336_v13 }
 0x2d1   : > { %v2201_v51 = vadd.f32 %v2200_v33, %v2038_v11  ;;  %v9986_v32 = vadd.f32 %v2152_v38, %v9730_v9  ;;  %v7096_v38 = vld [vmem:[%s12102_s4 + $0x100] sm:$0xf] }
 0x2d3   : > { %v9989_v5 = vadd.f32 %v2201_v51, %v9733_v10  ;;  %v7893_v51 = vld [vmem:[%s12102_s4 + $0x104] sm:$0xf0] }
 0x2d5   : > { %v2040_v42 = vpop.f32.mrf.mxu1 }
 0x2d6   : > { %v2153_v9 = vpop.f32.mrf.mxu2 }
 0x2d7   : > { %v2154_v10 = vadd.f32 %v2153_v9, %v1991_v15  ;;  %v1994_v40 = vpop.f32.mrf.mxu0  ;;  %v7097_v15 = vor.u32 %v7893_v51, %v7096_v38 }
 0x2d8   : > { %v2202_v62 = vpop.f32.mrf.mxu3 }
 0x2d9   : > { %v2203_v59 = vadd.f32 %v2202_v62, %v2040_v42  ;;  %v10002_v44 = vadd.f32 %v2154_v10, %v9746_v57  ;;  %v7144_v57 = vld [vmem:[%s12101_s3 + $0x100] sm:$0xf]  ;;  %2948 = vmatpush.bf16.msra.mxu0 %v7097_v15  ;;  %v2330_v62 = vpack.c.bf16 %v6911_v12, %v6910_v17  ;;  %v7892_v17 = vld [vmem:[%s12102_s4 + $0x104] sm:$0xf]  ;;  %v7098_v12 = vld [vmem:[%s12102_s4 + $0x108] sm:$0xf0] }
 0x2da   : > { %6986 = vmatmul.msk.bf16.gmra.mxu0 %vm968_vm2, %v2337_v0 }
 0x2db   : > { %v10005_v1 = vadd.f32 %v2203_v59, %v9749_v60  ;;  %7034 = vmatmul.msk.bf16.gmra.mxu2 %vm968_vm2, %v2329_v43  ;;  %v7885_v60 = vld [vmem:[%s12101_s3 + $0x104] sm:$0xf0] }
 0x2dc   : > { %v7145_v13 = vor.u32 %v7885_v60, %v7144_v57  ;;  %v7884_v57 = vld [vmem:[%s12101_s3 + $0x104] sm:$0xf]  ;;  %v7146_v60 = vld [vmem:[%s12101_s3 + $0x108] sm:$0xf0] }
 0x2dd   : > { %7042 = vmatmul.msk.bf16.gmra.mxu3 %vm968_vm2, %v2329_v43  ;;  %v2043_v4 = vpop.f32.mrf.mxu1 }
 0x2de   : > { %v2156_v48 = vpop.f32.mrf.mxu2  ;;  %3110 = vmatpush.bf16.msra.mxu2 %v7145_v13  ;;  %v6930_v13 = vld [vmem:[%s9219_s12 + $0xe7] sm:$0xff] }
 0x2df   : > { %v2157_v25 = vadd.f32 %v2156_v48, %v1994_v40  ;;  %v1996_v11 = vpop.f32.mrf.mxu0  ;;  %v6931_v48 = vld [vmem:[%s9219_s12 + $0xef] sm:$0xff] }
 0x2e0   : > { %v2205_v16 = vpop.f32.mrf.mxu3  ;;  %6994 = vmatmul.msk.bf16.gmra.mxu1 %vm968_vm2, %v2337_v0  ;;  %v2339_v38 = vpack.c.bf16 %v6931_v48, %v6930_v13  ;;  %v6914_v13 = vld [vmem:[%s9223_s7 + $0x107] sm:$0xff]  ;;  %v6915_v48 = vld [vmem:[%s9223_s7 + $0x10f] sm:$0xff] }
 0x2e1   : > { %v2206_v28 = vadd.f32 %v2205_v16, %v2043_v4  ;;  %v10024_v6 = vadd.f32 %v2157_v25, %v9768_v19  ;;  %v7149_v4 = vor.u32 %v7884_v57, %v7146_v60  ;;  %v6912_v25 = vld [vmem:[%s9223_s7 + $0xe7] sm:$0xff]  ;;  %v6933_v60 = vld [vmem:[%s9219_s12 + $0x10f] sm:$0xff] }
 0x2e2   : > { %v6932_v57 = vld [vmem:[%s9219_s12 + $0x107] sm:$0xff] }
 0x2e3   : > { %v10027_v33 = vadd.f32 %v2206_v28, %v9771_v20  ;;  %v6913_v28 = vld [vmem:[%s9223_s7 + $0xef] sm:$0xff]  ;;  %3159 = vmatpush.bf16.msra.mxu3 %v7149_v4 }
 0x2e4   : > { %v2331_v23 = vpack.c.bf16 %v6913_v28, %v6912_v25  ;;  %v2340_v25 = vpack.c.bf16 %v6933_v60, %v6932_v57 }
 0x2e5   : > { %v2045_v39 = vpop.f32.mrf.mxu1 }
 0x2e6   : > { %v2158_v19 = vpop.f32.mrf.mxu2 }
 0x2e7   : > { %v2159_v20 = vadd.f32 %v2158_v19, %v1996_v11  ;;  %v1999_v9 = vpop.f32.mrf.mxu0  ;;  %v7101_v19 = vor.u32 %v7892_v17, %v7098_v12 }
 0x2e8   : > { %v2207_v42 = vpop.f32.mrf.mxu3 }
 0x2e9   : > { %v2208_v54 = vadd.f32 %v2207_v42, %v2045_v39  ;;  %v10040_v0 = vadd.f32 %v2159_v20, %v9784_v49  ;;  %2997 = vmatpush.bf16.msra.mxu1 %v7101_v19 }
 0x2ea   : > { %6987 = vmatmul.msk.bf16.gmra.mxu0 %vm968_vm2, %v2338_v21 }
 0x2eb   : > { %v10043_v10 = vadd.f32 %v2208_v54, %v9787_v18  ;;  %7035 = vmatmul.msk.bf16.gmra.mxu2 %vm968_vm2, %v2330_v62 }
 0x2ed   : > { %7043 = vmatmul.msk.bf16.gmra.mxu3 %vm968_vm2, %v2330_v62  ;;  %v2048_v59 = vpop.f32.mrf.mxu1 }
 0x2ee   : > { %v2161_v40 = vpop.f32.mrf.mxu2 }
 0x2ef   : > { %v2162_v31 = vadd.f32 %v2161_v40, %v1999_v9  ;;  %v2001_v49 = vpop.f32.mrf.mxu0 }
 0x2f0   : > { %v2210_v43 = vpop.f32.mrf.mxu3  ;;  %6995 = vmatmul.msk.bf16.gmra.mxu1 %vm968_vm2, %v2338_v21 }
 0x2f1   : > { %v2211_v53 = vadd.f32 %v2210_v43, %v2048_v59  ;;  %v10050_v18 = vadd.f32 %v2162_v31, %v9794_v3  ;;  %v7264_v31 = vld [vmem:[%s12102_s4 + $0x170] sm:$0xf] }
 0x2f3   : > { %v10053_v47 = vadd.f32 %v2211_v53, %v9797_v58  ;;  %v7915_v53 = vld [vmem:[%s12102_s4 + $0x174] sm:$0xf0] }
 0x2f5   : > { %v2050_v16 = vpop.f32.mrf.mxu1 }
 0x2f6   : > { %v2163_v3 = vpop.f32.mrf.mxu2 }
 0x2f7   : > { %v2164_v58 = vadd.f32 %v2163_v3, %v2001_v49  ;;  %v2004_v15 = vpop.f32.mrf.mxu0  ;;  %v7265_v49 = vor.u32 %v7915_v53, %v7264_v31 }
 0x2f8   : > { %v2212_v11 = vpop.f32.mrf.mxu3 }
 0x2f9   : > { %v2213_v51 = vadd.f32 %v2212_v11, %v2050_v16  ;;  %v10066_v26 = vadd.f32 %v2164_v58, %v9810_v46  ;;  %v7312_v46 = vld [vmem:[%s12101_s3 + $0x170] sm:$0xf]  ;;  %3431 = vmatpush.bf16.msrb.mxu0 %v7265_v49  ;;  %v2332_v11 = vpack.c.bf16 %v6915_v48, %v6914_v13  ;;  %v7914_v13 = vld [vmem:[%s12102_s4 + $0x174] sm:$0xf]  ;;  %v7266_v48 = vld [vmem:[%s12102_s4 + $0x178] sm:$0xf0] }
 0x2fa   : > { %6988 = vmatmul.msk.bf16.gmra.mxu0 %vm968_vm2, %v2339_v38 }
 0x2fb   : > { %v10069_v39 = vadd.f32 %v2213_v51, %v9813_v29  ;;  %7036 = vmatmul.msk.bf16.gmra.mxu2 %vm968_vm2, %v2331_v23  ;;  %v7907_v29 = vld [vmem:[%s12101_s3 + $0x174] sm:$0xf0] }
 0x2fc   : > { %v7313_v21 = vor.u32 %v7907_v29, %v7312_v46  ;;  %v7906_v46 = vld [vmem:[%s12101_s3 + $0x174] sm:$0xf]  ;;  %v7314_v29 = vld [vmem:[%s12101_s3 + $0x178] sm:$0xf0] }
 0x2fd   : > { %7044 = vmatmul.msk.bf16.gmra.mxu3 %vm968_vm2, %v2331_v23  ;;  %v2053_v42 = vpop.f32.mrf.mxu1 }
 0x2fe   : > { %v2166_v20 = vpop.f32.mrf.mxu2  ;;  %3593 = vmatpush.bf16.msrb.mxu2 %v7313_v21  ;;  %v7062_v21 = vld [vmem:[%s9219_s12 + $0x28] sm:$0xff] }
 0x2ff   : > { %v2167_v9 = vadd.f32 %v2166_v20, %v2004_v15  ;;  %v2006_v59 = vpop.f32.mrf.mxu0  ;;  %v7063_v20 = vld [vmem:[%s9219_s12 + $0x30] sm:$0xff] }
 0x300   : > { %v2215_v54 = vpop.f32.mrf.mxu3  ;;  %6996 = vmatmul.msk.bf16.gmra.mxu1 %vm968_vm2, %v2339_v38  ;;  %v2819_v31 = vpack.c.bf16 %v7063_v20, %v7062_v21  ;;  %v7048_v21 = vld [vmem:[%s9223_s7 + $0x48] sm:$0xff]  ;;  %v7049_v20 = vld [vmem:[%s9223_s7 + $0x50] sm:$0xff] }
 0x301   : > { %v2216_v62 = vadd.f32 %v2215_v54, %v2053_v42  ;;  %v10088_v40 = vadd.f32 %v2167_v9, %v9832_v24  ;;  %v7317_v42 = vor.u32 %v7906_v46, %v7314_v29  ;;  %v7046_v9 = vld [vmem:[%s9223_s7 + $0x28] sm:$0xff]  ;;  %v7065_v29 = vld [vmem:[%s9219_s12 + $0x50] sm:$0xff] }
 0x302   : > { %v7064_v46 = vld [vmem:[%s9219_s12 + $0x48] sm:$0xff] }
 0x303   : > { %v10091_v43 = vadd.f32 %v2216_v62, %v9835_v56  ;;  %v7047_v62 = vld [vmem:[%s9223_s7 + $0x30] sm:$0xff]  ;;  %3642 = vmatpush.bf16.msrb.mxu3 %v7317_v42 }
 0x304   : > { %v2811_v57 = vpack.c.bf16 %v7047_v62, %v7046_v9  ;;  %v2820_v9 = vpack.c.bf16 %v7065_v29, %v7064_v46 }
 0x305   : > { %v2055_v4 = vpop.f32.mrf.mxu1 }
 0x306   : > { %v2168_v24 = vpop.f32.mrf.mxu2 }
 0x307   : > { %v2169_v56 = vadd.f32 %v2168_v24, %v2006_v59  ;;  %v2009_v3 = vpop.f32.mrf.mxu0  ;;  %v7269_v24 = vor.u32 %v7914_v13, %v7266_v48 }
 0x308   : > { %v2217_v16 = vpop.f32.mrf.mxu3 }
 0x309   : > { %v2218_v28 = vadd.f32 %v2217_v16, %v2055_v4  ;;  %v10104_v38 = vadd.f32 %v2169_v56, %v9848_v27  ;;  %3480 = vmatpush.bf16.msrb.mxu1 %v7269_v24 }
 0x30a   : > { %6989 = vmatmul.msk.bf16.gmra.mxu0 %vm968_vm2, %v2340_v25 }
 0x30b   : > { %v10107_v58 = vadd.f32 %v2218_v28, %v9851_v14  ;;  %7037 = vmatmul.msk.bf16.gmra.mxu2 %vm968_vm2, %v2332_v11 }
 0x30d   : > { %7045 = vmatmul.msk.bf16.gmra.mxu3 %vm968_vm2, %v2332_v11  ;;  %v2058_v51 = vpop.f32.mrf.mxu1 }
 0x30e   : > { %v2171_v15 = vpop.f32.mrf.mxu2 }
 0x30f   : > { %v2172_v17 = vadd.f32 %v2171_v15, %v2009_v3  ;;  %v2011_v27 = vpop.f32.mrf.mxu0 }
 0x310   : > { %v2220_v23 = vpop.f32.mrf.mxu3  ;;  %6997 = vmatmul.msk.bf16.gmra.mxu1 %vm968_vm2, %v2340_v25 }
 0x311   : > { %v2221_v12 = vadd.f32 %v2220_v23, %v2058_v51  ;;  %v10114_v14 = vadd.f32 %v2172_v17, %v9858_v7  ;;  %v7256_v17 = vld [vmem:[%s12102_s4 + $0x160] sm:$0xf] }
 0x313   : > { %v10117_v19 = vadd.f32 %v2221_v12, %v9861_v50  ;;  %v7913_v12 = vld [vmem:[%s12102_s4 + $0x164] sm:$0xf0] }
 0x315   : > { %v2060_v54 = vpop.f32.mrf.mxu1 }
 0x316   : > { %v2173_v7 = vpop.f32.mrf.mxu2 }
 0x317   : > { %v2174_v50 = vadd.f32 %v2173_v7, %v2011_v27  ;;  %v2464_v49 = vpop.f32.mrf.mxu0  ;;  %v7257_v27 = vor.u32 %v7913_v12, %v7256_v17 }
 0x318   : > { %v2222_v59 = vpop.f32.mrf.mxu3 }
 0x319   : > { %v2223_v53 = vadd.f32 %v2222_v59, %v2060_v54  ;;  %v10130_v60 = vadd.f32 %v2174_v50, %v9874_v36  ;;  %v7304_v36 = vld [vmem:[%s12101_s3 + $0x160] sm:$0xf]  ;;  %3432 = vmatpush.bf16.msrb.mxu0 %v7257_v27  ;;  %v2812_v59 = vpack.c.bf16 %v7049_v20, %v7048_v21  ;;  %v7912_v21 = vld [vmem:[%s12102_s4 + $0x164] sm:$0xf]  ;;  %v7258_v20 = vld [vmem:[%s12102_s4 + $0x168] sm:$0xf0] }
 0x31a   : > { %7126 = vmatmul.msk.bf16.vlgmr.msra.gmra.mxu0 %vm968_vm2, %v2819_v31 }
 0x31b   : > { %v10133_v4 = vadd.f32 %v2223_v53, %v9877_v63  ;;  %7174 = vmatmul.msk.bf16.vlgmr.msra.gmra.mxu2 %vm968_vm2, %v2811_v57  ;;  %v7905_v63 = vld [vmem:[%s12101_s3 + $0x164] sm:$0xf0] }
 0x31c   : > { %v7305_v25 = vor.u32 %v7905_v63, %v7304_v36  ;;  %v7904_v36 = vld [vmem:[%s12101_s3 + $0x164] sm:$0xf]  ;;  %v7306_v63 = vld [vmem:[%s12101_s3 + $0x168] sm:$0xf0] }
 0x31d   : > { %7182 = vmatmul.msk.bf16.vlgmr.msra.gmra.mxu3 %vm968_vm2, %v2811_v57  ;;  %v2513_v16 = vpop.f32.mrf.mxu1 }
 0x31e   : > { %v2626_v56 = vpop.f32.mrf.mxu2  ;;  %3594 = vmatpush.bf16.msrb.mxu2 %v7305_v25  ;;  %v7066_v25 = vld [vmem:[%s9219_s12 + $0x68] sm:$0xff] }
 0x31f   : > { %v2627_v3 = vadd.f32 %v2626_v56, %v2464_v49  ;;  %v2466_v51 = vpop.f32.mrf.mxu0  ;;  %v7067_v56 = vld [vmem:[%s9219_s12 + $0x70] sm:$0xff] }
 0x320   : > { %v2675_v28 = vpop.f32.mrf.mxu3  ;;  %7134 = vmatmul.msk.bf16.vlgmr.msra.gmra.mxu1 %vm968_vm2, %v2819_v31  ;;  %v2821_v17 = vpack.c.bf16 %v7067_v56, %v7066_v25  ;;  %v7052_v25 = vld [vmem:[%s9223_s7 + $0x88] sm:$0xff]  ;;  %v7053_v56 = vld [vmem:[%s9223_s7 + $0x90] sm:$0xff] }
 0x321   : > { %v2676_v11 = vadd.f32 %v2675_v28, %v2513_v16  ;;  %v10152_v15 = vadd.f32 %v2627_v3, %v9896_v8  ;;  %v7309_v16 = vor.u32 %v7904_v36, %v7306_v63  ;;  %v7050_v3 = vld [vmem:[%s9223_s7 + $0x68] sm:$0xff]  ;;  %v7069_v63 = vld [vmem:[%s9219_s12 + $0x90] sm:$0xff] }
 0x322   : > { %v7068_v36 = vld [vmem:[%s9219_s12 + $0x88] sm:$0xff] }
 0x323   : > { %v10155_v23 = vadd.f32 %v2676_v11, %v9899_v45  ;;  %v7051_v11 = vld [vmem:[%s9223_s7 + $0x70] sm:$0xff]  ;;  %3643 = vmatpush.bf16.msrb.mxu3 %v7309_v16 }
 0x324   : > { %v2813_v46 = vpack.c.bf16 %v7051_v11, %v7050_v3  ;;  %v2822_v3 = vpack.c.bf16 %v7069_v63, %v7068_v36 }
 0x325   : > { %v2515_v42 = vpop.f32.mrf.mxu1 }
 0x326   : > { %v2628_v8 = vpop.f32.mrf.mxu2 }
 0x327   : > { %v2629_v45 = vadd.f32 %v2628_v8, %v2466_v51  ;;  %v2469_v7 = vpop.f32.mrf.mxu0  ;;  %v7261_v8 = vor.u32 %v7912_v21, %v7258_v20 }
 0x328   : > { %v2677_v54 = vpop.f32.mrf.mxu3 }
 0x329   : > { %v2678_v62 = vadd.f32 %v2677_v54, %v2515_v42  ;;  %v10168_v31 = vadd.f32 %v2629_v45, %v9912_v61  ;;  %3481 = vmatpush.bf16.msrb.mxu1 %v7261_v8 }
 0x32a   : > { %7127 = vmatmul.msk.bf16.gmra.mxu0 %vm968_vm2, %v2820_v9 }
 0x32b   : > { %v10171_v50 = vadd.f32 %v2678_v62, %v9915_v22  ;;  %7175 = vmatmul.msk.bf16.gmra.mxu2 %vm968_vm2, %v2812_v59 }
 0x32d   : > { %7183 = vmatmul.msk.bf16.gmra.mxu3 %vm968_vm2, %v2812_v59  ;;  %v2518_v53 = vpop.f32.mrf.mxu1 }
 0x32e   : > { %v2631_v49 = vpop.f32.mrf.mxu2 }
 0x32f   : > { %v2632_v13 = vadd.f32 %v2631_v49, %v2469_v7  ;;  %v2471_v61 = vpop.f32.mrf.mxu0 }
 0x330   : > { %v2680_v57 = vpop.f32.mrf.mxu3  ;;  %7135 = vmatmul.msk.bf16.gmra.mxu1 %vm968_vm2, %v2820_v9 }
 0x331   : > { %v2681_v48 = vadd.f32 %v2680_v57, %v2518_v53  ;;  %v10178_v22 = vadd.f32 %v2632_v13, %v9922_v41  ;;  %v7248_v13 = vld [vmem:[%s12102_s4 + $0x150] sm:$0xf] }
 0x333   : > { %v10181_v24 = vadd.f32 %v2681_v48, %v9925_v52  ;;  %v7911_v48 = vld [vmem:[%s12102_s4 + $0x154] sm:$0xf0] }
 0x335   : > { %v2520_v28 = vpop.f32.mrf.mxu1 }
 0x336   : > { %v2633_v41 = vpop.f32.mrf.mxu2 }
 0x337   : > { %v2634_v52 = vadd.f32 %v2633_v41, %v2471_v61  ;;  %v2474_v27 = vpop.f32.mrf.mxu0  ;;  %v7249_v61 = vor.u32 %v7911_v48, %v7248_v13 }
 0x338   : > { %v2682_v51 = vpop.f32.mrf.mxu3 }
 0x339   : > { %v2683_v12 = vadd.f32 %v2682_v51, %v2520_v28  ;;  %v10194_v29 = vadd.f32 %v2634_v52, %v9938_v34  ;;  %v7296_v34 = vld [vmem:[%s12101_s3 + $0x150] sm:$0xf]  ;;  %3433 = vmatpush.bf16.msrb.mxu0 %v7249_v61  ;;  %v2814_v51 = vpack.c.bf16 %v7053_v56, %v7052_v25  ;;  %v7910_v25 = vld [vmem:[%s12102_s4 + $0x154] sm:$0xf]  ;;  %v7250_v56 = vld [vmem:[%s12102_s4 + $0x158] sm:$0xf0] }
 0x33a   : > { %7128 = vmatmul.msk.bf16.gmra.mxu0 %vm968_vm2, %v2821_v17 }
 0x33b   : > { %v10197_v42 = vadd.f32 %v2683_v12, %v9941_v37  ;;  %7176 = vmatmul.msk.bf16.gmra.mxu2 %vm968_vm2, %v2813_v46  ;;  %v7903_v37 = vld [vmem:[%s12101_s3 + $0x154] sm:$0xf0] }
 0x33c   : > { %v7297_v9 = vor.u32 %v7903_v37, %v7296_v34  ;;  %v7902_v34 = vld [vmem:[%s12101_s3 + $0x154] sm:$0xf]  ;;  %v7298_v37 = vld [vmem:[%s12101_s3 + $0x158] sm:$0xf0] }
 0x33d   : > { %7184 = vmatmul.msk.bf16.gmra.mxu3 %vm968_vm2, %v2813_v46  ;;  %v2523_v54 = vpop.f32.mrf.mxu1 }
 0x33e   : > { %v2636_v45 = vpop.f32.mrf.mxu2  ;;  %3595 = vmatpush.bf16.msrb.mxu2 %v7297_v9  ;;  %v7070_v9 = vld [vmem:[%s9219_s12 + $0xa8] sm:$0xff] }
 0x33f   : > { %v2637_v7 = vadd.f32 %v2636_v45, %v2474_v27  ;;  %v2476_v53 = vpop.f32.mrf.mxu0  ;;  %v7071_v45 = vld [vmem:[%s9219_s12 + $0xb0] sm:$0xff] }
 0x340   : > { %v2685_v62 = vpop.f32.mrf.mxu3  ;;  %7136 = vmatmul.msk.bf16.gmra.mxu1 %vm968_vm2, %v2821_v17  ;;  %v2823_v13 = vpack.c.bf16 %v7071_v45, %v7070_v9  ;;  %v7056_v9 = vld [vmem:[%s9223_s7 + $0xc8] sm:$0xff]  ;;  %v7057_v45 = vld [vmem:[%s9223_s7 + $0xd0] sm:$0xff] }
 0x341   : > { %v2686_v59 = vadd.f32 %v2685_v62, %v2523_v54  ;;  %v10216_v49 = vadd.f32 %v2637_v7, %v9960_v2  ;;  %v7301_v54 = vor.u32 %v7902_v34, %v7298_v37  ;;  %v7054_v7 = vld [vmem:[%s9223_s7 + $0xa8] sm:$0xff]  ;;  %v7073_v37 = vld [vmem:[%s9219_s12 + $0xd0] sm:$0xff] }
 0x342   : > { %v7072_v34 = vld [vmem:[%s9219_s12 + $0xc8] sm:$0xff] }
 0x343   : > { %v10219_v57 = vadd.f32 %v2686_v59, %v9963_v35  ;;  %v7055_v59 = vld [vmem:[%s9223_s7 + $0xb0] sm:$0xff]  ;;  %3644 = vmatpush.bf16.msrb.mxu3 %v7301_v54 }
 0x344   : > { %v2815_v36 = vpack.c.bf16 %v7055_v59, %v7054_v7  ;;  %v2824_v7 = vpack.c.bf16 %v7073_v37, %v7072_v34 }
 0x345   : > { %v2525_v16 = vpop.f32.mrf.mxu1 }
 0x346   : > { %v2638_v2 = vpop.f32.mrf.mxu2 }
 0x347   : > { %v2639_v35 = vadd.f32 %v2638_v2, %v2476_v53  ;;  %v2479_v41 = vpop.f32.mrf.mxu0  ;;  %v7253_v2 = vor.u32 %v7910_v25, %v7250_v56 }
 0x348   : > { %v2687_v28 = vpop.f32.mrf.mxu3 }
 0x349   : > { %v2688_v11 = vadd.f32 %v2687_v28, %v2525_v16  ;;  %v10232_v17 = vadd.f32 %v2639_v35, %v9976_v30  ;;  %3482 = vmatpush.bf16.msrb.mxu1 %v7253_v2 }
 0x34a   : > { %7129 = vmatmul.msk.bf16.gmra.mxu0 %vm968_vm2, %v2822_v3 }
 0x34b   : > { %v10235_v52 = vadd.f32 %v2688_v11, %v9979_v55  ;;  %7177 = vmatmul.msk.bf16.gmra.mxu2 %vm968_vm2, %v2814_v51 }
 0x34d   : > { %7185 = vmatmul.msk.bf16.gmra.mxu3 %vm968_vm2, %v2814_v51  ;;  %v2528_v12 = vpop.f32.mrf.mxu1 }
 0x34e   : > { %v2641_v27 = vpop.f32.mrf.mxu2 }
 0x34f   : > { %v2642_v21 = vadd.f32 %v2641_v27, %v2479_v41  ;;  %v2481_v30 = vpop.f32.mrf.mxu0 }
 0x350   : > { %v2690_v46 = vpop.f32.mrf.mxu3  ;;  %7137 = vmatmul.msk.bf16.gmra.mxu1 %vm968_vm2, %v2822_v3 }
 0x351   : > { %v2691_v20 = vadd.f32 %v2690_v46, %v2528_v12  ;;  %v10242_v55 = vadd.f32 %v2642_v21, %v9986_v32  ;;  %v7240_v21 = vld [vmem:[%s12102_s4 + $0x140] sm:$0xf] }
 0x353   : > { %v10245_v8 = vadd.f32 %v2691_v20, %v9989_v5  ;;  %v7909_v20 = vld [vmem:[%s12102_s4 + $0x144] sm:$0xf0] }
 0x355   : > { %v2530_v62 = vpop.f32.mrf.mxu1 }
 0x356   : > { %v2643_v32 = vpop.f32.mrf.mxu2 }
 0x357   : > { %v2644_v5 = vadd.f32 %v2643_v32, %v2481_v30  ;;  %v2484_v61 = vpop.f32.mrf.mxu0  ;;  %v7241_v30 = vor.u32 %v7909_v20, %v7240_v21 }
 0x358   : > { %v2692_v53 = vpop.f32.mrf.mxu3 }
 0x359   : > { %v2693_v48 = vadd.f32 %v2692_v53, %v2530_v62  ;;  %v10258_v63 = vadd.f32 %v2644_v5, %v10002_v44  ;;  %v7288_v44 = vld [vmem:[%s12101_s3 + $0x140] sm:$0xf]  ;;  %3434 = vmatpush.bf16.msrb.mxu0 %v7241_v30  ;;  %v2816_v53 = vpack.c.bf16 %v7057_v45, %v7056_v9  ;;  %v7908_v9 = vld [vmem:[%s12102_s4 + $0x144] sm:$0xf]  ;;  %v7242_v45 = vld [vmem:[%s12102_s4 + $0x148] sm:$0xf0] }
 0x35a   : > { %7130 = vmatmul.msk.bf16.gmra.mxu0 %vm968_vm2, %v2823_v13 }
 0x35b   : > { %v10261_v16 = vadd.f32 %v2693_v48, %v10005_v1  ;;  %7178 = vmatmul.msk.bf16.gmra.mxu2 %vm968_vm2, %v2815_v36  ;;  %v7901_v1 = vld [vmem:[%s12101_s3 + $0x144] sm:$0xf0] }
 0x35c   : > { %v7289_v3 = vor.u32 %v7901_v1, %v7288_v44  ;;  %v7900_v44 = vld [vmem:[%s12101_s3 + $0x144] sm:$0xf]  ;;  %v7290_v1 = vld [vmem:[%s12101_s3 + $0x148] sm:$0xf0] }
 0x35d   : > { %7186 = vmatmul.msk.bf16.gmra.mxu3 %vm968_vm2, %v2815_v36  ;;  %v2533_v28 = vpop.f32.mrf.mxu1 }
 0x35e   : > { %v2646_v35 = vpop.f32.mrf.mxu2  ;;  %3596 = vmatpush.bf16.msrb.mxu2 %v7289_v3  ;;  %v7074_v3 = vld [vmem:[%s9219_s12 + $0xe8] sm:$0xff] }
 0x35f   : > { %v2647_v41 = vadd.f32 %v2646_v35, %v2484_v61  ;;  %v2486_v12 = vpop.f32.mrf.mxu0  ;;  %v7075_v35 = vld [vmem:[%s9219_s12 + $0xf0] sm:$0xff] }
 0x360   : > { %v2695_v11 = vpop.f32.mrf.mxu3  ;;  %7138 = vmatmul.msk.bf16.gmra.mxu1 %vm968_vm2, %v2823_v13  ;;  %v2825_v21 = vpack.c.bf16 %v7075_v35, %v7074_v3  ;;  %v7060_v3 = vld [vmem:[%s9223_s7 + $0x108] sm:$0xff]  ;;  %v7061_v35 = vld [vmem:[%s9223_s7 + $0x110] sm:$0xff] }
 0x361   : > { %v2696_v51 = vadd.f32 %v2695_v11, %v2533_v28  ;;  %v10280_v27 = vadd.f32 %v2647_v41, %v10024_v6  ;;  %v7293_v28 = vor.u32 %v7900_v44, %v7290_v1  ;;  %v7058_v41 = vld [vmem:[%s9223_s7 + $0xe8] sm:$0xff]  ;;  %v7077_v1 = vld [vmem:[%s9219_s12 + $0x110] sm:$0xff] }
 0x362   : > { %v7076_v44 = vld [vmem:[%s9219_s12 + $0x108] sm:$0xff] }
 0x363   : > { %v10283_v46 = vadd.f32 %v2696_v51, %v10027_v33  ;;  %v7059_v51 = vld [vmem:[%s9223_s7 + $0xf0] sm:$0xff]  ;;  %3645 = vmatpush.bf16.msrb.mxu3 %v7293_v28 }
 0x364   : > { %v2817_v34 = vpack.c.bf16 %v7059_v51, %v7058_v41  ;;  %v2826_v41 = vpack.c.bf16 %v7077_v1, %v7076_v44 }
 0x365   : > { %v2535_v54 = vpop.f32.mrf.mxu1 }
 0x366   : > { %v2648_v6 = vpop.f32.mrf.mxu2 }
 0x367   : > { %v2649_v33 = vadd.f32 %v2648_v6, %v2486_v12  ;;  %v2489_v32 = vpop.f32.mrf.mxu0  ;;  %v7245_v6 = vor.u32 %v7908_v9, %v7242_v45 }
 0x368   : > { %v2697_v62 = vpop.f32.mrf.mxu3 }
 0x369   : > { %v2698_v59 = vadd.f32 %v2697_v62, %v2535_v54  ;;  %v10296_v13 = vadd.f32 %v2649_v33, %v10040_v0  ;;  %3483 = vmatpush.bf16.msrb.mxu1 %v7245_v6 }
 0x36a   : > { %7131 = vmatmul.msk.bf16.gmra.mxu0 %vm968_vm2, %v2824_v7 }
 0x36b   : > { %v10299_v5 = vadd.f32 %v2698_v59, %v10043_v10  ;;  %7179 = vmatmul.msk.bf16.gmra.mxu2 %vm968_vm2, %v2816_v53 }
 0x36d   : > { %7187 = vmatmul.msk.bf16.gmra.mxu3 %vm968_vm2, %v2816_v53  ;;  %v2538_v48 = vpop.f32.mrf.mxu1 }
 0x36e   : > { %v2651_v61 = vpop.f32.mrf.mxu2 }
 0x36f   : > { %v2652_v25 = vadd.f32 %v2651_v61, %v2489_v32  ;;  %v2491_v0 = vpop.f32.mrf.mxu0 }
 0x370   : > { %v2700_v36 = vpop.f32.mrf.mxu3  ;;  %7139 = vmatmul.msk.bf16.gmra.mxu1 %vm968_vm2, %v2824_v7 }
 0x371   : > { %v2701_v56 = vadd.f32 %v2700_v36, %v2538_v48  ;;  %v10306_v10 = vadd.f32 %v2652_v25, %v10050_v18  ;;  %v7412_v25 = vld [vmem:[%s12102_s4 + $0x1b0] sm:$0xf] }
 0x373   : > { %v10309_v2 = vadd.f32 %v2701_v56, %v10053_v47  ;;  %v7933_v56 = vld [vmem:[%s12102_s4 + $0x1b4] sm:$0xf0] }
 0x375   : > { %v2540_v11 = vpop.f32.mrf.mxu1 }
 0x376   : > { %v2653_v18 = vpop.f32.mrf.mxu2 }
 0x377   : > { %v2654_v47 = vadd.f32 %v2653_v18, %v2491_v0  ;;  %v2494_v30 = vpop.f32.mrf.mxu0  ;;  %v7413_v0 = vor.u32 %v7933_v56, %v7412_v25 }
 0x378   : > { %v2702_v12 = vpop.f32.mrf.mxu3 }
 0x379   : > { %v2703_v20 = vadd.f32 %v2702_v12, %v2540_v11  ;;  %v10322_v37 = vadd.f32 %v2654_v47, %v10066_v26  ;;  %v7460_v26 = vld [vmem:[%s12101_s3 + $0x1b0] sm:$0xf]  ;;  %3921 = vmatpush.bf16.msra.mxu0 %v7413_v0  ;;  %v2818_v12 = vpack.c.bf16 %v7061_v35, %v7060_v3  ;;  %v7932_v3 = vld [vmem:[%s12102_s4 + $0x1b4] sm:$0xf]  ;;  %v7414_v35 = vld [vmem:[%s12102_s4 + $0x1b8] sm:$0xf0] }
 0x37a   : > { %7132 = vmatmul.msk.bf16.gmra.mxu0 %vm968_vm2, %v2825_v21 }
 0x37b   : > { %v10325_v54 = vadd.f32 %v2703_v20, %v10069_v39  ;;  %7180 = vmatmul.msk.bf16.gmra.mxu2 %vm968_vm2, %v2817_v34  ;;  %v7925_v39 = vld [vmem:[%s12101_s3 + $0x1b4] sm:$0xf0] }
 0x37c   : > { %v7461_v7 = vor.u32 %v7925_v39, %v7460_v26  ;;  %v7924_v26 = vld [vmem:[%s12101_s3 + $0x1b4] sm:$0xf]  ;;  %v7462_v39 = vld [vmem:[%s12101_s3 + $0x1b8] sm:$0xf0] }
 0x37d   : > { %7188 = vmatmul.msk.bf16.gmra.mxu3 %vm968_vm2, %v2817_v34  ;;  %v2543_v62 = vpop.f32.mrf.mxu1 }
 0x37e   : > { %v2656_v33 = vpop.f32.mrf.mxu2  ;;  %4083 = vmatpush.bf16.msra.mxu2 %v7461_v7  ;;  %v7206_v7 = vld [vmem:[%s9219_s12 + $0x29] sm:$0xff] }
 0x37f   : > { %v2657_v32 = vadd.f32 %v2656_v33, %v2494_v30  ;;  %v2496_v48 = vpop.f32.mrf.mxu0  ;;  %v7207_v33 = vld [vmem:[%s9219_s12 + $0x31] sm:$0xff] }
 0x380   : > { %v2705_v59 = vpop.f32.mrf.mxu3  ;;  %7140 = vmatmul.msk.bf16.gmra.mxu1 %vm968_vm2, %v2825_v21  ;;  %v3305_v25 = vpack.c.bf16 %v7207_v33, %v7206_v7  ;;  %v7192_v7 = vld [vmem:[%s9223_s7 + $0x49] sm:$0xff]  ;;  %v7193_v33 = vld [vmem:[%s9223_s7 + $0x51] sm:$0xff] }
 0x381   : > { %v2706_v53 = vadd.f32 %v2705_v59, %v2543_v62  ;;  %v10344_v61 = vadd.f32 %v2657_v32, %v10088_v40  ;;  %v7465_v62 = vor.u32 %v7924_v26, %v7462_v39  ;;  %v7190_v32 = vld [vmem:[%s9223_s7 + $0x29] sm:$0xff]  ;;  %v7209_v39 = vld [vmem:[%s9219_s12 + $0x51] sm:$0xff] }
 0x382   : > { %v7208_v26 = vld [vmem:[%s9219_s12 + $0x49] sm:$0xff] }
 0x383   : > { %v10347_v36 = vadd.f32 %v2706_v53, %v10091_v43  ;;  %v7191_v53 = vld [vmem:[%s9223_s7 + $0x31] sm:$0xff]  ;;  %4132 = vmatpush.bf16.msra.mxu3 %v7465_v62 }
 0x384   : > { %v3297_v44 = vpack.c.bf16 %v7191_v53, %v7190_v32  ;;  %v3306_v32 = vpack.c.bf16 %v7209_v39, %v7208_v26 }
 0x385   : > { %v2545_v28 = vpop.f32.mrf.mxu1 }
 0x386   : > { %v2658_v40 = vpop.f32.mrf.mxu2 }
 0x387   : > { %v2659_v43 = vadd.f32 %v2658_v40, %v2496_v48  ;;  %v2499_v18 = vpop.f32.mrf.mxu0  ;;  %v7417_v40 = vor.u32 %v7932_v3, %v7414_v35 }
 0x388   : > { %v2707_v11 = vpop.f32.mrf.mxu3 }
 0x389   : > { %v2708_v51 = vadd.f32 %v2707_v11, %v2545_v28  ;;  %v10360_v21 = vadd.f32 %v2659_v43, %v10104_v38  ;;  %3970 = vmatpush.bf16.msra.mxu1 %v7417_v40 }
 0x38a   : > { %7133 = vmatmul.msk.bf16.gmra.mxu0 %vm968_vm2, %v2826_v41 }
 0x38b   : > { %v10363_v47 = vadd.f32 %v2708_v51, %v10107_v58  ;;  %7181 = vmatmul.msk.bf16.gmra.mxu2 %vm968_vm2, %v2818_v12 }
 0x38d   : > { %7189 = vmatmul.msk.bf16.gmra.mxu3 %vm968_vm2, %v2818_v12  ;;  %v2548_v20 = vpop.f32.mrf.mxu1 }
 0x38e   : > { %v2661_v30 = vpop.f32.mrf.mxu2 }
 0x38f   : > { %v2662_v9 = vadd.f32 %v2661_v30, %v2499_v18  ;;  %v2501_v38 = vpop.f32.mrf.mxu0 }
 0x390   : > { %v2710_v34 = vpop.f32.mrf.mxu3  ;;  %7141 = vmatmul.msk.bf16.gmra.mxu1 %vm968_vm2, %v2826_v41 }
 0x391   : > { %v2711_v45 = vadd.f32 %v2710_v34, %v2548_v20  ;;  %v10370_v58 = vadd.f32 %v2662_v9, %v10114_v14  ;;  %v7404_v9 = vld [vmem:[%s12102_s4 + $0x1a0] sm:$0xf] }
 0x393   : > { %v10373_v6 = vadd.f32 %v2711_v45, %v10117_v19  ;;  %v7931_v45 = vld [vmem:[%s12102_s4 + $0x1a4] sm:$0xf0] }
 0x395   : > { %v2550_v59 = vpop.f32.mrf.mxu1 }
 0x396   : > { %v2663_v14 = vpop.f32.mrf.mxu2 }
 0x397   : > { %v2664_v19 = vadd.f32 %v2663_v14, %v2501_v38  ;;  %v2950_v0 = vpop.f32.mrf.mxu0  ;;  %v7405_v38 = vor.u32 %v7931_v45, %v7404_v9 }
 0x398   : > { %v2712_v48 = vpop.f32.mrf.mxu3 }
 0x399   : > { %v2713_v56 = vadd.f32 %v2712_v48, %v2550_v59  ;;  %v10386_v1 = vadd.f32 %v2664_v19, %v10130_v60  ;;  %v7452_v60 = vld [vmem:[%s12101_s3 + $0x1a0] sm:$0xf]  ;;  %3922 = vmatpush.bf16.msra.mxu0 %v7405_v38  ;;  %v3298_v48 = vpack.c.bf16 %v7193_v33, %v7192_v7  ;;  %v7930_v7 = vld [vmem:[%s12102_s4 + $0x1a4] sm:$0xf]  ;;  %v7406_v33 = vld [vmem:[%s12102_s4 + $0x1a8] sm:$0xf0] }
 0x39a   : > { %7270 = vmatmul.msk.bf16.vlgmr.msrb.gmra.mxu0 %vm968_vm2, %v3305_v25 }
 0x39b   : > { %v10389_v28 = vadd.f32 %v2713_v56, %v10133_v4  ;;  %7318 = vmatmul.msk.bf16.vlgmr.msrb.gmra.mxu2 %vm968_vm2, %v3297_v44  ;;  %v7923_v4 = vld [vmem:[%s12101_s3 + $0x1a4] sm:$0xf0] }
 0x39c   : > { %v7453_v41 = vor.u32 %v7923_v4, %v7452_v60  ;;  %v7922_v60 = vld [vmem:[%s12101_s3 + $0x1a4] sm:$0xf]  ;;  %v7454_v4 = vld [vmem:[%s12101_s3 + $0x1a8] sm:$0xf0] }
 0x39d   : > { %7326 = vmatmul.msk.bf16.vlgmr.msrb.gmra.mxu3 %vm968_vm2, %v3297_v44  ;;  %v2999_v11 = vpop.f32.mrf.mxu1 }
 0x39e   : > { %v3112_v43 = vpop.f32.mrf.mxu2  ;;  %4084 = vmatpush.bf16.msra.mxu2 %v7453_v41  ;;  %v7210_v41 = vld [vmem:[%s9219_s12 + $0x69] sm:$0xff] }
 0x39f   : > { %v3113_v18 = vadd.f32 %v3112_v43, %v2950_v0  ;;  %v2952_v20 = vpop.f32.mrf.mxu0  ;;  %v7211_v43 = vld [vmem:[%s9219_s12 + $0x71] sm:$0xff] }
 0x3a0   : > { %v3161_v51 = vpop.f32.mrf.mxu3  ;;  %7278 = vmatmul.msk.bf16.vlgmr.msrb.gmra.mxu1 %vm968_vm2, %v3305_v25  ;;  %v3307_v9 = vpack.c.bf16 %v7211_v43, %v7210_v41  ;;  %v7196_v41 = vld [vmem:[%s9223_s7 + $0x89] sm:$0xff]  ;;  %v7197_v43 = vld [vmem:[%s9223_s7 + $0x91] sm:$0xff] }
 0x3a1   : > { %v3162_v12 = vadd.f32 %v3161_v51, %v2999_v11  ;;  %v10408_v30 = vadd.f32 %v3113_v18, %v10152_v15  ;;  %v7457_v11 = vor.u32 %v7922_v60, %v7454_v4  ;;  %v7194_v18 = vld [vmem:[%s9223_s7 + $0x69] sm:$0xff]  ;;  %v7213_v4 = vld [vmem:[%s9219_s12 + $0x91] sm:$0xff] }
 0x3a2   : > { %v7212_v60 = vld [vmem:[%s9219_s12 + $0x89] sm:$0xff] }
 0x3a3   : > { %v10411_v34 = vadd.f32 %v3162_v12, %v10155_v23  ;;  %v7195_v12 = vld [vmem:[%s9223_s7 + $0x71] sm:$0xff]  ;;  %4133 = vmatpush.bf16.msra.mxu3 %v7457_v11 }
 0x3a4   : > { %v3299_v26 = vpack.c.bf16 %v7195_v12, %v7194_v18  ;;  %v3308_v18 = vpack.c.bf16 %v7213_v4, %v7212_v60 }
 0x3a5   : > { %v3001_v62 = vpop.f32.mrf.mxu1 }
 0x3a6   : > { %v3114_v15 = vpop.f32.mrf.mxu2 }
 0x3a7   : > { %v3115_v23 = vadd.f32 %v3114_v15, %v2952_v20  ;;  %v2955_v14 = vpop.f32.mrf.mxu0  ;;  %v7409_v15 = vor.u32 %v7930_v7, %v7406_v33 }
 0x3a8   : > { %v3163_v59 = vpop.f32.mrf.mxu3 }
 0x3a9   : > { %v3164_v53 = vadd.f32 %v3163_v59, %v3001_v62  ;;  %v10424_v25 = vadd.f32 %v3115_v23, %v10168_v31  ;;  %3971 = vmatpush.bf16.msra.mxu1 %v7409_v15 }
 0x3aa   : > { %7271 = vmatmul.msk.bf16.gmra.mxu0 %vm968_vm2, %v3306_v32 }
 0x3ab   : > { %v10427_v19 = vadd.f32 %v3164_v53, %v10171_v50  ;;  %7319 = vmatmul.msk.bf16.gmra.mxu2 %vm968_vm2, %v3298_v48 }
 0x3ad   : > { %7327 = vmatmul.msk.bf16.gmra.mxu3 %vm968_vm2, %v3298_v48  ;;  %v3004_v56 = vpop.f32.mrf.mxu1 }
 0x3ae   : > { %v3117_v0 = vpop.f32.mrf.mxu2 }
 0x3af   : > { %v3118_v3 = vadd.f32 %v3117_v0, %v2955_v14  ;;  %v2957_v31 = vpop.f32.mrf.mxu0 }
 0x3b0   : > { %v3166_v44 = vpop.f32.mrf.mxu3  ;;  %7279 = vmatmul.msk.bf16.gmra.mxu1 %vm968_vm2, %v3306_v32 }
 0x3b1   : > { %v3167_v35 = vadd.f32 %v3166_v44, %v3004_v56  ;;  %v10434_v50 = vadd.f32 %v3118_v3, %v10178_v22  ;;  %v7396_v3 = vld [vmem:[%s12102_s4 + $0x190] sm:$0xf] }
 0x3b3   : > { %v10437_v40 = vadd.f32 %v3167_v35, %v10181_v24  ;;  %v7929_v35 = vld [vmem:[%s12102_s4 + $0x194] sm:$0xf0] }
 0x3b5   : > { %v3006_v51 = vpop.f32.mrf.mxu1 }
 0x3b6   : > { %v3119_v22 = vpop.f32.mrf.mxu2 }
 0x3b7   : > { %v3120_v24 = vadd.f32 %v3119_v22, %v2957_v31  ;;  %v2960_v38 = vpop.f32.mrf.mxu0  ;;  %v7397_v31 = vor.u32 %v7929_v35, %v7396_v3 }
 0x3b8   : > { %v3168_v20 = vpop.f32.mrf.mxu3 }
 0x3b9   : > { %v3169_v45 = vadd.f32 %v3168_v20, %v3006_v51  ;;  %v10450_v39 = vadd.f32 %v3120_v24, %v10194_v29  ;;  %v7444_v29 = vld [vmem:[%s12101_s3 + $0x190] sm:$0xf]  ;;  %3923 = vmatpush.bf16.msra.mxu0 %v7397_v31  ;;  %v3300_v20 = vpack.c.bf16 %v7197_v43, %v7196_v41  ;;  %v7928_v41 = vld [vmem:[%s12102_s4 + $0x194] sm:$0xf]  ;;  %v7398_v43 = vld [vmem:[%s12102_s4 + $0x198] sm:$0xf0] }
 0x3ba   : > { %7272 = vmatmul.msk.bf16.gmra.mxu0 %vm968_vm2, %v3307_v9 }
 0x3bb   : > { %v10453_v62 = vadd.f32 %v3169_v45, %v10197_v42  ;;  %7320 = vmatmul.msk.bf16.gmra.mxu2 %vm968_vm2, %v3299_v26  ;;  %v7921_v42 = vld [vmem:[%s12101_s3 + $0x194] sm:$0xf0] }
 0x3bc   : > { %v7445_v32 = vor.u32 %v7921_v42, %v7444_v29  ;;  %v7920_v29 = vld [vmem:[%s12101_s3 + $0x194] sm:$0xf]  ;;  %v7446_v42 = vld [vmem:[%s12101_s3 + $0x198] sm:$0xf0] }
 0x3bd   : > { %7328 = vmatmul.msk.bf16.gmra.mxu3 %vm968_vm2, %v3299_v26  ;;  %v3009_v59 = vpop.f32.mrf.mxu1 }
 0x3be   : > { %v3122_v23 = vpop.f32.mrf.mxu2  ;;  %4085 = vmatpush.bf16.msra.mxu2 %v7445_v32  ;;  %v7214_v32 = vld [vmem:[%s9219_s12 + $0xa9] sm:$0xff] }
 0x3bf   : > { %v3123_v14 = vadd.f32 %v3122_v23, %v2960_v38  ;;  %v2962_v56 = vpop.f32.mrf.mxu0  ;;  %v7215_v23 = vld [vmem:[%s9219_s12 + $0xb1] sm:$0xff] }
 0x3c0   : > { %v3171_v53 = vpop.f32.mrf.mxu3  ;;  %7280 = vmatmul.msk.bf16.gmra.mxu1 %vm968_vm2, %v3307_v9  ;;  %v3309_v3 = vpack.c.bf16 %v7215_v23, %v7214_v32  ;;  %v7200_v32 = vld [vmem:[%s9223_s7 + $0xc9] sm:$0xff]  ;;  %v7201_v23 = vld [vmem:[%s9223_s7 + $0xd1] sm:$0xff] }
 0x3c1   : > { %v3172_v48 = vadd.f32 %v3171_v53, %v3009_v59  ;;  %v10472_v0 = vadd.f32 %v3123_v14, %v10216_v49  ;;  %v7449_v59 = vor.u32 %v7920_v29, %v7446_v42  ;;  %v7198_v14 = vld [vmem:[%s9223_s7 + $0xa9] sm:$0xff]  ;;  %v7217_v42 = vld [vmem:[%s9219_s12 + $0xd1] sm:$0xff] }
 0x3c2   : > { %v7216_v29 = vld [vmem:[%s9219_s12 + $0xc9] sm:$0xff] }
 0x3c3   : > { %v10475_v44 = vadd.f32 %v3172_v48, %v10219_v57  ;;  %v7199_v48 = vld [vmem:[%s9223_s7 + $0xb1] sm:$0xff]  ;;  %4134 = vmatpush.bf16.msra.mxu3 %v7449_v59 }
 0x3c4   : > { %v3301_v60 = vpack.c.bf16 %v7199_v48, %v7198_v14  ;;  %v3310_v14 = vpack.c.bf16 %v7217_v42, %v7216_v29 }
 0x3c5   : > { %v3011_v11 = vpop.f32.mrf.mxu1 }
 0x3c6   : > { %v3124_v49 = vpop.f32.mrf.mxu2 }
 0x3c7   : > { %v3125_v57 = vadd.f32 %v3124_v49, %v2962_v56  ;;  %v2965_v22 = vpop.f32.mrf.mxu0  ;;  %v7401_v49 = vor.u32 %v7928_v41, %v7398_v43 }
 0x3c8   : > { %v3173_v51 = vpop.f32.mrf.mxu3 }
 0x3c9   : > { %v3174_v12 = vadd.f32 %v3173_v51, %v3011_v11  ;;  %v10488_v9 = vadd.f32 %v3125_v57, %v10232_v17  ;;  %3972 = vmatpush.bf16.msra.mxu1 %v7401_v49 }
 0x3ca   : > { %7273 = vmatmul.msk.bf16.gmra.mxu0 %vm968_vm2, %v3308_v18 }
 0x3cb   : > { %v10491_v24 = vadd.f32 %v3174_v12, %v10235_v52  ;;  %7321 = vmatmul.msk.bf16.gmra.mxu2 %vm968_vm2, %v3300_v20 }
 0x3cd   : > { %7329 = vmatmul.msk.bf16.gmra.mxu3 %vm968_vm2, %v3300_v20  ;;  %v3014_v45 = vpop.f32.mrf.mxu1 }
 0x3ce   : > { %v3127_v38 = vpop.f32.mrf.mxu2 }
 0x3cf   : > { %v3128_v7 = vadd.f32 %v3127_v38, %v2965_v22  ;;  %v2967_v17 = vpop.f32.mrf.mxu0 }
 0x3d0   : > { %v3176_v26 = vpop.f32.mrf.mxu3  ;;  %7281 = vmatmul.msk.bf16.gmra.mxu1 %vm968_vm2, %v3308_v18 }
 0x3d1   : > { %v3177_v33 = vadd.f32 %v3176_v26, %v3014_v45  ;;  %v10498_v52 = vadd.f32 %v3128_v7, %v10242_v55  ;;  %v7388_v7 = vld [vmem:[%s12102_s4 + $0x180] sm:$0xf] }
 0x3d3   : > { %v10501_v15 = vadd.f32 %v3177_v33, %v10245_v8  ;;  %v7927_v33 = vld [vmem:[%s12102_s4 + $0x184] sm:$0xf0] }
 0x3d5   : > { %v3016_v53 = vpop.f32.mrf.mxu1 }
 0x3d6   : > { %v3129_v55 = vpop.f32.mrf.mxu2 }
 0x3d7   : > { %v3130_v8 = vadd.f32 %v3129_v55, %v2967_v17  ;;  %v2970_v31 = vpop.f32.mrf.mxu0  ;;  %v7389_v17 = vor.u32 %v7927_v33, %v7388_v7 }
 0x3d8   : > { %v3178_v56 = vpop.f32.mrf.mxu3 }
 0x3d9   : > { %v3179_v35 = vadd.f32 %v3178_v56, %v3016_v53  ;;  %v10514_v4 = vadd.f32 %v3130_v8, %v10258_v63  ;;  %v7436_v63 = vld [vmem:[%s12101_s3 + $0x180] sm:$0xf]  ;;  %3924 = vmatpush.bf16.msra.mxu0 %v7389_v17  ;;  %v3302_v56 = vpack.c.bf16 %v7201_v23, %v7200_v32  ;;  %v7926_v32 = vld [vmem:[%s12102_s4 + $0x184] sm:$0xf]  ;;  %v7390_v23 = vld [vmem:[%s12102_s4 + $0x188] sm:$0xf0] }
 0x3da   : > { %7274 = vmatmul.msk.bf16.gmra.mxu0 %vm968_vm2, %v3309_v3 }
 0x3db   : > { %v10517_v11 = vadd.f32 %v3179_v35, %v10261_v16  ;;  %7322 = vmatmul.msk.bf16.gmra.mxu2 %vm968_vm2, %v3301_v60  ;;  %v7919_v16 = vld [vmem:[%s12101_s3 + $0x184] sm:$0xf0] }
 0x3dc   : > { %v7437_v18 = vor.u32 %v7919_v16, %v7436_v63  ;;  %v7918_v63 = vld [vmem:[%s12101_s3 + $0x184] sm:$0xf]  ;;  %v7438_v16 = vld [vmem:[%s12101_s3 + $0x188] sm:$0xf0] }
 0x3dd   : > { %7330 = vmatmul.msk.bf16.gmra.mxu3 %vm968_vm2, %v3301_v60  ;;  %v3019_v51 = vpop.f32.mrf.mxu1 }
 0x3de   : > { %v3132_v57 = vpop.f32.mrf.mxu2  ;;  %4086 = vmatpush.bf16.msra.mxu2 %v7437_v18  ;;  %v7218_v18 = vld [vmem:[%s9219_s12 + $0xe9] sm:$0xff] }
 0x3df   : > { %v3133_v22 = vadd.f32 %v3132_v57, %v2970_v31  ;;  %v2972_v45 = vpop.f32.mrf.mxu0  ;;  %v7219_v57 = vld [vmem:[%s9219_s12 + $0xf1] sm:$0xff] }
 0x3e0   : > { %v3181_v12 = vpop.f32.mrf.mxu3  ;;  %7282 = vmatmul.msk.bf16.gmra.mxu1 %vm968_vm2, %v3309_v3  ;;  %v3311_v7 = vpack.c.bf16 %v7219_v57, %v7218_v18  ;;  %v7204_v18 = vld [vmem:[%s9223_s7 + $0x109] sm:$0xff]  ;;  %v7205_v57 = vld [vmem:[%s9223_s7 + $0x111] sm:$0xff] }
 0x3e1   : > { %v3182_v20 = vadd.f32 %v3181_v12, %v3019_v51  ;;  %v10536_v38 = vadd.f32 %v3133_v22, %v10280_v27  ;;  %v7441_v51 = vor.u32 %v7918_v63, %v7438_v16  ;;  %v7202_v22 = vld [vmem:[%s9223_s7 + $0xe9] sm:$0xff]  ;;  %v7221_v16 = vld [vmem:[%s9219_s12 + $0x111] sm:$0xff] }
 0x3e2   : > { %v7220_v63 = vld [vmem:[%s9219_s12 + $0x109] sm:$0xff] }
 0x3e3   : > { %v10539_v26 = vadd.f32 %v3182_v20, %v10283_v46  ;;  %v7203_v20 = vld [vmem:[%s9223_s7 + $0xf1] sm:$0xff]  ;;  %4135 = vmatpush.bf16.msra.mxu3 %v7441_v51 }
 0x3e4   : > { %v3303_v29 = vpack.c.bf16 %v7203_v20, %v7202_v22  ;;  %v3312_v22 = vpack.c.bf16 %v7221_v16, %v7220_v63 }
 0x3e5   : > { %v3021_v59 = vpop.f32.mrf.mxu1 }
 0x3e6   : > { %v3134_v27 = vpop.f32.mrf.mxu2 }
 0x3e7   : > { %v3135_v46 = vadd.f32 %v3134_v27, %v2972_v45  ;;  %v2975_v55 = vpop.f32.mrf.mxu0  ;;  %v7393_v27 = vor.u32 %v7926_v32, %v7390_v23 }
 0x3e8   : > { %v3183_v53 = vpop.f32.mrf.mxu3 }
 0x3e9   : > { %v3184_v48 = vadd.f32 %v3183_v53, %v3021_v59  ;;  %v10552_v3 = vadd.f32 %v3135_v46, %v10296_v13  ;;  %3973 = vmatpush.bf16.msra.mxu1 %v7393_v27 }
 0x3ea   : > { %7275 = vmatmul.msk.bf16.gmra.mxu0 %vm968_vm2, %v3310_v14 }
 0x3eb   : > { %v10555_v8 = vadd.f32 %v3184_v48, %v10299_v5  ;;  %7323 = vmatmul.msk.bf16.gmra.mxu2 %vm968_vm2, %v3302_v56 }
 0x3ed   : > { %7331 = vmatmul.msk.bf16.gmra.mxu3 %vm968_vm2, %v3302_v56  ;;  %v3024_v35 = vpop.f32.mrf.mxu1 }
 0x3ee   : > { %v3137_v31 = vpop.f32.mrf.mxu2 }
 0x3ef   : > { %v3138_v41 = vadd.f32 %v3137_v31, %v2975_v55  ;;  %v2977_v13 = vpop.f32.mrf.mxu0 }
 0x3f0   : > { %v3186_v60 = vpop.f32.mrf.mxu3  ;;  %7283 = vmatmul.msk.bf16.gmra.mxu1 %vm968_vm2, %v3310_v14 }
 0x3f1   : > { %v3187_v43 = vadd.f32 %v3186_v60, %v3024_v35  ;;  %v10562_v5 = vadd.f32 %v3138_v41, %v10306_v10  ;;  %v7556_v41 = vld [vmem:[%s12102_s4 + $0x1f0] sm:$0xf] }
 0x3f3   : > { %v10565_v49 = vadd.f32 %v3187_v43, %v10309_v2  ;;  %v7949_v43 = vld [vmem:[%s12102_s4 + $0x1f4] sm:$0xf0] }
 0x3f5   : > { %v3026_v12 = vpop.f32.mrf.mxu1 }
 0x3f6   : > { %v3139_v10 = vpop.f32.mrf.mxu2 }
 0x3f7   : > { %v3140_v2 = vadd.f32 %v3139_v10, %v2977_v13  ;;  %v2980_v17 = vpop.f32.mrf.mxu0  ;;  %v7557_v13 = vor.u32 %v7949_v43, %v7556_v41 }
 0x3f8   : > { %v3188_v45 = vpop.f32.mrf.mxu3 }
 0x3f9   : > { %v3189_v33 = vadd.f32 %v3188_v45, %v3026_v12  ;;  %v10578_v42 = vadd.f32 %v3140_v2, %v10322_v37  ;;  %v7604_v37 = vld [vmem:[%s12101_s3 + $0x1f0] sm:$0xf]  ;;  %4407 = vmatpush.bf16.msrb.mxu0 %v7557_v13  ;;  %v3304_v45 = vpack.c.bf16 %v7205_v57, %v7204_v18  ;;  %v7948_v18 = vld [vmem:[%s12102_s4 + $0x1f4] sm:$0xf]  ;;  %v7558_v57 = vld [vmem:[%s12102_s4 + $0x1f8] sm:$0xf0] }
 0x3fa   : > { %7276 = vmatmul.msk.bf16.gmra.mxu0 %vm968_vm2, %v3311_v7 }
 0x3fb   : > { %v10581_v59 = vadd.f32 %v3189_v33, %v10325_v54  ;;  %7324 = vmatmul.msk.bf16.gmra.mxu2 %vm968_vm2, %v3303_v29  ;;  %v7941_v54 = vld [vmem:[%s12101_s3 + $0x1f4] sm:$0xf0] }
 0x3fc   : > { %v7605_v14 = vor.u32 %v7941_v54, %v7604_v37  ;;  %v7940_v37 = vld [vmem:[%s12101_s3 + $0x1f4] sm:$0xf]  ;;  %v7606_v54 = vld [vmem:[%s12101_s3 + $0x1f8] sm:$0xf0] }
 0x3fd   : > { %7332 = vmatmul.msk.bf16.gmra.mxu3 %vm968_vm2, %v3303_v29  ;;  %v3029_v53 = vpop.f32.mrf.mxu1 }
 0x3fe   : > { %v3142_v46 = vpop.f32.mrf.mxu2  ;;  %4569 = vmatpush.bf16.msrb.mxu2 %v7605_v14  ;;  %v7354_v14 = vld [vmem:[%s9219_s12 + $0x47] sm:$0xff] }
 0x3ff   : > { %v3143_v55 = vadd.f32 %v3142_v46, %v2980_v17  ;;  %v2982_v35 = vpop.f32.mrf.mxu0  ;;  %v7355_v46 = vld [vmem:[%s9219_s12 + $0x4f] sm:$0xff] }
 0x400   : > { %v3191_v48 = vpop.f32.mrf.mxu3  ;;  %7284 = vmatmul.msk.bf16.gmra.mxu1 %vm968_vm2, %v3311_v7  ;;  %v3795_v41 = vpack.c.bf16 %v7355_v46, %v7354_v14  ;;  %v7338_v14 = vld [vmem:[%s9223_s7 + $0x67] sm:$0xff]  ;;  %v7339_v46 = vld [vmem:[%s9223_s7 + $0x6f] sm:$0xff] }
 0x401   : > { %v3192_v56 = vadd.f32 %v3191_v48, %v3029_v53  ;;  %v10600_v31 = vadd.f32 %v3143_v55, %v10344_v61  ;;  %v7609_v53 = vor.u32 %v7940_v37, %v7606_v54  ;;  %v7336_v55 = vld [vmem:[%s9223_s7 + $0x47] sm:$0xff]  ;;  %v7357_v54 = vld [vmem:[%s9219_s12 + $0x6f] sm:$0xff] }
 0x402   : > { %v7356_v37 = vld [vmem:[%s9219_s12 + $0x67] sm:$0xff] }
 0x403   : > { %v10603_v60 = vadd.f32 %v3192_v56, %v10347_v36  ;;  %v7337_v56 = vld [vmem:[%s9223_s7 + $0x4f] sm:$0xff]  ;;  %4618 = vmatpush.bf16.msrb.mxu3 %v7609_v53 }
 0x404   : > { %v3787_v63 = vpack.c.bf16 %v7337_v56, %v7336_v55  ;;  %v3796_v55 = vpack.c.bf16 %v7357_v54, %v7356_v37 }
 0x405   : > { %v3031_v51 = vpop.f32.mrf.mxu1 }
 0x406   : > { %v3144_v61 = vpop.f32.mrf.mxu2 }
 0x407   : > { %v3145_v36 = vadd.f32 %v3144_v61, %v2982_v35  ;;  %v2985_v10 = vpop.f32.mrf.mxu0  ;;  %v7561_v61 = vor.u32 %v7948_v18, %v7558_v57 }
 0x408   : > { %v3193_v12 = vpop.f32.mrf.mxu3 }
 0x409   : > { %v3194_v20 = vadd.f32 %v3193_v12, %v3031_v51  ;;  %v10616_v7 = vadd.f32 %v3145_v36, %v10360_v21  ;;  %4456 = vmatpush.bf16.msrb.mxu1 %v7561_v61 }
 0x40a   : > { %7277 = vmatmul.msk.bf16.gmra.mxu0 %vm968_vm2, %v3312_v22 }
 0x40b   : > { %v10619_v2 = vadd.f32 %v3194_v20, %v10363_v47  ;;  %7325 = vmatmul.msk.bf16.gmra.mxu2 %vm968_vm2, %v3304_v45 }
 0x40d   : > { %7333 = vmatmul.msk.bf16.gmra.mxu3 %vm968_vm2, %v3304_v45  ;;  %v3034_v33 = vpop.f32.mrf.mxu1 }
 0x40e   : > { %v3147_v17 = vpop.f32.mrf.mxu2 }
 0x40f   : > { %v3148_v32 = vadd.f32 %v3147_v17, %v2985_v10  ;;  %v2987_v21 = vpop.f32.mrf.mxu0 }
 0x410   : > { %v3196_v29 = vpop.f32.mrf.mxu3  ;;  %7285 = vmatmul.msk.bf16.gmra.mxu1 %vm968_vm2, %v3312_v22 }
 0x411   : > { %v3197_v23 = vadd.f32 %v3196_v29, %v3034_v33  ;;  %v10626_v47 = vadd.f32 %v3148_v32, %v10370_v58  ;;  %v7548_v32 = vld [vmem:[%s12102_s4 + $0x1e0] sm:$0xf] }
 0x413   : > { %v10629_v27 = vadd.f32 %v3197_v23, %v10373_v6  ;;  %v7947_v23 = vld [vmem:[%s12102_s4 + $0x1e4] sm:$0xf0] }
 0x415   : > { %v3036_v48 = vpop.f32.mrf.mxu1 }
 0x416   : > { %v3149_v58 = vpop.f32.mrf.mxu2 }
 0x417   : > { %v3150_v6 = vadd.f32 %v3149_v58, %v2987_v21  ;;  %v3436_v13 = vpop.f32.mrf.mxu0  ;;  %v7549_v21 = vor.u32 %v7947_v23, %v7548_v32 }
 0x418   : > { %v3198_v35 = vpop.f32.mrf.mxu3 }
 0x419   : > { %v3199_v43 = vadd.f32 %v3198_v35, %v3036_v48  ;;  %v10642_v16 = vadd.f32 %v3150_v6, %v10386_v1  ;;  %v7596_v1 = vld [vmem:[%s12101_s3 + $0x1e0] sm:$0xf]  ;;  %4408 = vmatpush.bf16.msrb.mxu0 %v7549_v21  ;;  %v3788_v35 = vpack.c.bf16 %v7339_v46, %v7338_v14  ;;  %v7946_v14 = vld [vmem:[%s12102_s4 + $0x1e4] sm:$0xf]  ;;  %v7550_v46 = vld [vmem:[%s12102_s4 + $0x1e8] sm:$0xf0] }
 0x41a   : > { %7418 = vmatmul.msk.bf16.vlgmr.msra.gmra.mxu0 %vm968_vm2, %v3795_v41 }
 0x41b   : > { %v10645_v51 = vadd.f32 %v3199_v43, %v10389_v28  ;;  %7466 = vmatmul.msk.bf16.vlgmr.msra.gmra.mxu2 %vm968_vm2, %v3787_v63  ;;  %v7939_v28 = vld [vmem:[%s12101_s3 + $0x1e4] sm:$0xf0] }
 0x41c   : > { %v7597_v22 = vor.u32 %v7939_v28, %v7596_v1  ;;  %v7938_v1 = vld [vmem:[%s12101_s3 + $0x1e4] sm:$0xf]  ;;  %v7598_v28 = vld [vmem:[%s12101_s3 + $0x1e8] sm:$0xf0] }
 0x41d   : > { %7474 = vmatmul.msk.bf16.vlgmr.msra.gmra.mxu3 %vm968_vm2, %v3787_v63  ;;  %v3485_v12 = vpop.f32.mrf.mxu1 }
 0x41e   : > { %v3598_v36 = vpop.f32.mrf.mxu2  ;;  %4570 = vmatpush.bf16.msrb.mxu2 %v7597_v22  ;;  %v7358_v22 = vld [vmem:[%s9219_s12 + $0x87] sm:$0xff] }
 0x41f   : > { %v3599_v10 = vadd.f32 %v3598_v36, %v3436_v13  ;;  %v3438_v33 = vpop.f32.mrf.mxu0  ;;  %v7359_v36 = vld [vmem:[%s9219_s12 + $0x8f] sm:$0xff] }
 0x420   : > { %v3647_v20 = vpop.f32.mrf.mxu3  ;;  %7426 = vmatmul.msk.bf16.vlgmr.msra.gmra.mxu1 %vm968_vm2, %v3795_v41  ;;  %v3797_v32 = vpack.c.bf16 %v7359_v36, %v7358_v22  ;;  %v7342_v22 = vld [vmem:[%s9223_s7 + $0xa7] sm:$0xff]  ;;  %v7343_v36 = vld [vmem:[%s9223_s7 + $0xaf] sm:$0xff] }
 0x421   : > { %v3648_v45 = vadd.f32 %v3647_v20, %v3485_v12  ;;  %v10664_v17 = vadd.f32 %v3599_v10, %v10408_v30  ;;  %v7601_v12 = vor.u32 %v7938_v1, %v7598_v28  ;;  %v7340_v10 = vld [vmem:[%s9223_s7 + $0x87] sm:$0xff]  ;;  %v7361_v28 = vld [vmem:[%s9219_s12 + $0xaf] sm:$0xff] }
 0x422   : > { %v7360_v1 = vld [vmem:[%s9219_s12 + $0xa7] sm:$0xff] }
 0x423   : > { %v10667_v29 = vadd.f32 %v3648_v45, %v10411_v34  ;;  %v7341_v45 = vld [vmem:[%s9223_s7 + $0x8f] sm:$0xff]  ;;  %4619 = vmatpush.bf16.msrb.mxu3 %v7601_v12 }
 0x424   : > { %v3789_v37 = vpack.c.bf16 %v7341_v45, %v7340_v10  ;;  %v3798_v10 = vpack.c.bf16 %v7361_v28, %v7360_v1 }
 0x425   : > { %v3487_v53 = vpop.f32.mrf.mxu1 }
 0x426   : > { %v3600_v30 = vpop.f32.mrf.mxu2 }
 0x427   : > { %v3601_v34 = vadd.f32 %v3600_v30, %v3438_v33  ;;  %v3441_v58 = vpop.f32.mrf.mxu0  ;;  %v7553_v30 = vor.u32 %v7946_v14, %v7550_v46 }
 0x428   : > { %v3649_v48 = vpop.f32.mrf.mxu3 }
 0x429   : > { %v3650_v56 = vadd.f32 %v3649_v48, %v3487_v53  ;;  %v10680_v41 = vadd.f32 %v3601_v34, %v10424_v25  ;;  %4457 = vmatpush.bf16.msrb.mxu1 %v7553_v30 }
 0x42a   : > { %7419 = vmatmul.msk.bf16.gmra.mxu0 %vm968_vm2, %v3796_v55 }
 0x42b   : > { %v10683_v6 = vadd.f32 %v3650_v56, %v10427_v19  ;;  %7467 = vmatmul.msk.bf16.gmra.mxu2 %vm968_vm2, %v3788_v35 }
 0x42d   : > { %7475 = vmatmul.msk.bf16.gmra.mxu3 %vm968_vm2, %v3788_v35  ;;  %v3490_v43 = vpop.f32.mrf.mxu1 }
 0x42e   : > { %v3603_v13 = vpop.f32.mrf.mxu2 }
 0x42f   : > { %v3604_v18 = vadd.f32 %v3603_v13, %v3441_v58  ;;  %v3443_v25 = vpop.f32.mrf.mxu0 }
 0x430   : > { %v3652_v63 = vpop.f32.mrf.mxu3  ;;  %7427 = vmatmul.msk.bf16.gmra.mxu1 %vm968_vm2, %v3796_v55 }
 0x431   : > { %v3653_v57 = vadd.f32 %v3652_v63, %v3490_v43  ;;  %v10690_v19 = vadd.f32 %v3604_v18, %v10434_v50  ;;  %v7540_v18 = vld [vmem:[%s12102_s4 + $0x1d0] sm:$0xf] }
 0x433   : > { %v10693_v61 = vadd.f32 %v3653_v57, %v10437_v40  ;;  %v7945_v57 = vld [vmem:[%s12102_s4 + $0x1d4] sm:$0xf0] }
 0x435   : > { %v3492_v20 = vpop.f32.mrf.mxu1 }
 0x436   : > { %v3605_v50 = vpop.f32.mrf.mxu2 }
 0x437   : > { %v3606_v40 = vadd.f32 %v3605_v50, %v3443_v25  ;;  %v3446_v21 = vpop.f32.mrf.mxu0  ;;  %v7541_v25 = vor.u32 %v7945_v57, %v7540_v18 }
 0x438   : > { %v3654_v33 = vpop.f32.mrf.mxu3 }
 0x439   : > { %v3655_v23 = vadd.f32 %v3654_v33, %v3492_v20  ;;  %v10706_v54 = vadd.f32 %v3606_v40, %v10450_v39  ;;  %v7588_v39 = vld [vmem:[%s12101_s3 + $0x1d0] sm:$0xf]  ;;  %4409 = vmatpush.bf16.msrb.mxu0 %v7541_v25  ;;  %v3790_v33 = vpack.c.bf16 %v7343_v36, %v7342_v22  ;;  %v7944_v22 = vld [vmem:[%s12102_s4 + $0x1d4] sm:$0xf]  ;;  %v7542_v36 = vld [vmem:[%s12102_s4 + $0x1d8] sm:$0xf0] }
 0x43a   : > { %7420 = vmatmul.msk.bf16.gmra.mxu0 %vm968_vm2, %v3797_v32 }
 0x43b   : > { %v10709_v53 = vadd.f32 %v3655_v23, %v10453_v62  ;;  %7468 = vmatmul.msk.bf16.gmra.mxu2 %vm968_vm2, %v3789_v37  ;;  %v7937_v62 = vld [vmem:[%s12101_s3 + $0x1d4] sm:$0xf0] }
 0x43c   : > { %v7589_v55 = vor.u32 %v7937_v62, %v7588_v39  ;;  %v7936_v39 = vld [vmem:[%s12101_s3 + $0x1d4] sm:$0xf]  ;;  %v7590_v62 = vld [vmem:[%s12101_s3 + $0x1d8] sm:$0xf0] }
 0x43d   : > { %7476 = vmatmul.msk.bf16.gmra.mxu3 %vm968_vm2, %v3789_v37  ;;  %v3495_v48 = vpop.f32.mrf.mxu1 }
 0x43e   : > { %v3608_v34 = vpop.f32.mrf.mxu2  ;;  %4571 = vmatpush.bf16.msrb.mxu2 %v7589_v55  ;;  %v7362_v55 = vld [vmem:[%s9219_s12 + $0xc7] sm:$0xff] }
 0x43f   : > { %v3609_v58 = vadd.f32 %v3608_v34, %v3446_v21  ;;  %v3448_v43 = vpop.f32.mrf.mxu0  ;;  %v7363_v34 = vld [vmem:[%s9219_s12 + $0xcf] sm:$0xff] }
 0x440   : > { %v3657_v56 = vpop.f32.mrf.mxu3  ;;  %7428 = vmatmul.msk.bf16.gmra.mxu1 %vm968_vm2, %v3797_v32  ;;  %v3799_v18 = vpack.c.bf16 %v7363_v34, %v7362_v55  ;;  %v7346_v55 = vld [vmem:[%s9223_s7 + $0xe7] sm:$0xff]  ;;  %v7347_v34 = vld [vmem:[%s9223_s7 + $0xef] sm:$0xff] }
 0x441   : > { %v3658_v35 = vadd.f32 %v3657_v56, %v3495_v48  ;;  %v10728_v13 = vadd.f32 %v3609_v58, %v10472_v0  ;;  %v7593_v48 = vor.u32 %v7936_v39, %v7590_v62  ;;  %v7344_v58 = vld [vmem:[%s9223_s7 + $0xc7] sm:$0xff]  ;;  %v7365_v62 = vld [vmem:[%s9219_s12 + $0xef] sm:$0xff] }
 0x442   : > { %v7364_v39 = vld [vmem:[%s9219_s12 + $0xe7] sm:$0xff] }
 0x443   : > { %v10731_v63 = vadd.f32 %v3658_v35, %v10475_v44  ;;  %v7345_v35 = vld [vmem:[%s9223_s7 + $0xcf] sm:$0xff]  ;;  %4620 = vmatpush.bf16.msrb.mxu3 %v7593_v48 }
 0x444   : > { %v3791_v1 = vpack.c.bf16 %v7345_v35, %v7344_v58  ;;  %v3800_v58 = vpack.c.bf16 %v7365_v62, %v7364_v39 }
 0x445   : > { %v3497_v12 = vpop.f32.mrf.mxu1 }
 0x446   : > { %v3610_v0 = vpop.f32.mrf.mxu2 }
 0x447   : > { %v3611_v44 = vadd.f32 %v3610_v0, %v3448_v43  ;;  %v3451_v50 = vpop.f32.mrf.mxu0  ;;  %v7545_v0 = vor.u32 %v7944_v22, %v7542_v36 }
 0x448   : > { %v3659_v20 = vpop.f32.mrf.mxu3 }
 0x449   : > { %v3660_v45 = vadd.f32 %v3659_v20, %v3497_v12  ;;  %v10744_v32 = vadd.f32 %v3611_v44, %v10488_v9  ;;  %4458 = vmatpush.bf16.msrb.mxu1 %v7545_v0 }
 0x44a   : > { %7421 = vmatmul.msk.bf16.gmra.mxu0 %vm968_vm2, %v3798_v10 }
 0x44b   : > { %v10747_v40 = vadd.f32 %v3660_v45, %v10491_v24  ;;  %7469 = vmatmul.msk.bf16.gmra.mxu2 %vm968_vm2, %v3790_v33 }
 0x44d   : > { %7477 = vmatmul.msk.bf16.gmra.mxu3 %vm968_vm2, %v3790_v33  ;;  %v3500_v23 = vpop.f32.mrf.mxu1 }
 0x44e   : > { %v3613_v21 = vpop.f32.mrf.mxu2 }
 0x44f   : > { %v3614_v14 = vadd.f32 %v3613_v21, %v3451_v50  ;;  %v3453_v9 = vpop.f32.mrf.mxu0 }
 0x450   : > { %v3662_v37 = vpop.f32.mrf.mxu3  ;;  %7429 = vmatmul.msk.bf16.gmra.mxu1 %vm968_vm2, %v3798_v10 }
 0x451   : > { %v3663_v46 = vadd.f32 %v3662_v37, %v3500_v23  ;;  %v10754_v24 = vadd.f32 %v3614_v14, %v10498_v52  ;;  %v7532_v14 = vld [vmem:[%s12102_s4 + $0x1c0] sm:$0xf] }
 0x453   : > { %v10757_v30 = vadd.f32 %v3663_v46, %v10501_v15  ;;  %v7943_v46 = vld [vmem:[%s12102_s4 + $0x1c4] sm:$0xf0] }
 0x455   : > { %v3502_v56 = vpop.f32.mrf.mxu1 }
 0x456   : > { %v3615_v52 = vpop.f32.mrf.mxu2 }
 0x457   : > { %v3616_v15 = vadd.f32 %v3615_v52, %v3453_v9  ;;  %v3456_v25 = vpop.f32.mrf.mxu0  ;;  %v7533_v9 = vor.u32 %v7943_v46, %v7532_v14 }
 0x458   : > { %v3664_v43 = vpop.f32.mrf.mxu3 }
 0x459   : > { %v3665_v57 = vadd.f32 %v3664_v43, %v3502_v56  ;;  %v10770_v28 = vadd.f32 %v3616_v15, %v10514_v4  ;;  %v7580_v4 = vld [vmem:[%s12101_s3 + $0x1c0] sm:$0xf]  ;;  %4410 = vmatpush.bf16.msrb.mxu0 %v7533_v9  ;;  %v3792_v43 = vpack.c.bf16 %v7347_v34, %v7346_v55  ;;  %v7942_v55 = vld [vmem:[%s12102_s4 + $0x1c4] sm:$0xf]  ;;  %v7534_v34 = vld [vmem:[%s12102_s4 + $0x1c8] sm:$0xf0] }
 0x45a   : > { %7422 = vmatmul.msk.bf16.gmra.mxu0 %vm968_vm2, %v3799_v18 }
 0x45b   : > { %v10773_v12 = vadd.f32 %v3665_v57, %v10517_v11  ;;  %7470 = vmatmul.msk.bf16.gmra.mxu2 %vm968_vm2, %v3791_v1  ;;  %v7935_v11 = vld [vmem:[%s12101_s3 + $0x1c4] sm:$0xf0] }
 0x45c   : > { %v7581_v10 = vor.u32 %v7935_v11, %v7580_v4  ;;  %v7934_v4 = vld [vmem:[%s12101_s3 + $0x1c4] sm:$0xf]  ;;  %v7582_v11 = vld [vmem:[%s12101_s3 + $0x1c8] sm:$0xf0] }
 0x45d   : > { %7478 = vmatmul.msk.bf16.gmra.mxu3 %vm968_vm2, %v3791_v1  ;;  %v3505_v20 = vpop.f32.mrf.mxu1 }
 0x45e   : > { %v3618_v44 = vpop.f32.mrf.mxu2  ;;  %4572 = vmatpush.bf16.msrb.mxu2 %v7581_v10  ;;  %v7366_v10 = vld [vmem:[%s9219_s12 + $0x107] sm:$0xff] }
 0x45f   : > { %v3619_v50 = vadd.f32 %v3618_v44, %v3456_v25  ;;  %v3458_v23 = vpop.f32.mrf.mxu0  ;;  %v7367_v44 = vld [vmem:[%s9219_s12 + $0x10f] sm:$0xff] }
 0x460   : > { %v3667_v45 = vpop.f32.mrf.mxu3  ;;  %7430 = vmatmul.msk.bf16.gmra.mxu1 %vm968_vm2, %v3799_v18  ;;  %v3801_v14 = vpack.c.bf16 %v7367_v44, %v7366_v10  ;;  %v7350_v10 = vld [vmem:[%s9223_s7 + $0x127] sm:$0xff]  ;;  %v7351_v44 = vld [vmem:[%s9223_s7 + $0x12f] sm:$0xff] }
 0x461   : > { %v3668_v33 = vadd.f32 %v3667_v45, %v3505_v20  ;;  %v10792_v21 = vadd.f32 %v3619_v50, %v10536_v38  ;;  %v7585_v20 = vor.u32 %v7934_v4, %v7582_v11  ;;  %v7348_v50 = vld [vmem:[%s9223_s7 + $0x107] sm:$0xff]  ;;  %v7369_v11 = vld [vmem:[%s9219_s12 + $0x12f] sm:$0xff] }
 0x462   : > { %v7368_v4 = vld [vmem:[%s9219_s12 + $0x127] sm:$0xff] }
 0x463   : > { %v10795_v37 = vadd.f32 %v3668_v33, %v10539_v26  ;;  %v7349_v33 = vld [vmem:[%s9223_s7 + $0x10f] sm:$0xff]  ;;  %4621 = vmatpush.bf16.msrb.mxu3 %v7585_v20 }
 0x464   : > { %v3793_v39 = vpack.c.bf16 %v7349_v33, %v7348_v50  ;;  %v3802_v50 = vpack.c.bf16 %v7369_v11, %v7368_v4 }
 0x465   : > { %v3507_v48 = vpop.f32.mrf.mxu1 }
 0x466   : > { %v3620_v38 = vpop.f32.mrf.mxu2 }
 0x467   : > { %v3621_v26 = vadd.f32 %v3620_v38, %v3458_v23  ;;  %v3461_v52 = vpop.f32.mrf.mxu0  ;;  %v7537_v38 = vor.u32 %v7942_v55, %v7534_v34 }
 0x468   : > { %v3669_v56 = vpop.f32.mrf.mxu3 }
 0x469   : > { %v3670_v35 = vadd.f32 %v3669_v56, %v3507_v48  ;;  %v10808_v18 = vadd.f32 %v3621_v26, %v10552_v3  ;;  %4459 = vmatpush.bf16.msrb.mxu1 %v7537_v38 }
 0x46a   : > { %7423 = vmatmul.msk.bf16.gmra.mxu0 %vm968_vm2, %v3800_v58 }
 0x46b   : > { %v10811_v15 = vadd.f32 %v3670_v35, %v10555_v8  ;;  %7471 = vmatmul.msk.bf16.gmra.mxu2 %vm968_vm2, %v3792_v43 }
 0x46d   : > { %7479 = vmatmul.msk.bf16.gmra.mxu3 %vm968_vm2, %v3792_v43  ;;  %v3510_v57 = vpop.f32.mrf.mxu1 }
 0x46e   : > { %v3623_v25 = vpop.f32.mrf.mxu2 }
 0x46f   : > { %v3624_v22 = vadd.f32 %v3623_v25, %v3461_v52  ;;  %v3463_v3 = vpop.f32.mrf.mxu0 }
 0x470   : > { %v3672_v1 = vpop.f32.mrf.mxu3  ;;  %7431 = vmatmul.msk.bf16.gmra.mxu1 %vm968_vm2, %v3800_v58 }
 0x471   : > { %v3673_v36 = vadd.f32 %v3672_v1, %v3510_v57  ;;  %v10818_v8 = vadd.f32 %v3624_v22, %v10562_v5  ;;  %v7700_v22 = vld [vmem:[%s12102_s4 + $0x230] sm:$0xf] }
 0x473   : > { %v10821_v0 = vadd.f32 %v3673_v36, %v10565_v49  ;;  %v7965_v36 = vld [vmem:[%s12102_s4 + $0x234] sm:$0xf0] }
 0x475   : > { %v3512_v45 = vpop.f32.mrf.mxu1 }
 0x476   : > { %v3625_v5 = vpop.f32.mrf.mxu2 }
 0x477   : > { %v3626_v49 = vadd.f32 %v3625_v5, %v3463_v3  ;;  %v3466_v9 = vpop.f32.mrf.mxu0  ;;  %v7701_v3 = vor.u32 %v7965_v36, %v7700_v22 }
 0x478   : > { %v3674_v23 = vpop.f32.mrf.mxu3 }
 0x479   : > { %v3675_v46 = vadd.f32 %v3674_v23, %v3512_v45  ;;  %v10834_v62 = vadd.f32 %v3626_v49, %v10578_v42  ;;  %v7748_v42 = vld [vmem:[%s12101_s3 + $0x230] sm:$0xf]  ;;  %4893 = vmatpush.bf16.msra.mxu0 %v7701_v3  ;;  %v3794_v23 = vpack.c.bf16 %v7351_v44, %v7350_v10  ;;  %v7964_v10 = vld [vmem:[%s12102_s4 + $0x234] sm:$0xf]  ;;  %v7702_v44 = vld [vmem:[%s12102_s4 + $0x238] sm:$0xf0] }
 0x47a   : > { %7424 = vmatmul.msk.bf16.gmra.mxu0 %vm968_vm2, %v3801_v14 }
 0x47b   : > { %v10837_v48 = vadd.f32 %v3675_v46, %v10581_v59  ;;  %7472 = vmatmul.msk.bf16.gmra.mxu2 %vm968_vm2, %v3793_v39  ;;  %v7957_v59 = vld [vmem:[%s12101_s3 + $0x234] sm:$0xf0] }
 0x47c   : > { %v7749_v58 = vor.u32 %v7957_v59, %v7748_v42  ;;  %v7956_v42 = vld [vmem:[%s12101_s3 + $0x234] sm:$0xf]  ;;  %v7750_v59 = vld [vmem:[%s12101_s3 + $0x238] sm:$0xf0] }
 0x47d   : > { %7480 = vmatmul.msk.bf16.gmra.mxu3 %vm968_vm2, %v3793_v39  ;;  %v3515_v56 = vpop.f32.mrf.mxu1 }
 0x47e   : > { %v3628_v26 = vpop.f32.mrf.mxu2  ;;  %5055 = vmatpush.bf16.msra.mxu2 %v7749_v58  ;;  %v7498_v58 = vld [vmem:[%s9219_s12 + $0x48] sm:$0xff] }
 0x47f   : > { %v3629_v52 = vadd.f32 %v3628_v26, %v3466_v9  ;;  %v3468_v57 = vpop.f32.mrf.mxu0  ;;  %v7499_v26 = vld [vmem:[%s9219_s12 + $0x50] sm:$0xff] }
 0x480   : > { %v3677_v35 = vpop.f32.mrf.mxu3  ;;  %7432 = vmatmul.msk.bf16.gmra.mxu1 %vm968_vm2, %v3801_v14  ;;  %v4281_v22 = vpack.c.bf16 %v7499_v26, %v7498_v58  ;;  %v7484_v58 = vld [vmem:[%s9223_s7 + $0x68] sm:$0xff]  ;;  %v7485_v26 = vld [vmem:[%s9223_s7 + $0x70] sm:$0xff] }
 0x481   : > { %v3678_v43 = vadd.f32 %v3677_v35, %v3515_v56  ;;  %v10856_v25 = vadd.f32 %v3629_v52, %v10600_v31  ;;  %v7753_v56 = vor.u32 %v7956_v42, %v7750_v59  ;;  %v7482_v52 = vld [vmem:[%s9223_s7 + $0x48] sm:$0xff]  ;;  %v7501_v59 = vld [vmem:[%s9219_s12 + $0x70] sm:$0xff] }
 0x482   : > { %v7500_v42 = vld [vmem:[%s9219_s12 + $0x68] sm:$0xff] }
 0x483   : > { %v10859_v1 = vadd.f32 %v3678_v43, %v10603_v60  ;;  %v7483_v43 = vld [vmem:[%s9223_s7 + $0x50] sm:$0xff]  ;;  %5104 = vmatpush.bf16.msra.mxu3 %v7753_v56 }
 0x484   : > { %v4273_v4 = vpack.c.bf16 %v7483_v43, %v7482_v52  ;;  %v4282_v52 = vpack.c.bf16 %v7501_v59, %v7500_v42 }
 0x485   : > { %v3517_v20 = vpop.f32.mrf.mxu1 }
 0x486   : > { %v3630_v31 = vpop.f32.mrf.mxu2 }
 0x487   : > { %v3631_v60 = vadd.f32 %v3630_v31, %v3468_v57  ;;  %v3471_v5 = vpop.f32.mrf.mxu0  ;;  %v7705_v31 = vor.u32 %v7964_v10, %v7702_v44 }
 0x488   : > { %v3679_v45 = vpop.f32.mrf.mxu3 }
 0x489   : > { %v3680_v33 = vadd.f32 %v3679_v45, %v3517_v20  ;;  %v10872_v14 = vadd.f32 %v3631_v60, %v10616_v7  ;;  %4942 = vmatpush.bf16.msra.mxu1 %v7705_v31 }
 0x48a   : > { %7425 = vmatmul.msk.bf16.gmra.mxu0 %vm968_vm2, %v3802_v50 }
 0x48b   : > { %v10875_v49 = vadd.f32 %v3680_v33, %v10619_v2  ;;  %7473 = vmatmul.msk.bf16.gmra.mxu2 %vm968_vm2, %v3794_v23 }
 0x48d   : > { %7481 = vmatmul.msk.bf16.gmra.mxu3 %vm968_vm2, %v3794_v23  ;;  %v3520_v46 = vpop.f32.mrf.mxu1 }
 0x48e   : > { %v3633_v9 = vpop.f32.mrf.mxu2 }
 0x48f   : > { %v3634_v55 = vadd.f32 %v3633_v9, %v3471_v5  ;;  %v3473_v7 = vpop.f32.mrf.mxu0 }
 0x490   : > { %v3682_v39 = vpop.f32.mrf.mxu3  ;;  %7433 = vmatmul.msk.bf16.gmra.mxu1 %vm968_vm2, %v3802_v50 }
 0x491   : > { %v3683_v34 = vadd.f32 %v3682_v39, %v3520_v46  ;;  %v10882_v2 = vadd.f32 %v3634_v55, %v10626_v47  ;;  %v7692_v55 = vld [vmem:[%s12102_s4 + $0x220] sm:$0xf] }
 0x493   : > { %v10885_v38 = vadd.f32 %v3683_v34, %v10629_v27  ;;  %v7963_v34 = vld [vmem:[%s12102_s4 + $0x224] sm:$0xf0] }
 0x495   : > { %v3522_v35 = vpop.f32.mrf.mxu1 }
 0x496   : > { %v3635_v47 = vpop.f32.mrf.mxu2 }
 0x497   : > { %v3636_v27 = vadd.f32 %v3635_v47, %v3473_v7  ;;  %v3926_v3 = vpop.f32.mrf.mxu0  ;;  %v7693_v7 = vor.u32 %v7963_v34, %v7692_v55 }
 0x498   : > { %v3684_v57 = vpop.f32.mrf.mxu3 }
 0x499   : > { %v3685_v36 = vadd.f32 %v3684_v57, %v3522_v35  ;;  %v10898_v11 = vadd.f32 %v3636_v27, %v10642_v16  ;;  %v7740_v16 = vld [vmem:[%s12101_s3 + $0x220] sm:$0xf]  ;;  %4894 = vmatpush.bf16.msra.mxu0 %v7693_v7  ;;  %v4274_v57 = vpack.c.bf16 %v7485_v26, %v7484_v58  ;;  %v7962_v58 = vld [vmem:[%s12102_s4 + $0x224] sm:$0xf]  ;;  %v7694_v26 = vld [vmem:[%s12102_s4 + $0x228] sm:$0xf0] }
 0x49a   : > { %7562 = vmatmul.msk.bf16.vlgmr.msrb.gmra.mxu0 %vm968_vm2, %v4281_v22 }
 0x49b   : > { %v10901_v20 = vadd.f32 %v3685_v36, %v10645_v51  ;;  %7610 = vmatmul.msk.bf16.vlgmr.msrb.gmra.mxu2 %vm968_vm2, %v4273_v4  ;;  %v7955_v51 = vld [vmem:[%s12101_s3 + $0x224] sm:$0xf0] }
 0x49c   : > { %v7741_v50 = vor.u32 %v7955_v51, %v7740_v16  ;;  %v7954_v16 = vld [vmem:[%s12101_s3 + $0x224] sm:$0xf]  ;;  %v7742_v51 = vld [vmem:[%s12101_s3 + $0x228] sm:$0xf0] }
 0x49d   : > { %7618 = vmatmul.msk.bf16.vlgmr.msrb.gmra.mxu3 %vm968_vm2, %v4273_v4  ;;  %v3975_v45 = vpop.f32.mrf.mxu1 }
 0x49e   : > { %v4088_v60 = vpop.f32.mrf.mxu2  ;;  %5056 = vmatpush.bf16.msra.mxu2 %v7741_v50  ;;  %v7502_v50 = vld [vmem:[%s9219_s12 + $0x88] sm:$0xff] }
 0x49f   : > { %v4089_v5 = vadd.f32 %v4088_v60, %v3926_v3  ;;  %v3928_v46 = vpop.f32.mrf.mxu0  ;;  %v7503_v60 = vld [vmem:[%s9219_s12 + $0x90] sm:$0xff] }
 0x4a0   : > { %v4137_v33 = vpop.f32.mrf.mxu3  ;;  %7570 = vmatmul.msk.bf16.vlgmr.msrb.gmra.mxu1 %vm968_vm2, %v4281_v22  ;;  %v4283_v55 = vpack.c.bf16 %v7503_v60, %v7502_v50  ;;  %v7488_v50 = vld [vmem:[%s9223_s7 + $0xa8] sm:$0xff]  ;;  %v7489_v60 = vld [vmem:[%s9223_s7 + $0xb0] sm:$0xff] }
 0x4a1   : > { %v4138_v23 = vadd.f32 %v4137_v33, %v3975_v45  ;;  %v10920_v9 = vadd.f32 %v4089_v5, %v10664_v17  ;;  %v7745_v45 = vor.u32 %v7954_v16, %v7742_v51  ;;  %v7486_v5 = vld [vmem:[%s9223_s7 + $0x88] sm:$0xff]  ;;  %v7505_v51 = vld [vmem:[%s9219_s12 + $0xb0] sm:$0xff] }
 0x4a2   : > { %v7504_v16 = vld [vmem:[%s9219_s12 + $0xa8] sm:$0xff] }
 0x4a3   : > { %v10923_v39 = vadd.f32 %v4138_v23, %v10667_v29  ;;  %v7487_v23 = vld [vmem:[%s9223_s7 + $0x90] sm:$0xff]  ;;  %5105 = vmatpush.bf16.msra.mxu3 %v7745_v45 }
 0x4a4   : > { %v4275_v42 = vpack.c.bf16 %v7487_v23, %v7486_v5  ;;  %v4284_v5 = vpack.c.bf16 %v7505_v51, %v7504_v16 }
 0x4a5   : > { %v3977_v56 = vpop.f32.mrf.mxu1 }
 0x4a6   : > { %v4090_v17 = vpop.f32.mrf.mxu2 }
 0x4a7   : > { %v4091_v29 = vadd.f32 %v4090_v17, %v3928_v46  ;;  %v3931_v47 = vpop.f32.mrf.mxu0  ;;  %v7697_v17 = vor.u32 %v7962_v58, %v7694_v26 }
 0x4a8   : > { %v4139_v35 = vpop.f32.mrf.mxu3 }
 0x4a9   : > { %v4140_v43 = vadd.f32 %v4139_v35, %v3977_v56  ;;  %v10936_v22 = vadd.f32 %v4091_v29, %v10680_v41  ;;  %4943 = vmatpush.bf16.msra.mxu1 %v7697_v17 }
 0x4aa   : > { %7563 = vmatmul.msk.bf16.gmra.mxu0 %vm968_vm2, %v4282_v52 }
 0x4ab   : > { %v10939_v27 = vadd.f32 %v4140_v43, %v10683_v6  ;;  %7611 = vmatmul.msk.bf16.gmra.mxu2 %vm968_vm2, %v4274_v57 }
 0x4ad   : > { %7619 = vmatmul.msk.bf16.gmra.mxu3 %vm968_vm2, %v4274_v57  ;;  %v3980_v36 = vpop.f32.mrf.mxu1 }
 0x4ae   : > { %v4093_v3 = vpop.f32.mrf.mxu2 }
 0x4af   : > { %v4094_v10 = vadd.f32 %v4093_v3, %v3931_v47  ;;  %v3933_v41 = vpop.f32.mrf.mxu0 }
 0x4b0   : > { %v4142_v4 = vpop.f32.mrf.mxu3  ;;  %7571 = vmatmul.msk.bf16.gmra.mxu1 %vm968_vm2, %v4282_v52 }
 0x4b1   : > { %v4143_v44 = vadd.f32 %v4142_v4, %v3980_v36  ;;  %v10946_v6 = vadd.f32 %v4094_v10, %v10690_v19  ;;  %v7684_v10 = vld [vmem:[%s12102_s4 + $0x210] sm:$0xf] }
 0x4b3   : > { %v10949_v31 = vadd.f32 %v4143_v44, %v10693_v61  ;;  %v7961_v44 = vld [vmem:[%s12102_s4 + $0x214] sm:$0xf0] }
 0x4b5   : > { %v3982_v33 = vpop.f32.mrf.mxu1 }
 0x4b6   : > { %v4095_v19 = vpop.f32.mrf.mxu2 }
 0x4b7   : > { %v4096_v61 = vadd.f32 %v4095_v19, %v3933_v41  ;;  %v3936_v7 = vpop.f32.mrf.mxu0  ;;  %v7685_v41 = vor.u32 %v7961_v44, %v7684_v10 }
 0x4b8   : > { %v4144_v46 = vpop.f32.mrf.mxu3 }
 0x4b9   : > { %v4145_v34 = vadd.f32 %v4144_v46, %v3982_v33  ;;  %v10962_v59 = vadd.f32 %v4096_v61, %v10706_v54  ;;  %v7732_v54 = vld [vmem:[%s12101_s3 + $0x210] sm:$0xf]  ;;  %4895 = vmatpush.bf16.msra.mxu0 %v7685_v41  ;;  %v4276_v46 = vpack.c.bf16 %v7489_v60, %v7488_v50  ;;  %v7960_v50 = vld [vmem:[%s12102_s4 + $0x214] sm:$0xf]  ;;  %v7686_v60 = vld [vmem:[%s12102_s4 + $0x218] sm:$0xf0] }
 0x4ba   : > { %7564 = vmatmul.msk.bf16.gmra.mxu0 %vm968_vm2, %v4283_v55 }
 0x4bb   : > { %v10965_v56 = vadd.f32 %v4145_v34, %v10709_v53  ;;  %7612 = vmatmul.msk.bf16.gmra.mxu2 %vm968_vm2, %v4275_v42  ;;  %v7953_v53 = vld [vmem:[%s12101_s3 + $0x214] sm:$0xf0] }
 0x4bc   : > { %v7733_v52 = vor.u32 %v7953_v53, %v7732_v54  ;;  %v7952_v54 = vld [vmem:[%s12101_s3 + $0x214] sm:$0xf]  ;;  %v7734_v53 = vld [vmem:[%s12101_s3 + $0x218] sm:$0xf0] }
 0x4bd   : > { %7620 = vmatmul.msk.bf16.gmra.mxu3 %vm968_vm2, %v4275_v42  ;;  %v3985_v35 = vpop.f32.mrf.mxu1 }
 0x4be   : > { %v4098_v29 = vpop.f32.mrf.mxu2  ;;  %5057 = vmatpush.bf16.msra.mxu2 %v7733_v52  ;;  %v7506_v52 = vld [vmem:[%s9219_s12 + $0xc8] sm:$0xff] }
 0x4bf   : > { %v4099_v47 = vadd.f32 %v4098_v29, %v3936_v7  ;;  %v3938_v36 = vpop.f32.mrf.mxu0  ;;  %v7507_v29 = vld [vmem:[%s9219_s12 + $0xd0] sm:$0xff] }
 0x4c0   : > { %v4147_v43 = vpop.f32.mrf.mxu3  ;;  %7572 = vmatmul.msk.bf16.gmra.mxu1 %vm968_vm2, %v4283_v55  ;;  %v4285_v10 = vpack.c.bf16 %v7507_v29, %v7506_v52  ;;  %v7492_v52 = vld [vmem:[%s9223_s7 + $0xe8] sm:$0xff]  ;;  %v7493_v29 = vld [vmem:[%s9223_s7 + $0xf0] sm:$0xff] }
 0x4c1   : > { %v4148_v57 = vadd.f32 %v4147_v43, %v3985_v35  ;;  %v10984_v3 = vadd.f32 %v4099_v47, %v10728_v13  ;;  %v7737_v35 = vor.u32 %v7952_v54, %v7734_v53  ;;  %v7490_v47 = vld [vmem:[%s9223_s7 + $0xc8] sm:$0xff]  ;;  %v7509_v53 = vld [vmem:[%s9219_s12 + $0xf0] sm:$0xff] }
 0x4c2   : > { %v7508_v54 = vld [vmem:[%s9219_s12 + $0xe8] sm:$0xff] }
 0x4c3   : > { %v10987_v4 = vadd.f32 %v4148_v57, %v10731_v63  ;;  %v7491_v57 = vld [vmem:[%s9223_s7 + $0xd0] sm:$0xff]  ;;  %5106 = vmatpush.bf16.msra.mxu3 %v7737_v35 }
 0x4c4   : > { %v4277_v16 = vpack.c.bf16 %v7491_v57, %v7490_v47  ;;  %v4286_v47 = vpack.c.bf16 %v7509_v53, %v7508_v54 }
 0x4c5   : > { %v3987_v45 = vpop.f32.mrf.mxu1 }
 0x4c6   : > { %v4100_v13 = vpop.f32.mrf.mxu2 }
 0x4c7   : > { %v4101_v63 = vadd.f32 %v4100_v13, %v3938_v36  ;;  %v3941_v19 = vpop.f32.mrf.mxu0  ;;  %v7689_v13 = vor.u32 %v7960_v50, %v7686_v60 }
 0x4c8   : > { %v4149_v33 = vpop.f32.mrf.mxu3 }
 0x4c9   : > { %v4150_v23 = vadd.f32 %v4149_v33, %v3987_v45  ;;  %v11000_v55 = vadd.f32 %v4101_v63, %v10744_v32  ;;  %4944 = vmatpush.bf16.msra.mxu1 %v7689_v13 }
 0x4ca   : > { %7565 = vmatmul.msk.bf16.gmra.mxu0 %vm968_vm2, %v4284_v5 }
 0x4cb   : > { %v11003_v61 = vadd.f32 %v4150_v23, %v10747_v40  ;;  %7613 = vmatmul.msk.bf16.gmra.mxu2 %vm968_vm2, %v4276_v46 }
 0x4cd   : > { %7621 = vmatmul.msk.bf16.gmra.mxu3 %vm968_vm2, %v4276_v46  ;;  %v3990_v34 = vpop.f32.mrf.mxu1 }
 0x4ce   : > { %v4103_v7 = vpop.f32.mrf.mxu2 }
 0x4cf   : > { %v4104_v58 = vadd.f32 %v4103_v7, %v3941_v19  ;;  %v3943_v32 = vpop.f32.mrf.mxu0 }
 0x4d0   : > { %v4152_v42 = vpop.f32.mrf.mxu3  ;;  %7573 = vmatmul.msk.bf16.gmra.mxu1 %vm968_vm2, %v4284_v5 }
 0x4d1   : > { %v4153_v26 = vadd.f32 %v4152_v42, %v3990_v34  ;;  %v11010_v40 = vadd.f32 %v4104_v58, %v10754_v24  ;;  %v7676_v58 = vld [vmem:[%s12102_s4 + $0x200] sm:$0xf] }
 0x4d3   : > { %v11013_v17 = vadd.f32 %v4153_v26, %v10757_v30  ;;  %v7959_v26 = vld [vmem:[%s12102_s4 + $0x204] sm:$0xf0] }
 0x4d5   : > { %v3992_v43 = vpop.f32.mrf.mxu1 }
 0x4d6   : > { %v4105_v24 = vpop.f32.mrf.mxu2 }
 0x4d7   : > { %v4106_v30 = vadd.f32 %v4105_v24, %v3943_v32  ;;  %v3946_v41 = vpop.f32.mrf.mxu0  ;;  %v7677_v32 = vor.u32 %v7959_v26, %v7676_v58 }
 0x4d8   : > { %v4154_v36 = vpop.f32.mrf.mxu3 }
 0x4d9   : > { %v4155_v44 = vadd.f32 %v4154_v36, %v3992_v43  ;;  %v11026_v51 = vadd.f32 %v4106_v30, %v10770_v28  ;;  %v7724_v28 = vld [vmem:[%s12101_s3 + $0x200] sm:$0xf]  ;;  %4896 = vmatpush.bf16.msra.mxu0 %v7677_v32  ;;  %v4278_v36 = vpack.c.bf16 %v7493_v29, %v7492_v52  ;;  %v7958_v52 = vld [vmem:[%s12102_s4 + $0x204] sm:$0xf]  ;;  %v7678_v29 = vld [vmem:[%s12102_s4 + $0x208] sm:$0xf0] }
 0x4da   : > { %7566 = vmatmul.msk.bf16.gmra.mxu0 %vm968_vm2, %v4285_v10 }
 0x4db   : > { %v11029_v45 = vadd.f32 %v4155_v44, %v10773_v12  ;;  %7614 = vmatmul.msk.bf16.gmra.mxu2 %vm968_vm2, %v4277_v16  ;;  %v7951_v12 = vld [vmem:[%s12101_s3 + $0x204] sm:$0xf0] }
 0x4dc   : > { %v7725_v5 = vor.u32 %v7951_v12, %v7724_v28  ;;  %v7950_v28 = vld [vmem:[%s12101_s3 + $0x204] sm:$0xf]  ;;  %v7726_v12 = vld [vmem:[%s12101_s3 + $0x208] sm:$0xf0] }
 0x4dd   : > { %7622 = vmatmul.msk.bf16.gmra.mxu3 %vm968_vm2, %v4277_v16  ;;  %v3995_v33 = vpop.f32.mrf.mxu1 }
 0x4de   : > { %v4108_v63 = vpop.f32.mrf.mxu2  ;;  %5058 = vmatpush.bf16.msra.mxu2 %v7725_v5  ;;  %v7510_v5 = vld [vmem:[%s9219_s12 + $0x108] sm:$0xff] }
 0x4df   : > { %v4109_v19 = vadd.f32 %v4108_v63, %v3946_v41  ;;  %v3948_v34 = vpop.f32.mrf.mxu0  ;;  %v7511_v63 = vld [vmem:[%s9219_s12 + $0x110] sm:$0xff] }
 0x4e0   : > { %v4157_v23 = vpop.f32.mrf.mxu3  ;;  %7574 = vmatmul.msk.bf16.gmra.mxu1 %vm968_vm2, %v4285_v10  ;;  %v4287_v58 = vpack.c.bf16 %v7511_v63, %v7510_v5 }
 0x4e1   : > { %v4158_v46 = vadd.f32 %v4157_v23, %v3995_v33  ;;  %v11048_v7 = vadd.f32 %v4109_v19, %v10792_v21  ;;  %v7729_v33 = vor.u32 %v7950_v28, %v7726_v12  ;;  %v7494_v19 = vld [vmem:[%s9223_s7 + $0x108] sm:$0xff] }
 0x4e3   : > { %v11051_v42 = vadd.f32 %v4158_v46, %v10795_v37  ;;  %v7495_v46 = vld [vmem:[%s9223_s7 + $0x110] sm:$0xff]  ;;  %5107 = vmatpush.bf16.msra.mxu3 %v7729_v33 }
 0x4e4   : > { %v4279_v54 = vpack.c.bf16 %v7495_v46, %v7494_v19 }
 0x4e5   : > { %v3997_v35 = vpop.f32.mrf.mxu1 }
 0x4e6   : > { %v4110_v21 = vpop.f32.mrf.mxu2 }
 0x4e7   : > { %v4111_v37 = vadd.f32 %v4110_v21, %v3948_v34  ;;  %v3951_v24 = vpop.f32.mrf.mxu0  ;;  %v7681_v21 = vor.u32 %v7958_v52, %v7678_v29  ;;  %v7626_v52 = vld [vmem:[%s9223_s7 + $0x49] sm:$0xff]  ;;  %v7627_v29 = vld [vmem:[%s9223_s7 + $0x51] sm:$0xff] }
 0x4e8   : > { %v4159_v43 = vpop.f32.mrf.mxu3 }
 0x4e9   : > { %v4160_v57 = vadd.f32 %v4159_v43, %v3997_v35  ;;  %v11064_v10 = vadd.f32 %v4111_v37, %v10808_v18  ;;  %4945 = vmatpush.bf16.msra.mxu1 %v7681_v21 }
 0x4ea   : > { %7567 = vmatmul.msk.bf16.gmra.mxu0 %vm968_vm2, %v4286_v47 }
 0x4eb   : > { %v11067_v30 = vadd.f32 %v4160_v57, %v10811_v15  ;;  %7615 = vmatmul.msk.bf16.gmra.mxu2 %vm968_vm2, %v4278_v36 }
 0x4ed   : > { %7623 = vmatmul.msk.bf16.gmra.mxu3 %vm968_vm2, %v4278_v36  ;;  %v4000_v44 = vpop.f32.mrf.mxu1 }
 0x4ee   : > { %v4113_v41 = vpop.f32.mrf.mxu2 }
 0x4ef   : > { %v4114_v50 = vadd.f32 %v4113_v41, %v3951_v24  ;;  %v3953_v18 = vpop.f32.mrf.mxu0  ;;  %v7513_v41 = vld [vmem:[%s9219_s12 + $0x130] sm:$0xff] }
 0x4f0   : > { %v4162_v16 = vpop.f32.mrf.mxu3  ;;  %7575 = vmatmul.msk.bf16.gmra.mxu1 %vm968_vm2, %v4286_v47 }
 0x4f1   : > { %v4163_v60 = vadd.f32 %v4162_v16, %v4000_v44  ;;  %v11074_v15 = vadd.f32 %v4114_v50, %v10818_v8  ;;  %v7512_v44 = vld [vmem:[%s9219_s12 + $0x128] sm:$0xff] }
 0x4f2   : > { %v7496_v50 = vld [vmem:[%s9223_s7 + $0x128] sm:$0xff]  ;;  %v4288_v12 = vpack.c.bf16 %v7513_v41, %v7512_v44 }
 0x4f3   : > { %v11077_v13 = vadd.f32 %v4163_v60, %v10821_v0  ;;  %v7497_v60 = vld [vmem:[%s9223_s7 + $0x130] sm:$0xff] }
 0x4f5   : > { %v4002_v23 = vpop.f32.mrf.mxu1 }
 0x4f6   : > { %v4115_v8 = vpop.f32.mrf.mxu2 }
 0x4f7   : > { %v4116_v0 = vadd.f32 %v4115_v8, %v3953_v18  ;;  %v3956_v32 = vpop.f32.mrf.mxu0 }
 0x4f8   : > { %v4164_v34 = vpop.f32.mrf.mxu3 }
 0x4f9   : > { %v4165_v26 = vadd.f32 %v4164_v34, %v4002_v23  ;;  %v11090_v53 = vadd.f32 %v4116_v0, %v10834_v62  ;;  %v4280_v23 = vpack.c.bf16 %v7497_v60, %v7496_v50 }
 0x4fa   : > { %7568 = vmatmul.msk.bf16.gmra.mxu0 %vm968_vm2, %v4287_v58 }
 0x4fb   : > { %v11093_v35 = vadd.f32 %v4165_v26, %v10837_v48  ;;  %7616 = vmatmul.msk.bf16.gmra.mxu2 %vm968_vm2, %v4279_v54  ;;  %v7642_v26 = vld [vmem:[%s9219_s12 + $0x49] sm:$0xff] }
 0x4fd   : > { %7624 = vmatmul.msk.bf16.gmra.mxu3 %vm968_vm2, %v4279_v54  ;;  %v4005_v62 = vpop.f32.mrf.mxu1 }
 0x4fe   : > { %v4118_v48 = vpop.f32.mrf.mxu2 }
 0x4ff   : > { %v4119_v47 = vadd.f32 %v4118_v48, %v3956_v32  ;;  %v3958_v57 = vpop.f32.mrf.mxu0  ;;  %v7643_v32 = vld [vmem:[%s9219_s12 + $0x51] sm:$0xff] }
 0x500   : > { %v4167_v43 = vpop.f32.mrf.mxu3  ;;  %7576 = vmatmul.msk.bf16.gmra.mxu1 %vm968_vm2, %v4287_v58  ;;  %v4767_v48 = vpack.c.bf16 %v7643_v32, %v7642_v26 }
 0x501   : > { %v4168_v37 = vadd.f32 %v4167_v43, %v4005_v62  ;;  %v11106_v24 = vadd.f32 %v4119_v47, %v10856_v25 }
 0x503   : > { %v11109_v36 = vadd.f32 %v4168_v37, %v10859_v1 }
 0x505   : > { %v4007_v16 = vpop.f32.mrf.mxu1 }
 0x506   : > { %v4120_v18 = vpop.f32.mrf.mxu2 }
 0x507   : > { %v4121_v33 = vadd.f32 %v4120_v18, %v3958_v57  ;;  %v3961_v63 = vpop.f32.mrf.mxu0  ;;  %v4759_v57 = vpack.c.bf16 %v7627_v29, %v7626_v52 }
 0x508   : > { %v4169_v28 = vpop.f32.mrf.mxu3 }
 0x509   : > { %v4170_v5 = vadd.f32 %v4169_v28, %v4007_v16  ;;  %v11116_v25 = vadd.f32 %v4121_v33, %v10872_v14  ;;  %v7644_v28 = vld [vmem:[%s9219_s12 + $0x69] sm:$0xff] }
 0x50a   : > { %7569 = vmatmul.msk.bf16.gmra.mxu0 %vm968_vm2, %v4288_v12 }
 0x50b   : > { %v11119_v1 = vadd.f32 %v4170_v5, %v10875_v49  ;;  %7617 = vmatmul.msk.bf16.gmra.mxu2 %vm968_vm2, %v4280_v23  ;;  %v7628_v5 = vld [vmem:[%s9223_s7 + $0x69] sm:$0xff] }
 0x50d   : > { %7625 = vmatmul.msk.bf16.gmra.mxu3 %vm968_vm2, %v4280_v23  ;;  %v4010_v19 = vpop.f32.mrf.mxu1 }
 0x50e   : > { %v4123_v46 = vpop.f32.mrf.mxu2 }
 0x50f   : > { %v4124_v34 = vadd.f32 %v4123_v46, %v3961_v63  ;;  %v3963_v0 = vpop.f32.mrf.mxu0  ;;  %v7629_v63 = vld [vmem:[%s9223_s7 + $0x71] sm:$0xff] }
 0x510   : > { %v4172_v8 = vpop.f32.mrf.mxu3  ;;  %7577 = vmatmul.msk.bf16.gmra.mxu1 %vm968_vm2, %v4288_v12  ;;  %v7645_v12 = vld [vmem:[%s9219_s12 + $0x71] sm:$0xff] }
 0x511   : > { %v4173_v58 = vadd.f32 %v4172_v8, %v4010_v19  ;;  %v11126_v14 = vadd.f32 %v4124_v34, %v10882_v2  ;;  %v4768_v46 = vpack.c.bf16 %v7645_v12, %v7644_v28 }
 0x513   : > { %v11129_v49 = vadd.f32 %v4173_v58, %v10885_v38 }
 0x515   : > { %v4012_v54 = vpop.f32.mrf.mxu1 }
 0x516   : > { %v4125_v21 = vpop.f32.mrf.mxu2 }
 0x517   : > { %v4126_v43 = vadd.f32 %v4125_v21, %v3963_v0  ;;  %v4412_v37 = vpop.f32.mrf.mxu0  ;;  %v4760_v0 = vpack.c.bf16 %v7629_v63, %v7628_v5 }
 0x518   : > { %v4174_v62 = vpop.f32.mrf.mxu3 }
 0x519   : > { %v4175_v47 = vadd.f32 %v4174_v62, %v4012_v54  ;;  %v11136_v2 = vadd.f32 %v4126_v43, %v10898_v11  ;;  %v7646_v43 = vld [vmem:[%s9219_s12 + $0x89] sm:$0xff] }
 0x51a   : > { %7706 = vmatmul.msk.bf16.vlgmr.msra.gmra.mxu0 %vm968_vm2, %v4767_v48 }
 0x51b   : > { %v11139_v38 = vadd.f32 %v4175_v47, %v10901_v20  ;;  %7754 = vmatmul.msk.bf16.vlgmr.msra.gmra.mxu2 %vm968_vm2, %v4759_v57  ;;  %v7647_v47 = vld [vmem:[%s9219_s12 + $0x91] sm:$0xff] }
 0x51d   : > { %7762 = vmatmul.msk.bf16.vlgmr.msra.gmra.mxu3 %vm968_vm2, %v4759_v57  ;;  %v4461_v44 = vpop.f32.mrf.mxu1  ;;  %v7630_v57 = vld [vmem:[%s9223_s7 + $0x89] sm:$0xff] }
 0x51e   : > { %v4574_v41 = vpop.f32.mrf.mxu2 }
 0x51f   : > { %v4575_v50 = vadd.f32 %v4574_v41, %v4412_v37  ;;  %v4414_v18 = vpop.f32.mrf.mxu0 }
 0x520   : > { %v4623_v16 = vpop.f32.mrf.mxu3  ;;  %7714 = vmatmul.msk.bf16.vlgmr.msra.gmra.mxu1 %vm968_vm2, %v4767_v48  ;;  %v5908_v48 = vld [vmem:[%s8709_s15 + $0x8] sm:$0xff] }
 0x521   : > { %v4624_v60 = vadd.f32 %v4623_v16, %v4461_v44  ;;  %v11146_v11 = vadd.f32 %v4575_v50, %v10920_v9  ;;  %v7631_v44 = vld [vmem:[%s9223_s7 + $0x91] sm:$0xff]  ;;  %v4769_v50 = vpack.c.bf16 %v7647_v47, %v7646_v43 }
 0x523   : > { %v11149_v20 = vadd.f32 %v4624_v60, %v10923_v39  ;;  %v5907_v39 = vld [vmem:[%s8709_s15] sm:$0xff] }
 0x524   : > { %5939 = vrot.lane.b32.xlu0 %v5907_v39, %s8572_s22 }
 0x525   : > { %v4463_v33 = vpop.f32.mrf.mxu1 }
 0x526   : > { %v4576_v23 = vpop.f32.mrf.mxu2 }
 0x527   : > { %v4577_v8 = vadd.f32 %v4576_v23, %v4414_v18  ;;  %v4417_v58 = vpop.f32.mrf.mxu0 }
 0x528   : > { %v4625_v19 = vpop.f32.mrf.mxu3 }
 0x529   : > { %v4626_v34 = vadd.f32 %v4625_v19, %v4463_v33  ;;  %v11156_v26 = vadd.f32 %v4577_v8, %v10936_v22  ;;  %v5909_v33 = vld [vmem:[%s8709_s15 + $0x10] sm:$0xff] }
 0x52a   : > { %7707 = vmatmul.msk.bf16.gmra.mxu0 %vm968_vm2, %v4768_v46  ;;  %5943 = vrot.lane.b32.xlu1 %v5909_v33, %s8572_s22  ;;  %v7635_v33 = vld [vmem:[%s9223_s7 + $0xd1] sm:$0xff] }
 0x52b   : > { %v11159_v9 = vadd.f32 %v4626_v34, %v10939_v27  ;;  %7755 = vmatmul.msk.bf16.gmra.mxu2 %vm968_vm2, %v4760_v0  ;;  %v5910_v34 = vld [vmem:[%s8709_s15 + $0x18] sm:$0xff] }
 0x52c   : > { %5941 = vrot.lane.b32.xlu0 %v5908_v48, %s8572_s22 }
 0x52d   : > { %7763 = vmatmul.msk.bf16.gmra.mxu3 %vm968_vm2, %v4760_v0  ;;  %v4466_v32 = vpop.f32.mrf.mxu1  ;;  %v7649_v0 = vld [vmem:[%s9219_s12 + $0xb1] sm:$0xff] }
 0x52e   : > { %v4579_v22 = vpop.f32.mrf.mxu2 }
 0x52f   : > { %v4580_v27 = vadd.f32 %v4579_v22, %v4417_v58  ;;  %v4419_v29 = vpop.f32.mrf.mxu0  ;;  %v7648_v58 = vld [vmem:[%s9219_s12 + $0xa9] sm:$0xff]  ;;  %v7633_v22 = vld [vmem:[%s9223_s7 + $0xb1] sm:$0xff] }
 0x530   : > { %v4628_v54 = vpop.f32.mrf.mxu3  ;;  %7715 = vmatmul.msk.bf16.gmra.mxu1 %vm968_vm2, %v4768_v46 }
 0x531   : > { %v4629_v52 = vadd.f32 %v4628_v54, %v4466_v32  ;;  %v11168_v21 = vadd.f32 %v4580_v27, %v10946_v6  ;;  %v4761_v6 = vpack.c.bf16 %v7631_v44, %v7630_v57  ;;  %v7632_v32 = vld [vmem:[%s9223_s7 + $0xa9] sm:$0xff] }
 0x532   : > { %5945 = vrot.lane.b32.xlu1 %v5910_v34, %s8572_s22 }
 0x533   : > { %v11171_v62 = vadd.f32 %v4629_v52, %v10949_v31  ;;  %v4770_v52 = vpack.c.bf16 %v7649_v0, %v7648_v58 }
 0x535   : > { %v4468_v37 = vpop.f32.mrf.mxu1 }
 0x536   : > { %v4581_v41 = vpop.f32.mrf.mxu2 }
 0x537   : > { %v4582_v60 = vadd.f32 %v4581_v41, %v4419_v29  ;;  %v4422_v28 = vpop.f32.mrf.mxu0 }
 0x538   : > { %v4630_v16 = vpop.f32.mrf.mxu3 }
 0x539   : > { %v4631_v18 = vadd.f32 %v4630_v16, %v4468_v37  ;;  %v11180_v12 = vadd.f32 %v4582_v60, %v10962_v59  ;;  %v7650_v60 = vld [vmem:[%s9219_s12 + $0xc9] sm:$0xff] }
 0x53a   : > { %7708 = vmatmul.msk.bf16.gmra.mxu0 %vm968_vm2, %v4769_v50 }
 0x53b   : > { %v11183_v31 = vadd.f32 %v4631_v18, %v10965_v56  ;;  %7756 = vmatmul.msk.bf16.gmra.mxu2 %vm968_vm2, %v4761_v6  ;;  %v7651_v18 = vld [vmem:[%s9219_s12 + $0xd1] sm:$0xff] }
 0x53d   : > { %7764 = vmatmul.msk.bf16.gmra.mxu3 %vm968_vm2, %v4761_v6  ;;  %v4471_v5 = vpop.f32.mrf.mxu1  ;;  %v7634_v6 = vld [vmem:[%s9223_s7 + $0xc9] sm:$0xff] }
 0x53e   : > { %v4584_v59 = vpop.f32.mrf.mxu2  ;;  %v4763_v34 = vpack.c.bf16 %v7635_v33, %v7634_v6  ;;  %v5912_v6 = vld [vmem:[%s8709_s15 + $0x28] sm:$0xff] }
 0x53f   : > { %v4585_v23 = vadd.f32 %v4584_v59, %v4422_v28  ;;  %v4424_v56 = vpop.f32.mrf.mxu0 }
 0x540   : > { %v4633_v63 = vpop.f32.mrf.mxu3  ;;  %7716 = vmatmul.msk.bf16.gmra.mxu1 %vm968_vm2, %v4769_v50 }
 0x541   : > { %v4634_v19 = vadd.f32 %v4633_v63, %v4471_v5  ;;  %v11192_v46 = vadd.f32 %v4585_v23, %v10984_v3  ;;  %v4762_v3 = vpack.c.bf16 %v7633_v22, %v7632_v32  ;;  %v4771_v63 = vpack.c.bf16 %v7651_v18, %v7650_v60 }
 0x543   : > { %v11195_v8 = vadd.f32 %v4634_v19, %v10987_v4 }
 0x545   : > { %v4473_v39 = vpop.f32.mrf.mxu1 }
 0x546   : > { %v4586_v54 = vpop.f32.mrf.mxu2 }
 0x547   : > { %v4587_v29 = vadd.f32 %v4586_v54, %v4424_v56  ;;  %v4427_v43 = vpop.f32.mrf.mxu0 }
 0x548   : > { %v4635_v27 = vpop.f32.mrf.mxu3 }
 0x549   : > { %v4636_v48 = vadd.f32 %v4635_v27, %v4473_v39  ;;  %v11204_v4 = vadd.f32 %v4587_v29, %v11000_v55  ;;  %v5914_v29 = vld [vmem:[%s8709_s15 + $0x38] sm:$0xff] }
 0x54a   : > { %7709 = vmatmul.msk.bf16.gmra.mxu0 %vm968_vm2, %v4770_v52  ;;  %5953 = vrot.lane.b32.xlu1 %v5914_v29, %s8572_s22 }
 0x54b   : > { %v11207_v47 = vadd.f32 %v4636_v48, %v11003_v61  ;;  %7757 = vmatmul.msk.bf16.gmra.mxu2 %vm968_vm2, %v4762_v3  ;;  %v7652_v48 = vld [vmem:[%s9219_s12 + $0xe9] sm:$0xff] }
 0x54d   : > { %7765 = vmatmul.msk.bf16.gmra.mxu3 %vm968_vm2, %v4762_v3  ;;  %v4476_v37 = vpop.f32.mrf.mxu1 }
 0x54e   : > { %v4589_v57 = vpop.f32.mrf.mxu2 }
 0x54f   : > { %v4590_v41 = vadd.f32 %v4589_v57, %v4427_v43  ;;  %v4429_v50 = vpop.f32.mrf.mxu0  ;;  %v7653_v43 = vld [vmem:[%s9219_s12 + $0xf1] sm:$0xff] }
 0x550   : > { %v4638_v44 = vpop.f32.mrf.mxu3  ;;  %7717 = vmatmul.msk.bf16.gmra.mxu1 %vm968_vm2, %v4770_v52  ;;  %v5911_v52 = vld [vmem:[%s8709_s15 + $0x20] sm:$0xff]  ;;  %v7637_v57 = vld [vmem:[%s9223_s7 + $0xf1] sm:$0xff] }
 0x551   : > { %v4639_v16 = vadd.f32 %v4638_v44, %v4476_v37  ;;  %v11214_v55 = vadd.f32 %v4590_v41, %v11010_v40  ;;  %5947 = vrot.lane.b32.xlu2 %v5911_v52, %s8572_s22  ;;  %v7636_v37 = vld [vmem:[%s9223_s7 + $0xe9] sm:$0xff] }
 0x553   : > { %v11217_v61 = vadd.f32 %v4639_v16, %v11013_v17  ;;  %v5913_v17 = vld [vmem:[%s8709_s15 + $0x30] sm:$0xff]  ;;  %v4772_v16 = vpack.c.bf16 %v7653_v43, %v7652_v48 }
 0x554   : > { %5951 = vrot.lane.b32.xlu0 %v5913_v17, %s8572_s22  ;;  %v7655_v17 = vld [vmem:[%s9219_s12 + $0x111] sm:$0xff] }
 0x555   : > { %v4478_v28 = vpop.f32.mrf.mxu1 }
 0x556   : > { %v4591_v5 = vpop.f32.mrf.mxu2 }
 0x557   : > { %v4592_v23 = vadd.f32 %v4591_v5, %v4429_v50  ;;  %v4432_v56 = vpop.f32.mrf.mxu0 }
 0x558   : > { %v4640_v59 = vpop.f32.mrf.mxu3 }
 0x559   : > { %v4641_v19 = vadd.f32 %v4640_v59, %v4478_v28  ;;  %v11224_v58 = vadd.f32 %v4592_v23, %v11026_v51  ;;  %5949 = vrot.lane.b32.xlu2 %v5912_v6, %s8572_s22  ;;  %v7640_v6 = vld [vmem:[%s9223_s7 + $0x129] sm:$0xff] }
 0x55a   : > { %7710 = vmatmul.msk.bf16.gmra.mxu0 %vm968_vm2, %v4771_v63 }
 0x55b   : > { %v11227_v40 = vadd.f32 %v4641_v19, %v11029_v45  ;;  %7758 = vmatmul.msk.bf16.gmra.mxu2 %vm968_vm2, %v4763_v34 }
 0x55d   : > { %7766 = vmatmul.msk.bf16.gmra.mxu3 %vm968_vm2, %v4763_v34  ;;  %v4481_v0 = vpop.f32.mrf.mxu1  ;;  %v7654_v34 = vld [vmem:[%s9219_s12 + $0x109] sm:$0xff] }
 0x55e   : > { %v4594_v51 = vpop.f32.mrf.mxu2 }
 0x55f   : > { %v4595_v32 = vadd.f32 %v4594_v51, %v4432_v56  ;;  %v4434_v22 = vpop.f32.mrf.mxu0  ;;  %v5916_v56 = vld [vmem:[%s8709_s15 + $0x48] sm:$0xff] }
 0x560   : > { %v4643_v39 = vpop.f32.mrf.mxu3  ;;  %7718 = vmatmul.msk.bf16.gmra.mxu1 %vm968_vm2, %v4771_v63  ;;  %5957 = vrot.lane.b32.xlu0 %v5916_v56, %s8572_s22  ;;  %v7638_v51 = vld [vmem:[%s9223_s7 + $0x109] sm:$0xff] }
 0x561   : > { %v4644_v45 = vadd.f32 %v4643_v39, %v4481_v0  ;;  %v11236_v54 = vadd.f32 %v4595_v32, %v11048_v7  ;;  %v7639_v39 = vld [vmem:[%s9223_s7 + $0x111] sm:$0xff] }
 0x563   : > { %v11239_v27 = vadd.f32 %v4644_v45, %v11051_v42  ;;  %v4764_v42 = vpack.c.bf16 %v7637_v57, %v7636_v37 }
 0x565   : > { %v4483_v3 = vpop.f32.mrf.mxu1 }
 0x566   : > { %v4596_v44 = vpop.f32.mrf.mxu2 }
 0x567   : > { %v4597_v7 = vadd.f32 %v4596_v44, %v4434_v22  ;;  %v4437_v60 = vpop.f32.mrf.mxu0  ;;  %v4773_v22 = vpack.c.bf16 %v7655_v17, %v7654_v34 }
 0x568   : > { %v4645_v41 = vpop.f32.mrf.mxu3 }
 0x569   : > { %v4646_v50 = vadd.f32 %v4645_v41, %v4483_v3  ;;  %v11250_v18 = vadd.f32 %v4597_v7, %v11064_v10  ;;  %v5917_v3 = vld [vmem:[%s8709_s15 + $0x50] sm:$0xff] }
 0x56a   : > { %7711 = vmatmul.msk.bf16.gmra.mxu0 %vm968_vm2, %v4772_v16  ;;  %5959 = vrot.lane.b32.xlu1 %v5917_v3, %s8572_s22 }
 0x56b   : > { %v11253_v28 = vadd.f32 %v4646_v50, %v11067_v30  ;;  %7759 = vmatmul.msk.bf16.gmra.mxu2 %vm968_vm2, %v4764_v42  ;;  %v7656_v50 = vld [vmem:[%s9219_s12 + $0x129] sm:$0xff] }
 0x56d   : > { %7767 = vmatmul.msk.bf16.gmra.mxu3 %vm968_vm2, %v4764_v42  ;;  %v4486_v33 = vpop.f32.mrf.mxu1 }
 0x56e   : > { %v4599_v10 = vpop.f32.mrf.mxu2 }
 0x56f   : > { %v4600_v59 = vadd.f32 %v4599_v10, %v4437_v60  ;;  %v4439_v30 = vpop.f32.mrf.mxu0  ;;  %v7657_v60 = vld [vmem:[%s9219_s12 + $0x131] sm:$0xff]  ;;  %s6292_s12 = scalar_lea.sflag [#allocation7], %s8705_s24 }
 0x570   : > { %v4648_v5 = vpop.f32.mrf.mxu3  ;;  %7719 = vmatmul.msk.bf16.gmra.mxu1 %vm968_vm2, %v4772_v16 }
 0x571   : > { %v4649_v63 = vadd.f32 %v4648_v5, %v4486_v33  ;;  %v11262_v23 = vadd.f32 %v4600_v59, %v11074_v15  ;;  %v4765_v15 = vpack.c.bf16 %v7639_v39, %v7638_v51  ;;  %v7641_v33 = vld [vmem:[%s9223_s7 + $0x131] sm:$0xff]  ;;  %v4774_v59 = vpack.c.bf16 %v7657_v60, %v7656_v50 }
 0x572   : > { %v4766_v17 = vpack.c.bf16 %v7641_v33, %v7640_v6 }
 0x573   : > { %v11265_v19 = vadd.f32 %v4649_v63, %v11077_v13  ;;  %v5915_v63 = vld [vmem:[%s8709_s15 + $0x40] sm:$0xff] }
 0x574   : > { %5955 = vrot.lane.b32.xlu2 %v5915_v63, %s8572_s22 }
 0x575   : > { %v4488_v0 = vpop.f32.mrf.mxu1 }
 0x576   : > { %v4601_v32 = vpop.f32.mrf.mxu2 }
 0x577   : > { %v4602_v52 = vadd.f32 %v4601_v32, %v4439_v30  ;;  %v4442_v48 = vpop.f32.mrf.mxu0 }
 0x578   : > { %v4650_v45 = vpop.f32.mrf.mxu3 }
 0x579   : > { %v4651_v29 = vadd.f32 %v4650_v45, %v4488_v0  ;;  %v11274_v43 = vadd.f32 %v4602_v52, %v11090_v53 }
 0x57a   : > { %7712 = vmatmul.msk.bf16.gmra.mxu0 %vm968_vm2, %v4773_v22 }
 0x57b   : > { %v11277_v13 = vadd.f32 %v4651_v29, %v11093_v35  ;;  %7760 = vmatmul.msk.bf16.gmra.mxu2 %vm968_vm2, %v4765_v15 }
 0x57d   : > { %7768 = vmatmul.msk.bf16.gmra.mxu3 %vm968_vm2, %v4765_v15  ;;  %v4491_v37 = vpop.f32.mrf.mxu1 }
 0x57e   : > { %v4604_v57 = vpop.f32.mrf.mxu2 }
 0x57f   : > { %v4605_v44 = vadd.f32 %v4604_v57, %v4442_v48  ;;  %v4444_v35 = vpop.f32.mrf.mxu0 }
 0x580   : > { %v4653_v53 = vpop.f32.mrf.mxu3  ;;  %7720 = vmatmul.msk.bf16.gmra.mxu1 %vm968_vm2, %v4773_v22 }
 0x581   : > { %v4654_v41 = vadd.f32 %v4653_v53, %v4491_v37  ;;  %v11286_v16 = vadd.f32 %v4605_v44, %v11106_v24  ;;  %v5920_v53 = vld [vmem:[%s8709_s15 + $0x68] sm:$0xff] }
 0x582   : > { %5965 = vrot.lane.b32.xlu1 %v5920_v53, %s8572_s22 }
 0x583   : > { %v11289_v7 = vadd.f32 %v4654_v41, %v11109_v36 }
 0x585   : > { %v4493_v42 = vpop.f32.mrf.mxu1 }
 0x586   : > { %v4606_v10 = vpop.f32.mrf.mxu2 }
 0x587   : > { %v4607_v30 = vadd.f32 %v4606_v10, %v4444_v35  ;;  %v4447_v34 = vpop.f32.mrf.mxu0  ;;  %v5918_v35 = vld [vmem:[%s8709_s15 + $0x58] sm:$0xff] }
 0x588   : > { %v4655_v5 = vpop.f32.mrf.mxu3  ;;  %5961 = vrot.lane.b32.xlu2 %v5918_v35, %s8572_s22 }
 0x589   : > { %v4656_v56 = vadd.f32 %v4655_v5, %v4493_v42  ;;  %v11298_v24 = vadd.f32 %v4607_v30, %v11116_v25  ;;  %v5919_v25 = vld [vmem:[%s8709_s15 + $0x60] sm:$0xff] }
 0x58a   : > { %7713 = vmatmul.msk.bf16.gmra.mxu0 %vm968_vm2, %v4774_v59  ;;  %5963 = vrot.lane.b32.xlu0 %v5919_v25, %s8572_s22 }
 0x58b   : > { %v11301_v36 = vadd.f32 %v4656_v56, %v11119_v1  ;;  %7761 = vmatmul.msk.bf16.gmra.mxu2 %vm968_vm2, %v4766_v17 }
 0x58d   : > { %7769 = vmatmul.msk.bf16.gmra.mxu3 %vm968_vm2, %v4766_v17  ;;  %v4496_v0 = vpop.f32.mrf.mxu1  ;;  %v5922_v17 = vld [vmem:[%s8709_s15 + $0x78] sm:$0xff] }
 0x58e   : > { %v4609_v51 = vpop.f32.mrf.mxu2 }
 0x58f   : > { %v4610_v32 = vadd.f32 %v4609_v51, %v4447_v34  ;;  %v4449_v22 = vpop.f32.mrf.mxu0 }
 0x590   : > { %v4658_v39 = vpop.f32.mrf.mxu3  ;;  %7721 = vmatmul.msk.bf16.gmra.mxu1 %vm968_vm2, %v4774_v59  ;;  %v5921_v59 = vld [vmem:[%s8709_s15 + $0x70] sm:$0xff]  ;;  %s7966_s15 = sshll.u32 %s8551_s27, 4 }
 0x591   : > { %v4659_v45 = vadd.f32 %v4658_v39, %v4496_v0  ;;  %v11309_v1 = vadd.f32 %v4610_v32, %v11126_v14  ;;  %5967 = vrot.lane.b32.xlu2 %v5921_v59, %s8572_s22  ;;  %s6310_s21 = sadd.s32 %s7966_s15, %s7806_s23 }
 0x592   : > { %5969 = vrot.lane.b32.xlu0 %v5922_v17, %s8572_s22  ;;  %s7807_s9 = sshll.u32 %s6310_s21, 3 }
 0x593   : > { %v11312_v52 = vadd.f32 %v4659_v45, %v11129_v49  ;;  %v5245_v49 = vld [vmem:[%s12103_s5] sm:$0x3]  ;;  %s6312_s19 = scalar_lea.hbm %s12104_s6, %s7807_s9 }
 0x594   : > { %s6315_s27 = sshll.u32 %s6312_s19, 4  ;;  %s6316_s27 = int_to_ptr.hbm [resolvable:$true] %s6315_s27 }
 0x595   : > { %v4498_v29 = vpop.f32.mrf.mxu1  ;;  %s8451_s7 = sshra.s32 %s6316_s27, 4  ;;  %s8452_s7 = int_to_ptr.hbm [resolvable:$true] %s8451_s7 }
 0x596   : > { %v4611_v48 = vpop.f32.mrf.mxu2  ;;  %s8453_s15 = scalar_lea.hbm %s8452_s7, 128  ;;  %p8458_p10 = scmp.lt.s32.totalorder %s8452_s7, %s12104_s6 }
 0x597   : > { %v4612_v3 = vadd.f32 %v4611_v48, %v4449_v22  ;;  %v4898_v57 = vpop.f32.mrf.mxu0  ;;  %p8454_p6 = scmp.ne.s32.totalorder %s8452_s7, %s8453_s15  ;;  %p8459_p11 = scmp.lt.s32.totalorder %s8457_s10, %s8453_s15 }
 0x598   : > { %v4660_v15 = vpop.f32.mrf.mxu3 }
 0x599   : > { %v4661_v37 = vadd.f32 %v4660_v15, %v4498_v29  ;;  %v11317_v44 = vadd.f32 %v4612_v3, %v11136_v2  ;;  %v11328_v2 = vperm.slane %v5245_v49, 0  ;;  %p8455_p7 = pnand %p8454_p6, %p8680_p9  ;;  %p8460_p13 = por %p8459_p11, %p8458_p10 }
 0x59b   : > { %v11320_v41 = vadd.f32 %v4661_v37, %v11139_v38  ;;  %p8456_p8 = pneg %p8455_p7 }
 0x59d   : > { %v4947_v14 = vpop.f32.mrf.mxu1  ;;  %p8461_p0 = pnand %p8460_p13, %p8456_p8 }
 0x59e   : > { %v5060_v50 = vpop.f32.mrf.mxu2 }
 0x59f   : > { %v5061_v42 = vadd.f32 %v5060_v50, %v4898_v57  ;;  %v4900_v6 = vpop.f32.mrf.mxu0 }
 0x5a0   : > { %v5109_v60 = vpop.f32.mrf.mxu3 }
 0x5a1   : > { %v5149_v38 = vadd.f32 %v5061_v42, %v11146_v11  ;;  %v5110_v29 = vadd.f32 %v5109_v60, %v4947_v14 }
 0x5a3   : > { %v5251_v33 = vadd.f32 %v11328_v2, %v5149_v38  ;;  %v5150_v37 = vadd.f32 %v5110_v29, %v11149_v20 }
 0x5a5   : > { %v4949_v10 = vpop.f32.mrf.mxu1  ;;  %v7770_v5 = vmul.f32 -1.442695, %v5251_v33 }
 0x5a6   : > { %v5062_v63 = vpop.f32.mrf.mxu2 }
 0x5a7   : > { %8215 = vpow2.f32 %v7770_v5  ;;  %v5063_v56 = vadd.f32 %v5062_v63, %v4900_v6  ;;  %v4903_v34 = vpop.f32.mrf.mxu0 }
 0x5a8   : > { %v5111_v30 = vpop.f32.mrf.mxu3 }
 0x5a9   : > { %v5151_v0 = vadd.f32 %v5063_v56, %v11156_v26  ;;  %v11340_v26 = vperm.slane %v5245_v49, 1  ;;  %v5112_v38 = vadd.f32 %v5111_v30, %v4949_v10 }
 0x5ab   : > { %v5253_v51 = vadd.f32 %v11328_v2, %v5151_v0  ;;  %v11346_v33 = vadd.f32 %v11340_v26, %v5150_v37  ;;  %v5152_v59 = vadd.f32 %v5112_v38, %v11159_v9 }
 0x5ad   : > { %v4952_v11 = vpop.f32.mrf.mxu1  ;;  %v8216_v39 = vpop.eup %8215  ;;  %v7771_v32 = vmul.f32 -1.442695, %v5253_v51 }
 0x5ae   : > { %v5331_v45 = vadd.f32 1.0, %v8216_v39  ;;  %v5065_v22 = vpop.f32.mrf.mxu2 }
 0x5af   : > { %8217 = vpow2.f32 %v7771_v32  ;;  %v5066_v48 = vadd.f32 %v5065_v22, %v4903_v34  ;;  %v4905_v15 = vpop.f32.mrf.mxu0  ;;  %v11356_v22 = vadd.f32 %v11340_v26, %v5152_v59 }
 0x5b0   : > { %v5114_v25 = vpop.f32.mrf.mxu3  ;;  %8219 = vrcp.f32 %v5331_v45  ;;  %v5358_v30 = vand.u32 2147483648, %v5331_v45  ;;  %v5356_v17 = vand.u32 2147483647, %v5331_v45  ;;  %vm5352_vm4 = vweird.f32 %v5331_v45 }
 0x5b1   : > { %v5153_v3 = vadd.f32 %v5066_v48, %v11168_v21  ;;  %v5115_v51 = vadd.f32 %v5114_v25, %v4952_v11 }
 0x5b2   : > { %vm5357_vm6 = vcmp.eq.f32.partialorder %v5356_v17, 8.507059e+37 }
 0x5b3   : > { %v5255_v57 = vadd.f32 %v11328_v2, %v5153_v3  ;;  %v5359_v3 = vor.u32 1.1754944e-38, %v5358_v30 }
 0x5b5   : > { %v4954_v53 = vpop.f32.mrf.mxu1  ;;  %v8218_v35 = vpop.eup %8217  ;;  %v7772_v50 = vmul.f32 -1.442695, %v5255_v57 }
 0x5b6   : > { %v8220_v42 = vpop.eup %8219  ;;  %v11343_v6 = vadd.f32 1.0, %v8218_v35  ;;  %v5067_v14 = vpop.f32.mrf.mxu2  ;;  %v5154_v35 = vadd.f32 %v5115_v51, %v11171_v62 }
 0x5b7   : > { %8221 = vpow2.f32 %v7772_v50  ;;  %v5068_v21 = vadd.f32 %v5067_v14, %v4905_v15  ;;  %v4908_v5 = vpop.f32.mrf.mxu0  ;;  %v5348_v20 = vmul.f32 %v8220_v42, %v5331_v45  ;;  %vm5353_vm3 = vweird.f32 %v8220_v42 }
 0x5b8   : > { %v5116_v60 = vpop.f32.mrf.mxu3  ;;  %8223 = vrcp.f32 %v11343_v6  ;;  %vm5354_vm5 = vmor %vm5352_vm4, %vm5353_vm3  ;;  %v5371_v62 = vand.u32 2147483647, %v11343_v6  ;;  %vm5367_vm8 = vweird.f32 %v11343_v6 }
 0x5b9   : > { %v5155_v49 = vadd.f32 %v5068_v21, %v11180_v12  ;;  %v5349_v63 = vsub.f32 1.0, %v5348_v20  ;;  %8225 = vtanh.f32 %v11346_v33  ;;  %v5117_v30 = vadd.f32 %v5116_v60, %v4954_v53 }
 0x5ba   : > { %vm5372_vm10 = vcmp.eq.f32.partialorder %v5371_v62, 8.507059e+37 }
 0x5bb   : > { %v5257_v10 = vadd.f32 %v11328_v2, %v5155_v49  ;;  %v5350_v34 = vmul.f32 %v8220_v42, %v5349_v63  ;;  %v11375_v49 = vadd.f32 %v11340_v26, %v5154_v35 }
 0x5bd   : > { %v11353_v56 = vpop.f32.mrf.mxu1  ;;  %v8222_v0 = vpop.eup %8221  ;;  %v7773_v39 = vmul.f32 -1.442695, %v5257_v10  ;;  %v5351_v48 = vadd.f32 %v8220_v42, %v5350_v34 }
 0x5be   : > { %v8224_v32 = vpop.eup %8223  ;;  %v11358_v12 = vadd.f32 1.0, %v8222_v0  ;;  %v5070_v9 = vpop.f32.mrf.mxu2 }
 0x5bf   : > { %8227 = vpow2.f32 %v7773_v39  ;;  %v5071_v15 = vadd.f32 %v5070_v9, %v4908_v5  ;;  %v4910_v37 = vpop.f32.mrf.mxu0  ;;  %v5363_v57 = vmul.f32 %v8224_v32, %v11343_v6  ;;  %v5355_v11 = vsel %vm5354_vm5, %v8220_v42, %v5351_v48  ;;  %v8226_v25 = vpop.eup %8225 }
 0x5c0   : > { %v5119_v29 = vpop.f32.mrf.mxu3  ;;  %8229 = vrcp.f32 %v11358_v12  ;;  %v11364_v38 = vsel %vm5357_vm6, %v5359_v3, %v5355_v11  ;;  %v5373_v5 = vand.u32 2147483648, %v11343_v6  ;;  %vm5368_vm7 = vweird.f32 %v8224_v32 }
 0x5c1   : > { %v5157_v50 = vadd.f32 %v5071_v15, %v11192_v46  ;;  %v6003_v45 = vmul.f32 %v8226_v25, %v11364_v38  ;;  %v5364_v14 = vsub.f32 1.0, %v5363_v57  ;;  %8231 = vtanh.f32 %v11356_v22  ;;  %vm5369_vm9 = vmor %vm5367_vm8, %vm5368_vm7 }
 0x5c2   : > { %v5374_v39 = vor.u32 1.1754944e-38, %v5373_v5  ;;  %v5156_v57 = vadd.f32 %v5117_v30, %v11183_v31  ;;  %v5388_v25 = vand.u32 2147483648, %v11358_v12  ;;  %v5120_v31 = vadd.f32 %v5119_v29, %v11353_v56 }
 0x5c3   : > { %v5259_v21 = vadd.f32 %v11328_v2, %v5157_v50  ;;  %6035 = vrot.lane.b32.xlu1 %v6003_v45, %s8572_s22  ;;  %v5365_v20 = vmul.f32 %v8224_v32, %v5364_v14  ;;  %vm5382_vm12 = vweird.f32 %v11358_v12 }
 0x5c4   : > { %v5389_v30 = vor.u32 1.1754944e-38, %v5388_v25 }
 0x5c5   : > { %v11371_v42 = vpop.f32.mrf.mxu1  ;;  %v8228_v46 = vpop.eup %8227  ;;  %v7774_v59 = vmul.f32 -1.442695, %v5259_v21  ;;  %v5366_v0 = vadd.f32 %v8224_v32, %v5365_v20  ;;  %v11398_v21 = vadd.f32 %v11340_v26, %v5156_v57 }
 0x5c6   : > { %v8230_v63 = vpop.eup %8229  ;;  %v11377_v10 = vadd.f32 1.0, %v8228_v46  ;;  %v5072_v34 = vpop.f32.mrf.mxu2 }
 0x5c7   : > { %8233 = vpow2.f32 %v7774_v59  ;;  %v5073_v51 = vadd.f32 %v5072_v34, %v4910_v37  ;;  %v4913_v9 = vpop.f32.mrf.mxu0  ;;  %v5378_v48 = vmul.f32 %v8230_v63, %v11358_v12  ;;  %v5370_v15 = vsel %vm5369_vm9, %v8224_v32, %v5366_v0  ;;  %v8232_v3 = vpop.eup %8231 }
 0x5c8   : > { %v11379_v17 = vpop.f32.mrf.mxu3  ;;  %8235 = vrcp.f32 %v11377_v10  ;;  %v11385_v60 = vsel %vm5372_vm10, %v5374_v39, %v5370_v15  ;;  %vm5383_vm11 = vweird.f32 %v8230_v63  ;;  %vm5397_vm0 = vweird.f32 %v11377_v10 }
 0x5c9   : > { %v5159_v53 = vadd.f32 %v5073_v51, %v11204_v4  ;;  %v6004_v6 = vmul.f32 %v8232_v3, %v11385_v60  ;;  %v5379_v11 = vsub.f32 1.0, %v5378_v48  ;;  %8237 = vtanh.f32 %v11375_v49  ;;  %vm5384_vm13 = vmor %vm5382_vm12, %vm5383_vm11 }
 0x5ca   : > { %v5386_v4 = vand.u32 2147483647, %v11358_v12  ;;  %v5158_v51 = vadd.f32 %v5120_v31, %v11195_v8  ;;  %v5403_v3 = vand.u32 2147483648, %v11377_v10  ;;  %v5401_v8 = vand.u32 2147483647, %v11377_v10 }
 0x5cb   : > { %v5261_v37 = vadd.f32 %v11328_v2, %v5159_v53  ;;  %6037 = vrot.lane.b32.xlu2 %v6004_v6, %s8572_s22  ;;  %v5380_v35 = vmul.f32 %v8230_v63, %v5379_v11  ;;  %v5122_v25 = vadd.f32 %v11379_v17, %v11371_v42 }
 0x5cc   : > { %vm5387_vm14 = vcmp.eq.f32.partialorder %v5386_v4, 8.507059e+37  ;;  %v11418_v57 = vadd.f32 %v11340_v26, %v5158_v51  ;;  %vm5402_vm3 = vcmp.eq.f32.partialorder %v5401_v8, 8.507059e+37 }
 0x5cd   : > { %v11393_v32 = vpop.f32.mrf.mxu1  ;;  %v8234_v50 = vpop.eup %8233  ;;  %v7775_v45 = vmul.f32 -1.442695, %v5261_v37  ;;  %v5381_v46 = vadd.f32 %v8230_v63, %v5380_v35 }
 0x5ce   : > { %v8236_v14 = vpop.eup %8235  ;;  %v11400_v5 = vadd.f32 1.0, %v8234_v50  ;;  %v5075_v20 = vpop.f32.mrf.mxu2 }
 0x5cf   : > { %8239 = vpow2.f32 %v7775_v45  ;;  %v5076_v59 = vadd.f32 %v5075_v20, %v4913_v9  ;;  %v4915_v34 = vpop.f32.mrf.mxu0  ;;  %v5393_v0 = vmul.f32 %v8236_v14, %v11377_v10  ;;  %v5385_v56 = vsel %vm5384_vm13, %v8230_v63, %v5381_v46  ;;  %v8238_v29 = vpop.eup %8237 }
 0x5d0   : > { %v5124_v62 = vpop.f32.mrf.mxu3  ;;  %8241 = vrcp.f32 %v11400_v5  ;;  %v11407_v48 = vsel %vm5387_vm14, %v5389_v30, %v5385_v56  ;;  %vm5398_vm15 = vweird.f32 %v8236_v14  ;;  %v5404_v45 = vor.u32 1.1754944e-38, %v5403_v3 }
 0x5d1   : > { %v5161_v39 = vadd.f32 %v5076_v59, %v11214_v55  ;;  %v6005_v12 = vmul.f32 %v8238_v29, %v11407_v48  ;;  %v5394_v15 = vsub.f32 1.0, %v5393_v0  ;;  %8243 = vtanh.f32 %v11398_v21  ;;  %vm5399_vm1 = vmor %vm5397_vm0, %vm5398_vm15  ;;  %v11436_v29 = vpop.permute.xlu2 %5947 }
 0x5d2   : > { %v5160_v0 = vadd.f32 %v5122_v25, %v11207_v47  ;;  %v5418_v51 = vand.u32 2147483648, %v11400_v5  ;;  %vm5412_vm5 = vweird.f32 %v11400_v5 }
 0x5d3   : > { %v5263_v9 = vadd.f32 %v11328_v2, %v5161_v39  ;;  %6039 = vrot.lane.b32.xlu0 %v6005_v12, %s8572_s22  ;;  %v5395_v53 = vmul.f32 %v8236_v14, %v5394_v15  ;;  %v5416_v39 = vand.u32 2147483647, %v11400_v5  ;;  %v5125_v12 = vadd.f32 %v5124_v62, %v11393_v32 }
 0x5d4   : > { %v11445_v3 = vadd.f32 %v11340_v26, %v5160_v0 }
 0x5d5   : > { %v11414_v63 = vpop.f32.mrf.mxu1  ;;  %v8240_v55 = vpop.eup %8239  ;;  %v7776_v6 = vmul.f32 -1.442695, %v5263_v9  ;;  %v5396_v50 = vadd.f32 %v8236_v14, %v5395_v53  ;;  %vm5417_vm7 = vcmp.eq.f32.partialorder %v5416_v39, 8.507059e+37 }
 0x5d6   : > { %v8242_v11 = vpop.eup %8241  ;;  %v11420_v37 = vadd.f32 1.0, %v8240_v55  ;;  %v5077_v35 = vpop.f32.mrf.mxu2 }
 0x5d7   : > { %8245 = vpow2.f32 %v7776_v6  ;;  %v5078_v31 = vadd.f32 %v5077_v35, %v4915_v34  ;;  %v4918_v20 = vpop.f32.mrf.mxu0  ;;  %v5408_v46 = vmul.f32 %v8242_v11, %v11400_v5  ;;  %v5400_v59 = vsel %vm5399_vm1, %v8236_v14, %v5396_v50  ;;  %v8244_v30 = vpop.eup %8243 }
 0x5d8   : > { %v11424_v4 = vpop.f32.mrf.mxu3  ;;  %8247 = vrcp.f32 %v11420_v37  ;;  %v11430_v17 = vsel %vm5402_vm3, %v5404_v45, %v5400_v59  ;;  %vm5413_vm4 = vweird.f32 %v8242_v11  ;;  %v5419_v35 = vor.u32 1.1754944e-38, %v5418_v51 }
 0x5d9   : > { %v5163_v42 = vadd.f32 %v5078_v31, %v11224_v58  ;;  %v6006_v10 = vmul.f32 %v8244_v30, %v11430_v17  ;;  %v5409_v56 = vsub.f32 1.0, %v5408_v46  ;;  %8249 = vtanh.f32 %v11418_v57  ;;  %vm5414_vm6 = vmor %vm5412_vm5, %vm5413_vm4 }
 0x5da   : > { %v5162_v45 = vadd.f32 %v5125_v12, %v11217_v61  ;;  %v5431_v0 = vand.u32 2147483647, %v11420_v37  ;;  %v5127_v39 = vadd.f32 %v11424_v4, %v11414_v63  ;;  %vm5427_vm9 = vweird.f32 %v11420_v37 }
 0x5db   : > { %v5265_v34 = vadd.f32 %v11328_v2, %v5163_v42  ;;  %6041 = vrot.lane.b32.xlu1 %v6006_v10, %s8572_s22  ;;  %v5410_v58 = vmul.f32 %v8242_v11, %v5409_v56  ;;  %v5433_v42 = vand.u32 2147483648, %v11420_v37  ;;  %v11467_v10 = vpop.permute.xlu1 %5943 }
 0x5dc   : > { %vm5432_vm11 = vcmp.eq.f32.partialorder %v5431_v0, 8.507059e+37 }
 0x5dd   : > { %v11440_v14 = vpop.f32.mrf.mxu1  ;;  %v8246_v47 = vpop.eup %8245  ;;  %v7777_v15 = vmul.f32 -1.442695, %v5265_v34  ;;  %v5411_v6 = vadd.f32 %v8242_v11, %v5410_v58 }
 0x5de   : > { %v8248_v9 = vpop.eup %8247  ;;  %v11447_v53 = vadd.f32 1.0, %v8246_v47  ;;  %v5080_v8 = vpop.f32.mrf.mxu2 }
 0x5df   : > { %8251 = vpow2.f32 %v7777_v15  ;;  %v5081_v25 = vadd.f32 %v5080_v8, %v4918_v20  ;;  %v4920_v50 = vpop.f32.mrf.mxu0  ;;  %v5423_v32 = vmul.f32 %v8248_v9, %v11420_v37  ;;  %v5415_v62 = vsel %vm5414_vm6, %v8242_v11, %v5411_v6  ;;  %v8250_v31 = vpop.eup %8249 }
 0x5e0   : > { %v11449_v55 = vpop.f32.mrf.mxu3  ;;  %8253 = vrcp.f32 %v11447_v53  ;;  %v11456_v59 = vsel %vm5417_vm7, %v5419_v35, %v5415_v62  ;;  %vm5428_vm8 = vweird.f32 %v8248_v9  ;;  %v5950_v34 = vpop.permute.xlu2 %5949  ;;  %vm5442_vm13 = vweird.f32 %v11447_v53 }
 0x5e1   : > { %v5165_v46 = vadd.f32 %v5081_v25, %v11236_v54  ;;  %v6007_v5 = vmul.f32 %v8250_v31, %v11456_v59  ;;  %v5424_v30 = vsub.f32 1.0, %v5423_v32  ;;  %8255 = vtanh.f32 %v11445_v3  ;;  %vm5429_vm10 = vmor %vm5427_vm9, %vm5428_vm8 }
 0x5e2   : > { %v11465_v54 = vadd.f32 %v11340_v26, %v5162_v45  ;;  %v5434_v25 = vor.u32 1.1754944e-38, %v5433_v42  ;;  %v5164_v45 = vadd.f32 %v5127_v39, %v11227_v40  ;;  %v11488_v42 = vpop.permute.xlu0 %5939  ;;  %v5130_v40 = vadd.f32 %v11449_v55, %v11440_v14 }
 0x5e3   : > { %v5267_v20 = vadd.f32 %v11328_v2, %v5165_v46  ;;  %6043 = vrot.lane.b32.xlu2 %v6007_v5, %s8572_s22  ;;  %v5425_v11 = vmul.f32 %v8248_v9, %v5424_v30  ;;  %v5448_v30 = vand.u32 2147483648, %v11447_v53 }
 0x5e5   : > { %v8252_v61 = vpop.eup %8251  ;;  %v7778_v56 = vmul.f32 -1.442695, %v5267_v20  ;;  %v11473_v47 = vpop.f32.mrf.mxu1  ;;  %v5426_v15 = vadd.f32 %v8248_v9, %v5425_v11  ;;  %v5446_v20 = vand.u32 2147483647, %v11447_v53 }
 0x5e6   : > { %v8254_v51 = vpop.eup %8253  ;;  %v11469_v58 = vadd.f32 1.0, %v8252_v61  ;;  %v5082_v12 = vpop.f32.mrf.mxu2  ;;  %v11493_v61 = vadd.f32 %v11340_v26, %v5164_v45 }
 0x5e7   : > { %8257 = vpow2.f32 %v7778_v56  ;;  %v5083_v8 = vadd.f32 %v5082_v12, %v4920_v50  ;;  %v4923_v35 = vpop.f32.mrf.mxu0  ;;  %v5438_v32 = vmul.f32 %v8254_v51, %v11447_v53  ;;  %v5430_v62 = vsel %vm5429_vm10, %v8248_v9, %v5426_v15  ;;  %v8256_v63 = vpop.eup %8255 }
 0x5e8   : > { %v5131_v6 = vpop.f32.mrf.mxu3  ;;  %8259 = vrcp.f32 %v11469_v58  ;;  %v5435_v31 = vsel %vm5432_vm11, %v5434_v25, %v5430_v62  ;;  %vm5443_vm12 = vweird.f32 %v8254_v51  ;;  %v11498_v12 = vpop.permute.xlu1 %5945  ;;  %vm5447_vm15 = vcmp.eq.f32.partialorder %v5446_v20, 8.507059e+37 }
 0x5e9   : > { %v5167_v4 = vadd.f32 %v5083_v8, %v11250_v18  ;;  %v11481_v37 = vmul.f32 %v5950_v34, %v5435_v31  ;;  %v6008_v50 = vmul.f32 %v8256_v63, %v5435_v31  ;;  %v5439_v46 = vsub.f32 1.0, %v5438_v32  ;;  %vm5444_vm14 = vmor %vm5442_vm13, %vm5443_vm12 }
 0x5ea   : > { %8261 = vtanh.f32 %v11465_v54  ;;  %v5449_v8 = vor.u32 1.1754944e-38, %v5448_v30  ;;  %v5166_v62 = vadd.f32 %v5130_v40, %v11239_v27  ;;  %v5461_v27 = vand.u32 2147483647, %v11469_v58 }
 0x5eb   : > { %v5269_v5 = vadd.f32 %v11328_v2, %v5167_v4  ;;  %6045 = vrot.lane.b32.xlu0 %v6008_v50, %s8572_s22  ;;  %v5440_v9 = vmul.f32 %v8254_v51, %v5439_v46  ;;  %v5463_v46 = vand.u32 2147483648, %v11469_v58  ;;  %vm5457_vm1 = vweird.f32 %v11469_v58 }
 0x5ec   : > { %vm5462_vm4 = vcmp.eq.f32.partialorder %v5461_v27, 8.507059e+37 }
 0x5ed   : > { %v8258_v18 = vpop.eup %8257  ;;  %v7779_v11 = vmul.f32 -1.442695, %v5269_v5  ;;  %v5441_v39 = vadd.f32 %v8254_v51, %v5440_v9  ;;  %v4972_v63 = vpop.f32.mrf.mxu1 }
 0x5ee   : > { %v8260_v0 = vpop.eup %8259  ;;  %v11495_v56 = vadd.f32 1.0, %v8258_v18  ;;  %v5085_v34 = vpop.f32.mrf.mxu2  ;;  %v5132_v18 = vadd.f32 %v5131_v6, %v11473_v47 }
 0x5ef   : > { %8263 = vpow2.f32 %v7779_v11  ;;  %v5086_v15 = vadd.f32 %v5085_v34, %v4923_v35  ;;  %v4925_v25 = vpop.f32.mrf.mxu0  ;;  %v5453_v14 = vmul.f32 %v8260_v0, %v11469_v58  ;;  %v5445_v55 = vsel %vm5444_vm14, %v8254_v51, %v5441_v39  ;;  %v11520_v34 = vpop.permute.xlu0 %5941 }
 0x5f0   : > { %8265 = vrcp.f32 %v11495_v56  ;;  %v8262_v32 = vpop.eup %8261  ;;  %v5134_v4 = vpop.f32.mrf.mxu3  ;;  %v11505_v31 = vsel %vm5447_vm15, %v5449_v8, %v5445_v55  ;;  %vm5458_vm0 = vweird.f32 %v8260_v0  ;;  %v5464_v8 = vor.u32 1.1754944e-38, %v5463_v46 }
 0x5f1   : > { %v5169_v53 = vadd.f32 %v5086_v15, %v11262_v23  ;;  %v6009_v35 = vmul.f32 %v8262_v32, %v11505_v31  ;;  %v5454_v45 = vsub.f32 1.0, %v5453_v14  ;;  %8267 = vtanh.f32 %v11493_v61  ;;  %v5954_v15 = vpop.permute.xlu1 %5953  ;;  %vm5459_vm3 = vmor %vm5457_vm1, %vm5458_vm0 }
 0x5f2   : > { %v11514_v23 = vadd.f32 %v11340_v26, %v5166_v62  ;;  %v5168_v58 = vadd.f32 %v5132_v18, %v11253_v28  ;;  %v5135_v28 = vadd.f32 %v5134_v4, %v4972_v63  ;;  %vm5472_vm6 = vweird.f32 %v11495_v56 }
 0x5f3   : > { %v5271_v50 = vadd.f32 %v11328_v2, %v5169_v53  ;;  %6047 = vrot.lane.b32.xlu1 %v6009_v35, %s8572_s22  ;;  %v5455_v51 = vmul.f32 %v8260_v0, %v5454_v45  ;;  %v7787_v4 = vmul.f32 -1.442695, %v11356_v22 }
 0x5f4   : > { %v11535_v18 = vadd.f32 %v11340_v26, %v5168_v58 }
 0x5f5   : > { %v8264_v5 = vpop.eup %8263  ;;  %v7780_v30 = vmul.f32 -1.442695, %v5271_v50  ;;  %v5456_v11 = vadd.f32 %v8260_v0, %v5455_v51  ;;  %v4974_v45 = vpop.f32.mrf.mxu1 }
 0x5f6   : > { %v8266_v9 = vpop.eup %8265  ;;  %v11516_v20 = vadd.f32 1.0, %v8264_v5  ;;  %v5087_v40 = vpop.f32.mrf.mxu2 }
 0x5f7   : > { %8269 = vpow2.f32 %v7780_v30  ;;  %v5088_v39 = vadd.f32 %v5087_v40, %v4925_v25  ;;  %v5468_v14 = vmul.f32 %v8266_v9, %v11495_v56  ;;  %v5460_v55 = vsel %vm5459_vm3, %v8260_v0, %v5456_v11  ;;  %v4928_v32 = vpop.f32.mrf.mxu0  ;;  %v8268_v47 = vpop.eup %8267 }
 0x5f8   : > { %8271 = vrcp.f32 %v11516_v20  ;;  %v5465_v62 = vsel %vm5462_vm4, %v5464_v8, %v5460_v55  ;;  %v5136_v46 = vpop.f32.mrf.mxu3  ;;  %v5478_v0 = vand.u32 2147483648, %v11495_v56  ;;  %vm5473_vm5 = vweird.f32 %v8266_v9 }
 0x5f9   : > { %v5171_v6 = vadd.f32 %v5088_v39, %v11274_v43  ;;  %v11527_v53 = vmul.f32 %v5954_v15, %v5465_v62  ;;  %v6010_v25 = vmul.f32 %v8268_v47, %v5465_v62  ;;  %v5469_v35 = vsub.f32 1.0, %v5468_v14  ;;  %v11540_v15 = vpop.permute.xlu0 %5951  ;;  %v5956_v14 = vpop.permute.xlu2 %5955  ;;  %vm5474_vm7 = vmor %vm5472_vm6, %vm5473_vm5 }
 0x5fa   : > { %8273 = vtanh.f32 %v11514_v23  ;;  %v5476_v43 = vand.u32 2147483647, %v11495_v56  ;;  %v5479_v55 = vor.u32 1.1754944e-38, %v5478_v0  ;;  %v5170_v62 = vadd.f32 %v5135_v28, %v11265_v19 }
 0x5fb   : > { %v5273_v50 = vadd.f32 %v11328_v2, %v5171_v6  ;;  %6049 = vrot.lane.b32.xlu2 %v6010_v25, %s8572_s22  ;;  %v5470_v51 = vmul.f32 %v8266_v9, %v5469_v35  ;;  %v5493_v22 = vand.u32 2147483648, %v11516_v20  ;;  %v5491_v19 = vand.u32 2147483647, %v11516_v20 }
 0x5fc   : > { %vm5477_vm8 = vcmp.eq.f32.partialorder %v5476_v43, 8.507059e+37  ;;  %vm5487_vm10 = vweird.f32 %v11516_v20 }
 0x5fd   : > { %v8270_v27 = vpop.eup %8269  ;;  %v7781_v5 = vmul.f32 -1.442695, %v5273_v50  ;;  %v5471_v39 = vadd.f32 %v8266_v9, %v5470_v51  ;;  %v11556_v51 = vadd.f32 %v11340_v26, %v5170_v62  ;;  %v4977_v43 = vpop.f32.mrf.mxu1  ;;  %vm5492_vm12 = vcmp.eq.f32.partialorder %v5491_v19, 8.507059e+37 }
 0x5fe   : > { %v8272_v30 = vpop.eup %8271  ;;  %v11537_v40 = vadd.f32 1.0, %v8270_v27  ;;  %v5090_v11 = vpop.f32.mrf.mxu2 }
 0x5ff   : > { %8275 = vpow2.f32 %v7781_v5  ;;  %v5091_v8 = vadd.f32 %v5090_v11, %v4928_v32  ;;  %v5483_v63 = vmul.f32 %v8272_v30, %v11516_v20  ;;  %v5475_v47 = vsel %vm5474_vm7, %v8266_v9, %v5471_v39  ;;  %v4930_v35 = vpop.f32.mrf.mxu0 }
 0x600   : > { %8277 = vrcp.f32 %v11537_v40  ;;  %v8274_v6 = vpop.eup %8273  ;;  %v5480_v58 = vsel %vm5477_vm8, %v5479_v55, %v5475_v47  ;;  %vm5488_vm9 = vweird.f32 %v8272_v30  ;;  %v5139_v28 = vpop.f32.mrf.mxu3  ;;  %v5137_v39 = vadd.f32 %v5136_v46, %v4974_v45 }
 0x601   : > { %v5173_v56 = vadd.f32 %v5091_v8, %v11286_v16  ;;  %v11548_v25 = vmul.f32 %v5956_v14, %v5480_v58  ;;  %v6011_v32 = vmul.f32 %v8274_v6, %v5480_v58  ;;  %v5484_v50 = vsub.f32 1.0, %v5483_v63  ;;  %v5958_v63 = vpop.permute.xlu0 %5957  ;;  %vm5489_vm11 = vmor %vm5487_vm10, %vm5488_vm9 }
 0x602   : > { %8279 = vtanh.f32 %v11535_v18  ;;  %v7786_v6 = vmul.f32 -1.442695, %v11346_v33  ;;  %v5172_v20 = vadd.f32 %v5137_v39, %v11277_v13  ;;  %v5508_v33 = vand.u32 2147483648, %v11537_v40 }
 0x603   : > { %v5275_v0 = vadd.f32 %v11328_v2, %v5173_v56  ;;  %8281 = vpow2.f32 %v7787_v4  ;;  %6051 = vrot.lane.b32.xlu0 %v6011_v32, %s8572_s22  ;;  %v5485_v9 = vmul.f32 %v8272_v30, %v5484_v50  ;;  %v5494_v4 = vor.u32 1.1754944e-38, %v5493_v22 }
 0x604   : > { %vm5502_vm14 = vweird.f32 %v11537_v40 }
 0x605   : > { %v8276_v16 = vpop.eup %8275  ;;  %v7782_v27 = vmul.f32 -1.442695, %v5275_v0  ;;  %v5486_v14 = vadd.f32 %v8272_v30, %v5485_v9 }
 0x606   : > { %v8278_v5 = vpop.eup %8277  ;;  %v11558_v11 = vadd.f32 1.0, %v8276_v16  ;;  %v5092_v8 = vpop.f32.mrf.mxu2 }
 0x607   : > { %8283 = vpow2.f32 %v7782_v27  ;;  %v5093_v55 = vadd.f32 %v5092_v8, %v4930_v35  ;;  %v5498_v47 = vmul.f32 %v8278_v5, %v11537_v40  ;;  %v5490_v62 = vsel %vm5489_vm11, %v8272_v30, %v5486_v14  ;;  %v4933_v30 = vpop.f32.mrf.mxu0  ;;  %v5960_v14 = vpop.permute.xlu1 %5959 }
 0x608   : > { %8285 = vrcp.f32 %v11558_v11  ;;  %v8280_v56 = vpop.eup %8279  ;;  %v5495_v46 = vsel %vm5492_vm12, %v5494_v4, %v5490_v62  ;;  %vm5503_vm13 = vweird.f32 %v8278_v5  ;;  %v11579_v27 = vadd.f32 %v11340_v26, %v5172_v20  ;;  %v5141_v4 = vpop.f32.mrf.mxu3 }
 0x609   : > { %v5175_v45 = vadd.f32 %v5093_v55, %v11298_v24  ;;  %v8282_v58 = vpop.eup %8281  ;;  %v11567_v32 = vmul.f32 %v5958_v63, %v5495_v46  ;;  %v6012_v35 = vmul.f32 %v8280_v56, %v5495_v46  ;;  %v5499_v50 = vsub.f32 1.0, %v5498_v47  ;;  %v4979_v63 = vpop.f32.mrf.mxu1  ;;  %vm5504_vm15 = vmor %vm5502_vm14, %vm5503_vm13 }
 0x60a   : > { %8287 = vtanh.f32 %v11556_v51  ;;  %v5506_v24 = vand.u32 2147483647, %v11537_v40  ;;  %v11574_v13 = vadd.f32 1.0, %v8282_v58  ;;  %v5140_v56 = vadd.f32 %v5139_v28, %v4977_v43 }
 0x60b   : > { %v5277_v0 = vadd.f32 %v11328_v2, %v5175_v45  ;;  %8289 = vpow2.f32 %v7786_v6  ;;  %6053 = vrot.lane.b32.xlu1 %v6012_v35, %s8572_s22  ;;  %v5500_v22 = vmul.f32 %v8278_v5, %v5499_v50  ;;  %v5509_v6 = vor.u32 1.1754944e-38, %v5508_v33 }
 0x60c   : > { %vm5507_vm0 = vcmp.eq.f32.partialorder %v5506_v24, 8.507059e+37  ;;  %v5523_v43 = vand.u32 2147483648, %v11558_v11  ;;  %v5174_v28 = vadd.f32 %v5140_v56, %v11289_v7  ;;  %vm5517_vm3 = vweird.f32 %v11558_v11 }
 0x60d   : > { %v8284_v9 = vpop.eup %8283  ;;  %v7783_v19 = vmul.f32 -1.442695, %v5277_v0  ;;  %v5501_v55 = vadd.f32 %v8278_v5, %v5500_v22  ;;  %v5962_v0 = vpop.permute.xlu2 %5961  ;;  %vm5687_vm11 = vweird.f32 %v11574_v13 }
 0x60e   : > { %v11576_v16 = vpop.eup %8285  ;;  %v11581_v39 = vadd.f32 1.0, %v8284_v9  ;;  %v5095_v8 = vpop.f32.mrf.mxu2  ;;  %v5142_v9 = vadd.f32 %v5141_v4, %v4979_v63 }
 0x60f   : > { %8291 = vpow2.f32 %v7783_v19  ;;  %v5096_v47 = vadd.f32 %v5095_v8, %v4933_v30  ;;  %v5513_v62 = vmul.f32 %v11576_v16, %v11558_v11  ;;  %v5505_v45 = vsel %vm5504_vm15, %v8278_v5, %v5501_v55  ;;  %v4935_v7 = vpop.f32.mrf.mxu0 }
 0x610   : > { %8293 = vrcp.f32 %v11581_v39  ;;  %v8288_v46 = vpop.eup %8287  ;;  %v5510_v20 = vsel %vm5507_vm0, %v5509_v6, %v5505_v45  ;;  %vm5518_vm1 = vweird.f32 %v11576_v16  ;;  %v5521_v5 = vand.u32 2147483647, %v11558_v11 }
 0x611   : > { %v5177_v58 = vadd.f32 %v5096_v47, %v11309_v1  ;;  %v8290_v40 = vpop.eup %8289  ;;  %8295 = vrcp.f32 %v11574_v13  ;;  %v11590_v35 = vmul.f32 %v5960_v14, %v5510_v20  ;;  %v6013_v50 = vmul.f32 %v8288_v46, %v5510_v20  ;;  %vm5519_vm4 = vmor %vm5517_vm3, %vm5518_vm1  ;;  %v5144_v20 = vpop.f32.mrf.mxu3 }
 0x612   : > { %v5514_v33 = vsub.f32 1.0, %v5513_v62  ;;  %8297 = vtanh.f32 %v11579_v27  ;;  %v11600_v24 = vadd.f32 1.0, %v8290_v40  ;;  %v7790_v14 = vmul.f32 -1.442695, %v11418_v57 }
 0x613   : > { %v5279_v30 = vadd.f32 %v11328_v2, %v5177_v58  ;;  %6055 = vrot.lane.b32.xlu2 %v6013_v50, %s8572_s22  ;;  %v5524_v62 = vor.u32 1.1754944e-38, %v5523_v43  ;;  %v11614_v45 = vadd.f32 %v11340_v26, %v5174_v28  ;;  %vm5522_vm5 = vcmp.eq.f32.partialorder %v5521_v5, 8.507059e+37  ;;  %v4982_v58 = vpop.f32.mrf.mxu1 }
 0x614   : > { %v5515_v1 = vmul.f32 %v11576_v16, %v5514_v33  ;;  %v5176_v11 = vadd.f32 %v5142_v9, %v11301_v36  ;;  %v7788_v33 = vmul.f32 -1.442695, %v11375_v49  ;;  %v5538_v5 = vand.u32 2147483648, %v11581_v39 }
 0x615   : > { %v8292_v22 = vpop.eup %8291  ;;  %v7784_v19 = vmul.f32 -1.442695, %v5279_v30  ;;  %vm5532_vm7 = vweird.f32 %v11581_v39 }
 0x616   : > { %v11602_v8 = vpop.eup %8293  ;;  %v11605_v55 = vadd.f32 1.0, %v8292_v22  ;;  %v5516_v47 = vadd.f32 %v11576_v16, %v5515_v1  ;;  %v5097_v6 = vpop.f32.mrf.mxu2 }
 0x617   : > { %8299 = vpow2.f32 %v7784_v19  ;;  %v5098_v56 = vadd.f32 %v5097_v6, %v4935_v7  ;;  %v5528_v63 = vmul.f32 %v11602_v8, %v11581_v39  ;;  %v11611_v4 = vpop.eup %8295  ;;  %v11627_v1 = vpop.permute.xlu2 %5967  ;;  %vm5533_vm6 = vweird.f32 %v11602_v8 }
 0x618   : > { %8301 = vrcp.f32 %v11605_v55  ;;  %v5520_v57 = vsel %vm5519_vm4, %v11576_v16, %v5516_v47  ;;  %v8298_v46 = vpop.eup %8297  ;;  %vm5534_vm8 = vmor %vm5532_vm7, %vm5533_vm6  ;;  %vm5547_vm12 = vweird.f32 %v11605_v55  ;;  %vm5688_vm15 = vweird.f32 %v11611_v4 }
 0x619   : > { %8303 = vrcp.f32 %v11600_v24  ;;  %v5525_v40 = vsel %vm5522_vm5, %v5524_v62, %v5520_v57  ;;  %v5179_v50 = vadd.f32 %v5098_v56, %v11317_v44  ;;  %v5529_v28 = vsub.f32 1.0, %v5528_v63  ;;  %v5964_v62 = vpop.permute.xlu0 %5963  ;;  %vm11687_vm1 = vmor %vm5687_vm11, %vm5688_vm15 }
 0x61a   : > { %v11622_v30 = vmul.f32 %v5962_v0, %v5525_v40  ;;  %v6014_v43 = vmul.f32 %v8298_v46, %v5525_v40  ;;  %8305 = vpow2.f32 %v7790_v14  ;;  %v5683_v44 = vmul.f32 %v11611_v4, %v11574_v13 }
 0x61b   : > { %v5281_v16 = vadd.f32 %v11328_v2, %v5179_v50  ;;  %8307 = vtanh.f32 %v11614_v45  ;;  %v5530_v36 = vmul.f32 %v11602_v8, %v5529_v28  ;;  %v11634_v0 = vadd.f32 %v11340_v26, %v5176_v11 }
 0x61c   : > { %6057 = vrot.lane.b32.xlu0 %v6014_v43, %s8572_s22  ;;  %v5536_v2 = vand.u32 2147483647, %v11581_v39  ;;  %8309 = vpow2.f32 %v7788_v33  ;;  %v5145_v14 = vadd.f32 %v5144_v20, %v4982_v58  ;;  %v5539_v56 = vor.u32 1.1754944e-38, %v5538_v5  ;;  %v4984_v33 = vpop.f32.mrf.mxu1  ;;  %v5146_v43 = vpop.f32.mrf.mxu3 }
 0x61d   : > { %v8300_v49 = vpop.eup %8299  ;;  %v7785_v22 = vmul.f32 -1.442695, %v5281_v16  ;;  %v5531_v7 = vadd.f32 %v11602_v8, %v5530_v36  ;;  %v5684_v63 = vsub.f32 1.0, %v5683_v44  ;;  %v5551_v39 = vand.u32 2147483647, %v11605_v55 }
 0x61e   : > { %v8302_v9 = vpop.eup %8301  ;;  %v11638_v19 = vadd.f32 1.0, %v8300_v49  ;;  %vm5537_vm9 = vcmp.eq.f32.partialorder %v5536_v2, 8.507059e+37  ;;  %v5178_v20 = vadd.f32 %v5145_v14, %v11312_v52  ;;  %v5553_v50 = vand.u32 2147483648, %v11605_v55 }
 0x61f   : > { %v11641_v47 = vpop.eup %8303  ;;  %8311 = vpow2.f32 %v7785_v22  ;;  %v5543_v6 = vmul.f32 %v8302_v9, %v11605_v55  ;;  %v5535_v46 = vsel %vm5534_vm8, %v11602_v8, %v5531_v7  ;;  %vm5548_vm10 = vweird.f32 %v8302_v9 }
 0x620   : > { %8313 = vrcp.f32 %v11638_v19  ;;  %v8306_v57 = vpop.eup %8305  ;;  %v5540_v40 = vsel %vm5537_vm9, %v5539_v56, %v5535_v46  ;;  %v7789_v8 = vmul.f32 -1.442695, %v11398_v21  ;;  %v5685_v44 = vmul.f32 %v11611_v4, %v5684_v63  ;;  %v5966_v63 = vpop.permute.xlu1 %5965  ;;  %vm5549_vm13 = vmor %vm5547_vm12, %vm5548_vm10 }
 0x621   : > { %8315 = vtanh.f32 %v11634_v0  ;;  %v5544_v11 = vsub.f32 1.0, %v5543_v6  ;;  %v8308_v58 = vpop.eup %8307  ;;  %v11651_v28 = vmul.f32 %v5964_v62, %v5540_v40  ;;  %v5693_v52 = vand.u32 2147483648, %v11574_v13 }
 0x622   : > { %v6015_v16 = vmul.f32 %v8308_v58, %v5540_v40  ;;  %v8310_v5 = vpop.eup %8309  ;;  %v11657_v22 = vadd.f32 1.0, %v8306_v57  ;;  %v5988_v2 = vmul.f32 %v11520_v34, %v11385_v60  ;;  %v11664_v21 = vadd.f32 %v11340_v26, %v5178_v20 }
 0x623   : > { %v5545_v36 = vmul.f32 %v8302_v9, %v5544_v11  ;;  %v5147_v62 = vadd.f32 %v5146_v43, %v4984_v33  ;;  %v5554_v57 = vor.u32 1.1754944e-38, %v5553_v50  ;;  %vm5552_vm14 = vcmp.eq.f32.partialorder %v5551_v39, 8.507059e+37 }
 0x624   : > { %6059 = vrot.lane.b32.xlu1 %v6015_v16, %s8572_s22  ;;  %v5686_v58 = vadd.f32 %v11611_v4, %v5685_v44  ;;  %v5691_v39 = vand.u32 2147483647, %v11574_v13  ;;  %v5566_v16 = vand.u32 2147483647, %v11638_v19  ;;  %vm5562_vm3 = vweird.f32 %v11638_v19 }
 0x625   : > { %v8312_v49 = vpop.eup %8311  ;;  %v5546_v14 = vadd.f32 %v8302_v9, %v5545_v36  ;;  %v6038_v56 = vpop.permute.xlu2 %6037  ;;  %v5180_v33 = vadd.f32 %v5147_v62, %v11320_v41  ;;  %v5668_v41 = vmul.f32 %v11641_v47, %v11600_v24  ;;  %vm5673_vm11 = vweird.f32 %v11641_v47 }
 0x626   : > { %v8314_v7 = vpop.eup %8313  ;;  %v11666_v6 = vadd.f32 1.0, %v8312_v49  ;;  %v11670_v34 = vadd.f32 %v6038_v56, %v5988_v2  ;;  %v5690_v44 = vsel %vm11687_vm1, %v11611_v4, %v5686_v58  ;;  %v11696_v49 = vadd.f32 1.0, %v8310_v5 }
 0x627   : > { %v8316_v46 = vpop.eup %8315  ;;  %v5558_v60 = vmul.f32 %v8314_v7, %v11638_v19  ;;  %v5550_v11 = vsel %vm5549_vm13, %v8302_v9, %v5546_v14  ;;  %v5568_v9 = vand.u32 2147483648, %v11638_v19  ;;  %vm5563_vm0 = vweird.f32 %v8314_v7 }
 0x628   : > { %8317 = vrcp.f32 %v11666_v6  ;;  %v5555_v55 = vsel %vm5552_vm14, %v5554_v57, %v5550_v11  ;;  %v5694_v14 = vor.u32 1.1754944e-38, %v5693_v52  ;;  %v11700_v13 = vadd.f32 %v11340_v26, %v5180_v33  ;;  %vm5564_vm4 = vmor %vm5562_vm3, %vm5563_vm0 }
 0x629   : > { %v5559_v20 = vsub.f32 1.0, %v5558_v60  ;;  %8319 = vtanh.f32 %v11670_v34  ;;  %v11676_v40 = vmul.f32 %v5966_v63, %v5555_v55  ;;  %v6016_v50 = vmul.f32 %v8316_v46, %v5555_v55 }
 0x62a   : > { %8321 = vtanh.f32 %v11664_v21  ;;  %v5569_v56 = vor.u32 1.1754944e-38, %v5568_v9  ;;  %vm5692_vm5 = vcmp.eq.f32.partialorder %v5691_v39, 8.507059e+37  ;;  %vm5567_vm6 = vcmp.eq.f32.partialorder %v5566_v16, 8.507059e+37  ;;  %v5970_v16 = vpop.permute.xlu0 %5969 }
 0x62b   : > { %8323 = vrcp.f32 %v11657_v22  ;;  %v5560_v43 = vmul.f32 %v8314_v7, %v5559_v20  ;;  %6061 = vrot.lane.b32.xlu2 %v6016_v50, %s8572_s22  ;;  %v5695_v4 = vsel %vm5692_vm5, %v5694_v14, %v5690_v44  ;;  %v5669_v11 = vsub.f32 1.0, %v5668_v41 }
 0x62c   : > { %8325 = vpow2.f32 %v7789_v8  ;;  %v7793_v58 = vmul.f32 -1.442695, %v11493_v61  ;;  %v5581_v50 = vand.u32 2147483647, %v11666_v6  ;;  %v5987_v61 = vmul.f32 %v11488_v42, %v11364_v38 }
 0x62d   : > { %v5561_v2 = vadd.f32 %v8314_v7, %v5560_v43  ;;  %8327 = vtanh.f32 %v11700_v13  ;;  %vm5577_vm8 = vweird.f32 %v11666_v6  ;;  %vm5672_vm12 = vweird.f32 %v11600_v24 }
 0x62e   : > { %v8318_v62 = vpop.eup %8317  ;;  %8329 = vrcp.f32 %v11696_v49  ;;  %vm5582_vm10 = vcmp.eq.f32.partialorder %v5581_v50, 8.507059e+37  ;;  %vm5674_vm13 = vmor %vm5672_vm12, %vm5673_vm11  ;;  %vm5732_vm0 = vweird.f32 %v11657_v22  ;;  %vm5702_vm5 = vweird.f32 %v11696_v49 }
 0x62f   : > { %v8320_v63 = vpop.eup %8319  ;;  %v5565_v57 = vsel %vm5564_vm4, %v8314_v7, %v5561_v2  ;;  %v5573_v46 = vmul.f32 %v8318_v62, %v11666_v6  ;;  %v5583_v7 = vand.u32 2147483648, %v11666_v6  ;;  %vm5578_vm7 = vweird.f32 %v8318_v62 }
 0x630   : > { %v8322_v5 = vpop.eup %8321  ;;  %v5570_v60 = vsel %vm5567_vm6, %v5569_v56, %v5565_v57  ;;  %v11703_v55 = vmul.f32 %v8320_v63, %v5695_v4  ;;  %8331 = vpow2.f32 %v7793_v58  ;;  %vm5579_vm9 = vmor %vm5577_vm8, %vm5578_vm7  ;;  %v7791_v4 = vmul.f32 -1.442695, %v11445_v3 }
 0x631   : > { %v11705_v19 = vpop.eup %8323  ;;  %v11708_v8 = vmul.f32 %v11627_v1, %v5570_v60  ;;  %v6017_v26 = vmul.f32 %v8322_v5, %v5570_v60  ;;  %v5574_v52 = vsub.f32 1.0, %v5573_v46  ;;  %v5670_v1 = vmul.f32 %v11641_v47, %v5669_v11 }
 0x632   : > { %v8326_v33 = vpop.eup %8325  ;;  %v5728_v9 = vmul.f32 %v11705_v19, %v11657_v22  ;;  %v5584_v36 = vor.u32 1.1754944e-38, %v5583_v7  ;;  %v5678_v46 = vand.u32 2147483648, %v11600_v24  ;;  %v5991_v3 = vmul.f32 %v11436_v29, %v11456_v59 }
 0x633   : > { %6063 = vrot.lane.b32.xlu0 %v6017_v26, %s8572_s22  ;;  %v5575_v20 = vmul.f32 %v8318_v62, %v5574_v52  ;;  %v11722_v41 = vadd.f32 1.0, %v8326_v33  ;;  %v8328_v14 = vpop.eup %8327  ;;  %v5671_v63 = vadd.f32 %v11641_v47, %v5670_v1  ;;  %vm5733_vm15 = vweird.f32 %v11705_v19 }
 0x634   : > { %v5729_v38 = vsub.f32 1.0, %v5728_v9  ;;  %v11726_v42 = vpop.eup %8329  ;;  %v5679_v52 = vor.u32 1.1754944e-38, %v5678_v46  ;;  %v5738_v29 = vand.u32 2147483648, %v11657_v22  ;;  %v7792_v59 = vmul.f32 -1.442695, %v11465_v54  ;;  %vm5734_vm1 = vmor %vm5732_vm0, %vm5733_vm15 }
 0x635   : > { %v5576_v39 = vadd.f32 %v8318_v62, %v5575_v20  ;;  %v6036_v43 = vpop.permute.xlu1 %6035  ;;  %v5675_v60 = vsel %vm5674_vm13, %v11641_v47, %v5671_v63  ;;  %v5698_v11 = vmul.f32 %v11726_v42, %v11696_v49  ;;  %vm5703_vm4 = vweird.f32 %v11726_v42 }
 0x636   : > { %v6083_v44 = vadd.f32 %v6036_v43, %v5987_v61  ;;  %v8332_v5 = vpop.eup %8331  ;;  %v5730_v26 = vmul.f32 %v11705_v19, %v5729_v38  ;;  %v5736_v61 = vand.u32 2147483647, %v11657_v22  ;;  %v5989_v22 = vmul.f32 %v11467_v10, %v11407_v48  ;;  %vm5704_vm6 = vmor %vm5702_vm5, %vm5703_vm4 }
 0x637   : > { %v5580_v2 = vsel %vm5579_vm9, %v8318_v62, %v5576_v39  ;;  %v5676_v62 = vand.u32 2147483647, %v11600_v24  ;;  %v11743_v7 = vadd.f32 1.0, %v8332_v5  ;;  %v5699_v47 = vsub.f32 1.0, %v5698_v11 }
 0x638   : > { %v5585_v56 = vsel %vm5582_vm10, %v5584_v36, %v5580_v2  ;;  %8333 = vtanh.f32 %v6083_v44  ;;  %v5731_v1 = vadd.f32 %v11705_v19, %v5730_v26  ;;  %v5739_v36 = vor.u32 1.1754944e-38, %v5738_v29 }
 0x639   : > { %v11728_v6 = vmul.f32 %v5970_v16, %v5585_v56  ;;  %v6018_v57 = vmul.f32 %v8328_v14, %v5585_v56  ;;  %8335 = vrcp.f32 %v11722_v41  ;;  %vm5677_vm14 = vcmp.eq.f32.partialorder %v5676_v62, 8.507059e+37 }
 0x63a   : > { %8337 = vpow2.f32 %v7791_v4  ;;  %v5680_v50 = vsel %vm5677_vm14, %v5679_v52, %v5675_v60  ;;  %v5700_v43 = vmul.f32 %v11726_v42, %v5699_v47  ;;  %v5735_v54 = vsel %vm5734_vm1, %v11705_v19, %v5731_v1 }
 0x63b   : > { %6065 = vrot.lane.b32.xlu1 %v6018_v57, %s8572_s22  ;;  %6227 = vrot.lane.b32.xlu0 %v6083_v44, %s8572_s22  ;;  %vm5737_vm3 = vcmp.eq.f32.partialorder %v5736_v61, 8.507059e+37  ;;  %v5708_v48 = vand.u32 2147483648, %v11696_v49  ;;  %v7796_v10 = vmul.f32 -1.442695, %v11556_v51  ;;  %v5706_v57 = vand.u32 2147483647, %v11696_v49 }
 0x63c   : > { %v5740_v14 = vsel %vm5737_vm3, %v5739_v36, %v5735_v54  ;;  %v5701_v56 = vadd.f32 %v11726_v42, %v5700_v43  ;;  %v5990_v51 = vmul.f32 %v11498_v12, %v11430_v17  ;;  %v5723_v17 = vand.u32 2147483648, %v11722_v41 }
 0x63d   : > { %v6044_v24 = vpop.permute.xlu2 %6043  ;;  %v5709_v60 = vor.u32 1.1754944e-38, %v5708_v48  ;;  %vm5707_vm7 = vcmp.eq.f32.partialorder %v5706_v57, 8.507059e+37  ;;  %v7794_v12 = vmul.f32 -1.442695, %v11514_v23  ;;  %vm5717_vm9 = vweird.f32 %v11722_v41 }
 0x63e   : > { %v8334_v58 = vpop.eup %8333  ;;  %v11745_v20 = vadd.f32 %v6044_v24, %v5991_v3  ;;  %v5705_v4 = vsel %vm5704_vm6, %v11726_v42, %v5701_v56  ;;  %v5724_v61 = vor.u32 1.1754944e-38, %v5723_v17  ;;  %vm5777_vm13 = vweird.f32 %v11743_v7 }
 0x63f   : > { %v6115_v33 = vmul.f32 %v8334_v58, %v5680_v50  ;;  %v11749_v9 = vpop.eup %8335  ;;  %v5710_v52 = vsel %vm5707_vm7, %v5709_v60, %v5705_v4 }
 0x640   : > { %8339 = vtanh.f32 %v11745_v20  ;;  %v8338_v39 = vpop.eup %8337  ;;  %v5713_v16 = vmul.f32 %v11749_v9, %v11722_v41  ;;  %vm5718_vm8 = vweird.f32 %v11749_v9 }
 0x641   : > { %6147 = vrot.lane.b32.xlu2 %v6115_v33, %s8572_s22  ;;  %8341 = vrcp.f32 %v11743_v7  ;;  %v11768_v2 = vadd.f32 1.0, %v8338_v39  ;;  %v5721_v33 = vand.u32 2147483647, %v11722_v41  ;;  %vm5719_vm10 = vmor %vm5717_vm9, %vm5718_vm8 }
 0x642   : > { %8343 = vpow2.f32 %v7792_v59  ;;  %v5714_v63 = vsub.f32 1.0, %v5713_v16 }
 0x643   : > { %6229 = vrot.lane.b32.xlu1 %v11670_v34, %s8572_s22  ;;  %6149 = vrot.lane.b32.xlu0 %v11703_v55, %s8572_s22  ;;  %vm5722_vm11 = vcmp.eq.f32.partialorder %v5721_v33, 8.507059e+37  ;;  %vm5747_vm1 = vweird.f32 %v11768_v2 }
 0x644   : > { %v5715_v62 = vmul.f32 %v11749_v9, %v5714_v63 }
 0x645   : > { %v6040_v44 = vpop.permute.xlu0 %6039 }
 0x646   : > { %v8340_v34 = vpop.eup %8339  ;;  %v6085_v55 = vadd.f32 %v6040_v44, %v5989_v22  ;;  %v5716_v42 = vadd.f32 %v11749_v9, %v5715_v62  ;;  %v5783_v44 = vand.u32 2147483648, %v11743_v7  ;;  %v7799_v62 = vmul.f32 -1.442695, %v11634_v0 }
 0x647   : > { %v6119_v19 = vmul.f32 %v8340_v34, %v5740_v14  ;;  %v11772_v38 = vpop.eup %8341  ;;  %v7795_v34 = vmul.f32 -1.442695, %v11535_v18 }
 0x648   : > { %8345 = vtanh.f32 %v6085_v55  ;;  %v8344_v46 = vpop.eup %8343  ;;  %v5773_v5 = vmul.f32 %v11772_v38, %v11743_v7  ;;  %v5720_v1 = vsel %vm5719_vm10, %v11749_v9, %v5716_v42  ;;  %vm5778_vm12 = vweird.f32 %v11772_v38 }
 0x649   : > { %6231 = vrot.lane.b32.xlu2 %v6085_v55, %s8572_s22  ;;  %8347 = vrcp.f32 %v11768_v2  ;;  %v11786_v49 = vadd.f32 1.0, %v8344_v46  ;;  %v5725_v54 = vsel %vm5722_vm11, %v5724_v61, %v5720_v1  ;;  %vm5779_vm14 = vmor %vm5777_vm13, %vm5778_vm12 }
 0x64a   : > { %8349 = vpow2.f32 %v7796_v10  ;;  %v5774_v58 = vsub.f32 1.0, %v5773_v5  ;;  %v5753_v5 = vand.u32 2147483648, %v11768_v2 }
 0x64b   : > { %vm5762_vm6 = vweird.f32 %v11786_v49 }
 0x64c   : > { %v5775_v59 = vmul.f32 %v11772_v38, %v5774_v58 }
 0x64d   : > { %v6042_v11 = vpop.permute.xlu1 %6041 }
 0x64e   : > { %v8346_v26 = vpop.eup %8345  ;;  %v6086_v3 = vadd.f32 %v6042_v11, %v5990_v51  ;;  %v5776_v9 = vadd.f32 %v11772_v38, %v5775_v59 }
 0x64f   : > { %v6117_v24 = vmul.f32 %v8346_v26, %v5710_v52  ;;  %v11790_v50 = vpop.eup %8347  ;;  %v5993_v26 = vmul.f32 %v11540_v15, %v11505_v31  ;;  %v5768_v31 = vand.u32 2147483648, %v11786_v49  ;;  %v7797_v15 = vmul.f32 -1.442695, %v11579_v27 }
 0x650   : > { %8351 = vtanh.f32 %v6086_v3  ;;  %6233 = vrot.lane.b32.xlu0 %v6086_v3, %s8572_s22  ;;  %v8350_v47 = vpop.eup %8349  ;;  %v5743_v29 = vmul.f32 %v11790_v50, %v11768_v2  ;;  %v5780_v56 = vsel %vm5779_vm14, %v11772_v38, %v5776_v9  ;;  %vm5748_vm0 = vweird.f32 %v11790_v50 }
 0x651   : > { %6151 = vrot.lane.b32.xlu1 %v6117_v24, %s8572_s22  ;;  %8353 = vrcp.f32 %v11786_v49  ;;  %v11803_v43 = vadd.f32 1.0, %v8350_v47  ;;  %vm5749_vm3 = vmor %vm5747_vm1, %vm5748_vm0  ;;  %v5754_v3 = vor.u32 1.1754944e-38, %v5753_v5  ;;  %v5766_v47 = vand.u32 2147483647, %v11786_v49 }
 0x652   : > { %8355 = vpow2.f32 %v7794_v12  ;;  %v5744_v22 = vsub.f32 1.0, %v5743_v29 }
 0x653   : > { %vm5767_vm8 = vcmp.eq.f32.partialorder %v5766_v47, 8.507059e+37  ;;  %vm5822_vm10 = vweird.f32 %v11803_v43 }
 0x654   : > { %v5745_v14 = vmul.f32 %v11790_v50, %v5744_v22 }
 0x655   : > { %v6050_v23 = vpop.permute.xlu2 %6049 }
 0x656   : > { %v8352_v39 = vpop.eup %8351  ;;  %v11806_v41 = vadd.f32 %v6050_v23, %v11527_v53  ;;  %v5781_v53 = vand.u32 2147483647, %v11743_v7  ;;  %v5746_v57 = vadd.f32 %v11790_v50, %v5745_v14  ;;  %v5769_v23 = vor.u32 1.1754944e-38, %v5768_v31 }
 0x657   : > { %v6118_v16 = vmul.f32 %v8352_v39, %v5725_v54  ;;  %v11810_v36 = vpop.eup %8353 }
 0x658   : > { %8357 = vtanh.f32 %v11806_v41  ;;  %6155 = vrot.lane.b32.xlu0 %v6119_v19, %s8572_s22  ;;  %v8356_v55 = vpop.eup %8355  ;;  %v5758_v18 = vmul.f32 %v11810_v36, %v11786_v49  ;;  %v5784_v19 = vor.u32 1.1754944e-38, %v5783_v44  ;;  %vm5782_vm15 = vcmp.eq.f32.partialorder %v5781_v53, 8.507059e+37 }
 0x659   : > { %6235 = vrot.lane.b32.xlu1 %v11745_v20, %s8572_s22  ;;  %6153 = vrot.lane.b32.xlu2 %v6118_v16, %s8572_s22  ;;  %8359 = vrcp.f32 %v11803_v43  ;;  %v11826_v48 = vadd.f32 1.0, %v8356_v55  ;;  %v5750_v60 = vsel %vm5749_vm3, %v11790_v50, %v5746_v57  ;;  %vm5763_vm5 = vweird.f32 %v11810_v36 }
 0x65a   : > { %8361 = vpow2.f32 %v7795_v34  ;;  %v5785_v10 = vsel %vm5782_vm15, %v5784_v19, %v5780_v56  ;;  %v5759_v4 = vsub.f32 1.0, %v5758_v18  ;;  %vm5764_vm7 = vmor %vm5762_vm6, %vm5763_vm5  ;;  %v5828_v34 = vand.u32 2147483648, %v11803_v43 }
 0x65b   : > { %v7798_v53 = vmul.f32 -1.442695, %v11614_v45  ;;  %vm5792_vm14 = vweird.f32 %v11826_v48 }
 0x65c   : > { %v5760_v11 = vmul.f32 %v11810_v36, %v5759_v4  ;;  %v5829_v19 = vor.u32 1.1754944e-38, %v5828_v34  ;;  %v5798_v4 = vand.u32 2147483648, %v11826_v48 }
 0x65d   : > { %v6046_v20 = vpop.permute.xlu0 %6045 }
 0x65e   : > { %v8358_v63 = vpop.eup %8357  ;;  %v6088_v7 = vadd.f32 %v6046_v20, %v11481_v37  ;;  %v5751_v37 = vand.u32 2147483647, %v11768_v2  ;;  %v5761_v50 = vadd.f32 %v11810_v36, %v5760_v11 }
 0x65f   : > { %v6122_v46 = vmul.f32 %v8358_v63, %v5785_v10  ;;  %v11831_v38 = vpop.eup %8359 }
 0x660   : > { %8363 = vtanh.f32 %v6088_v7  ;;  %v8362_v51 = vpop.eup %8361  ;;  %v5818_v0 = vmul.f32 %v11831_v38, %v11803_v43  ;;  %vm5752_vm4 = vcmp.eq.f32.partialorder %v5751_v37, 8.507059e+37  ;;  %v5765_v29 = vsel %vm5764_vm7, %v11810_v36, %v5761_v50 }
 0x661   : > { %6237 = vrot.lane.b32.xlu2 %v6088_v7, %s8572_s22  ;;  %8365 = vrcp.f32 %v11826_v48  ;;  %v11845_v2 = vadd.f32 1.0, %v8362_v51  ;;  %v5755_v58 = vsel %vm5752_vm4, %v5754_v3, %v5750_v60  ;;  %v5770_v16 = vsel %vm5767_vm8, %v5769_v23, %v5765_v29 }
 0x662   : > { %8367 = vpow2.f32 %v7799_v62  ;;  %v5819_v12 = vsub.f32 1.0, %v5818_v0  ;;  %vm5823_vm9 = vweird.f32 %v11831_v38  ;;  %v5799_v51 = vor.u32 1.1754944e-38, %v5798_v4 }
 0x663   : > { %vm5824_vm11 = vmor %vm5822_vm10, %vm5823_vm9  ;;  %vm5807_vm3 = vweird.f32 %v11845_v2 }
 0x664   : > { %v5820_v61 = vmul.f32 %v11831_v38, %v5819_v12 }
 0x665   : > { %v6048_v52 = vpop.permute.xlu1 %6047 }
 0x666   : > { %v8364_v24 = vpop.eup %8363  ;;  %v6089_v42 = vadd.f32 %v6048_v52, %v5993_v26  ;;  %v5821_v36 = vadd.f32 %v11831_v38, %v5820_v61 }
 0x667   : > { %v6120_v17 = vmul.f32 %v8364_v24, %v5755_v58  ;;  %v11849_v33 = vpop.eup %8365  ;;  %v7800_v58 = vmul.f32 -1.442695, %v11664_v21 }
 0x668   : > { %8369 = vtanh.f32 %v6089_v42  ;;  %6239 = vrot.lane.b32.xlu0 %v6089_v42, %s8572_s22  ;;  %v8368_v1 = vpop.eup %8367  ;;  %v5788_v59 = vmul.f32 %v11849_v33, %v11826_v48  ;;  %v5825_v56 = vsel %vm5824_vm11, %v11831_v38, %v5821_v36  ;;  %vm5793_vm13 = vweird.f32 %v11849_v33 }
 0x669   : > { %6157 = vrot.lane.b32.xlu1 %v6120_v17, %s8572_s22  ;;  %8371 = vrcp.f32 %v11845_v2  ;;  %v11862_v27 = vadd.f32 1.0, %v8368_v1  ;;  %v5796_v38 = vand.u32 2147483647, %v11826_v48  ;;  %vm5794_vm15 = vmor %vm5792_vm14, %vm5793_vm13  ;;  %v5813_v17 = vand.u32 2147483648, %v11845_v2 }
 0x66a   : > { %8373 = vpow2.f32 %v7797_v15  ;;  %v5789_v9 = vsub.f32 1.0, %v5788_v59 }
 0x66b   : > { %vm5797_vm0 = vcmp.eq.f32.partialorder %v5796_v38, 8.507059e+37  ;;  %v5814_v31 = vor.u32 1.1754944e-38, %v5813_v17  ;;  %v5873_v23 = vand.u32 2147483648, %v11862_v27  ;;  %vm5867_vm7 = vweird.f32 %v11862_v27 }
 0x66c   : > { %v5790_v14 = vmul.f32 %v11849_v33, %v5789_v9 }
 0x66d   : > { %v6056_v39 = vpop.permute.xlu2 %6055 }
 0x66e   : > { %v8370_v54 = vpop.eup %8369  ;;  %v11865_v49 = vadd.f32 %v6056_v39, %v11590_v35  ;;  %v5826_v35 = vand.u32 2147483647, %v11803_v43  ;;  %v5791_v10 = vadd.f32 %v11849_v33, %v5790_v14 }
 0x66f   : > { %v6121_v22 = vmul.f32 %v8370_v54, %v5770_v16  ;;  %v11869_v44 = vpop.eup %8371 }
 0x670   : > { %8375 = vtanh.f32 %v11865_v49  ;;  %6161 = vrot.lane.b32.xlu0 %v6122_v46, %s8572_s22  ;;  %v8374_v55 = vpop.eup %8373  ;;  %v5803_v18 = vmul.f32 %v11869_v44, %v11845_v2  ;;  %vm5827_vm12 = vcmp.eq.f32.partialorder %v5826_v35, 8.507059e+37  ;;  %v5795_v62 = vsel %vm5794_vm15, %v11849_v33, %v5791_v10 }
 0x671   : > { %8377 = vrcp.f32 %v11862_v27  ;;  %6241 = vrot.lane.b32.xlu1 %v11806_v41, %s8572_s22  ;;  %6159 = vrot.lane.b32.xlu2 %v6121_v22, %s8572_s22  ;;  %v11885_v63 = vadd.f32 1.0, %v8374_v55  ;;  %v5830_v7 = vsel %vm5827_vm12, %v5829_v19, %v5825_v56  ;;  %v5800_v26 = vsel %vm5797_vm0, %v5799_v51, %v5795_v62 }
 0x672   : > { %8379 = vpow2.f32 %v7798_v53  ;;  %v5804_v46 = vsub.f32 1.0, %v5803_v18  ;;  %vm5808_vm1 = vweird.f32 %v11869_v44  ;;  %v5874_v22 = vor.u32 1.1754944e-38, %v5873_v23 }
 0x673   : > { %vm5809_vm4 = vmor %vm5807_vm3, %vm5808_vm1  ;;  %v5843_v55 = vand.u32 2147483648, %v11885_v63  ;;  %vm5837_vm11 = vweird.f32 %v11885_v63  ;;  %v5841_v18 = vand.u32 2147483647, %v11885_v63 }
 0x674   : > { %v5805_v5 = vmul.f32 %v11869_v44, %v5804_v46 }
 0x675   : > { %v6052_v20 = vpop.permute.xlu0 %6051  ;;  %vm5842_vm13 = vcmp.eq.f32.partialorder %v5841_v18, 8.507059e+37 }
 0x676   : > { %v8376_v41 = vpop.eup %8375  ;;  %v6091_v43 = vadd.f32 %v6052_v20, %v11548_v25  ;;  %v5806_v24 = vadd.f32 %v11869_v44, %v5805_v5  ;;  %v5844_v20 = vor.u32 1.1754944e-38, %v5843_v55 }
 0x677   : > { %v11888_v45 = vpop.eup %8377  ;;  %v6125_v57 = vmul.f32 %v8376_v41, %v5830_v7 }
 0x678   : > { %8381 = vtanh.f32 %v6091_v43  ;;  %v5863_v25 = vmul.f32 %v11888_v45, %v11862_v27  ;;  %v8380_v37 = vpop.eup %8379  ;;  %v5810_v12 = vsel %vm5809_vm4, %v11869_v44, %v5806_v24  ;;  %vm5868_vm6 = vweird.f32 %v11888_v45 }
 0x679   : > { %6243 = vrot.lane.b32.xlu2 %v6091_v43, %s8572_s22  ;;  %8383 = vrcp.f32 %v11885_v63  ;;  %v11902_v48 = vadd.f32 1.0, %v8380_v37  ;;  %vm5869_vm8 = vmor %vm5867_vm7, %vm5868_vm6 }
 0x67a   : > { %v5864_v3 = vsub.f32 1.0, %v5863_v25 }
 0x67b   : > { %vm5852_vm15 = vweird.f32 %v11902_v48  ;;  %v5856_v38 = vand.u32 2147483647, %v11902_v48 }
 0x67c   : > { %v5865_v50 = vmul.f32 %v11888_v45, %v5864_v3 }
 0x67d   : > { %v6054_v60 = vpop.permute.xlu1 %6053  ;;  %vm5857_vm1 = vcmp.eq.f32.partialorder %v5856_v38, 8.507059e+37 }
 0x67e   : > { %v8382_v11 = vpop.eup %8381  ;;  %v6092_v0 = vadd.f32 %v6054_v60, %v11567_v32  ;;  %v5811_v32 = vand.u32 2147483647, %v11845_v2  ;;  %v7801_v2 = vmul.f32 -1.442695, %v11700_v13  ;;  %v5866_v29 = vadd.f32 %v11888_v45, %v5865_v50 }
 0x67f   : > { %v6123_v52 = vmul.f32 %v8382_v11, %v5800_v26  ;;  %v11906_v42 = vpop.eup %8383 }
 0x680   : > { %8385 = vtanh.f32 %v6092_v0  ;;  %6245 = vrot.lane.b32.xlu0 %v6092_v0, %s8572_s22  ;;  %v5833_v21 = vmul.f32 %v11906_v42, %v11885_v63  ;;  %vm5812_vm5 = vcmp.eq.f32.partialorder %v5811_v32, 8.507059e+37  ;;  %v5870_v54 = vsel %vm5869_vm8, %v11888_v45, %v5866_v29 }
 0x681   : > { %6163 = vrot.lane.b32.xlu1 %v6123_v52, %s8572_s22  ;;  %8387 = vrcp.f32 %v11902_v48  ;;  %v5815_v1 = vsel %vm5812_vm5, %v5814_v31, %v5810_v12  ;;  %vm5838_vm10 = vweird.f32 %v11906_v42  ;;  %v5858_v63 = vand.u32 2147483648, %v11902_v48 }
 0x682   : > { %8389 = vpow2.f32 %v7800_v58  ;;  %v5834_v61 = vsub.f32 1.0, %v5833_v21  ;;  %vm5839_vm12 = vmor %vm5837_vm11, %vm5838_vm10 }
 0x683   : > { %v5859_v5 = vor.u32 1.1754944e-38, %v5858_v63 }
 0x684   : > { %v5835_v16 = vmul.f32 %v11906_v42, %v5834_v61 }
 0x685   : > { %v6062_v33 = vpop.permute.xlu2 %6061 }
 0x686   : > { %v11920_v15 = vadd.f32 %v6062_v33, %v11676_v40  ;;  %v8386_v47 = vpop.eup %8385  ;;  %v5871_v40 = vand.u32 2147483647, %v11862_v27  ;;  %v5836_v53 = vadd.f32 %v11906_v42, %v5835_v16 }
 0x687   : > { %v6124_v59 = vmul.f32 %v8386_v47, %v5815_v1  ;;  %v8388_v39 = vpop.eup %8387 }
 0x688   : > { %8391 = vtanh.f32 %v11920_v15  ;;  %6167 = vrot.lane.b32.xlu0 %v6125_v57, %s8572_s22  ;;  %v8390_v13 = vpop.eup %8389  ;;  %vm5872_vm9 = vcmp.eq.f32.partialorder %v5871_v40, 8.507059e+37  ;;  %v5848_v9 = vmul.f32 %v8388_v39, %v11902_v48  ;;  %vm5853_vm14 = vweird.f32 %v8388_v39 }
 0x689   : > { %6247 = vrot.lane.b32.xlu1 %v11865_v49, %s8572_s22  ;;  %6165 = vrot.lane.b32.xlu2 %v6124_v59, %s8572_s22  ;;  %8393 = vpow2.f32 %v7801_v2  ;;  %v11936_v44 = vadd.f32 1.0, %v8390_v13  ;;  %v5875_v34 = vsel %vm5872_vm9, %v5874_v22, %v5870_v54  ;;  %vm5854_vm0 = vmor %vm5852_vm15, %vm5853_vm14 }
 0x68a   : > { %v5849_v14 = vsub.f32 1.0, %v5848_v9 }
 0x68b   : > { %v5888_v17 = vand.u32 2147483648, %v11936_v44  ;;  %vm5882_vm4 = vweird.f32 %v11936_v44  ;;  %v5886_v32 = vand.u32 2147483647, %v11936_v44 }
 0x68c   : > { %v5850_v41 = vmul.f32 %v8388_v39, %v5849_v14 }
 0x68d   : > { %v5889_v21 = vor.u32 1.1754944e-38, %v5888_v17  ;;  %vm5887_vm6 = vcmp.eq.f32.partialorder %v5886_v32, 8.507059e+37 }
 0x68e   : > { %v8392_v36 = vpop.eup %8391  ;;  %v6058_v27 = vpop.permute.xlu0 %6057  ;;  %v5851_v4 = vadd.f32 %v8388_v39, %v5850_v41 }
 0x68f   : > { %v6094_v49 = vadd.f32 %v6058_v27, %v11622_v30  ;;  %v6128_v35 = vmul.f32 %v8392_v36, %v5875_v34  ;;  %v8394_v56 = vpop.eup %8393  ;;  %v5840_v30 = vsel %vm5839_vm12, %v11906_v42, %v5836_v53 }
 0x690   : > { %v11947_v19 = vadd.f32 1.0, %v8394_v56  ;;  %v5845_v45 = vsel %vm5842_vm13, %v5844_v20, %v5840_v30 }
 0x691   : > { %8395 = vtanh.f32 %v6094_v49  ;;  %6249 = vrot.lane.b32.xlu2 %v6094_v49, %s8572_s22 }
 0x692   : > { %8397 = vrcp.f32 %v11936_v44  ;;  %v5903_v59 = vand.u32 2147483648, %v11947_v19  ;;  %vm5897_vm8 = vweird.f32 %v11947_v19 }
 0x693   : > { %8399 = vrcp.f32 %v11947_v19 }
 0x694   : > { %v5904_v40 = vor.u32 1.1754944e-38, %v5903_v59 }
 0x696   : > { %v6060_v7 = vpop.permute.xlu1 %6059 }
 0x697   : > { %v8396_v43 = vpop.eup %8395  ;;  %v6095_v57 = vadd.f32 %v6060_v7, %v11651_v28  ;;  %v5855_v28 = vsel %vm5854_vm0, %v8388_v39, %v5851_v4 }
 0x698   : > { %v8398_v10 = vpop.eup %8397  ;;  %v6126_v46 = vmul.f32 %v8396_v43, %v5845_v45  ;;  %v5860_v11 = vsel %vm5857_vm1, %v5859_v5, %v5855_v28 }
 0x699   : > { %8401 = vtanh.f32 %v6095_v57  ;;  %6251 = vrot.lane.b32.xlu0 %v6095_v57, %s8572_s22  ;;  %v5878_v25 = vmul.f32 %v8398_v10, %v11936_v44  ;;  %v8400_v37 = vpop.eup %8399  ;;  %vm5883_vm3 = vweird.f32 %v8398_v10 }
 0x69a   : > { %6169 = vrot.lane.b32.xlu1 %v6126_v46, %s8572_s22  ;;  %v5893_v3 = vmul.f32 %v8400_v37, %v11947_v19  ;;  %vm5884_vm5 = vmor %vm5882_vm4, %vm5883_vm3  ;;  %vm5898_vm7 = vweird.f32 %v8400_v37 }
 0x69b   : > { %v6148_v62 = vpop.permute.xlu2 %6147  ;;  %v5879_v51 = vsub.f32 1.0, %v5878_v25  ;;  %vm5899_vm9 = vmor %vm5897_vm8, %vm5898_vm7 }
 0x69c   : > { %6195 = vst.msk [vmem:[%s8727_s14] sm:$0xff] %vm968_vm2, %v6148_v62  ;;  %v5894_v58 = vsub.f32 1.0, %v5893_v3 }
 0x69d   : > { %v5880_v26 = vmul.f32 %v8398_v10, %v5879_v51 }
 0x69e   : > { %v5895_v12 = vmul.f32 %v8400_v37, %v5894_v58 }
 0x69f   : > { %v8402_v60 = vpop.eup %8401  ;;  %v5881_v42 = vadd.f32 %v8398_v10, %v5880_v26 }
 0x6a0   : > { %v6127_v0 = vmul.f32 %v8402_v60, %v5860_v11  ;;  %v5896_v29 = vadd.f32 %v8400_v37, %v5895_v12 }
 0x6a1   : > { %6173 = vrot.lane.b32.xlu0 %v6128_v35, %s8572_s22  ;;  %v5885_v50 = vsel %vm5884_vm5, %v8398_v10, %v5881_v42 }
 0x6a2   : > { %6171 = vrot.lane.b32.xlu2 %v6127_v0, %s8572_s22  ;;  %v5890_v2 = vsel %vm5887_vm6, %v5889_v21, %v5885_v50  ;;  %v5900_v61 = vsel %vm5899_vm9, %v8400_v37, %v5896_v29 }
 0x6a3   : > { %v6232_v48 = vpop.permute.xlu2 %6231 }
 0x6a4   : > { %6277 = vst.msk [vmem:[%s8729_s18 + $0x10] sm:$0xff] %vm968_vm2, %v6232_v48 }
 0x6a5   : > { %v6064_v52 = vpop.permute.xlu0 %6063 }
 0x6a6   : > { %v6097_v24 = vadd.f32 %v6064_v52, %v11708_v8 }
 0x6a8   : > { %8403 = vtanh.f32 %v6097_v24 }
 0x6ad   : > { %v6066_v33 = vpop.permute.xlu1 %6065  ;;  %v6228_v31 = vpop.permute.xlu0 %6227 }
 0x6ae   : > { %v8404_v47 = vpop.eup %8403  ;;  %v6098_v8 = vadd.f32 %v6066_v33, %v11728_v6  ;;  %6275 = vst.msk [vmem:[%s8729_s18] sm:$0xff] %vm968_vm2, %v6228_v31  ;;  %v5901_v6 = vand.u32 2147483647, %v11947_v19 }
 0x6af   : > { %v6129_v1 = vmul.f32 %v8404_v47, %v5890_v2 }
 0x6b0   : > { %8405 = vtanh.f32 %v6098_v8  ;;  %6257 = vrot.lane.b32.xlu0 %v6098_v8, %s8572_s22  ;;  %vm5902_vm10 = vcmp.eq.f32.partialorder %v5901_v6, 8.507059e+37 }
 0x6b1   : > { %6175 = vrot.lane.b32.xlu1 %v6129_v1, %s8572_s22  ;;  %v5905_v16 = vsel %vm5902_vm10, %v5904_v40, %v5900_v61 }
 0x6b3   : > { %v6154_v23 = vpop.permute.xlu2 %6153 }
 0x6b4   : > { %6198 = vst.msk [vmem:[%s8727_s14 + $0x18] sm:$0xff] %vm968_vm2, %v6154_v23 }
 0x6b5   : > { %v6230_v39 = vpop.permute.xlu1 %6229  ;;  %v6150_v13 = vpop.permute.xlu0 %6149 }
 0x6b6   : > { %v8406_v54 = vpop.eup %8405  ;;  %6276 = vst.msk [vmem:[%s8729_s18 + $0x8] sm:$0xff] %vm968_vm2, %v6230_v39 }
 0x6b7   : > { %6196 = vst.msk [vmem:[%s8727_s14 + $0x8] sm:$0xff] %vm968_vm2, %v6150_v13  ;;  %v6130_v22 = vmul.f32 %v8406_v54, %v5905_v16 }
 0x6b9   : > { %6253 = vrot.lane.b32.xlu1 %v11920_v15, %s8572_s22  ;;  %6177 = vrot.lane.b32.xlu2 %v6130_v22, %s8572_s22 }
 0x6bb   : > { %v6238_v9 = vpop.permute.xlu2 %6237 }
 0x6bc   : > { %6280 = vst.msk [vmem:[%s8729_s18 + $0x28] sm:$0xff] %vm968_vm2, %v6238_v9 }
 0x6c1   : > { %6255 = vrot.lane.b32.xlu2 %v6097_v24, %s8572_s22  ;;  %s6333_s22 = scalar_lea.hbm %s12125_s26, %s7807_s9 }
 0x6c2   : > { %v6234_v36 = vpop.permute.xlu0 %6233 }
 0x6c3   : > { %6278 = vst.msk [vmem:[%s8729_s18 + $0x18] sm:$0xff] %vm968_vm2, %v6234_v36  ;;  %v6152_v44 = vpop.permute.xlu1 %6151 }
 0x6c4   : > { %6197 = vst.msk [vmem:[%s8727_s14 + $0x10] sm:$0xff] %vm968_vm2, %v6152_v44 }
 0x6ca   : > { %v6156_v27 = vpop.permute.xlu0 %6155 }
 0x6cb   : > { %6199 = vst.msk [vmem:[%s8727_s14 + $0x20] sm:$0xff] %vm968_vm2, %v6156_v27  ;;  %v6236_v15 = vpop.permute.xlu1 %6235  ;;  %v6160_v34 = vpop.permute.xlu2 %6159 }
 0x6cc   : > { %6279 = vst.msk [vmem:[%s8729_s18 + $0x20] sm:$0xff] %vm968_vm2, %v6236_v15 }
 0x6cd   : > { %6201 = vst.msk [vmem:[%s8727_s14 + $0x30] sm:$0xff] %vm968_vm2, %v6160_v34 }
 0x6d3   : > { %v6244_v49 = vpop.permute.xlu2 %6243 }
 0x6d4   : > { %6283 = vst.msk [vmem:[%s8729_s18 + $0x40] sm:$0xff] %vm968_vm2, %v6244_v49 }
 0x6da   : > { %v6240_v35 = vpop.permute.xlu0 %6239 }
 0x6db   : > { %6281 = vst.msk [vmem:[%s8729_s18 + $0x30] sm:$0xff] %vm968_vm2, %v6240_v35  ;;  %v6158_v53 = vpop.permute.xlu1 %6157 }
 0x6dc   : > { %6200 = vst.msk [vmem:[%s8727_s14 + $0x28] sm:$0xff] %vm968_vm2, %v6158_v53 }
 0x6e2   : > { %v6162_v55 = vpop.permute.xlu0 %6161 }
 0x6e3   : > { %6202 = vst.msk [vmem:[%s8727_s14 + $0x38] sm:$0xff] %vm968_vm2, %v6162_v55  ;;  %v6242_v14 = vpop.permute.xlu1 %6241  ;;  %v6166_v56 = vpop.permute.xlu2 %6165 }
 0x6e4   : > { %6282 = vst.msk [vmem:[%s8729_s18 + $0x38] sm:$0xff] %vm968_vm2, %v6242_v14 }
 0x6e5   : > { %6204 = vst.msk [vmem:[%s8727_s14 + $0x48] sm:$0xff] %vm968_vm2, %v6166_v56 }
 0x6eb   : > { %v6250_v18 = vpop.permute.xlu2 %6249 }
 0x6ec   : > { %6286 = vst.msk [vmem:[%s8729_s18 + $0x58] sm:$0xff] %vm968_vm2, %v6250_v18 }
 0x6f2   : > { %v6246_v30 = vpop.permute.xlu0 %6245 }
 0x6f3   : > { %6284 = vst.msk [vmem:[%s8729_s18 + $0x48] sm:$0xff] %vm968_vm2, %v6246_v30  ;;  %v6164_v19 = vpop.permute.xlu1 %6163 }
 0x6f4   : > { %6203 = vst.msk [vmem:[%s8727_s14 + $0x40] sm:$0xff] %vm968_vm2, %v6164_v19 }
 0x6fa   : > { %v6168_v20 = vpop.permute.xlu0 %6167 }
 0x6fb   : > { %6205 = vst.msk [vmem:[%s8727_s14 + $0x50] sm:$0xff] %vm968_vm2, %v6168_v20  ;;  %v6248_v41 = vpop.permute.xlu1 %6247 }
 0x6fc   : > { %6285 = vst.msk [vmem:[%s8729_s18 + $0x50] sm:$0xff] %vm968_vm2, %v6248_v41  ;;  %v6172_v43 = vpop.permute.xlu2 %6171 }
 0x6fd   : > { %6207 = vst.msk [vmem:[%s8727_s14 + $0x60] sm:$0xff] %vm968_vm2, %v6172_v43 }
 0x70b   : > { %v6252_v7 = vpop.permute.xlu0 %6251 }
 0x70c   : > { %v6170_v45 = vpop.permute.xlu1 %6169  ;;  %6287 = vst.msk [vmem:[%s8729_s18 + $0x60] sm:$0xff] %vm968_vm2, %v6252_v7 }
 0x70d   : > { %6206 = vst.msk [vmem:[%s8727_s14 + $0x58] sm:$0xff] %vm968_vm2, %v6170_v45 }
 0x713   : > { %v6178_v10 = vpop.permute.xlu2 %6177  ;;  %v6174_v57 = vpop.permute.xlu0 %6173 }
 0x714   : > { %6210 = vst.msk [vmem:[%s8727_s14 + $0x78] sm:$0xff] %vm968_vm2, %v6178_v10 }
 0x715   : > { %6208 = vst.msk [vmem:[%s8727_s14 + $0x68] sm:$0xff] %vm968_vm2, %v6174_v57 }
 0x71b   : > { %v6256_v46 = vpop.permute.xlu2 %6255 }
 0x71c   : > { %6289 = vst.msk [vmem:[%s8729_s18 + $0x70] sm:$0xff] %vm968_vm2, %v6256_v46 }
 0x722   : > { %v6258_v4 = vpop.permute.xlu0 %6257 }
 0x723   : > { %6290 = vst.msk [vmem:[%s8729_s18 + $0x78] sm:$0xff] %vm968_vm2, %v6258_v4  ;;  %v6176_v63 = vpop.permute.xlu1 %6175 }
 0x724   : > { %6209 = vst.msk [vmem:[%s8727_s14 + $0x70] sm:$0xff] %vm968_vm2, %v6176_v63 }
 0x725   : > { %8464 = shalt.err (!%p8461_p0)
}
 0x726   : > { %s8573_s14 = smov 128   ;;  %s8574_s9 = smov 8  }
 0x727   : > { %8128 = dma.vmem_to_hbm [thread:$0]  (%p8680_p9), %s6314_s13, 2048, %s6316_s27, %s6292_s12, %s8573_s14, %s8573_s14, %s8574_s9  }
 0x728   : > { %s6334_s28 = sshll.u32 %s8729_s18, 4  ;;  %s6336_s11 = sshll.u32 %s6333_s22, 4  ;;  %s6335_s28 = int_to_ptr.vmem [resolvable:$true] %s6334_s28  ;;  %s6337_s11 = int_to_ptr.hbm [resolvable:$true] %s6336_s11 }
 0x729   : > { %s6297_s26 = scalar_lea.sflag [#allocation10], %s8705_s24  ;;  %s8479_s7 = sshra.s32 %s6337_s11, 4  ;;  %s8480_s7 = int_to_ptr.hbm [resolvable:$true] %s8479_s7 }
 0x72a   : > { %s8481_s15 = scalar_lea.hbm %s8480_s7, 128  ;;  %s8485_s10 = scalar_lea.hbm %s12126_s20, 512 }
 0x72b   : > { %v6254_v38 = vpop.permute.xlu1 %6253  ;;  %p8482_p1 = scmp.ne.s32.totalorder %s8480_s7, %s8481_s15  ;;  %p8486_p3 = scmp.lt.s32.totalorder %s8480_s7, %s12126_s20 }
 0x72c   : > { %6288 = vst.msk [vmem:[%s8729_s18 + $0x68] sm:$0xff] %vm968_vm2, %v6254_v38  ;;  %p8487_p5 = scmp.lt.s32.totalorder %s8485_s10, %s8481_s15 }
 0x72d   : > { %p8483_p2 = pnand %p8482_p1, %p8680_p9 }
 0x72e   : > { %p8488_p6 = por %p8487_p5, %p8486_p3 }
 0x72f   : > { %p8484_p4 = pneg %p8483_p2 }
 0x731   : > { %p8489_p7 = pnand %p8488_p6, %p8484_p4 }
 0x733   : > { %8492 = shalt.err (!%p8489_p7)
}
 0x734   : > { %8129 = dma.vmem_to_hbm [thread:$0]  (%p8680_p9), %s6335_s28, 2048, %s6337_s11, %s6297_s26, %s8573_s14, %s8573_s14, %s8574_s9  }
 0x735 PF: > { %s12127_s24 = sld [smem:[#allocation14_spill]]  ;;  %p8144_p8 = scmp.ge.s32.totalorder %s8567_s8, 2 }
 0x737   : > { %p8137_p10 = pnand %p8144_p8, %p8686_p12 }
 0x739   : > { %p8138_p11 = pneg %p8137_p10 }
 0x73b   : > { %s6351_s22 = sand.u32 1, %s12127_s24  }
 0x73c   : > { %s6352_s12 = scalar_lea.sflag [#allocation7], %s6351_s22 }
 0x73d   : > { %8530 = dma.done.wait (%p8138_p11), %s6352_s12, 2048  }
 0x73e   : > { %8532 = vsyncadd (%p8138_p11), %s6352_s12, 4294965248  ;;  %s6362_s16 = scalar_lea.sflag [#allocation10], %s6351_s22 }
 0x73f   : > { %8534 = dma.done.wait (%p8138_p11), %s6362_s16, 2048  }
 0x740   : > { %8536 = vsyncadd (%p8138_p11), %s6362_s16, 4294965248  ;;  %s27_s8 = sadd.s32 1, %s8567_s8   ;;  %s12129_s17 = sld [smem:[#allocation15_spill]] }
 0x741   : > { %p24_p13 = scmp.ge.s32.totalorder %s27_s8, 6   ;;  %s12130_s26 = sld [smem:[#allocation19_spill]] }
 0x742   : > { %s12131_s19 = sld [smem:[#allocation16_spill]]  ;;  %s12133_s24 = smov %s8543_s25 }
 0x743   : > { %s12132_s14 = sld [smem:[#allocation17_spill]]  ;;  %s12135_s27 = smov %s8559_s29 }
 0x744   : > { %s12136_s28 = smov %s8563_s30 }
 0x745   :  { %26 = sbr.rel (!%p24_p13) target bundleno = 11 (0xb), region = 149 }
 0x746   : > { %s12134_s25 = smov %s12129_s17 }
 0x748   : > { %s12137_s29 = smov %s12131_s19 }
 0x749   : > { %s12138_s30 = smov %s12132_s14 }
 0x74a   :  { %6368 = vsyncpa [#allocation6], 1 }
 0x74b   :  { %6370 = vsyncpa [#allocation6 + $0x1], 1 }
 0x74c   :  { %6371 = vsyncpa [#allocation7], 1 }
 0x74d   :  { %6373 = vsyncpa [#allocation7 + $0x1], 1 }
 0x74e   :  { %6374 = vsyncpa [#allocation10], 1 }
 0x74f   :  { %6376 = vsyncpa [#allocation10 + $0x1], 1 }

</bundles_post_ra>
